<compile_context>
chip_gen: v7x
topology: tpu7x:2x2x1
jax: 0.10.0
libtpu: 0.0.40
codegen_flags: <defaults>
</compile_context>

<pallas_src>
import functools

import jax
import jax.numpy as jnp
from jax.experimental import pallas as pl
from jax.experimental.pallas import tpu as pltpu


# ---------------------------------------------------------------------------
# Pallas kernels
# ---------------------------------------------------------------------------
def _conv_bn_relu_hpool_kernel(x_ref, w_ref, b_ref, o_ref, *, H, W, Cin, Cout):
    """Fused 3x3 conv (stride 1, pad 1) + folded-BN bias + ReLU + the
    H-direction half of the 2x2 max pool, for one image.

      x_ref: (H+2, W+2, Cin)  f32    zero-padded NHWC input
      w_ref: (9, Cin, Cout)   bf16   conv weights with BN scale folded in
      b_ref: (1, Cout)        f32    folded BN bias
      o_ref: (H//2, W, Cout)  bf16   relu(conv + bias), max over row pairs
    """
    acc = jnp.zeros((H * W, Cout), jnp.float32)
    for k in range(9):                      # unrolled: 9 shifted taps (dy, dx)
        dy, dx = k // 3, k % 3
        tap = x_ref[dy:dy + H, dx:dx + W, :]                  # (H, W, Cin) f32
        lhs = tap.reshape(H * W, Cin).astype(jnp.bfloat16)    # MXU operand
        acc = acc + jnp.dot(lhs, w_ref[k],
                            preferred_element_type=jnp.float32)
    y = jnp.maximum(acc + b_ref[...], 0.0)                    # f32 epilogue
    y = y.reshape(H // 2, 2, W, Cout)                         # split row pairs
    o_ref[...] = jnp.maximum(y[:, 0], y[:, 1]).astype(o_ref.dtype)


def _mlp_kernel(x_ref, w1_ref, b1_ref, w2_ref, b2_ref, o_ref):
    """Fused classifier: relu(x @ w1 + b1) @ w2 + b2."""
    h = jnp.dot(x_ref[...], w1_ref[...], preferred_element_type=jnp.float32)
    h = jnp.maximum(h + b1_ref[...], 0.0)
    # TODO(synk): Dropout(p=0.5) is identity at inference; training-mode
    # (stochastic) dropout is not implemented.
    y = jnp.dot(h.astype(jnp.bfloat16), w2_ref[...],
                preferred_element_type=jnp.float32)
    o_ref[...] = y + b2_ref[...]


# ---------------------------------------------------------------------------
# pallas_call wrappers
# ---------------------------------------------------------------------------
def conv_bn_relu_hpool(xpad, w, bias):
    """xpad: (B, H+2, W+2, Cin) f32 -> (B, H//2, W, Cout) bf16 (H-pooled)."""
    B, Hp, Wp, Cin = xpad.shape
    H, W = Hp - 2, Wp - 2
    Cout = w.shape[-1]
    Ho = H // 2
    kernel = functools.partial(_conv_bn_relu_hpool_kernel,
                               H=H, W=W, Cin=Cin, Cout=Cout)
    return pl.pallas_call(
        kernel,
        out_shape=jax.ShapeDtypeStruct((B, Ho, W, Cout), jnp.bfloat16),
        grid_spec=pltpu.PrefetchScalarGridSpec(
            num_scalar_prefetch=0,
            grid=(B,),                       # 2 parallel steps -> both v7x TCs
            in_specs=[
                pl.BlockSpec((None, Hp, Wp, Cin), lambda b: (b, 0, 0, 0)),
                pl.BlockSpec((9, Cin, Cout), lambda b: (0, 0, 0)),
                pl.BlockSpec((1, Cout), lambda b: (0, 0)),
            ],
            out_specs=pl.BlockSpec((None, Ho, W, Cout), lambda b: (b, 0, 0, 0)),
        ),
        compiler_params=pltpu.CompilerParams(
            dimension_semantics=("parallel",)),
    )(xpad, w, bias)


def mlp(flat, w1, b1, w2, b2):
    """flat: (B, 2048) bf16 -> (B, 128) f32 padded logits (single VMEM block)."""
    B = flat.shape[0]
    Np = w2.shape[1]
    return pl.pallas_call(
        _mlp_kernel,
        out_shape=jax.ShapeDtypeStruct((B, Np), jnp.float32),
    )(flat, w1, b1, w2, b2)


# ---------------------------------------------------------------------------
# Parameters: PyTorch-semantics init + one-time prep (BN fold, layout, bf16)
# ---------------------------------------------------------------------------
def init_params(key, num_classes=10):
    def conv_block(k, cin, cout):
        kw, kb, kg, kbe, km, kv = jax.random.split(k, 6)
        fan_in = 9 * cin
        return dict(
            w=jax.random.normal(kw, (3, 3, cin, cout), jnp.float32)
              * (2.0 / fan_in) ** 0.5,                               # HWIO
            b=0.01 * jax.random.normal(kb, (cout,), jnp.float32),
            gamma=1.0 + 0.1 * jax.random.normal(kg, (cout,), jnp.float32),
            beta=0.1 * jax.random.normal(kbe, (cout,), jnp.float32),
            mean=0.1 * jax.random.normal(km, (cout,), jnp.float32),
            var=jnp.abs(jax.random.normal(kv, (cout,), jnp.float32)) + 0.5,
        )

    k1, k2, k3, k4, k5 = jax.random.split(key, 5)
    convs = [conv_block(k1, 3, 32),
             conv_block(k2, 32, 64),
             conv_block(k3, 64, 128)]
    kw1, kb1 = jax.random.split(k4)
    kw2, kb2 = jax.random.split(k5)
    # fc1 rows follow PyTorch's flatten order (C, H, W) of the (128,4,4) map.
    fc1 = dict(w=jax.random.normal(kw1, (128 * 4 * 4, 256), jnp.float32)
                 * (1.0 / (128 * 4 * 4)) ** 0.5,
               b=0.01 * jax.random.normal(kb1, (256,), jnp.float32))
    fc2 = dict(w=jax.random.normal(kw2, (256, num_classes), jnp.float32)
                 * (1.0 / 256) ** 0.5,
               b=0.01 * jax.random.normal(kb2, (num_classes,), jnp.float32))
    return dict(convs=convs, fc1=fc1, fc2=fc2)


def prepare_params(params, eps=1e-5):
    """One-time weight prep: fold eval-mode BN into the conv weights, pad
    conv1's K to a multiple of 8, permute fc1 to the NHWC flatten order,
    lane-pad fc2 to 128 outputs, cast matmul operands to bf16."""
    convs = []
    cin_pad = 0
    for i, blk in enumerate(params["convs"]):
        s = blk["gamma"] / jnp.sqrt(blk["var"] + eps)          # BN scale
        w = blk["w"] * s                                       # fold into weights
        bias = (blk["b"] - blk["mean"]) * s + blk["beta"]      # folded bias
        cin, cout = w.shape[2], w.shape[3]
        if i == 0 and cin % 8 != 0:                            # K: 3 -> 8
            cin_pad = 8 - cin % 8
            w = jnp.pad(w, ((0, 0), (0, 0), (0, cin_pad), (0, 0)))
            cin += cin_pad
        convs.append(dict(
            w=w.reshape(9, cin, cout).astype(jnp.bfloat16),    # tap-major
            b=bias.reshape(1, cout).astype(jnp.float32),
        ))

    # fc1: permute rows from NCHW flatten order (C,H,W) to the NHWC order the
    # conv stack produces, so no runtime transpose is needed.
    w1 = params["fc1"]["w"]                                    # (128*4*4, 256)
    w1 = (w1.reshape(128, 4, 4, 256).transpose(1, 2, 0, 3)
            .reshape(128 * 4 * 4, 256))
    fc1 = dict(w=w1.astype(jnp.bfloat16),
               b=params["fc1"]["b"].reshape(1, -1).astype(jnp.float32))

    # fc2: zero-pad outputs to 128 lanes; logits sliced back afterwards.
    w2, b2 = params["fc2"]["w"], params["fc2"]["b"]
    num_classes = w2.shape[1]
    npad = max(0, 128 - num_classes)
    fc2 = dict(w=jnp.pad(w2, ((0, 0), (0, npad))).astype(jnp.bfloat16),
               b=jnp.pad(b2, ((0, npad),)).reshape(1, -1).astype(jnp.float32))

    return dict(convs=convs, fc1=fc1, fc2=fc2,
                cin_pad=cin_pad, num_classes=num_classes)


# ---------------------------------------------------------------------------
# Forward pass
# ---------------------------------------------------------------------------
def simple_cnn_forward(prep, x_nchw):
    x = jnp.transpose(x_nchw, (0, 2, 3, 1)).astype(jnp.float32)  # NCHW -> NHWC
    x = jnp.pad(x, ((0, 0), (0, 0), (0, 0), (0, prep["cin_pad"])))
    for blk in prep["convs"]:
        xpad = jnp.pad(x, ((0, 0), (1, 1), (1, 1), (0, 0))).astype(jnp.float32)
        y = conv_bn_relu_hpool(xpad, blk["w"], blk["b"])     # (B, Ho, W, C) bf16
        # W-direction half of the 2x2 max pool (fuses with next stage's pad).
        x = jnp.maximum(y[:, :, 0::2, :], y[:, :, 1::2, :])  # (B, Ho, Wo, C)
    flat = x.reshape(x.shape[0], -1)                # NHWC flatten, fc1 matches
    out = mlp(flat, prep["fc1"]["w"], prep["fc1"]["b"],
              prep["fc2"]["w"], prep["fc2"]["b"])
    return out[:, :prep["num_classes"]]


if __name__ == "__main__":
    key = jax.random.PRNGKey(0)
    kp, kx = jax.random.split(key)
    params = init_params(kp, num_classes=10)
    prep = prepare_params(params)
    # Input implied by the classifier (128*4*4 after three 2x2 pools): 3x32x32.
    x = jax.random.normal(kx, (2, 3, 32, 32), jnp.float32)
    fwd = jax.jit(functools.partial(simple_cnn_forward, prep))
    logits = fwd(x)
    jax.block_until_ready(logits)
    assert logits.shape == (2, 10)
    print("KERNEL_OK")
</pallas_src>

<mosaic_0001>
module attributes {stable_mosaic.version = 11 : i64} {
  func.func @_conv_bn_relu_hpool_kernel(%arg0: i32, %arg1: memref<1x34x34x8xf32, #tpu.memory_space<vmem>>, %arg2: memref<9x8x32xbf16, #tpu.memory_space<vmem>>, %arg3: memref<1x32xf32, #tpu.memory_space<vmem>>, %arg4: memref<1x16x32x32xbf16, #tpu.memory_space<vmem>>) attributes {dimension_semantics = [#tpu.dimension_semantics<parallel>], iteration_bounds = array<i64: 2>, scalar_prefetch = 0 : i64, scratch_operands = 0 : i64, tpu.core_type = #tpu.core_type<tc>, window_params = [{transform_indices = @transform_0, window_bounds = array<i64: 1, 34, 34, 8>}, {pipeline_mode = #tpu.pipeline_mode<synchronous>, transform_indices = @transform_1, window_bounds = array<i64: 9, 8, 32>}, {pipeline_mode = #tpu.pipeline_mode<synchronous>, transform_indices = @transform_2, window_bounds = array<i64: 1, 32>}, {transform_indices = @transform_3, window_bounds = array<i64: 1, 16, 32, 32>}]} {
    %cst = arith.constant 0.000000e+00 : f32
    %0 = vector.broadcast %cst : f32 to vector<1024x32xf32>
    %c0 = arith.constant 0 : index
    %c0_0 = arith.constant 0 : index
    %c0_1 = arith.constant 0 : index
    %c0_2 = arith.constant 0 : index
    %1 = vector.load %arg1[%c0, %c0_0, %c0_1, %c0_2] : memref<1x34x34x8xf32, #tpu.memory_space<vmem>>, vector<1x32x32x8xf32>
    %2 = vector.shape_cast %1 : vector<1x32x32x8xf32> to vector<32x32x8xf32>
    %3 = vector.shape_cast %2 : vector<32x32x8xf32> to vector<1024x8xf32>
    %4 = arith.truncf %3 : vector<1024x8xf32> to vector<1024x8xbf16>
    %c0_3 = arith.constant 0 : index
    %c0_4 = arith.constant 0 : index
    %c0_5 = arith.constant 0 : index
    %5 = vector.load %arg2[%c0_3, %c0_4, %c0_5] : memref<9x8x32xbf16, #tpu.memory_space<vmem>>, vector<1x8x32xbf16>
    %6 = vector.shape_cast %5 : vector<1x8x32xbf16> to vector<8x32xbf16>
    %cst_6 = arith.constant dense<0.000000e+00> : vector<1024x32xf32>
    %7 = tpu.matmul %4, %6, %cst_6 {dimension_numbers = #tpu.dot_dimension_numbers<[1], [0], [0], [1], [0, 0, 1, 1], [], []>} : vector<1024x8xbf16>, vector<8x32xbf16>, vector<1024x32xf32> -> vector<1024x32xf32>
    %8 = arith.addf %0, %7 : vector<1024x32xf32>
    %c0_7 = arith.constant 0 : index
    %c0_8 = arith.constant 0 : index
    %c1 = arith.constant 1 : index
    %c0_9 = arith.constant 0 : index
    %9 = vector.load %arg1[%c0_7, %c0_8, %c1, %c0_9] : memref<1x34x34x8xf32, #tpu.memory_space<vmem>>, vector<1x32x32x8xf32>
    %10 = vector.shape_cast %9 : vector<1x32x32x8xf32> to vector<32x32x8xf32>
    %11 = vector.shape_cast %10 : vector<32x32x8xf32> to vector<1024x8xf32>
    %12 = arith.truncf %11 : vector<1024x8xf32> to vector<1024x8xbf16>
    %c1_10 = arith.constant 1 : index
    %c0_11 = arith.constant 0 : index
    %c0_12 = arith.constant 0 : index
    %13 = vector.load %arg2[%c1_10, %c0_11, %c0_12] : memref<9x8x32xbf16, #tpu.memory_space<vmem>>, vector<1x8x32xbf16>
    %14 = vector.shape_cast %13 : vector<1x8x32xbf16> to vector<8x32xbf16>
    %cst_13 = arith.constant dense<0.000000e+00> : vector<1024x32xf32>
    %15 = tpu.matmul %12, %14, %cst_13 {dimension_numbers = #tpu.dot_dimension_numbers<[1], [0], [0], [1], [0, 0, 1, 1], [], []>} : vector<1024x8xbf16>, vector<8x32xbf16>, vector<1024x32xf32> -> vector<1024x32xf32>
    %16 = arith.addf %8, %15 : vector<1024x32xf32>
    %c0_14 = arith.constant 0 : index
    %c0_15 = arith.constant 0 : index
    %c2 = arith.constant 2 : index
    %c0_16 = arith.constant 0 : index
    %17 = vector.load %arg1[%c0_14, %c0_15, %c2, %c0_16] : memref<1x34x34x8xf32, #tpu.memory_space<vmem>>, vector<1x32x32x8xf32>
    %18 = vector.shape_cast %17 : vector<1x32x32x8xf32> to vector<32x32x8xf32>
    %19 = vector.shape_cast %18 : vector<32x32x8xf32> to vector<1024x8xf32>
    %20 = arith.truncf %19 : vector<1024x8xf32> to vector<1024x8xbf16>
    %c2_17 = arith.constant 2 : index
    %c0_18 = arith.constant 0 : index
    %c0_19 = arith.constant 0 : index
    %21 = vector.load %arg2[%c2_17, %c0_18, %c0_19] : memref<9x8x32xbf16, #tpu.memory_space<vmem>>, vector<1x8x32xbf16>
    %22 = vector.shape_cast %21 : vector<1x8x32xbf16> to vector<8x32xbf16>
    %cst_20 = arith.constant dense<0.000000e+00> : vector<1024x32xf32>
    %23 = tpu.matmul %20, %22, %cst_20 {dimension_numbers = #tpu.dot_dimension_numbers<[1], [0], [0], [1], [0, 0, 1, 1], [], []>} : vector<1024x8xbf16>, vector<8x32xbf16>, vector<1024x32xf32> -> vector<1024x32xf32>
    %24 = arith.addf %16, %23 : vector<1024x32xf32>
    %c0_21 = arith.constant 0 : index
    %c1_22 = arith.constant 1 : index
    %c0_23 = arith.constant 0 : index
    %c0_24 = arith.constant 0 : index
    %25 = vector.load %arg1[%c0_21, %c1_22, %c0_23, %c0_24] : memref<1x34x34x8xf32, #tpu.memory_space<vmem>>, vector<1x32x32x8xf32>
    %26 = vector.shape_cast %25 : vector<1x32x32x8xf32> to vector<32x32x8xf32>
    %27 = vector.shape_cast %26 : vector<32x32x8xf32> to vector<1024x8xf32>
    %28 = arith.truncf %27 : vector<1024x8xf32> to vector<1024x8xbf16>
    %c3 = arith.constant 3 : index
    %c0_25 = arith.constant 0 : index
    %c0_26 = arith.constant 0 : index
    %29 = vector.load %arg2[%c3, %c0_25, %c0_26] : memref<9x8x32xbf16, #tpu.memory_space<vmem>>, vector<1x8x32xbf16>
    %30 = vector.shape_cast %29 : vector<1x8x32xbf16> to vector<8x32xbf16>
    %cst_27 = arith.constant dense<0.000000e+00> : vector<1024x32xf32>
    %31 = tpu.matmul %28, %30, %cst_27 {dimension_numbers = #tpu.dot_dimension_numbers<[1], [0], [0], [1], [0, 0, 1, 1], [], []>} : vector<1024x8xbf16>, vector<8x32xbf16>, vector<1024x32xf32> -> vector<1024x32xf32>
    %32 = arith.addf %24, %31 : vector<1024x32xf32>
    %c0_28 = arith.constant 0 : index
    %c1_29 = arith.constant 1 : index
    %c1_30 = arith.constant 1 : index
    %c0_31 = arith.constant 0 : index
    %33 = vector.load %arg1[%c0_28, %c1_29, %c1_30, %c0_31] : memref<1x34x34x8xf32, #tpu.memory_space<vmem>>, vector<1x32x32x8xf32>
    %34 = vector.shape_cast %33 : vector<1x32x32x8xf32> to vector<32x32x8xf32>
    %35 = vector.shape_cast %34 : vector<32x32x8xf32> to vector<1024x8xf32>
    %36 = arith.truncf %35 : vector<1024x8xf32> to vector<1024x8xbf16>
    %c4 = arith.constant 4 : index
    %c0_32 = arith.constant 0 : index
    %c0_33 = arith.constant 0 : index
    %37 = vector.load %arg2[%c4, %c0_32, %c0_33] : memref<9x8x32xbf16, #tpu.memory_space<vmem>>, vector<1x8x32xbf16>
    %38 = vector.shape_cast %37 : vector<1x8x32xbf16> to vector<8x32xbf16>
    %cst_34 = arith.constant dense<0.000000e+00> : vector<1024x32xf32>
    %39 = tpu.matmul %36, %38, %cst_34 {dimension_numbers = #tpu.dot_dimension_numbers<[1], [0], [0], [1], [0, 0, 1, 1], [], []>} : vector<1024x8xbf16>, vector<8x32xbf16>, vector<1024x32xf32> -> vector<1024x32xf32>
    %40 = arith.addf %32, %39 : vector<1024x32xf32>
    %c0_35 = arith.constant 0 : index
    %c1_36 = arith.constant 1 : index
    %c2_37 = arith.constant 2 : index
    %c0_38 = arith.constant 0 : index
    %41 = vector.load %arg1[%c0_35, %c1_36, %c2_37, %c0_38] : memref<1x34x34x8xf32, #tpu.memory_space<vmem>>, vector<1x32x32x8xf32>
    %42 = vector.shape_cast %41 : vector<1x32x32x8xf32> to vector<32x32x8xf32>
    %43 = vector.shape_cast %42 : vector<32x32x8xf32> to vector<1024x8xf32>
    %44 = arith.truncf %43 : vector<1024x8xf32> to vector<1024x8xbf16>
    %c5 = arith.constant 5 : index
    %c0_39 = arith.constant 0 : index
    %c0_40 = arith.constant 0 : index
    %45 = vector.load %arg2[%c5, %c0_39, %c0_40] : memref<9x8x32xbf16, #tpu.memory_space<vmem>>, vector<1x8x32xbf16>
    %46 = vector.shape_cast %45 : vector<1x8x32xbf16> to vector<8x32xbf16>
    %cst_41 = arith.constant dense<0.000000e+00> : vector<1024x32xf32>
    %47 = tpu.matmul %44, %46, %cst_41 {dimension_numbers = #tpu.dot_dimension_numbers<[1], [0], [0], [1], [0, 0, 1, 1], [], []>} : vector<1024x8xbf16>, vector<8x32xbf16>, vector<1024x32xf32> -> vector<1024x32xf32>
    %48 = arith.addf %40, %47 : vector<1024x32xf32>
    %c0_42 = arith.constant 0 : index
    %c2_43 = arith.constant 2 : index
    %c0_44 = arith.constant 0 : index
    %c0_45 = arith.constant 0 : index
    %49 = vector.load %arg1[%c0_42, %c2_43, %c0_44, %c0_45] : memref<1x34x34x8xf32, #tpu.memory_space<vmem>>, vector<1x32x32x8xf32>
    %50 = vector.shape_cast %49 : vector<1x32x32x8xf32> to vector<32x32x8xf32>
    %51 = vector.shape_cast %50 : vector<32x32x8xf32> to vector<1024x8xf32>
    %52 = arith.truncf %51 : vector<1024x8xf32> to vector<1024x8xbf16>
    %c6 = arith.constant 6 : index
    %c0_46 = arith.constant 0 : index
    %c0_47 = arith.constant 0 : index
    %53 = vector.load %arg2[%c6, %c0_46, %c0_47] : memref<9x8x32xbf16, #tpu.memory_space<vmem>>, vector<1x8x32xbf16>
    %54 = vector.shape_cast %53 : vector<1x8x32xbf16> to vector<8x32xbf16>
    %cst_48 = arith.constant dense<0.000000e+00> : vector<1024x32xf32>
    %55 = tpu.matmul %52, %54, %cst_48 {dimension_numbers = #tpu.dot_dimension_numbers<[1], [0], [0], [1], [0, 0, 1, 1], [], []>} : vector<1024x8xbf16>, vector<8x32xbf16>, vector<1024x32xf32> -> vector<1024x32xf32>
    %56 = arith.addf %48, %55 : vector<1024x32xf32>
    %c0_49 = arith.constant 0 : index
    %c2_50 = arith.constant 2 : index
    %c1_51 = arith.constant 1 : index
    %c0_52 = arith.constant 0 : index
    %57 = vector.load %arg1[%c0_49, %c2_50, %c1_51, %c0_52] : memref<1x34x34x8xf32, #tpu.memory_space<vmem>>, vector<1x32x32x8xf32>
    %58 = vector.shape_cast %57 : vector<1x32x32x8xf32> to vector<32x32x8xf32>
    %59 = vector.shape_cast %58 : vector<32x32x8xf32> to vector<1024x8xf32>
    %60 = arith.truncf %59 : vector<1024x8xf32> to vector<1024x8xbf16>
    %c7 = arith.constant 7 : index
    %c0_53 = arith.constant 0 : index
    %c0_54 = arith.constant 0 : index
    %61 = vector.load %arg2[%c7, %c0_53, %c0_54] : memref<9x8x32xbf16, #tpu.memory_space<vmem>>, vector<1x8x32xbf16>
    %62 = vector.shape_cast %61 : vector<1x8x32xbf16> to vector<8x32xbf16>
    %cst_55 = arith.constant dense<0.000000e+00> : vector<1024x32xf32>
    %63 = tpu.matmul %60, %62, %cst_55 {dimension_numbers = #tpu.dot_dimension_numbers<[1], [0], [0], [1], [0, 0, 1, 1], [], []>} : vector<1024x8xbf16>, vector<8x32xbf16>, vector<1024x32xf32> -> vector<1024x32xf32>
    %64 = arith.addf %56, %63 : vector<1024x32xf32>
    %c0_56 = arith.constant 0 : index
    %c2_57 = arith.constant 2 : index
    %c2_58 = arith.constant 2 : index
    %c0_59 = arith.constant 0 : index
    %65 = vector.load %arg1[%c0_56, %c2_57, %c2_58, %c0_59] : memref<1x34x34x8xf32, #tpu.memory_space<vmem>>, vector<1x32x32x8xf32>
    %66 = vector.shape_cast %65 : vector<1x32x32x8xf32> to vector<32x32x8xf32>
    %67 = vector.shape_cast %66 : vector<32x32x8xf32> to vector<1024x8xf32>
    %68 = arith.truncf %67 : vector<1024x8xf32> to vector<1024x8xbf16>
    %c8 = arith.constant 8 : index
    %c0_60 = arith.constant 0 : index
    %c0_61 = arith.constant 0 : index
    %69 = vector.load %arg2[%c8, %c0_60, %c0_61] : memref<9x8x32xbf16, #tpu.memory_space<vmem>>, vector<1x8x32xbf16>
    %70 = vector.shape_cast %69 : vector<1x8x32xbf16> to vector<8x32xbf16>
    %cst_62 = arith.constant dense<0.000000e+00> : vector<1024x32xf32>
    %71 = tpu.matmul %68, %70, %cst_62 {dimension_numbers = #tpu.dot_dimension_numbers<[1], [0], [0], [1], [0, 0, 1, 1], [], []>} : vector<1024x8xbf16>, vector<8x32xbf16>, vector<1024x32xf32> -> vector<1024x32xf32>
    %72 = arith.addf %64, %71 : vector<1024x32xf32>
    %c0_63 = arith.constant 0 : index
    %c0_64 = arith.constant 0 : index
    %73 = vector.load %arg3[%c0_63, %c0_64] : memref<1x32xf32, #tpu.memory_space<vmem>>, vector<1x32xf32>
    %74 = vector.broadcast %73 : vector<1x32xf32> to vector<1024x32xf32>
    %75 = arith.addf %72, %74 : vector<1024x32xf32>
    %cst_65 = arith.constant 0.000000e+00 : f32
    %76 = vector.broadcast %cst_65 : f32 to vector<1024x32xf32>
    %77 = arith.maximumf %75, %76 : vector<1024x32xf32>
    %78 = vector.shape_cast %77 : vector<1024x32xf32> to vector<16x2x32x32xf32>
    %79 = vector.extract_strided_slice %78 {offsets = [0, 0, 0, 0], sizes = [16, 1, 32, 32], strides = [1, 1, 1, 1]} : vector<16x2x32x32xf32> to vector<16x1x32x32xf32>
    %80 = vector.shape_cast %79 : vector<16x1x32x32xf32> to vector<16x32x32xf32>
    %81 = vector.extract_strided_slice %78 {offsets = [0, 1, 0, 0], sizes = [16, 1, 32, 32], strides = [1, 1, 1, 1]} : vector<16x2x32x32xf32> to vector<16x1x32x32xf32>
    %82 = vector.shape_cast %81 : vector<16x1x32x32xf32> to vector<16x32x32xf32>
    %83 = arith.maximumf %80, %82 : vector<16x32x32xf32>
    %84 = arith.truncf %83 : vector<16x32x32xf32> to vector<16x32x32xbf16>
    %c0_66 = arith.constant 0 : index
    %c0_67 = arith.constant 0 : index
    %c0_68 = arith.constant 0 : index
    %c0_69 = arith.constant 0 : index
    %85 = vector.load %arg4[%c0_66, %c0_67, %c0_68, %c0_69] : memref<1x16x32x32xbf16, #tpu.memory_space<vmem>>, vector<1x16x32x32xbf16>
    %86 = vector.shape_cast %85 : vector<1x16x32x32xbf16> to vector<16x32x32xbf16>
    %87 = vector.shape_cast %84 : vector<16x32x32xbf16> to vector<1x16x32x32xbf16>
    tpu.vector_store %arg4[%c0_66, %c0_67, %c0_68, %c0_69], %87 {strides = array<i32>} : memref<1x16x32x32xbf16, #tpu.memory_space<vmem>>, vector<1x16x32x32xbf16>,
    return
  }
  func.func @transform_0(%arg0: i32) -> (i32, i32, i32, i32) {
    %c0_i32 = arith.constant 0 : i32
    %c0_i32_0 = arith.constant 0 : i32
    %c0_i32_1 = arith.constant 0 : i32
    %c0_i32_2 = arith.constant 0 : i32
    return %arg0, %c0_i32, %c0_i32_0, %c0_i32_1 : i32, i32, i32, i32
  }
  func.func @transform_1(%arg0: i32) -> (i32, i32, i32) {
    %c0_i32 = arith.constant 0 : i32
    %c0_i32_0 = arith.constant 0 : i32
    %c0_i32_1 = arith.constant 0 : i32
    %c0_i32_2 = arith.constant 0 : i32
    return %c0_i32, %c0_i32_0, %c0_i32_1 : i32, i32, i32
  }
  func.func @transform_2(%arg0: i32) -> (i32, i32) {
    %c0_i32 = arith.constant 0 : i32
    %c0_i32_0 = arith.constant 0 : i32
    %c0_i32_1 = arith.constant 0 : i32
    return %c0_i32, %c0_i32_0 : i32, i32
  }
  func.func @transform_3(%arg0: i32) -> (i32, i32, i32, i32) {
    %c0_i32 = arith.constant 0 : i32
    %c0_i32_0 = arith.constant 0 : i32
    %c0_i32_1 = arith.constant 0 : i32
    %c0_i32_2 = arith.constant 0 : i32
    return %arg0, %c0_i32, %c0_i32_0, %c0_i32_1 : i32, i32, i32, i32
  }
}

module attributes {stable_mosaic.version = 11 : i64} {
  func.func @_conv_bn_relu_hpool_kernel(%arg0: i32, %arg1: memref<1x18x18x32xf32, #tpu.memory_space<vmem>>, %arg2: memref<9x32x64xbf16, #tpu.memory_space<vmem>>, %arg3: memref<1x64xf32, #tpu.memory_space<vmem>>, %arg4: memref<1x8x16x64xbf16, #tpu.memory_space<vmem>>) attributes {dimension_semantics = [#tpu.dimension_semantics<parallel>], iteration_bounds = array<i64: 2>, scalar_prefetch = 0 : i64, scratch_operands = 0 : i64, tpu.core_type = #tpu.core_type<tc>, window_params = [{transform_indices = @transform_0, window_bounds = array<i64: 1, 18, 18, 32>}, {pipeline_mode = #tpu.pipeline_mode<synchronous>, transform_indices = @transform_1, window_bounds = array<i64: 9, 32, 64>}, {pipeline_mode = #tpu.pipeline_mode<synchronous>, transform_indices = @transform_2, window_bounds = array<i64: 1, 64>}, {transform_indices = @transform_3, window_bounds = array<i64: 1, 8, 16, 64>}]} {
    %cst = arith.constant 0.000000e+00 : f32
    %0 = vector.broadcast %cst : f32 to vector<256x64xf32>
    %c0 = arith.constant 0 : index
    %c0_0 = arith.constant 0 : index
    %c0_1 = arith.constant 0 : index
    %c0_2 = arith.constant 0 : index
    %1 = vector.load %arg1[%c0, %c0_0, %c0_1, %c0_2] : memref<1x18x18x32xf32, #tpu.memory_space<vmem>>, vector<1x16x16x32xf32>
    %2 = vector.shape_cast %1 : vector<1x16x16x32xf32> to vector<16x16x32xf32>
    %3 = vector.shape_cast %2 : vector<16x16x32xf32> to vector<256x32xf32>
    %4 = arith.truncf %3 : vector<256x32xf32> to vector<256x32xbf16>
    %c0_3 = arith.constant 0 : index
    %c0_4 = arith.constant 0 : index
    %c0_5 = arith.constant 0 : index
    %5 = vector.load %arg2[%c0_3, %c0_4, %c0_5] : memref<9x32x64xbf16, #tpu.memory_space<vmem>>, vector<1x32x64xbf16>
    %6 = vector.shape_cast %5 : vector<1x32x64xbf16> to vector<32x64xbf16>
    %cst_6 = arith.constant dense<0.000000e+00> : vector<256x64xf32>
    %7 = tpu.matmul %4, %6, %cst_6 {dimension_numbers = #tpu.dot_dimension_numbers<[1], [0], [0], [1], [0, 0, 1, 1], [], []>} : vector<256x32xbf16>, vector<32x64xbf16>, vector<256x64xf32> -> vector<256x64xf32>
    %8 = arith.addf %0, %7 : vector<256x64xf32>
    %c0_7 = arith.constant 0 : index
    %c0_8 = arith.constant 0 : index
    %c1 = arith.constant 1 : index
    %c0_9 = arith.constant 0 : index
    %9 = vector.load %arg1[%c0_7, %c0_8, %c1, %c0_9] : memref<1x18x18x32xf32, #tpu.memory_space<vmem>>, vector<1x16x16x32xf32>
    %10 = vector.shape_cast %9 : vector<1x16x16x32xf32> to vector<16x16x32xf32>
    %11 = vector.shape_cast %10 : vector<16x16x32xf32> to vector<256x32xf32>
    %12 = arith.truncf %11 : vector<256x32xf32> to vector<256x32xbf16>
    %c1_10 = arith.constant 1 : index
    %c0_11 = arith.constant 0 : index
    %c0_12 = arith.constant 0 : index
    %13 = vector.load %arg2[%c1_10, %c0_11, %c0_12] : memref<9x32x64xbf16, #tpu.memory_space<vmem>>, vector<1x32x64xbf16>
    %14 = vector.shape_cast %13 : vector<1x32x64xbf16> to vector<32x64xbf16>
    %cst_13 = arith.constant dense<0.000000e+00> : vector<256x64xf32>
    %15 = tpu.matmul %12, %14, %cst_13 {dimension_numbers = #tpu.dot_dimension_numbers<[1], [0], [0], [1], [0, 0, 1, 1], [], []>} : vector<256x32xbf16>, vector<32x64xbf16>, vector<256x64xf32> -> vector<256x64xf32>
    %16 = arith.addf %8, %15 : vector<256x64xf32>
    %c0_14 = arith.constant 0 : index
    %c0_15 = arith.constant 0 : index
    %c2 = arith.constant 2 : index
    %c0_16 = arith.constant 0 : index
    %17 = vector.load %arg1[%c0_14, %c0_15, %c2, %c0_16] : memref<1x18x18x32xf32, #tpu.memory_space<vmem>>, vector<1x16x16x32xf32>
    %18 = vector.shape_cast %17 : vector<1x16x16x32xf32> to vector<16x16x32xf32>
    %19 = vector.shape_cast %18 : vector<16x16x32xf32> to vector<256x32xf32>
    %20 = arith.truncf %19 : vector<256x32xf32> to vector<256x32xbf16>
    %c2_17 = arith.constant 2 : index
    %c0_18 = arith.constant 0 : index
    %c0_19 = arith.constant 0 : index
    %21 = vector.load %arg2[%c2_17, %c0_18, %c0_19] : memref<9x32x64xbf16, #tpu.memory_space<vmem>>, vector<1x32x64xbf16>
    %22 = vector.shape_cast %21 : vector<1x32x64xbf16> to vector<32x64xbf16>
    %cst_20 = arith.constant dense<0.000000e+00> : vector<256x64xf32>
    %23 = tpu.matmul %20, %22, %cst_20 {dimension_numbers = #tpu.dot_dimension_numbers<[1], [0], [0], [1], [0, 0, 1, 1], [], []>} : vector<256x32xbf16>, vector<32x64xbf16>, vector<256x64xf32> -> vector<256x64xf32>
    %24 = arith.addf %16, %23 : vector<256x64xf32>
    %c0_21 = arith.constant 0 : index
    %c1_22 = arith.constant 1 : index
    %c0_23 = arith.constant 0 : index
    %c0_24 = arith.constant 0 : index
    %25 = vector.load %arg1[%c0_21, %c1_22, %c0_23, %c0_24] : memref<1x18x18x32xf32, #tpu.memory_space<vmem>>, vector<1x16x16x32xf32>
    %26 = vector.shape_cast %25 : vector<1x16x16x32xf32> to vector<16x16x32xf32>
    %27 = vector.shape_cast %26 : vector<16x16x32xf32> to vector<256x32xf32>
    %28 = arith.truncf %27 : vector<256x32xf32> to vector<256x32xbf16>
    %c3 = arith.constant 3 : index
    %c0_25 = arith.constant 0 : index
    %c0_26 = arith.constant 0 : index
    %29 = vector.load %arg2[%c3, %c0_25, %c0_26] : memref<9x32x64xbf16, #tpu.memory_space<vmem>>, vector<1x32x64xbf16>
    %30 = vector.shape_cast %29 : vector<1x32x64xbf16> to vector<32x64xbf16>
    %cst_27 = arith.constant dense<0.000000e+00> : vector<256x64xf32>
    %31 = tpu.matmul %28, %30, %cst_27 {dimension_numbers = #tpu.dot_dimension_numbers<[1], [0], [0], [1], [0, 0, 1, 1], [], []>} : vector<256x32xbf16>, vector<32x64xbf16>, vector<256x64xf32> -> vector<256x64xf32>
    %32 = arith.addf %24, %31 : vector<256x64xf32>
    %c0_28 = arith.constant 0 : index
    %c1_29 = arith.constant 1 : index
    %c1_30 = arith.constant 1 : index
    %c0_31 = arith.constant 0 : index
    %33 = vector.load %arg1[%c0_28, %c1_29, %c1_30, %c0_31] : memref<1x18x18x32xf32, #tpu.memory_space<vmem>>, vector<1x16x16x32xf32>
    %34 = vector.shape_cast %33 : vector<1x16x16x32xf32> to vector<16x16x32xf32>
    %35 = vector.shape_cast %34 : vector<16x16x32xf32> to vector<256x32xf32>
    %36 = arith.truncf %35 : vector<256x32xf32> to vector<256x32xbf16>
    %c4 = arith.constant 4 : index
    %c0_32 = arith.constant 0 : index
    %c0_33 = arith.constant 0 : index
    %37 = vector.load %arg2[%c4, %c0_32, %c0_33] : memref<9x32x64xbf16, #tpu.memory_space<vmem>>, vector<1x32x64xbf16>
    %38 = vector.shape_cast %37 : vector<1x32x64xbf16> to vector<32x64xbf16>
    %cst_34 = arith.constant dense<0.000000e+00> : vector<256x64xf32>
    %39 = tpu.matmul %36, %38, %cst_34 {dimension_numbers = #tpu.dot_dimension_numbers<[1], [0], [0], [1], [0, 0, 1, 1], [], []>} : vector<256x32xbf16>, vector<32x64xbf16>, vector<256x64xf32> -> vector<256x64xf32>
    %40 = arith.addf %32, %39 : vector<256x64xf32>
    %c0_35 = arith.constant 0 : index
    %c1_36 = arith.constant 1 : index
    %c2_37 = arith.constant 2 : index
    %c0_38 = arith.constant 0 : index
    %41 = vector.load %arg1[%c0_35, %c1_36, %c2_37, %c0_38] : memref<1x18x18x32xf32, #tpu.memory_space<vmem>>, vector<1x16x16x32xf32>
    %42 = vector.shape_cast %41 : vector<1x16x16x32xf32> to vector<16x16x32xf32>
    %43 = vector.shape_cast %42 : vector<16x16x32xf32> to vector<256x32xf32>
    %44 = arith.truncf %43 : vector<256x32xf32> to vector<256x32xbf16>
    %c5 = arith.constant 5 : index
    %c0_39 = arith.constant 0 : index
    %c0_40 = arith.constant 0 : index
    %45 = vector.load %arg2[%c5, %c0_39, %c0_40] : memref<9x32x64xbf16, #tpu.memory_space<vmem>>, vector<1x32x64xbf16>
    %46 = vector.shape_cast %45 : vector<1x32x64xbf16> to vector<32x64xbf16>
    %cst_41 = arith.constant dense<0.000000e+00> : vector<256x64xf32>
    %47 = tpu.matmul %44, %46, %cst_41 {dimension_numbers = #tpu.dot_dimension_numbers<[1], [0], [0], [1], [0, 0, 1, 1], [], []>} : vector<256x32xbf16>, vector<32x64xbf16>, vector<256x64xf32> -> vector<256x64xf32>
    %48 = arith.addf %40, %47 : vector<256x64xf32>
    %c0_42 = arith.constant 0 : index
    %c2_43 = arith.constant 2 : index
    %c0_44 = arith.constant 0 : index
    %c0_45 = arith.constant 0 : index
    %49 = vector.load %arg1[%c0_42, %c2_43, %c0_44, %c0_45] : memref<1x18x18x32xf32, #tpu.memory_space<vmem>>, vector<1x16x16x32xf32>
    %50 = vector.shape_cast %49 : vector<1x16x16x32xf32> to vector<16x16x32xf32>
    %51 = vector.shape_cast %50 : vector<16x16x32xf32> to vector<256x32xf32>
    %52 = arith.truncf %51 : vector<256x32xf32> to vector<256x32xbf16>
    %c6 = arith.constant 6 : index
    %c0_46 = arith.constant 0 : index
    %c0_47 = arith.constant 0 : index
    %53 = vector.load %arg2[%c6, %c0_46, %c0_47] : memref<9x32x64xbf16, #tpu.memory_space<vmem>>, vector<1x32x64xbf16>
    %54 = vector.shape_cast %53 : vector<1x32x64xbf16> to vector<32x64xbf16>
    %cst_48 = arith.constant dense<0.000000e+00> : vector<256x64xf32>
    %55 = tpu.matmul %52, %54, %cst_48 {dimension_numbers = #tpu.dot_dimension_numbers<[1], [0], [0], [1], [0, 0, 1, 1], [], []>} : vector<256x32xbf16>, vector<32x64xbf16>, vector<256x64xf32> -> vector<256x64xf32>
    %56 = arith.addf %48, %55 : vector<256x64xf32>
    %c0_49 = arith.constant 0 : index
    %c2_50 = arith.constant 2 : index
    %c1_51 = arith.constant 1 : index
    %c0_52 = arith.constant 0 : index
    %57 = vector.load %arg1[%c0_49, %c2_50, %c1_51, %c0_52] : memref<1x18x18x32xf32, #tpu.memory_space<vmem>>, vector<1x16x16x32xf32>
    %58 = vector.shape_cast %57 : vector<1x16x16x32xf32> to vector<16x16x32xf32>
    %59 = vector.shape_cast %58 : vector<16x16x32xf32> to vector<256x32xf32>
    %60 = arith.truncf %59 : vector<256x32xf32> to vector<256x32xbf16>
    %c7 = arith.constant 7 : index
    %c0_53 = arith.constant 0 : index
    %c0_54 = arith.constant 0 : index
    %61 = vector.load %arg2[%c7, %c0_53, %c0_54] : memref<9x32x64xbf16, #tpu.memory_space<vmem>>, vector<1x32x64xbf16>
    %62 = vector.shape_cast %61 : vector<1x32x64xbf16> to vector<32x64xbf16>
    %cst_55 = arith.constant dense<0.000000e+00> : vector<256x64xf32>
    %63 = tpu.matmul %60, %62, %cst_55 {dimension_numbers = #tpu.dot_dimension_numbers<[1], [0], [0], [1], [0, 0, 1, 1], [], []>} : vector<256x32xbf16>, vector<32x64xbf16>, vector<256x64xf32> -> vector<256x64xf32>
    %64 = arith.addf %56, %63 : vector<256x64xf32>
    %c0_56 = arith.constant 0 : index
    %c2_57 = arith.constant 2 : index
    %c2_58 = arith.constant 2 : index
    %c0_59 = arith.constant 0 : index
    %65 = vector.load %arg1[%c0_56, %c2_57, %c2_58, %c0_59] : memref<1x18x18x32xf32, #tpu.memory_space<vmem>>, vector<1x16x16x32xf32>
    %66 = vector.shape_cast %65 : vector<1x16x16x32xf32> to vector<16x16x32xf32>
    %67 = vector.shape_cast %66 : vector<16x16x32xf32> to vector<256x32xf32>
    %68 = arith.truncf %67 : vector<256x32xf32> to vector<256x32xbf16>
    %c8 = arith.constant 8 : index
    %c0_60 = arith.constant 0 : index
    %c0_61 = arith.constant 0 : index
    %69 = vector.load %arg2[%c8, %c0_60, %c0_61] : memref<9x32x64xbf16, #tpu.memory_space<vmem>>, vector<1x32x64xbf16>
    %70 = vector.shape_cast %69 : vector<1x32x64xbf16> to vector<32x64xbf16>
    %cst_62 = arith.constant dense<0.000000e+00> : vector<256x64xf32>
    %71 = tpu.matmul %68, %70, %cst_62 {dimension_numbers = #tpu.dot_dimension_numbers<[1], [0], [0], [1], [0, 0, 1, 1], [], []>} : vector<256x32xbf16>, vector<32x64xbf16>, vector<256x64xf32> -> vector<256x64xf32>
    %72 = arith.addf %64, %71 : vector<256x64xf32>
    %c0_63 = arith.constant 0 : index
    %c0_64 = arith.constant 0 : index
    %73 = vector.load %arg3[%c0_63, %c0_64] : memref<1x64xf32, #tpu.memory_space<vmem>>, vector<1x64xf32>
    %74 = vector.broadcast %73 : vector<1x64xf32> to vector<256x64xf32>
    %75 = arith.addf %72, %74 : vector<256x64xf32>
    %cst_65 = arith.constant 0.000000e+00 : f32
    %76 = vector.broadcast %cst_65 : f32 to vector<256x64xf32>
    %77 = arith.maximumf %75, %76 : vector<256x64xf32>
    %78 = vector.shape_cast %77 : vector<256x64xf32> to vector<8x2x16x64xf32>
    %79 = vector.extract_strided_slice %78 {offsets = [0, 0, 0, 0], sizes = [8, 1, 16, 64], strides = [1, 1, 1, 1]} : vector<8x2x16x64xf32> to vector<8x1x16x64xf32>
    %80 = vector.shape_cast %79 : vector<8x1x16x64xf32> to vector<8x16x64xf32>
    %81 = vector.extract_strided_slice %78 {offsets = [0, 1, 0, 0], sizes = [8, 1, 16, 64], strides = [1, 1, 1, 1]} : vector<8x2x16x64xf32> to vector<8x1x16x64xf32>
    %82 = vector.shape_cast %81 : vector<8x1x16x64xf32> to vector<8x16x64xf32>
    %83 = arith.maximumf %80, %82 : vector<8x16x64xf32>
    %84 = arith.truncf %83 : vector<8x16x64xf32> to vector<8x16x64xbf16>
    %c0_66 = arith.constant 0 : index
    %c0_67 = arith.constant 0 : index
    %c0_68 = arith.constant 0 : index
    %c0_69 = arith.constant 0 : index
    %85 = vector.load %arg4[%c0_66, %c0_67, %c0_68, %c0_69] : memref<1x8x16x64xbf16, #tpu.memory_space<vmem>>, vector<1x8x16x64xbf16>
    %86 = vector.shape_cast %85 : vector<1x8x16x64xbf16> to vector<8x16x64xbf16>
    %87 = vector.shape_cast %84 : vector<8x16x64xbf16> to vector<1x8x16x64xbf16>
    tpu.vector_store %arg4[%c0_66, %c0_67, %c0_68, %c0_69], %87 {strides = array<i32>} : memref<1x8x16x64xbf16, #tpu.memory_space<vmem>>, vector<1x8x16x64xbf16>,
    return
  }
  func.func @transform_0(%arg0: i32) -> (i32, i32, i32, i32) {
    %c0_i32 = arith.constant 0 : i32
    %c0_i32_0 = arith.constant 0 : i32
    %c0_i32_1 = arith.constant 0 : i32
    %c0_i32_2 = arith.constant 0 : i32
    return %arg0, %c0_i32, %c0_i32_0, %c0_i32_1 : i32, i32, i32, i32
  }
  func.func @transform_1(%arg0: i32) -> (i32, i32, i32) {
    %c0_i32 = arith.constant 0 : i32
    %c0_i32_0 = arith.constant 0 : i32
    %c0_i32_1 = arith.constant 0 : i32
    %c0_i32_2 = arith.constant 0 : i32
    return %c0_i32, %c0_i32_0, %c0_i32_1 : i32, i32, i32
  }
  func.func @transform_2(%arg0: i32) -> (i32, i32) {
    %c0_i32 = arith.constant 0 : i32
    %c0_i32_0 = arith.constant 0 : i32
    %c0_i32_1 = arith.constant 0 : i32
    return %c0_i32, %c0_i32_0 : i32, i32
  }
  func.func @transform_3(%arg0: i32) -> (i32, i32, i32, i32) {
    %c0_i32 = arith.constant 0 : i32
    %c0_i32_0 = arith.constant 0 : i32
    %c0_i32_1 = arith.constant 0 : i32
    %c0_i32_2 = arith.constant 0 : i32
    return %arg0, %c0_i32, %c0_i32_0, %c0_i32_1 : i32, i32, i32, i32
  }
}

module attributes {stable_mosaic.version = 11 : i64} {
  func.func @_conv_bn_relu_hpool_kernel(%arg0: i32, %arg1: memref<1x10x10x64xf32, #tpu.memory_space<vmem>>, %arg2: memref<9x64x128xbf16, #tpu.memory_space<vmem>>, %arg3: memref<1x128xf32, #tpu.memory_space<vmem>>, %arg4: memref<1x4x8x128xbf16, #tpu.memory_space<vmem>>) attributes {dimension_semantics = [#tpu.dimension_semantics<parallel>], iteration_bounds = array<i64: 2>, scalar_prefetch = 0 : i64, scratch_operands = 0 : i64, tpu.core_type = #tpu.core_type<tc>, window_params = [{transform_indices = @transform_0, window_bounds = array<i64: 1, 10, 10, 64>}, {pipeline_mode = #tpu.pipeline_mode<synchronous>, transform_indices = @transform_1, window_bounds = array<i64: 9, 64, 128>}, {pipeline_mode = #tpu.pipeline_mode<synchronous>, transform_indices = @transform_2, window_bounds = array<i64: 1, 128>}, {transform_indices = @transform_3, window_bounds = array<i64: 1, 4, 8, 128>}]} {
    %cst = arith.constant 0.000000e+00 : f32
    %0 = vector.broadcast %cst : f32 to vector<64x128xf32>
    %c0 = arith.constant 0 : index
    %c0_0 = arith.constant 0 : index
    %c0_1 = arith.constant 0 : index
    %c0_2 = arith.constant 0 : index
    %1 = vector.load %arg1[%c0, %c0_0, %c0_1, %c0_2] : memref<1x10x10x64xf32, #tpu.memory_space<vmem>>, vector<1x8x8x64xf32>
    %2 = vector.shape_cast %1 : vector<1x8x8x64xf32> to vector<8x8x64xf32>
    %3 = vector.shape_cast %2 : vector<8x8x64xf32> to vector<64x64xf32>
    %4 = arith.truncf %3 : vector<64x64xf32> to vector<64x64xbf16>
    %c0_3 = arith.constant 0 : index
    %c0_4 = arith.constant 0 : index
    %c0_5 = arith.constant 0 : index
    %5 = vector.load %arg2[%c0_3, %c0_4, %c0_5] : memref<9x64x128xbf16, #tpu.memory_space<vmem>>, vector<1x64x128xbf16>
    %6 = vector.shape_cast %5 : vector<1x64x128xbf16> to vector<64x128xbf16>
    %cst_6 = arith.constant dense<0.000000e+00> : vector<64x128xf32>
    %7 = tpu.matmul %4, %6, %cst_6 {dimension_numbers = #tpu.dot_dimension_numbers<[1], [0], [0], [1], [0, 0, 1, 1], [], []>} : vector<64x64xbf16>, vector<64x128xbf16>, vector<64x128xf32> -> vector<64x128xf32>
    %8 = arith.addf %0, %7 : vector<64x128xf32>
    %c0_7 = arith.constant 0 : index
    %c0_8 = arith.constant 0 : index
    %c1 = arith.constant 1 : index
    %c0_9 = arith.constant 0 : index
    %9 = vector.load %arg1[%c0_7, %c0_8, %c1, %c0_9] : memref<1x10x10x64xf32, #tpu.memory_space<vmem>>, vector<1x8x8x64xf32>
    %10 = vector.shape_cast %9 : vector<1x8x8x64xf32> to vector<8x8x64xf32>
    %11 = vector.shape_cast %10 : vector<8x8x64xf32> to vector<64x64xf32>
    %12 = arith.truncf %11 : vector<64x64xf32> to vector<64x64xbf16>
    %c1_10 = arith.constant 1 : index
    %c0_11 = arith.constant 0 : index
    %c0_12 = arith.constant 0 : index
    %13 = vector.load %arg2[%c1_10, %c0_11, %c0_12] : memref<9x64x128xbf16, #tpu.memory_space<vmem>>, vector<1x64x128xbf16>
    %14 = vector.shape_cast %13 : vector<1x64x128xbf16> to vector<64x128xbf16>
    %cst_13 = arith.constant dense<0.000000e+00> : vector<64x128xf32>
    %15 = tpu.matmul %12, %14, %cst_13 {dimension_numbers = #tpu.dot_dimension_numbers<[1], [0], [0], [1], [0, 0, 1, 1], [], []>} : vector<64x64xbf16>, vector<64x128xbf16>, vector<64x128xf32> -> vector<64x128xf32>
    %16 = arith.addf %8, %15 : vector<64x128xf32>
    %c0_14 = arith.constant 0 : index
    %c0_15 = arith.constant 0 : index
    %c2 = arith.constant 2 : index
    %c0_16 = arith.constant 0 : index
    %17 = vector.load %arg1[%c0_14, %c0_15, %c2, %c0_16] : memref<1x10x10x64xf32, #tpu.memory_space<vmem>>, vector<1x8x8x64xf32>
    %18 = vector.shape_cast %17 : vector<1x8x8x64xf32> to vector<8x8x64xf32>
    %19 = vector.shape_cast %18 : vector<8x8x64xf32> to vector<64x64xf32>
    %20 = arith.truncf %19 : vector<64x64xf32> to vector<64x64xbf16>
    %c2_17 = arith.constant 2 : index
    %c0_18 = arith.constant 0 : index
    %c0_19 = arith.constant 0 : index
    %21 = vector.load %arg2[%c2_17, %c0_18, %c0_19] : memref<9x64x128xbf16, #tpu.memory_space<vmem>>, vector<1x64x128xbf16>
    %22 = vector.shape_cast %21 : vector<1x64x128xbf16> to vector<64x128xbf16>
    %cst_20 = arith.constant dense<0.000000e+00> : vector<64x128xf32>
    %23 = tpu.matmul %20, %22, %cst_20 {dimension_numbers = #tpu.dot_dimension_numbers<[1], [0], [0], [1], [0, 0, 1, 1], [], []>} : vector<64x64xbf16>, vector<64x128xbf16>, vector<64x128xf32> -> vector<64x128xf32>
    %24 = arith.addf %16, %23 : vector<64x128xf32>
    %c0_21 = arith.constant 0 : index
    %c1_22 = arith.constant 1 : index
    %c0_23 = arith.constant 0 : index
    %c0_24 = arith.constant 0 : index
    %25 = vector.load %arg1[%c0_21, %c1_22, %c0_23, %c0_24] : memref<1x10x10x64xf32, #tpu.memory_space<vmem>>, vector<1x8x8x64xf32>
    %26 = vector.shape_cast %25 : vector<1x8x8x64xf32> to vector<8x8x64xf32>
    %27 = vector.shape_cast %26 : vector<8x8x64xf32> to vector<64x64xf32>
    %28 = arith.truncf %27 : vector<64x64xf32> to vector<64x64xbf16>
    %c3 = arith.constant 3 : index
    %c0_25 = arith.constant 0 : index
    %c0_26 = arith.constant 0 : index
    %29 = vector.load %arg2[%c3, %c0_25, %c0_26] : memref<9x64x128xbf16, #tpu.memory_space<vmem>>, vector<1x64x128xbf16>
    %30 = vector.shape_cast %29 : vector<1x64x128xbf16> to vector<64x128xbf16>
    %cst_27 = arith.constant dense<0.000000e+00> : vector<64x128xf32>
    %31 = tpu.matmul %28, %30, %cst_27 {dimension_numbers = #tpu.dot_dimension_numbers<[1], [0], [0], [1], [0, 0, 1, 1], [], []>} : vector<64x64xbf16>, vector<64x128xbf16>, vector<64x128xf32> -> vector<64x128xf32>
    %32 = arith.addf %24, %31 : vector<64x128xf32>
    %c0_28 = arith.constant 0 : index
    %c1_29 = arith.constant 1 : index
    %c1_30 = arith.constant 1 : index
    %c0_31 = arith.constant 0 : index
    %33 = vector.load %arg1[%c0_28, %c1_29, %c1_30, %c0_31] : memref<1x10x10x64xf32, #tpu.memory_space<vmem>>, vector<1x8x8x64xf32>
    %34 = vector.shape_cast %33 : vector<1x8x8x64xf32> to vector<8x8x64xf32>
    %35 = vector.shape_cast %34 : vector<8x8x64xf32> to vector<64x64xf32>
    %36 = arith.truncf %35 : vector<64x64xf32> to vector<64x64xbf16>
    %c4 = arith.constant 4 : index
    %c0_32 = arith.constant 0 : index
    %c0_33 = arith.constant 0 : index
    %37 = vector.load %arg2[%c4, %c0_32, %c0_33] : memref<9x64x128xbf16, #tpu.memory_space<vmem>>, vector<1x64x128xbf16>
    %38 = vector.shape_cast %37 : vector<1x64x128xbf16> to vector<64x128xbf16>
    %cst_34 = arith.constant dense<0.000000e+00> : vector<64x128xf32>
    %39 = tpu.matmul %36, %38, %cst_34 {dimension_numbers = #tpu.dot_dimension_numbers<[1], [0], [0], [1], [0, 0, 1, 1], [], []>} : vector<64x64xbf16>, vector<64x128xbf16>, vector<64x128xf32> -> vector<64x128xf32>
    %40 = arith.addf %32, %39 : vector<64x128xf32>
    %c0_35 = arith.constant 0 : index
    %c1_36 = arith.constant 1 : index
    %c2_37 = arith.constant 2 : index
    %c0_38 = arith.constant 0 : index
    %41 = vector.load %arg1[%c0_35, %c1_36, %c2_37, %c0_38] : memref<1x10x10x64xf32, #tpu.memory_space<vmem>>, vector<1x8x8x64xf32>
    %42 = vector.shape_cast %41 : vector<1x8x8x64xf32> to vector<8x8x64xf32>
    %43 = vector.shape_cast %42 : vector<8x8x64xf32> to vector<64x64xf32>
    %44 = arith.truncf %43 : vector<64x64xf32> to vector<64x64xbf16>
    %c5 = arith.constant 5 : index
    %c0_39 = arith.constant 0 : index
    %c0_40 = arith.constant 0 : index
    %45 = vector.load %arg2[%c5, %c0_39, %c0_40] : memref<9x64x128xbf16, #tpu.memory_space<vmem>>, vector<1x64x128xbf16>
    %46 = vector.shape_cast %45 : vector<1x64x128xbf16> to vector<64x128xbf16>
    %cst_41 = arith.constant dense<0.000000e+00> : vector<64x128xf32>
    %47 = tpu.matmul %44, %46, %cst_41 {dimension_numbers = #tpu.dot_dimension_numbers<[1], [0], [0], [1], [0, 0, 1, 1], [], []>} : vector<64x64xbf16>, vector<64x128xbf16>, vector<64x128xf32> -> vector<64x128xf32>
    %48 = arith.addf %40, %47 : vector<64x128xf32>
    %c0_42 = arith.constant 0 : index
    %c2_43 = arith.constant 2 : index
    %c0_44 = arith.constant 0 : index
    %c0_45 = arith.constant 0 : index
    %49 = vector.load %arg1[%c0_42, %c2_43, %c0_44, %c0_45] : memref<1x10x10x64xf32, #tpu.memory_space<vmem>>, vector<1x8x8x64xf32>
    %50 = vector.shape_cast %49 : vector<1x8x8x64xf32> to vector<8x8x64xf32>
    %51 = vector.shape_cast %50 : vector<8x8x64xf32> to vector<64x64xf32>
    %52 = arith.truncf %51 : vector<64x64xf32> to vector<64x64xbf16>
    %c6 = arith.constant 6 : index
    %c0_46 = arith.constant 0 : index
    %c0_47 = arith.constant 0 : index
    %53 = vector.load %arg2[%c6, %c0_46, %c0_47] : memref<9x64x128xbf16, #tpu.memory_space<vmem>>, vector<1x64x128xbf16>
    %54 = vector.shape_cast %53 : vector<1x64x128xbf16> to vector<64x128xbf16>
    %cst_48 = arith.constant dense<0.000000e+00> : vector<64x128xf32>
    %55 = tpu.matmul %52, %54, %cst_48 {dimension_numbers = #tpu.dot_dimension_numbers<[1], [0], [0], [1], [0, 0, 1, 1], [], []>} : vector<64x64xbf16>, vector<64x128xbf16>, vector<64x128xf32> -> vector<64x128xf32>
    %56 = arith.addf %48, %55 : vector<64x128xf32>
    %c0_49 = arith.constant 0 : index
    %c2_50 = arith.constant 2 : index
    %c1_51 = arith.constant 1 : index
    %c0_52 = arith.constant 0 : index
    %57 = vector.load %arg1[%c0_49, %c2_50, %c1_51, %c0_52] : memref<1x10x10x64xf32, #tpu.memory_space<vmem>>, vector<1x8x8x64xf32>
    %58 = vector.shape_cast %57 : vector<1x8x8x64xf32> to vector<8x8x64xf32>
    %59 = vector.shape_cast %58 : vector<8x8x64xf32> to vector<64x64xf32>
    %60 = arith.truncf %59 : vector<64x64xf32> to vector<64x64xbf16>
    %c7 = arith.constant 7 : index
    %c0_53 = arith.constant 0 : index
    %c0_54 = arith.constant 0 : index
    %61 = vector.load %arg2[%c7, %c0_53, %c0_54] : memref<9x64x128xbf16, #tpu.memory_space<vmem>>, vector<1x64x128xbf16>
    %62 = vector.shape_cast %61 : vector<1x64x128xbf16> to vector<64x128xbf16>
    %cst_55 = arith.constant dense<0.000000e+00> : vector<64x128xf32>
    %63 = tpu.matmul %60, %62, %cst_55 {dimension_numbers = #tpu.dot_dimension_numbers<[1], [0], [0], [1], [0, 0, 1, 1], [], []>} : vector<64x64xbf16>, vector<64x128xbf16>, vector<64x128xf32> -> vector<64x128xf32>
    %64 = arith.addf %56, %63 : vector<64x128xf32>
    %c0_56 = arith.constant 0 : index
    %c2_57 = arith.constant 2 : index
    %c2_58 = arith.constant 2 : index
    %c0_59 = arith.constant 0 : index
    %65 = vector.load %arg1[%c0_56, %c2_57, %c2_58, %c0_59] : memref<1x10x10x64xf32, #tpu.memory_space<vmem>>, vector<1x8x8x64xf32>
    %66 = vector.shape_cast %65 : vector<1x8x8x64xf32> to vector<8x8x64xf32>
    %67 = vector.shape_cast %66 : vector<8x8x64xf32> to vector<64x64xf32>
    %68 = arith.truncf %67 : vector<64x64xf32> to vector<64x64xbf16>
    %c8 = arith.constant 8 : index
    %c0_60 = arith.constant 0 : index
    %c0_61 = arith.constant 0 : index
    %69 = vector.load %arg2[%c8, %c0_60, %c0_61] : memref<9x64x128xbf16, #tpu.memory_space<vmem>>, vector<1x64x128xbf16>
    %70 = vector.shape_cast %69 : vector<1x64x128xbf16> to vector<64x128xbf16>
    %cst_62 = arith.constant dense<0.000000e+00> : vector<64x128xf32>
    %71 = tpu.matmul %68, %70, %cst_62 {dimension_numbers = #tpu.dot_dimension_numbers<[1], [0], [0], [1], [0, 0, 1, 1], [], []>} : vector<64x64xbf16>, vector<64x128xbf16>, vector<64x128xf32> -> vector<64x128xf32>
    %72 = arith.addf %64, %71 : vector<64x128xf32>
    %c0_63 = arith.constant 0 : index
    %c0_64 = arith.constant 0 : index
    %73 = vector.load %arg3[%c0_63, %c0_64] : memref<1x128xf32, #tpu.memory_space<vmem>>, vector<1x128xf32>
    %74 = vector.broadcast %73 : vector<1x128xf32> to vector<64x128xf32>
    %75 = arith.addf %72, %74 : vector<64x128xf32>
    %cst_65 = arith.constant 0.000000e+00 : f32
    %76 = vector.broadcast %cst_65 : f32 to vector<64x128xf32>
    %77 = arith.maximumf %75, %76 : vector<64x128xf32>
    %78 = vector.shape_cast %77 : vector<64x128xf32> to vector<4x2x8x128xf32>
    %79 = vector.extract_strided_slice %78 {offsets = [0, 0, 0, 0], sizes = [4, 1, 8, 128], strides = [1, 1, 1, 1]} : vector<4x2x8x128xf32> to vector<4x1x8x128xf32>
    %80 = vector.shape_cast %79 : vector<4x1x8x128xf32> to vector<4x8x128xf32>
    %81 = vector.extract_strided_slice %78 {offsets = [0, 1, 0, 0], sizes = [4, 1, 8, 128], strides = [1, 1, 1, 1]} : vector<4x2x8x128xf32> to vector<4x1x8x128xf32>
    %82 = vector.shape_cast %81 : vector<4x1x8x128xf32> to vector<4x8x128xf32>
    %83 = arith.maximumf %80, %82 : vector<4x8x128xf32>
    %84 = arith.truncf %83 : vector<4x8x128xf32> to vector<4x8x128xbf16>
    %c0_66 = arith.constant 0 : index
    %c0_67 = arith.constant 0 : index
    %c0_68 = arith.constant 0 : index
    %c0_69 = arith.constant 0 : index
    %85 = vector.load %arg4[%c0_66, %c0_67, %c0_68, %c0_69] : memref<1x4x8x128xbf16, #tpu.memory_space<vmem>>, vector<1x4x8x128xbf16>
    %86 = vector.shape_cast %85 : vector<1x4x8x128xbf16> to vector<4x8x128xbf16>
    %87 = vector.shape_cast %84 : vector<4x8x128xbf16> to vector<1x4x8x128xbf16>
    tpu.vector_store %arg4[%c0_66, %c0_67, %c0_68, %c0_69], %87 {strides = array<i32>} : memref<1x4x8x128xbf16, #tpu.memory_space<vmem>>, vector<1x4x8x128xbf16>,
    return
  }
  func.func @transform_0(%arg0: i32) -> (i32, i32, i32, i32) {
    %c0_i32 = arith.constant 0 : i32
    %c0_i32_0 = arith.constant 0 : i32
    %c0_i32_1 = arith.constant 0 : i32
    %c0_i32_2 = arith.constant 0 : i32
    return %arg0, %c0_i32, %c0_i32_0, %c0_i32_1 : i32, i32, i32, i32
  }
  func.func @transform_1(%arg0: i32) -> (i32, i32, i32) {
    %c0_i32 = arith.constant 0 : i32
    %c0_i32_0 = arith.constant 0 : i32
    %c0_i32_1 = arith.constant 0 : i32
    %c0_i32_2 = arith.constant 0 : i32
    return %c0_i32, %c0_i32_0, %c0_i32_1 : i32, i32, i32
  }
  func.func @transform_2(%arg0: i32) -> (i32, i32) {
    %c0_i32 = arith.constant 0 : i32
    %c0_i32_0 = arith.constant 0 : i32
    %c0_i32_1 = arith.constant 0 : i32
    return %c0_i32, %c0_i32_0 : i32, i32
  }
  func.func @transform_3(%arg0: i32) -> (i32, i32, i32, i32) {
    %c0_i32 = arith.constant 0 : i32
    %c0_i32_0 = arith.constant 0 : i32
    %c0_i32_1 = arith.constant 0 : i32
    %c0_i32_2 = arith.constant 0 : i32
    return %arg0, %c0_i32, %c0_i32_0, %c0_i32_1 : i32, i32, i32, i32
  }
}

module attributes {stable_mosaic.version = 11 : i64} {
  func.func @_mlp_kernel(%arg0: memref<2x2048xbf16, #tpu.memory_space<vmem>>, %arg1: memref<2048x256xbf16, #tpu.memory_space<vmem>>, %arg2: memref<1x256xf32, #tpu.memory_space<vmem>>, %arg3: memref<256x128xbf16, #tpu.memory_space<vmem>>, %arg4: memref<1x128xf32, #tpu.memory_space<vmem>>, %arg5: memref<2x128xf32, #tpu.memory_space<vmem>>) attributes {dimension_semantics = [], scalar_prefetch = 0 : i64, scratch_operands = 0 : i64, tpu.core_type = #tpu.core_type<tc>} {
    %c0 = arith.constant 0 : index
    %c0_0 = arith.constant 0 : index
    %0 = vector.load %arg0[%c0, %c0_0] : memref<2x2048xbf16, #tpu.memory_space<vmem>>, vector<2x2048xbf16>
    %c0_1 = arith.constant 0 : index
    %c0_2 = arith.constant 0 : index
    %1 = vector.load %arg1[%c0_1, %c0_2] : memref<2048x256xbf16, #tpu.memory_space<vmem>>, vector<2048x256xbf16>
    %cst = arith.constant dense<0.000000e+00> : vector<2x256xf32>
    %2 = tpu.matmul %0, %1, %cst {dimension_numbers = #tpu.dot_dimension_numbers<[1], [0], [0], [1], [0, 0, 1, 1], [], []>} : vector<2x2048xbf16>, vector<2048x256xbf16>, vector<2x256xf32> -> vector<2x256xf32>
    %c0_3 = arith.constant 0 : index
    %c0_4 = arith.constant 0 : index
    %3 = vector.load %arg2[%c0_3, %c0_4] : memref<1x256xf32, #tpu.memory_space<vmem>>, vector<1x256xf32>
    %4 = vector.broadcast %3 : vector<1x256xf32> to vector<2x256xf32>
    %5 = arith.addf %2, %4 : vector<2x256xf32>
    %cst_5 = arith.constant 0.000000e+00 : f32
    %6 = vector.broadcast %cst_5 : f32 to vector<2x256xf32>
    %7 = arith.maximumf %5, %6 : vector<2x256xf32>
    %8 = arith.truncf %7 : vector<2x256xf32> to vector<2x256xbf16>
    %c0_6 = arith.constant 0 : index
    %c0_7 = arith.constant 0 : index
    %9 = vector.load %arg3[%c0_6, %c0_7] : memref<256x128xbf16, #tpu.memory_space<vmem>>, vector<256x128xbf16>
    %cst_8 = arith.constant dense<0.000000e+00> : vector<2x128xf32>
    %10 = tpu.matmul %8, %9, %cst_8 {dimension_numbers = #tpu.dot_dimension_numbers<[1], [0], [0], [1], [0, 0, 1, 1], [], []>} : vector<2x256xbf16>, vector<256x128xbf16>, vector<2x128xf32> -> vector<2x128xf32>
    %c0_9 = arith.constant 0 : index
    %c0_10 = arith.constant 0 : index
    %11 = vector.load %arg4[%c0_9, %c0_10] : memref<1x128xf32, #tpu.memory_space<vmem>>, vector<1x128xf32>
    %12 = vector.broadcast %11 : vector<1x128xf32> to vector<2x128xf32>
    %13 = arith.addf %10, %12 : vector<2x128xf32>
    %c0_11 = arith.constant 0 : index
    %c0_12 = arith.constant 0 : index
    %14 = vector.load %arg5[%c0_11, %c0_12] : memref<2x128xf32, #tpu.memory_space<vmem>>, vector<2x128xf32>
    tpu.vector_store %arg5[%c0_11, %c0_12], %13 {strides = array<i32>} : memref<2x128xf32, #tpu.memory_space<vmem>>, vector<2x128xf32>,
    return
  }
}

</mosaic_0001>

<bundles_post_ra>
// kernel: simple_cnn_forward.6
= control target key start
LH: loop header
LB: loop body
LE: loop exit
PB: predicated region body
PF: predicated region fallthrough
CT: control target
= control target key end

     0   :  { %s1986_s12 = smov 0   ;;  %s2250_s0 = inlined_call_operand.vmem [shape: f32[2,10,10,64], index: 0, kind: input, shape index: {}]   ;;  %s2251_s1 = inlined_call_operand.vmem [shape: bf16[9,64,128], index: 1, kind: input, shape index: {}]   ;;  %s2252_s2 = inlined_call_operand.vmem [shape: f32[1,128], index: 2, kind: input, shape index: {}]   ;;  %s2253_s3 = inlined_call_operand.vmem [shape: bf16[2,4,8,128], index: 3, kind: output, shape index: {}]  }
   0x1 LB: > { %s1418_s13 = sadd.s32 4294967295, %s1964_s12   ;;  %p1422_p0 = scmp.ge.s32.totalorder %s1964_s12, 1  ;;  %s1964_s12 = sphi %s1986_s12, %s13_s12  }
   0x2   : > { %p137_p1 = scmp.lt.s32.totalorder %s1964_s12, 3 }
   0x4   : > { %p138_p2 = pnand %p1422_p0, %p137_p1 }
   0x5   : > { %v1922_v0 = vld [vmem:[%s2251_s1 + $0x20] sm:$0xff] (!%p138_p2)   ;;  %p161_p3 = scmp.lt.s32.totalorder (!%p138_p2), %s1418_s13, 1  ;;  %v1924_v2 = vld [vmem:[%s2251_s1 + $0x28] sm:$0xff] (!%p138_p2)   ;;  %v1926_v4 = vld [vmem:[%s2251_s1 + $0x30] sm:$0xff] (!%p138_p2)   ;;  %vm237_vm0 = vcmask (!%p138_p2), 523264  }
   0x6   : > { %141 = sbr.rel (%p138_p2) target bundleno = 313 (0x139), region = 32  ;;  %v1923_v1 = vld [vmem:[%s2251_s1 + $0x80] sm:$0xff] (!%p138_p2)   ;;  %1697 = vmatprep.subr.bf16.mxu1 (!%p138_p2), %v1922_v0  ;;  %v1925_v3 = vld [vmem:[%s2251_s1 + $0x88] sm:$0xff] (!%p138_p2)   ;;  %v1927_v5 = vld [vmem:[%s2251_s1 + $0x90] sm:$0xff] (!%p138_p2)  }
   0x7   : > { %1761 = vmatprep.subr.bf16.mxu0 (!%p138_p2), %v1923_v1  ;;  %1698 = vmatpush3.bf16.msra.mxu1 (!%p138_p2), %v1922_v0  ;;  %v1928_v6 = vld [vmem:[%s2251_s1 + $0x38] sm:$0xff] (!%p138_p2)   ;;  %v1930_v14 = vld [vmem:[%s2251_s1] sm:$0xff] (!%p138_p2)   ;;  %v1932_v21 = vld [vmem:[%s2251_s1 + $0x8] sm:$0xff] (!%p138_p2)  }
   0x8   : > { %1762 = vmatpush3.bf16.msra.mxu0 (!%p138_p2), %v1923_v1  ;;  %1699 = vmatprep.subr.bf16.mxu1 (!%p138_p2), %v1924_v2  ;;  %v1929_v10 = vld [vmem:[%s2251_s1 + $0x98] sm:$0xff] (!%p138_p2)   ;;  %v1931_v16 = vld [vmem:[%s2251_s1 + $0xa0] sm:$0xff] (!%p138_p2)   ;;  %v1933_v22 = vld [vmem:[%s2251_s1 + $0xa8] sm:$0xff] (!%p138_p2)  }
   0x9   : > { %1763 = vmatprep.subr.bf16.mxu0 (!%p138_p2), %v1925_v3  ;;  %v1934_v26 = vld [vmem:[%s2251_s1 + $0x10] sm:$0xff] (!%p138_p2)   ;;  %v1936_v35 = vld [vmem:[%s2251_s1 + $0x18] sm:$0xff] (!%p138_p2)   ;;  %v1938_v41 = vld [vmem:[%s2251_s1 + $0x40] sm:$0xff] (!%p138_p2)  }
   0xa   : > { %v1935_v28 = vld [vmem:[%s2251_s1 + $0xb0] sm:$0xff] (!%p138_p2)   ;;  %v1937_v36 = vld [vmem:[%s2251_s1 + $0xb8] sm:$0xff] (!%p138_p2)   ;;  %v1939_v44 = vld [vmem:[%s2251_s1 + $0xc0] sm:$0xff] (!%p138_p2)  }
   0xb   : > { %1700 = vmatpush3.bf16.msra.mxu1 (!%p138_p2), %v1924_v2  ;;  %v1940_v51 = vld [vmem:[%s2251_s1 + $0x48] sm:$0xff] (!%p138_p2)   ;;  %v1942_v57 = vld [vmem:[%s2251_s1 + $0x50] sm:$0xff] (!%p138_p2)   ;;  %v1944_v0 = vld [vmem:[%s2251_s1 + $0x58] sm:$0xff] (!%p138_p2)  }
   0xc   : > { %1764 = vmatpush3.bf16.msra.mxu0 (!%p138_p2), %v1925_v3  ;;  %1701 = vmatprep.subr.bf16.mxu1 (!%p138_p2), %v1926_v4  ;;  %v1941_v52 = vld [vmem:[%s2251_s1 + $0xc8] sm:$0xff] (!%p138_p2)   ;;  %v1943_v60 = vld [vmem:[%s2251_s1 + $0xd0] sm:$0xff] (!%p138_p2)   ;;  %v1945_v1 = vld [vmem:[%s2251_s1 + $0xd8] sm:$0xff] (!%p138_p2)  }
   0xd   : > { %s2255_s13 = smov (!%p161_p3, %s1418_s13), 1  ;;  %1765 = vmatprep.subr.bf16.mxu0 %v1927_v5  ;;  %v1946_v3 = vld [vmem:[%s2251_s1 + $0x60] sm:$0xff]  }
   0xe   : > { %s1913_s24 = smul.u32 160, %s2255_s13  ;;  %s1613_s18 = sshll.u32 %s2255_s13, 4 }
   0xf   : > { %1702 = vmatpush3.bf16.msra.mxu1 %v1926_v4  ;;  %v1947_v4 = vld [vmem:[%s2251_s1 + $0xe0] sm:$0xff]   ;;  %s170_s21 = scalar_lea.vmem %s2253_s3, %s1613_s18 }
  0x10   : > { %s2018_s29 = scalar_lea.vmem %s2250_s0, %s1913_s24  ;;  %1766 = vmatpush3.bf16.msra.mxu0 %v1927_v5  ;;  %1703 = vmatprep.subr.bf16.mxu1 %v1928_v6 }
  0x11   : > { %v192_v7 = vld [vmem:[%s2018_s29 + $0x1] sm:$0xff]  ;;  %v193_v8 = vld [vmem:[%s2018_s29 + $0x11] sm:$0xff]  ;;  %1767 = vmatprep.subr.bf16.mxu0 %v1929_v10 }
  0x12   : > { %v1491_v9 = vld [vmem:[%s2018_s29 + $0x21] sm:$0xff]  ;;  %v200_v11 = vpack.c.bf16 %v193_v8, %v192_v7  ;;  %v195_v13 = vld [vmem:[%s2018_s29 + $0x31] sm:$0xff] }
  0x13   : > { %v685_v12 = vpack.c.bf16 %v1491_v9, %v193_v8  ;;  %v1493_v15 = vld [vmem:[%s2018_s29 + $0x41] sm:$0xff]  ;;  %v2039_v17 = vpack.c.bf16 %v195_v13, %v1491_v9  ;;  %v197_v18 = vld [vmem:[%s2018_s29 + $0x51] sm:$0xff]  ;;  %1704 = vmatpush3.bf16.msra.mxu1 %v1928_v6 }
  0x14   : > { %1705 = vmatprep.mubr.msk.bf16.mxu1 %vm237_vm0, %v200_v11  ;;  %v686_v19 = vpack.c.bf16 %v1493_v15, %v195_v13  ;;  %v1495_v20 = vld [vmem:[%s2018_s29 + $0x61] sm:$0xff]  ;;  %1768 = vmatpush3.bf16.msra.mxu0 %v1929_v10  ;;  %v2049_v23 = vpack.c.bf16 %v197_v18, %v1493_v15  ;;  %v199_v25 = vld [vmem:[%s2018_s29 + $0x71] sm:$0xff] }
  0x15   : > { %1769 = vmatprep.mubr.msk.bf16.mxu0 %vm237_vm0, %v685_v12  ;;  %1713 = vmatprep.subr.bf16.mxu1 %v1930_v14  ;;  %v687_v24 = vpack.c.bf16 %v1495_v20, %v197_v18  ;;  %v2059_v27 = vld [vmem:[%s2018_s29 + $0x81] sm:$0xff]  ;;  %v2068_v30 = vpack.c.bf16 %v199_v25, %v1495_v20  ;;  %v2071_v31 = vld [vmem:[%s2018_s29 + $0x10] sm:$0xff]  ;;  %v1952_v15 = vld [vmem:[%s2251_s1 + $0x78] sm:$0xff]  }
  0x16   : > { %1777 = vmatprep.subr.bf16.mxu0 %v1931_v16  ;;  %1706 = vmatmul.mubr.msk.bf16.vlgmr.msra.gmra.mrb[0].mxu1 %vm237_vm0, %v2039_v17  ;;  %v172_v29 = vld [vmem:[%s2018_s29] sm:$0xff]  ;;  %v2074_v32 = vld [vmem:[%s2018_s29 + $0x12] sm:$0xff]  ;;  %v688_v33 = vpack.c.bf16 %v2059_v27, %v199_v25  ;;  %v1948_v6 = vld [vmem:[%s2251_s1 + $0x68] sm:$0xff]  }
  0x17   : > { %1770 = vmatmul.mubr.msk.bf16.vlgmr.msra.gmra.mrb[0].mxu0 %vm237_vm0, %v686_v19  ;;  %1714 = vmatpush3.bf16.msra.mxu1 %v1930_v14  ;;  %v2078_v34 = vld [vmem:[%s2018_s29 + $0x22] sm:$0xff]  ;;  %v180_v37 = vpack.c.bf16 %v2071_v31, %v172_v29  ;;  %v2095_v40 = vld [vmem:[%s2018_s29 + $0x30] sm:$0xff] }
  0x18   : > { %1778 = vmatpush3.bf16.msra.mxu0 %v1931_v16  ;;  %1715 = vmatprep.subr.bf16.mxu1 %v1932_v21  ;;  %v815_v38 = vpack.c.bf16 %v2078_v34, %v2074_v32  ;;  %v2092_v39 = vld [vmem:[%s2018_s29 + $0x20] sm:$0xff]  ;;  %v1516_v42 = vld [vmem:[%s2018_s29 + $0x32] sm:$0xff]  ;;  %v1949_v7 = vld [vmem:[%s2251_s1 + $0xe8] sm:$0xff]  }
  0x19   : > { %1779 = vmatprep.subr.bf16.mxu0 %v1933_v22  ;;  %1709 = vmatprep.mubr.msk.bf16.mxu1 %vm237_vm0, %v2049_v23  ;;  %v1517_v43 = vld [vmem:[%s2018_s29 + $0x42] sm:$0xff]  ;;  %v2111_v46 = vld [vmem:[%s2018_s29 + $0x50] sm:$0xff]  ;;  %v181_v47 = vpack.c.bf16 %v2095_v40, %v2092_v39  ;;  %v2168_v5 = vpack.c.bf16 %v1516_v42, %v2078_v34  ;;  %v1953_v16 = vld [vmem:[%s2251_s1 + $0xf8] sm:$0xff]   ;;  %v555_v18 = vpack.c.bf16 %v2092_v39, %v2071_v31 }
  0x1a   : > { %1773 = vmatprep.mubr.msk.bf16.mxu0 %vm237_vm0, %v687_v24  ;;  %v2107_v45 = vld [vmem:[%s2018_s29 + $0x40] sm:$0xff]  ;;  %v1518_v48 = vld [vmem:[%s2018_s29 + $0x52] sm:$0xff]  ;;  %v816_v49 = vpack.c.bf16 %v1517_v43, %v1516_v42 }
  0x1b   : > { %1716 = vmatpush3.bf16.msra.mxu1 %v1932_v21  ;;  %v1519_v50 = vld [vmem:[%s2018_s29 + $0x62] sm:$0xff]  ;;  %v182_v53 = vpack.c.bf16 %v2111_v46, %v2107_v45  ;;  %v2130_v55 = vld [vmem:[%s2018_s29 + $0x70] sm:$0xff]  ;;  %v2176_v8 = vpack.c.bf16 %v1518_v48, %v1517_v43  ;;  %v556_v20 = vpack.c.bf16 %v2107_v45, %v2095_v40  ;;  %v1610_v45 = vld [vmem:[%s2252_s2] ss:$0 sm:$0xff] }
  0x1c   : > { %1780 = vmatpush3.bf16.msra.mxu0 %v1933_v22  ;;  %1717 = vmatprep.subr.bf16.mxu1 %v1934_v26  ;;  %v2127_v54 = vld [vmem:[%s2018_s29 + $0x60] sm:$0xff]  ;;  %v817_v56 = vpack.c.bf16 %v1519_v50, %v1518_v48  ;;  %v1520_v58 = vld [vmem:[%s2018_s29 + $0x72] sm:$0xff]  ;;  %v1955_v21 = vld [vmem:[%s2251_s1 + $0x108] sm:$0xff]  }
  0x1d   : > { %1781 = vmatprep.subr.bf16.mxu0 %v1935_v28  ;;  %v2139_v59 = vld [vmem:[%s2018_s29 + $0x82] sm:$0xff]  ;;  %v183_v61 = vpack.c.bf16 %v2130_v55, %v2127_v54  ;;  %v1950_v9 = vld [vmem:[%s2251_s1 + $0x70] sm:$0xff]   ;;  %v427_v13 = vpack.c.bf16 %v1520_v58, %v1519_v50  ;;  %v557_v22 = vpack.c.bf16 %v2127_v54, %v2111_v46 }
  0x1e   : > { %1710 = vmatmul.mubr.msk.bf16.gmra.mrb[4].mxu1 %vm237_vm0, %v2068_v30  ;;  %v416_v62 = vld [vmem:[%s2018_s29 + $0x2] sm:$0xff]  ;;  %v818_v63 = vpack.c.bf16 %v2139_v59, %v1520_v58  ;;  %v1545_v11 = vld [vmem:[%s2018_s29 + $0x90] sm:$0xff] }
  0x1f   : > { %1774 = vmatmul.mubr.msk.bf16.gmra.mrb[4].mxu0 %vm237_vm0, %v688_v33  ;;  %1718 = vmatpush3.bf16.msra.mxu1 %v1934_v26  ;;  %v424_v2 = vpack.c.bf16 %v2074_v32, %v416_v62  ;;  %v1544_v10 = vld [vmem:[%s2018_s29 + $0x80] sm:$0xff]  ;;  %v1951_v12 = vld [vmem:[%s2251_s1 + $0xf0] sm:$0xff]   ;;  %v1957_v26 = vld [vmem:[%s2251_s1 + $0x118] sm:$0xff]  }
  0x20   : > { %1782 = vmatpush3.bf16.msra.mxu0 %v1935_v28  ;;  %1719 = vmatprep.subr.bf16.mxu1 %v1936_v35  ;;  %v949_v14 = vpack.c.bf16 %v1545_v11, %v1544_v10  ;;  %v1954_v19 = vld [vmem:[%s2251_s1 + $0x100] sm:$0xff]   ;;  %v1956_v24 = vld [vmem:[%s2251_s1 + $0x110] sm:$0xff]   ;;  %v558_v25 = vpack.c.bf16 %v1544_v10, %v2130_v55 }
  0x21   : > { %1783 = vmatprep.subr.bf16.mxu0 %v1937_v36  ;;  %1721 = vmatprep.mubr.msk.bf16.mxu1 %vm237_vm0, %v180_v37  ;;  %v1593_v28 = vld [vmem:[%s2018_s29 + $0x92] sm:$0xff] }
  0x22   : > { %1785 = vmatprep.mubr.msk.bf16.mxu0 %vm237_vm0, %v815_v38 }
  0x23   : > { %1720 = vmatpush3.bf16.msra.mxu1 %v1936_v35 }
  0x24   : > { %1784 = vmatpush3.bf16.msra.mxu0 %v1937_v36  ;;  %1729 = vmatprep.subr.bf16.mxu1 %v1938_v41 }
  0x25   : > { %1793 = vmatprep.subr.bf16.mxu0 %v1939_v44 }
  0x26   : > { %1722 = vmatmul.mubr.msk.bf16.vlgmr.msra.gmra.mrb[0].mxu1 %vm237_vm0, %v181_v47 }
  0x27   : > { %1786 = vmatmul.mubr.msk.bf16.vlgmr.msra.gmra.mrb[0].mxu0 %vm237_vm0, %v816_v49  ;;  %1730 = vmatpush3.bf16.msra.mxu1 %v1938_v41 }
  0x28   : > { %1794 = vmatpush3.bf16.msra.mxu0 %v1939_v44  ;;  %1731 = vmatprep.subr.bf16.mxu1 %v1940_v51 }
  0x29   : > { %1795 = vmatprep.subr.bf16.mxu0 %v1941_v52  ;;  %1725 = vmatprep.mubr.msk.bf16.mxu1 %vm237_vm0, %v182_v53 }
  0x2a   : > { %1789 = vmatprep.mubr.msk.bf16.mxu0 %vm237_vm0, %v817_v56 }
  0x2b   : > { %1732 = vmatpush3.bf16.msra.mxu1 %v1940_v51 }
  0x2c   : > { %1796 = vmatpush3.bf16.msra.mxu0 %v1941_v52  ;;  %1733 = vmatprep.subr.bf16.mxu1 %v1942_v57 }
  0x2d   : > { %1797 = vmatprep.subr.bf16.mxu0 %v1943_v60 }
  0x2e   : > { %1726 = vmatmul.mubr.msk.bf16.gmra.mrb[4].mxu1 %vm237_vm0, %v183_v61 }
  0x2f   : > { %1790 = vmatmul.mubr.msk.bf16.gmra.mrb[4].mxu0 %vm237_vm0, %v818_v63  ;;  %1734 = vmatpush3.bf16.msra.mxu1 %v1942_v57 }
  0x30   : > { %1798 = vmatpush3.bf16.msra.mxu0 %v1943_v60  ;;  %1735 = vmatprep.subr.bf16.mxu1 %v1944_v0 }
  0x31   : > { %1799 = vmatprep.subr.bf16.mxu0 %v1945_v1  ;;  %1737 = vmatprep.mubr.msk.bf16.mxu1 %vm237_vm0, %v424_v2 }
  0x32   : > { %1801 = vmatprep.mubr.msk.bf16.mxu0 %vm237_vm0, %v181_v47 }
  0x33   : > { %1736 = vmatpush3.bf16.msra.mxu1 %v1944_v0 }
  0x34   : > { %1800 = vmatpush3.bf16.msra.mxu0 %v1945_v1  ;;  %1745 = vmatprep.subr.bf16.mxu1 %v1946_v3 }
  0x35   : > { %1809 = vmatprep.subr.bf16.mxu0 %v1947_v4 }
  0x36   : > { %1738 = vmatmul.mubr.msk.bf16.vlgmr.msra.gmra.mrb[0].mxu1 %vm237_vm0, %v2168_v5 }
  0x37   : > { %1802 = vmatmul.mubr.msk.bf16.vlgmr.msra.gmra.mrb[0].mxu0 %vm237_vm0, %v182_v53  ;;  %1746 = vmatpush3.bf16.msra.mxu1 %v1946_v3 }
  0x38   : > { %1810 = vmatpush3.bf16.msra.mxu0 %v1947_v4  ;;  %1747 = vmatprep.subr.bf16.mxu1 %v1948_v6 }
  0x39   : > { %1811 = vmatprep.subr.bf16.mxu0 %v1949_v7  ;;  %1741 = vmatprep.mubr.msk.bf16.mxu1 %vm237_vm0, %v2176_v8 }
  0x3a   : > { %1805 = vmatprep.mubr.msk.bf16.mxu0 %vm237_vm0, %v183_v61 }
  0x3b   : > { %1748 = vmatpush3.bf16.msra.mxu1 %v1948_v6 }
  0x3c   : > { %1812 = vmatpush3.bf16.msra.mxu0 %v1949_v7  ;;  %1749 = vmatprep.subr.bf16.mxu1 %v1950_v9 }
  0x3d   : > { %1813 = vmatprep.subr.bf16.mxu0 %v1951_v12 }
  0x3e   : > { %1742 = vmatmul.mubr.msk.bf16.gmra.mrb[4].mxu1 %vm237_vm0, %v427_v13 }
  0x3f   : > { %1806 = vmatmul.mubr.msk.bf16.gmra.mrb[4].mxu0 %vm237_vm0, %v949_v14  ;;  %1750 = vmatpush3.bf16.msra.mxu1 %v1950_v9 }
  0x40   : > { %1814 = vmatpush3.bf16.msra.mxu0 %v1951_v12  ;;  %1751 = vmatprep.subr.bf16.mxu1 %v1952_v15 }
  0x41   : > { %1815 = vmatprep.subr.bf16.mxu0 %v1953_v16  ;;  %1753 = vmatprep.mubr.msk.bf16.mxu1 %vm237_vm0, %v555_v18 }
  0x42   : > { %1817 = vmatprep.mubr.msk.bf16.mxu0 %vm237_vm0, %v2039_v17  ;;  %v1569_v17 = vld [vmem:[%s2018_s29 + $0x91] sm:$0xff] }
  0x43   : > { %1752 = vmatpush3.bf16.msra.mxu1 %v1952_v15 }
  0x44   : > { %1816 = vmatpush3.bf16.msra.mxu0 %v1953_v16  ;;  %1841 = vmatprep.subr.bf16.mxu1 %v1954_v19 }
  0x45   : > { %1825 = vmatprep.subr.bf16.mxu0 %v1954_v19 }
  0x46   : > { %1754 = vmatmul.mubr.msk.bf16.vlgmr.msra.gmra.mrb[0].mxu1 %vm237_vm0, %v556_v20 }
  0x47   : > { %1818 = vmatmul.mubr.msk.bf16.vlgmr.msra.gmra.mrb[0].mxu0 %vm237_vm0, %v2049_v23  ;;  %1845 = vmatpush3.bf16.msra.mxu1 %v1954_v19  ;;  %v1079_v23 = vpack.c.bf16 %v1569_v17, %v2059_v27  ;;  %v1209_v27 = vpack.c.bf16 %v1593_v28, %v2139_v59 }
  0x48   : > { %1826 = vmatpush3.bf16.msra.mxu0 %v1954_v19  ;;  %1842 = vmatprep.subr.bf16.mxu1 %v1955_v21 }
  0x49   : > { %1827 = vmatprep.subr.bf16.mxu0 %v1955_v21  ;;  %1757 = vmatprep.mubr.msk.bf16.mxu1 %vm237_vm0, %v557_v22 }
  0x4a   : > { %1821 = vmatprep.mubr.msk.bf16.mxu0 %vm237_vm0, %v2068_v30 }
  0x4b   : > { %1846 = vmatpush3.bf16.msra.mxu1 %v1955_v21 }
  0x4c   : > { %1828 = vmatpush3.bf16.msra.mxu0 %v1955_v21  ;;  %1843 = vmatprep.subr.bf16.mxu1 %v1956_v24 }
  0x4d   : > { %1829 = vmatprep.subr.bf16.mxu0 %v1956_v24 }
  0x4e   : > { %1758 = vmatmul.mubr.msk.bf16.gmra.mrb[4].mxu1 %vm237_vm0, %v558_v25 }
  0x4f   : > { %1822 = vmatmul.mubr.msk.bf16.gmra.mrb[4].mxu0 %vm237_vm0, %v1079_v23  ;;  %1847 = vmatpush3.bf16.msra.mxu1 %v1956_v24 }
  0x50   : > { %1830 = vmatpush3.bf16.msra.mxu0 %v1956_v24  ;;  %1844 = vmatprep.subr.bf16.mxu1 %v1957_v26 }
  0x51   : > { %1831 = vmatprep.subr.bf16.mxu0 %v1957_v26  ;;  %1833 = vmatprep.mubr.msk.bf16.mxu0 %vm237_vm0, %v2168_v5 }
  0x52   : > { %1837 = vmatprep.mubr.msk.bf16.mxu1 %vm237_vm0, %v427_v13 }
  0x53   : > { %1848 = vmatpush3.bf16.msra.mxu1 %v1957_v26 }
  0x54   : > { %1832 = vmatpush3.bf16.msra.mxu0 %v1957_v26 }
  0x56   : > { %1838 = vmatmul.mubr.msk.bf16.vlgmr.msra.gmra.mrb[8].mxu1 %vm237_vm0, %v1209_v27 }
  0x57   : > { %1834 = vmatmul.mubr.msk.bf16.vlgmr.msra.gmra.mrb[0].mxu0 %vm237_vm0, %v2176_v8 }
 0x119   : > { %v1755_v29 = vpop.f32.mrb[0].mxu1 }
 0x11a   : > { %v638_v30 = vpop.f32.mrb[1].mxu1 }
 0x11b   : > { %v1756_v31 = vpop.f32.mrb[2].mxu1 }
 0x11c   : > { %v641_v32 = vpop.f32.mrb[3].mxu1 }
 0x121   : > { %v1759_v33 = vpop.f32.mrb[4].mxu1 }
 0x122   : > { %v1823_v34 = vpop.f32.mrb[4].mxu0  ;;  %v654_v35 = vpop.f32.mrb[5].mxu1 }
 0x123   : > { %v1853_v36 = vadd.f32 %v1823_v34, %v1759_v33  ;;  %v1175_v37 = vpop.f32.mrb[5].mxu0  ;;  %v1760_v38 = vpop.f32.mrb[6].mxu1 }
 0x124   : > { %v1855_v39 = vadd.f32 %v1175_v37, %v654_v35  ;;  %v1824_v40 = vpop.f32.mrb[6].mxu0  ;;  %v657_v41 = vpop.f32.mrb[7].mxu1 }
 0x125   : > { %v1857_v42 = vadd.f32 %v1824_v40, %v1760_v38  ;;  %v1178_v43 = vpop.f32.mrb[7].mxu0 }
 0x126   : > { %v1859_v44 = vadd.f32 %v1178_v43, %v657_v41 }
 0x129   : > { %v1839_v46 = vpop.f32.mrb[8].mxu1 }
 0x12a   : > { %v1835_v47 = vpop.f32.mrb[0].mxu0  ;;  %v1854_v48 = vadd.f32 %v1853_v36, %v1839_v46  ;;  %v1305_v49 = vpop.f32.mrb[9].mxu1 }
 0x12b   : > { %v1849_v50 = vadd.f32 %v1835_v47, %v1755_v29  ;;  %v1289_v51 = vpop.f32.mrb[1].mxu0  ;;  %v1856_v52 = vadd.f32 %v1855_v39, %v1305_v49  ;;  %v1840_v53 = vpop.f32.mrb[10].mxu1 }
 0x12c   : > { %v1341_v54 = vadd.f32 %v1854_v48, %v1610_v45  ;;  %v1850_v55 = vadd.f32 %v1289_v51, %v638_v30  ;;  %v1836_v56 = vpop.f32.mrb[2].mxu0  ;;  %v1858_v57 = vadd.f32 %v1857_v42, %v1840_v53  ;;  %v1308_v58 = vpop.f32.mrb[11].mxu1 }
 0x12d   : > { %v1337_v59 = vadd.f32 %v1849_v50, %v1610_v45  ;;  %v1339_v60 = vadd.f32 %v1856_v52, %v1610_v45  ;;  %v1851_v61 = vadd.f32 %v1836_v56, %v1756_v31  ;;  %v1292_v62 = vpop.f32.mrb[3].mxu0  ;;  %v1860_v63 = vadd.f32 %v1859_v44, %v1308_v58 }
 0x12e   : > { %v1335_v0 = vadd.f32 %v1850_v55, %v1610_v45  ;;  %v1342_v1 = vadd.f32 %v1858_v57, %v1610_v45  ;;  %v1852_v2 = vadd.f32 %v1292_v62, %v641_v32  ;;  %v1349_v5 = vmax.f32 %v1341_v54, 0.0 }
 0x12f   : > { %v1338_v3 = vadd.f32 %v1851_v61, %v1610_v45  ;;  %v1340_v4 = vadd.f32 %v1860_v63, %v1610_v45  ;;  %v1345_v8 = vmax.f32 %v1337_v59, 0.0  ;;  %v1347_v9 = vmax.f32 %v1339_v60, 0.0 }
 0x130   : > { %v1350_v6 = vmax.f32 %v1342_v1, 0.0  ;;  %v1336_v7 = vadd.f32 %v1852_v2, %v1610_v45  ;;  %v1343_v12 = vmax.f32 %v1335_v0, 0.0 }
 0x131   : > { %v1346_v10 = vmax.f32 %v1338_v3, 0.0  ;;  %v1348_v11 = vmax.f32 %v1340_v4, 0.0 }
 0x132   : > { %v1354_v13 = vmax.f32 %v1349_v5, %v1350_v6  ;;  %v1344_v14 = vmax.f32 %v1336_v7, 0.0 }
 0x133   : > { %v1352_v15 = vmax.f32 %v1345_v8, %v1346_v10  ;;  %v1353_v16 = vmax.f32 %v1347_v9, %v1348_v11 }
 0x134   : > { %v1351_v18 = vmax.f32 %v1343_v12, %v1344_v14 }
 0x135   : > { %v1622_v19 = vpack.c.bf16 %v1354_v13, %v1353_v16 }
 0x136   : > { %v1617_v20 = vpack.c.bf16 %v1352_v15, %v1351_v18 }
 0x137   : > { %1624 = vst [vmem:[%s170_s21 + $0x8] sm:$0xff] %v1622_v19  }
 0x138   : > { %1618 = vst [vmem:[%s170_s21] sm:$0xff] %v1617_v20  }
 0x139 PF: > { %s13_s12 = sadd.s32 1, %s1964_s12  }
 0x13a   : > { %p10_p4 = scmp.ge.s32.totalorder %s13_s12, 4  }
 0x13c   :  { %12 = sbr.rel (!%p10_p4) target bundleno = 1 (0x1), region = 72 }

// kernel: simple_cnn_forward.5
= control target key start
LH: loop header
LB: loop body
LE: loop exit
PB: predicated region body
PF: predicated region fallthrough
CT: control target
= control target key end

     0   :  { %s4318_s12 = smov 0   ;;  %s4980_s0 = inlined_call_operand.vmem [shape: f32[2,18,18,32], index: 0, kind: input, shape index: {}]   ;;  %s4981_s1 = inlined_call_operand.vmem [shape: bf16[9,32,64], index: 1, kind: input, shape index: {}]   ;;  %s4982_s2 = inlined_call_operand.vmem [shape: f32[1,64], index: 2, kind: input, shape index: {}]   ;;  %s4983_s3 = inlined_call_operand.vmem [shape: bf16[2,8,16,64], index: 3, kind: output, shape index: {}]  }
   0x1 LB: > { %s3087_s13 = sadd.s32 4294967295, %s4296_s12   ;;  %p3091_p0 = scmp.ge.s32.totalorder %s4296_s12, 1  ;;  %s4296_s12 = sphi %s4318_s12, %s13_s12  }
   0x2   : > { %p137_p1 = scmp.lt.s32.totalorder %s4296_s12, 3 }
   0x4   : > { %p138_p2 = pnand %p3091_p0, %p137_p1 }
   0x5   : > { %v4272_v0 = vld [vmem:[%s4981_s1 + $0x10] sm:$0xff] (!%p138_p2)   ;;  %p161_p3 = scmp.lt.s32.totalorder (!%p138_p2), %s3087_s13, 1  ;;  %v4332_v1 = vld [vmem:[%s4981_s1 + $0x40] sm:$0xff] (!%p138_p2)   ;;  %v4274_v2 = vld [vmem:[%s4981_s1 + $0x18] sm:$0xff] (!%p138_p2)   ;;  %vm289_vm0 = vcmask (!%p138_p2), 261120   ;;  %vm3015_vm1 = vcmask (!%p138_p2), 519168  }
   0x6   : > { %141 = sbr.rel (%p138_p2) target bundleno = 528 (0x210), region = 32  ;;  %3679 = vmatprep.subr.bf16.mxu1 (!%p138_p2), %v4272_v0  ;;  %3823 = vmatprep.subr.bf16.mxu0 (!%p138_p2), %v4332_v1  ;;  %v4343_v3 = vld [vmem:[%s4981_s1 + $0x48] sm:$0xff] (!%p138_p2)   ;;  %v4276_v4 = vld [vmem:[%s4981_s1] sm:$0xff] (!%p138_p2)   ;;  %v4277_v5 = vld [vmem:[%s4981_s1 + $0x50] sm:$0xff] (!%p138_p2)  }
   0x7   : > { %3680 = vmatpush3.bf16.msra.mxu1 (!%p138_p2), %v4272_v0  ;;  %3824 = vmatpush3.bf16.msra.mxu0 (!%p138_p2), %v4332_v1  ;;  %v4278_v18 = vld [vmem:[%s4981_s1 + $0x58] sm:$0xff] (!%p138_p2)   ;;  %v4279_v23 = vld [vmem:[%s4981_s1 + $0x8] sm:$0xff] (!%p138_p2)   ;;  %v4280_v25 = vld [vmem:[%s4981_s1 + $0x60] sm:$0xff] (!%p138_p2)  }
   0x8   : > { %3681 = vmatprep.subr.bf16.mxu1 (!%p138_p2), %v4274_v2  ;;  %3825 = vmatprep.subr.bf16.mxu0 (!%p138_p2), %v4343_v3  ;;  %v4419_v33 = vld [vmem:[%s4981_s1 + $0x20] sm:$0xff] (!%p138_p2)   ;;  %v4282_v52 = vld [vmem:[%s4981_s1 + $0x68] sm:$0xff] (!%p138_p2)   ;;  %v4482_v61 = vld [vmem:[%s4981_s1 + $0x70] sm:$0xff] (!%p138_p2)  }
   0xb   : > { %3682 = vmatpush3.bf16.msra.mxu1 (!%p138_p2), %v4274_v2  ;;  %3826 = vmatpush3.bf16.msra.mxu0 (!%p138_p2), %v4343_v3 }
   0xc   : > { %3715 = vmatprep.subr.bf16.mxu1 (!%p138_p2), %v4276_v4  ;;  %3859 = vmatprep.subr.bf16.mxu0 (!%p138_p2), %v4277_v5 }
   0xd   : > { %s4985_s13 = smov (!%p161_p3, %s3087_s13), 1 }
   0xe   : > { %s4263_s22 = smul.u32 432, %s4985_s13  ;;  %s3500_s4 = sshll.u32 %s4985_s13, 6 }
   0xf   : > { %s4911_s7 = scalar_lea.vmem %s4983_s3, %s3500_s4 }
  0x10   : > { %s4357_s29 = scalar_lea.vmem %s4980_s0, %s4263_s22 }
  0x11   : > { %v224_v6 = vld [vmem:[%s4357_s29 + $0x1] sm:$0xff]  ;;  %v225_v7 = vld [vmem:[%s4357_s29 + $0x9] sm:$0xff]  ;;  %v3211_v8 = vld [vmem:[%s4357_s29 + $0x19] sm:$0xff] }
  0x12   : > { %v256_v9 = vpack.c.bf16 %v225_v7, %v224_v6  ;;  %v3212_v10 = vld [vmem:[%s4357_s29 + $0x21] sm:$0xff]  ;;  %v3213_v11 = vld [vmem:[%s4357_s29 + $0x31] sm:$0xff]  ;;  %v3214_v12 = vld [vmem:[%s4357_s29 + $0x39] sm:$0xff] }
  0x13   : > { %v1365_v13 = vpack.c.bf16 %v3212_v10, %v3211_v8  ;;  %v4366_v14 = vpack.c.bf16 %v3214_v12, %v3213_v11  ;;  %v3215_v15 = vld [vmem:[%s4357_s29 + $0x49] sm:$0xff]  ;;  %v3216_v16 = vld [vmem:[%s4357_s29 + $0x51] sm:$0xff]  ;;  %v3217_v19 = vld [vmem:[%s4357_s29 + $0x61] sm:$0xff] }
  0x14   : > { %3683 = vmatprep.mubr.msk.bf16.mxu1 %vm289_vm0, %v256_v9  ;;  %v4371_v17 = vpack.c.bf16 %v3216_v16, %v3215_v15  ;;  %v3218_v20 = vld [vmem:[%s4357_s29 + $0x69] sm:$0xff]  ;;  %v3219_v21 = vld [vmem:[%s4357_s29 + $0x79] sm:$0xff]  ;;  %v3220_v22 = vld [vmem:[%s4357_s29 + $0x81] sm:$0xff] }
  0x15   : > { %3827 = vmatprep.mubr.msk.bf16.mxu0 %vm289_vm0, %v1365_v13  ;;  %3684 = vmatmul.mubr.msk.bf16.vlgmr.msra.gmra.mrb[0].mxu1 %vm289_vm0, %v1365_v13  ;;  %v4391_v24 = vpack.c.bf16 %v3218_v20, %v3217_v19  ;;  %v4396_v26 = vpack.c.bf16 %v3220_v22, %v3219_v21  ;;  %v3221_v27 = vld [vmem:[%s4357_s29 + $0x91] sm:$0xff]  ;;  %v3222_v28 = vld [vmem:[%s4357_s29 + $0x99] sm:$0xff]  ;;  %v3223_v29 = vld [vmem:[%s4357_s29 + $0xa9] sm:$0xff] }
  0x16   : > { %3828 = vmatmul.mubr.msk.bf16.vlgmr.msra.gmra.mrb[0].mxu0 %vm289_vm0, %v4366_v14  ;;  %3716 = vmatpush3.bf16.msra.mxu1 %v4276_v4  ;;  %v3224_v30 = vld [vmem:[%s4357_s29 + $0xb1] sm:$0xff]  ;;  %v4410_v31 = vpack.c.bf16 %v3222_v28, %v3221_v27  ;;  %v3225_v34 = vld [vmem:[%s4357_s29 + $0xc1] sm:$0xff]  ;;  %v3226_v35 = vld [vmem:[%s4357_s29 + $0xc9] sm:$0xff] }
  0x17   : > { %3860 = vmatpush3.bf16.msra.mxu0 %v4277_v5  ;;  %3687 = vmatprep.mubr.msk.bf16.mxu1 %vm289_vm0, %v4366_v14  ;;  %v4412_v32 = vpack.c.bf16 %v3224_v30, %v3223_v29  ;;  %v3265_v36 = vld [vmem:[%s4357_s29 + $0x1a] sm:$0xff]  ;;  %v3266_v37 = vld [vmem:[%s4357_s29 + $0x22] sm:$0xff]  ;;  %v4432_v38 = vpack.c.bf16 %v3226_v35, %v3225_v34  ;;  %v3267_v42 = vld [vmem:[%s4357_s29 + $0x32] sm:$0xff] }
  0x18   : > { %3831 = vmatprep.mubr.msk.bf16.mxu0 %vm289_vm0, %v4371_v17  ;;  %3861 = vmatprep.subr.bf16.mxu0 %v4278_v18  ;;  %v4434_v39 = vpack.c.bf16 %v3266_v37, %v3265_v36  ;;  %v242_v40 = vld [vmem:[%s4357_s29 + $0xd9] sm:$0xff]  ;;  %v243_v41 = vld [vmem:[%s4357_s29 + $0xe1] sm:$0xff]  ;;  %v244_v44 = vld [vmem:[%s4357_s29 + $0xf1] sm:$0xff] }
  0x19   : > { %3717 = vmatprep.subr.bf16.mxu1 %v4279_v23  ;;  %v3268_v43 = vld [vmem:[%s4357_s29 + $0x3a] sm:$0xff]  ;;  %v3269_v46 = vld [vmem:[%s4357_s29 + $0x4a] sm:$0xff]  ;;  %v3270_v47 = vld [vmem:[%s4357_s29 + $0x52] sm:$0xff]  ;;  %v4452_v48 = vpack.c.bf16 %v243_v41, %v242_v40 }
  0x1a   : > { %3718 = vmatpush3.bf16.msra.mxu1 %v4279_v23  ;;  %v245_v45 = vld [vmem:[%s4357_s29 + $0xf9] sm:$0xff]  ;;  %v4454_v49 = vpack.c.bf16 %v3268_v43, %v3267_v42  ;;  %v4458_v51 = vpack.c.bf16 %v3270_v47, %v3269_v46  ;;  %v246_v53 = vld [vmem:[%s4357_s29 + $0x109] sm:$0xff]  ;;  %v247_v54 = vld [vmem:[%s4357_s29 + $0x111] sm:$0xff] }
  0x1b   : > { %3862 = vmatpush3.bf16.msra.mxu0 %v4278_v18  ;;  %3751 = vmatprep.subr.bf16.mxu1 %v4419_v33  ;;  %v4456_v50 = vpack.c.bf16 %v245_v45, %v244_v44  ;;  %v3271_v55 = vld [vmem:[%s4357_s29 + $0x62] sm:$0xff]  ;;  %v3272_v56 = vld [vmem:[%s4357_s29 + $0x6a] sm:$0xff]  ;;  %v3273_v59 = vld [vmem:[%s4357_s29 + $0x7a] sm:$0xff]  ;;  %v4484_v62 = vpack.c.bf16 %v247_v54, %v246_v53 }
  0x1c   : > { %3895 = vmatprep.subr.bf16.mxu0 %v4280_v25  ;;  %v248_v57 = vld [vmem:[%s4357_s29 + $0x121] sm:$0xff]  ;;  %v249_v58 = vld [vmem:[%s4357_s29 + $0x129] sm:$0xff]  ;;  %v4486_v63 = vpack.c.bf16 %v3272_v56, %v3271_v55  ;;  %v250_v4 = vld [vmem:[%s4357_s29 + $0x139] sm:$0xff] }
  0x1d   : > { %3688 = vmatmul.mubr.msk.bf16.gmra.mrb[4].mxu1 %vm289_vm0, %v4371_v17  ;;  %v3274_v60 = vld [vmem:[%s4357_s29 + $0x82] sm:$0xff]  ;;  %v4488_v0 = vpack.c.bf16 %v249_v58, %v248_v57  ;;  %v3275_v6 = vld [vmem:[%s4357_s29 + $0x92] sm:$0xff]  ;;  %v3276_v7 = vld [vmem:[%s4357_s29 + $0x9a] sm:$0xff] }
  0x1e   : > { %3832 = vmatmul.mubr.msk.bf16.gmra.mrb[4].mxu0 %vm289_vm0, %v4391_v24  ;;  %3691 = vmatprep.mubr.msk.bf16.mxu1 %vm289_vm0, %v4391_v24  ;;  %v4490_v2 = vpack.c.bf16 %v3274_v60, %v3273_v59  ;;  %v251_v5 = vld [vmem:[%s4357_s29 + $0x141] sm:$0xff]  ;;  %v252_v8 = vld [vmem:[%s4357_s29 + $0x151] sm:$0xff]  ;;  %v253_v9 = vld [vmem:[%s4357_s29 + $0x159] sm:$0xff]  ;;  %v4511_v13 = vpack.c.bf16 %v3276_v7, %v3275_v6 }
  0x1f   : > { %3835 = vmatprep.mubr.msk.bf16.mxu0 %vm289_vm0, %v4396_v26  ;;  %v3277_v10 = vld [vmem:[%s4357_s29 + $0xaa] sm:$0xff]  ;;  %v3278_v11 = vld [vmem:[%s4357_s29 + $0xb2] sm:$0xff]  ;;  %v4509_v12 = vpack.c.bf16 %v251_v5, %v250_v4  ;;  %v4513_v15 = vpack.c.bf16 %v253_v9, %v252_v8  ;;  %v3279_v20 = vld [vmem:[%s4357_s29 + $0xc2] sm:$0xff] }
  0x20   : > { %v4515_v16 = vpack.c.bf16 %v3278_v11, %v3277_v10  ;;  %v254_v18 = vld [vmem:[%s4357_s29 + $0x169] sm:$0xff]  ;;  %v255_v19 = vld [vmem:[%s4357_s29 + $0x171] sm:$0xff]  ;;  %v172_v22 = vld [vmem:[%s4357_s29] sm:$0xff] }
  0x21   : > { %v3280_v21 = vld [vmem:[%s4357_s29 + $0xca] sm:$0xff]  ;;  %v3282_v27 = vld [vmem:[%s4357_s29 + $0xe2] sm:$0xff]  ;;  %v4533_v28 = vpack.c.bf16 %v255_v19, %v254_v18  ;;  %v174_v35 = vld [vmem:[%s4357_s29 + $0x18] sm:$0xff] }
  0x22   : > { %v173_v23 = vld [vmem:[%s4357_s29 + $0x8] sm:$0xff]  ;;  %v4535_v29 = vpack.c.bf16 %v3280_v21, %v3279_v20  ;;  %v175_v36 = vld [vmem:[%s4357_s29 + $0x20] sm:$0xff]  ;;  %v3283_v37 = vld [vmem:[%s4357_s29 + $0xf2] sm:$0xff] }
  0x23   : > { %v204_v30 = vpack.c.bf16 %v173_v23, %v172_v22  ;;  %v3284_v40 = vld [vmem:[%s4357_s29 + $0xfa] sm:$0xff]  ;;  %v176_v41 = vld [vmem:[%s4357_s29 + $0x30] sm:$0xff]  ;;  %v4554_v45 = vpack.c.bf16 %v175_v36, %v174_v35  ;;  %v4283_v53 = vld [vmem:[%s4981_s1 + $0x28] sm:$0xff]  }
  0x24   : > { %v177_v42 = vld [vmem:[%s4357_s29 + $0x38] sm:$0xff]  ;;  %v3285_v43 = vld [vmem:[%s4357_s29 + $0x10a] sm:$0xff]  ;;  %v4556_v46 = vpack.c.bf16 %v3284_v40, %v3283_v37  ;;  %v3287_v56 = vld [vmem:[%s4357_s29 + $0x122] sm:$0xff] }
  0x25   : > { %3692 = vmatmul.mubr.msk.bf16.gmra.mrb[8].mxu1 %vm289_vm0, %v4396_v26  ;;  %v3286_v44 = vld [vmem:[%s4357_s29 + $0x112] sm:$0xff]  ;;  %v4558_v47 = vpack.c.bf16 %v177_v42, %v176_v41  ;;  %v178_v54 = vld [vmem:[%s4357_s29 + $0x48] sm:$0xff]  ;;  %v180_v58 = vld [vmem:[%s4357_s29 + $0x60] sm:$0xff] }
  0x26   : > { %3836 = vmatmul.mubr.msk.bf16.gmra.mrb[8].mxu0 %vm289_vm0, %v4410_v31  ;;  %3695 = vmatprep.mubr.msk.bf16.mxu1 %vm289_vm0, %v4410_v31  ;;  %v179_v55 = vld [vmem:[%s4357_s29 + $0x50] sm:$0xff]  ;;  %v181_v59 = vld [vmem:[%s4357_s29 + $0x68] sm:$0xff]  ;;  %v182_v9 = vld [vmem:[%s4357_s29 + $0x78] sm:$0xff] }
  0x27   : > { %3839 = vmatprep.mubr.msk.bf16.mxu0 %vm289_vm0, %v4412_v32  ;;  %v3288_v57 = vld [vmem:[%s4357_s29 + $0x12a] sm:$0xff]  ;;  %v3290_v4 = vld [vmem:[%s4357_s29 + $0x142] sm:$0xff]  ;;  %v4587_v5 = vpack.c.bf16 %v179_v55, %v178_v54  ;;  %v4591_v7 = vpack.c.bf16 %v181_v59, %v180_v58  ;;  %v3291_v11 = vld [vmem:[%s4357_s29 + $0x152] sm:$0xff] }
  0x28   : > { %v4583_v60 = vld [vmem:[%s4981_s1 + $0x30] sm:$0xff]   ;;  %v4589_v6 = vpack.c.bf16 %v3288_v57, %v3287_v56  ;;  %v183_v10 = vld [vmem:[%s4357_s29 + $0x80] sm:$0xff]  ;;  %v185_v20 = vld [vmem:[%s4357_s29 + $0x98] sm:$0xff] }
  0x29   : > { %v3292_v18 = vld [vmem:[%s4357_s29 + $0x15a] sm:$0xff]  ;;  %v184_v19 = vld [vmem:[%s4357_s29 + $0x90] sm:$0xff]  ;;  %v4612_v23 = vpack.c.bf16 %v183_v10, %v182_v9  ;;  %v186_v35 = vld [vmem:[%s4357_s29 + $0xa8] sm:$0xff] }
  0x2a   : > { %v3293_v21 = vld [vmem:[%s4357_s29 + $0x16a] sm:$0xff]  ;;  %v3294_v22 = vld [vmem:[%s4357_s29 + $0x172] sm:$0xff]  ;;  %v3295_v37 = vld [vmem:[%s4357_s29 + $0x182] sm:$0xff] }
  0x2b   : > { %v187_v36 = vld [vmem:[%s4357_s29 + $0xb0] sm:$0xff]  ;;  %v188_v41 = vld [vmem:[%s4357_s29 + $0xc0] sm:$0xff]  ;;  %v189_v42 = vld [vmem:[%s4357_s29 + $0xc8] sm:$0xff] }
  0x2c   : > { %v3296_v40 = vld [vmem:[%s4357_s29 + $0x18a] sm:$0xff]  ;;  %v190_v54 = vld [vmem:[%s4357_s29 + $0xd8] sm:$0xff]  ;;  %v191_v55 = vld [vmem:[%s4357_s29 + $0xe0] sm:$0xff] }
  0x2d   : > { %3696 = vmatmul.mubr.msk.bf16.gmra.mrb[12].mxu1 %vm289_vm0, %v4412_v32  ;;  %v192_v56 = vld [vmem:[%s4357_s29 + $0xf0] sm:$0xff]  ;;  %v193_v57 = vld [vmem:[%s4357_s29 + $0xf8] sm:$0xff]  ;;  %v4652_v58 = vpack.c.bf16 %v191_v55, %v190_v54  ;;  %v196_v10 = vld [vmem:[%s4357_s29 + $0x120] sm:$0xff] }
  0x2e   : > { %3840 = vmatmul.mubr.msk.bf16.gmra.mrb[12].mxu0 %vm289_vm0, %v4432_v38  ;;  %3699 = vmatprep.mubr.msk.bf16.mxu1 %vm289_vm0, %v4432_v38  ;;  %v4654_v59 = vpack.c.bf16 %v193_v57, %v192_v56  ;;  %v195_v9 = vld [vmem:[%s4357_s29 + $0x110] sm:$0xff]  ;;  %v4287_v57 = vld [vmem:[%s4981_s1 + $0x38] sm:$0xff]  }
  0x2f   : > { %3863 = vmatprep.mubr.msk.bf16.mxu0 %vm289_vm0, %v4434_v39  ;;  %v721_v54 = vld [vmem:[%s4357_s29 + $0xa] sm:$0xff] }
  0x35   : > { %3700 = vmatmul.mubr.msk.bf16.gmra.mrb[16].mxu1 %vm289_vm0, %v4452_v48 }
  0x36   : > { %3864 = vmatmul.mubr.msk.bf16.vlgmr.msra.gmra.mrb[0].mxu0 %vm289_vm0, %v4454_v49  ;;  %3703 = vmatprep.mubr.msk.bf16.mxu1 %vm289_vm0, %v4456_v50 }
  0x37   : > { %3896 = vmatpush3.bf16.msra.mxu0 %v4280_v25  ;;  %3867 = vmatprep.mubr.msk.bf16.mxu0 %vm289_vm0, %v4458_v51  ;;  %v3281_v25 = vld [vmem:[%s4357_s29 + $0xda] sm:$0xff] }
  0x38   : > { %3897 = vmatprep.subr.bf16.mxu0 %v4282_v52  ;;  %v4537_v34 = vpack.c.bf16 %v3282_v27, %v3281_v25  ;;  %v4614_v25 = vpack.c.bf16 %v3292_v18, %v3291_v11  ;;  %v4616_v27 = vpack.c.bf16 %v185_v20, %v184_v19  ;;  %v197_v11 = vld [vmem:[%s4357_s29 + $0x128] sm:$0xff]  ;;  %v4288_v18 = vld [vmem:[%s4981_s1 + $0x80] sm:$0xff]  }
  0x39   : > { %v4677_v20 = vpack.c.bf16 %v197_v11, %v196_v10  ;;  %v4289_v11 = vld [vmem:[%s4981_s1 + $0x88] sm:$0xff]  }
  0x3b   : > { %3898 = vmatpush3.bf16.msra.mxu0 %v4282_v52  ;;  %v4560_v52 = vpack.c.bf16 %v3286_v44, %v3285_v43  ;;  %v4634_v43 = vpack.c.bf16 %v187_v36, %v186_v35  ;;  %v4636_v44 = vpack.c.bf16 %v3296_v40, %v3295_v37  ;;  %v201_v35 = vld [vmem:[%s4357_s29 + $0x158] sm:$0xff]  ;;  %v202_v40 = vld [vmem:[%s4357_s29 + $0x168] sm:$0xff] }
  0x3c   : > { %3931 = vmatprep.subr.bf16.mxu0 %v4482_v61 }
  0x3d   : > { %3704 = vmatmul.mubr.msk.bf16.gmra.mrb[20].mxu1 %vm289_vm0, %v4484_v62 }
  0x3e   : > { %3868 = vmatmul.mubr.msk.bf16.gmra.mrb[4].mxu0 %vm289_vm0, %v4486_v63  ;;  %3707 = vmatprep.mubr.msk.bf16.mxu1 %vm289_vm0, %v4488_v0 }
  0x3f   : > { %3871 = vmatprep.mubr.msk.bf16.mxu0 %vm289_vm0, %v4490_v2 }
  0x45   : > { %3708 = vmatmul.mubr.msk.bf16.gmra.mrb[24].mxu1 %vm289_vm0, %v4509_v12 }
  0x46   : > { %3872 = vmatmul.mubr.msk.bf16.gmra.mrb[8].mxu0 %vm289_vm0, %v4511_v13  ;;  %3711 = vmatprep.mubr.msk.bf16.mxu1 %vm289_vm0, %v4513_v15 }
  0x47   : > { %3875 = vmatprep.mubr.msk.bf16.mxu0 %vm289_vm0, %v4515_v16 }
  0x4d   : > { %3712 = vmatmul.mubr.msk.bf16.gmra.mrb[28].mxu1 %vm289_vm0, %v4533_v28 }
  0x4e   : > { %3876 = vmatmul.mubr.msk.bf16.gmra.mrb[12].mxu0 %vm289_vm0, %v4535_v29  ;;  %3719 = vmatprep.mubr.msk.bf16.mxu1 %vm289_vm0, %v204_v30  ;;  %v4618_v30 = vpack.c.bf16 %v3294_v22, %v3293_v21  ;;  %v199_v21 = vld [vmem:[%s4357_s29 + $0x140] sm:$0xff]  ;;  %v200_v22 = vld [vmem:[%s4357_s29 + $0x150] sm:$0xff] }
  0x4f   : > { %3879 = vmatprep.mubr.msk.bf16.mxu0 %vm289_vm0, %v4537_v34  ;;  %v4693_v37 = vpack.c.bf16 %v201_v35, %v200_v22 }
  0x55   : > { %3720 = vmatmul.mubr.msk.bf16.vlgmr.msra.gmra.mrb[0].mxu1 %vm289_vm0, %v4554_v45 }
  0x56   : > { %3880 = vmatmul.mubr.msk.bf16.gmra.mrb[16].mxu0 %vm289_vm0, %v4556_v46  ;;  %3752 = vmatpush3.bf16.msra.mxu1 %v4419_v33  ;;  %v3289_v33 = vld [vmem:[%s4357_s29 + $0x13a] sm:$0xff] }
  0x57   : > { %3723 = vmatprep.mubr.msk.bf16.mxu1 %vm289_vm0, %v4558_v47  ;;  %3883 = vmatprep.mubr.msk.bf16.mxu0 %vm289_vm0, %v4560_v52  ;;  %v4593_v8 = vpack.c.bf16 %v3290_v4, %v3289_v33  ;;  %v4286_v33 = vld [vmem:[%s4981_s1 + $0x78] sm:$0xff]   ;;  %v194_v4 = vld [vmem:[%s4357_s29 + $0x108] sm:$0xff] }
  0x58   : > { %3753 = vmatprep.subr.bf16.mxu1 %v4283_v53  ;;  %v4675_v19 = vpack.c.bf16 %v195_v9, %v194_v4  ;;  %v3349_v4 = vld [vmem:[%s4357_s29 + $0x198] sm:$0xff]  ;;  %v3350_v9 = vld [vmem:[%s4357_s29 + $0x1a0] sm:$0xff] }
  0x59   : > { %v1993_v10 = vpack.c.bf16 %v3350_v9, %v3349_v4 }
  0x5a   : > { %3754 = vmatpush3.bf16.msra.mxu1 %v4283_v53  ;;  %v4638_v53 = vpack.c.bf16 %v189_v42, %v188_v41  ;;  %v203_v41 = vld [vmem:[%s4357_s29 + $0x170] sm:$0xff]  ;;  %v720_v42 = vld [vmem:[%s4357_s29 + $0x2] sm:$0xff] }
  0x5b   : > { %3787 = vmatprep.subr.bf16.mxu1 %v4583_v60  ;;  %v4707_v55 = vpack.c.bf16 %v203_v41, %v202_v40  ;;  %v752_v56 = vpack.c.bf16 %v721_v54, %v720_v42 }
  0x5d   : > { %3724 = vmatmul.mubr.msk.bf16.gmra.mrb[4].mxu1 %vm289_vm0, %v4587_v5 }
  0x5e   : > { %3884 = vmatmul.mubr.msk.bf16.gmra.mrb[20].mxu0 %vm289_vm0, %v4589_v6  ;;  %3727 = vmatprep.mubr.msk.bf16.mxu1 %vm289_vm0, %v4591_v7 }
  0x5f   : > { %3887 = vmatprep.mubr.msk.bf16.mxu0 %vm289_vm0, %v4593_v8 }
  0x65   : > { %3728 = vmatmul.mubr.msk.bf16.gmra.mrb[8].mxu1 %vm289_vm0, %v4612_v23 }
  0x66   : > { %3888 = vmatmul.mubr.msk.bf16.gmra.mrb[24].mxu0 %vm289_vm0, %v4614_v25  ;;  %3731 = vmatprep.mubr.msk.bf16.mxu1 %vm289_vm0, %v4616_v27 }
  0x67   : > { %3891 = vmatprep.mubr.msk.bf16.mxu0 %vm289_vm0, %v4618_v30 }
  0x6d   : > { %3732 = vmatmul.mubr.msk.bf16.gmra.mrb[12].mxu1 %vm289_vm0, %v4634_v43 }
  0x6e   : > { %3892 = vmatmul.mubr.msk.bf16.gmra.mrb[28].mxu0 %vm289_vm0, %v4636_v44  ;;  %3735 = vmatprep.mubr.msk.bf16.mxu1 %vm289_vm0, %v4638_v53 }
  0x6f   : > { %3899 = vmatprep.mubr.msk.bf16.mxu0 %vm289_vm0, %v4558_v47 }
  0x75   : > { %3736 = vmatmul.mubr.msk.bf16.gmra.mrb[16].mxu1 %vm289_vm0, %v4652_v58 }
  0x76   : > { %3900 = vmatmul.mubr.msk.bf16.vlgmr.msra.gmra.mrb[0].mxu0 %vm289_vm0, %v4587_v5  ;;  %3739 = vmatprep.mubr.msk.bf16.mxu1 %vm289_vm0, %v4654_v59 }
  0x77   : > { %3932 = vmatpush3.bf16.msra.mxu0 %v4482_v61  ;;  %3903 = vmatprep.mubr.msk.bf16.mxu0 %vm289_vm0, %v4591_v7  ;;  %v198_v61 = vld [vmem:[%s4357_s29 + $0x138] sm:$0xff] }
  0x78   : > { %3933 = vmatprep.subr.bf16.mxu0 %v4286_v33  ;;  %v4691_v36 = vpack.c.bf16 %v199_v21, %v198_v61 }
  0x7b   : > { %3934 = vmatpush3.bf16.msra.mxu0 %v4286_v33 }
  0x7c   : > { %3967 = vmatprep.subr.bf16.mxu0 %v4288_v18 }
  0x7d   : > { %3740 = vmatmul.mubr.msk.bf16.gmra.mrb[20].mxu1 %vm289_vm0, %v4675_v19 }
  0x7e   : > { %3904 = vmatmul.mubr.msk.bf16.gmra.mrb[4].mxu0 %vm289_vm0, %v4612_v23  ;;  %3743 = vmatprep.mubr.msk.bf16.mxu1 %vm289_vm0, %v4677_v20 }
  0x7f   : > { %3907 = vmatprep.mubr.msk.bf16.mxu0 %vm289_vm0, %v4616_v27 }
  0x85   : > { %3744 = vmatmul.mubr.msk.bf16.gmra.mrb[24].mxu1 %vm289_vm0, %v4691_v36 }
  0x86   : > { %3908 = vmatmul.mubr.msk.bf16.gmra.mrb[8].mxu0 %vm289_vm0, %v4634_v43  ;;  %3747 = vmatprep.mubr.msk.bf16.mxu1 %vm289_vm0, %v4693_v37 }
  0x87   : > { %3911 = vmatprep.mubr.msk.bf16.mxu0 %vm289_vm0, %v4638_v53 }
  0x8d   : > { %3748 = vmatmul.mubr.msk.bf16.gmra.mrb[28].mxu1 %vm289_vm0, %v4707_v55 }
  0x8e   : > { %3912 = vmatmul.mubr.msk.bf16.gmra.mrb[12].mxu0 %vm289_vm0, %v4652_v58  ;;  %3755 = vmatprep.mubr.msk.bf16.mxu1 %vm289_vm0, %v752_v56 }
  0x8f   : > { %3915 = vmatprep.mubr.msk.bf16.mxu0 %vm289_vm0, %v4654_v59 }
  0x95   : > { %3756 = vmatmul.mubr.msk.bf16.vlgmr.msra.gmra.mrb[0].mxu1 %vm289_vm0, %v4434_v39  ;;  %v3347_v39 = vld [vmem:[%s4357_s29 + $0x180] sm:$0xff] }
  0x96   : > { %3916 = vmatmul.mubr.msk.bf16.gmra.mrb[16].mxu0 %vm289_vm0, %v4675_v19  ;;  %3788 = vmatpush3.bf16.msra.mxu1 %v4583_v60  ;;  %v3348_v60 = vld [vmem:[%s4357_s29 + $0x188] sm:$0xff] }
  0x97   : > { %3759 = vmatprep.mubr.msk.bf16.mxu1 %vm289_vm0, %v4454_v49  ;;  %3919 = vmatprep.mubr.msk.bf16.mxu0 %vm289_vm0, %v4677_v20  ;;  %v4739_v33 = vpack.c.bf16 %v3348_v60, %v3347_v39 }
  0x98   : > { %3789 = vmatprep.subr.bf16.mxu1 %v4287_v57 }
  0x9a   : > { %3790 = vmatpush3.bf16.msra.mxu1 %v4287_v57 }
  0x9b   : > { %4003 = vmatprep.subr.bf16.mxu1 %v4332_v1 }
  0x9d   : > { %3760 = vmatmul.mubr.msk.bf16.gmra.mrb[4].mxu1 %vm289_vm0, %v4458_v51 }
  0x9e   : > { %3920 = vmatmul.mubr.msk.bf16.gmra.mrb[20].mxu0 %vm289_vm0, %v4691_v36  ;;  %3763 = vmatprep.mubr.msk.bf16.mxu1 %vm289_vm0, %v4486_v63 }
  0x9f   : > { %3923 = vmatprep.mubr.msk.bf16.mxu0 %vm289_vm0, %v4693_v37 }
  0xa5   : > { %3764 = vmatmul.mubr.msk.bf16.gmra.mrb[8].mxu1 %vm289_vm0, %v4490_v2 }
  0xa6   : > { %3924 = vmatmul.mubr.msk.bf16.gmra.mrb[24].mxu0 %vm289_vm0, %v4707_v55  ;;  %3767 = vmatprep.mubr.msk.bf16.mxu1 %vm289_vm0, %v4511_v13 }
  0xa7   : > { %3927 = vmatprep.mubr.msk.bf16.mxu0 %vm289_vm0, %v4739_v33 }
  0xad   : > { %3768 = vmatmul.mubr.msk.bf16.gmra.mrb[12].mxu1 %vm289_vm0, %v4515_v16 }
  0xae   : > { %3928 = vmatmul.mubr.msk.bf16.gmra.mrb[28].mxu0 %vm289_vm0, %v1993_v10  ;;  %3771 = vmatprep.mubr.msk.bf16.mxu1 %vm289_vm0, %v4535_v29 }
  0xaf   : > { %3935 = vmatprep.mubr.msk.bf16.mxu0 %vm289_vm0, %v4366_v14  ;;  %v3402_v14 = vld [vmem:[%s4357_s29 + $0x189] sm:$0xff] }
  0xb5   : > { %3772 = vmatmul.mubr.msk.bf16.gmra.mrb[16].mxu1 %vm289_vm0, %v4537_v34 }
  0xb6   : > { %3936 = vmatmul.mubr.msk.bf16.vlgmr.msra.gmra.mrb[0].mxu0 %vm289_vm0, %v4371_v17  ;;  %3775 = vmatprep.mubr.msk.bf16.mxu1 %vm289_vm0, %v4556_v46 }
  0xb7   : > { %3968 = vmatpush3.bf16.msra.mxu0 %v4288_v18  ;;  %3939 = vmatprep.mubr.msk.bf16.mxu0 %vm289_vm0, %v4391_v24  ;;  %v3404_v24 = vld [vmem:[%s4357_s29 + $0x1a1] sm:$0xff] }
  0xb8   : > { %3969 = vmatprep.subr.bf16.mxu0 %v4289_v11 }
  0xbb   : > { %3970 = vmatpush3.bf16.msra.mxu0 %v4289_v11 }
  0xbd   : > { %3776 = vmatmul.mubr.msk.bf16.gmra.mrb[20].mxu1 %vm289_vm0, %v4560_v52 }
  0xbe   : > { %3940 = vmatmul.mubr.msk.bf16.gmra.mrb[4].mxu0 %vm289_vm0, %v4396_v26  ;;  %3779 = vmatprep.mubr.msk.bf16.mxu1 %vm289_vm0, %v4589_v6 }
  0xbf   : > { %3943 = vmatprep.mubr.msk.bf16.mxu0 %vm289_vm0, %v4410_v31  ;;  %v3457_v31 = vld [vmem:[%s4357_s29 + $0x19a] sm:$0xff] }
  0xc5   : > { %3780 = vmatmul.mubr.msk.bf16.gmra.mrb[24].mxu1 %vm289_vm0, %v4593_v8 }
  0xc6   : > { %3944 = vmatmul.mubr.msk.bf16.gmra.mrb[8].mxu0 %vm289_vm0, %v4412_v32  ;;  %3783 = vmatprep.mubr.msk.bf16.mxu1 %vm289_vm0, %v4614_v25  ;;  %v3458_v32 = vld [vmem:[%s4357_s29 + $0x1a2] sm:$0xff] }
  0xc7   : > { %3947 = vmatprep.mubr.msk.bf16.mxu0 %vm289_vm0, %v4432_v38  ;;  %v2605_v38 = vpack.c.bf16 %v3458_v32, %v3457_v31 }
  0xcd   : > { %3784 = vmatmul.mubr.msk.bf16.gmra.mrb[28].mxu1 %vm289_vm0, %v4618_v30 }
  0xce   : > { %3948 = vmatmul.mubr.msk.bf16.gmra.mrb[12].mxu0 %vm289_vm0, %v4452_v48  ;;  %3791 = vmatprep.mubr.msk.bf16.mxu1 %vm289_vm0, %v4554_v45 }
  0xcf   : > { %3951 = vmatprep.mubr.msk.bf16.mxu0 %vm289_vm0, %v4456_v50 }
  0xd5   : > { %3792 = vmatmul.mubr.msk.bf16.vlgmr.msra.gmra.mrb[0].mxu1 %vm289_vm0, %v4558_v47  ;;  %v4901_v47 = vld [vmem:[%s4982_s2] ss:$0 sm:$0xff] }
  0xd6   : > { %3952 = vmatmul.mubr.msk.bf16.gmra.mrb[16].mxu0 %vm289_vm0, %v4484_v62  ;;  %4005 = vmatpush3.bf16.msra.mxu1 %v4332_v1  ;;  %v3401_v1 = vld [vmem:[%s4357_s29 + $0x181] sm:$0xff] }
  0xd7   : > { %3795 = vmatprep.mubr.msk.bf16.mxu1 %vm289_vm0, %v4587_v5  ;;  %3955 = vmatprep.mubr.msk.bf16.mxu0 %vm289_vm0, %v4488_v0  ;;  %v2298_v17 = vpack.c.bf16 %v3402_v14, %v3401_v1 }
  0xd8   : > { %4004 = vmatprep.subr.bf16.mxu1 %v4343_v3 }
  0xda   : > { %4006 = vmatpush3.bf16.msra.mxu1 %v4343_v3  ;;  %v3403_v3 = vld [vmem:[%s4357_s29 + $0x199] sm:$0xff] }
  0xdb   : > { %v2299_v26 = vpack.c.bf16 %v3404_v24, %v3403_v3 }
  0xdd   : > { %3796 = vmatmul.mubr.msk.bf16.gmra.mrb[4].mxu1 %vm289_vm0, %v4591_v7 }
  0xde   : > { %3956 = vmatmul.mubr.msk.bf16.gmra.mrb[20].mxu0 %vm289_vm0, %v4509_v12  ;;  %3799 = vmatprep.mubr.msk.bf16.mxu1 %vm289_vm0, %v4612_v23 }
  0xdf   : > { %3959 = vmatprep.mubr.msk.bf16.mxu0 %vm289_vm0, %v4513_v15 }
  0xe5   : > { %3800 = vmatmul.mubr.msk.bf16.gmra.mrb[8].mxu1 %vm289_vm0, %v4616_v27 }
  0xe6   : > { %3960 = vmatmul.mubr.msk.bf16.gmra.mrb[24].mxu0 %vm289_vm0, %v4533_v28  ;;  %3803 = vmatprep.mubr.msk.bf16.mxu1 %vm289_vm0, %v4634_v43 }
  0xe7   : > { %3963 = vmatprep.mubr.msk.bf16.mxu0 %vm289_vm0, %v2298_v17 }
  0xed   : > { %3804 = vmatmul.mubr.msk.bf16.gmra.mrb[12].mxu1 %vm289_vm0, %v4638_v53 }
  0xee   : > { %3964 = vmatmul.mubr.msk.bf16.gmra.mrb[28].mxu0 %vm289_vm0, %v2299_v26  ;;  %3807 = vmatprep.mubr.msk.bf16.mxu1 %vm289_vm0, %v4652_v58 }
  0xef   : > { %3971 = vmatprep.mubr.msk.bf16.mxu0 %vm289_vm0, %v4454_v49 }
  0xf5   : > { %3808 = vmatmul.mubr.msk.bf16.gmra.mrb[16].mxu1 %vm289_vm0, %v4654_v59 }
  0xf6   : > { %3972 = vmatmul.mubr.msk.bf16.vlgmr.msra.gmra.mrb[0].mxu0 %vm289_vm0, %v4458_v51  ;;  %3811 = vmatprep.mubr.msk.bf16.mxu1 %vm289_vm0, %v4675_v19 }
  0xf7   : > { %3975 = vmatprep.mubr.msk.bf16.mxu0 %vm289_vm0, %v4486_v63 }
  0xfd   : > { %3812 = vmatmul.mubr.msk.bf16.gmra.mrb[20].mxu1 %vm289_vm0, %v4677_v20 }
  0xfe   : > { %3976 = vmatmul.mubr.msk.bf16.gmra.mrb[4].mxu0 %vm289_vm0, %v4490_v2  ;;  %3815 = vmatprep.mubr.msk.bf16.mxu1 %vm289_vm0, %v4691_v36 }
  0xff   : > { %3979 = vmatprep.mubr.msk.bf16.mxu0 %vm289_vm0, %v4511_v13 }
 0x105   : > { %3816 = vmatmul.mubr.msk.bf16.gmra.mrb[24].mxu1 %vm289_vm0, %v4693_v37 }
 0x106   : > { %3980 = vmatmul.mubr.msk.bf16.gmra.mrb[8].mxu0 %vm289_vm0, %v4515_v16  ;;  %3819 = vmatprep.mubr.msk.bf16.mxu1 %vm289_vm0, %v4707_v55 }
 0x107   : > { %3983 = vmatprep.mubr.msk.bf16.mxu0 %vm289_vm0, %v4535_v29 }
 0x10d   : > { %3820 = vmatmul.mubr.msk.bf16.gmra.mrb[28].mxu1 %vm289_vm0, %v4739_v33 }
 0x10e   : > { %3984 = vmatmul.mubr.msk.bf16.gmra.mrb[12].mxu0 %vm289_vm0, %v4537_v34  ;;  %3843 = vmatprep.mubr.msk.bf16.mxu1 %vm289_vm0, %v4452_v48 }
 0x10f   : > { %3987 = vmatprep.mubr.msk.bf16.mxu0 %vm289_vm0, %v4556_v46 }
 0x115   : > { %3844 = vmatmul.mubr.msk.bf16.vlgmr.msra.gmra.mrb[16].mxu1 %vm289_vm0, %v4456_v50 }
 0x116   : > { %3988 = vmatmul.mubr.msk.bf16.gmra.mrb[16].mxu0 %vm289_vm0, %v4560_v52  ;;  %3847 = vmatprep.mubr.msk.bf16.mxu1 %vm289_vm0, %v4484_v62 }
 0x117   : > { %3991 = vmatprep.mubr.msk.bf16.mxu0 %vm289_vm0, %v4589_v6 }
 0x11d   : > { %3848 = vmatmul.mubr.msk.bf16.gmra.mrb[20].mxu1 %vm289_vm0, %v4488_v0 }
 0x11e   : > { %3992 = vmatmul.mubr.msk.bf16.gmra.mrb[20].mxu0 %vm289_vm0, %v4593_v8  ;;  %3851 = vmatprep.mubr.msk.bf16.mxu1 %vm289_vm0, %v4509_v12 }
 0x11f   : > { %3995 = vmatprep.mubr.msk.bf16.mxu0 %vm289_vm0, %v4614_v25 }
 0x125   : > { %3852 = vmatmul.mubr.msk.bf16.gmra.mrb[24].mxu1 %vm289_vm0, %v4513_v15 }
 0x126   : > { %3996 = vmatmul.mubr.msk.bf16.gmra.mrb[24].mxu0 %vm289_vm0, %v4618_v30  ;;  %3855 = vmatprep.mubr.msk.bf16.mxu1 %vm289_vm0, %v4533_v28 }
 0x127   : > { %3999 = vmatprep.mubr.msk.bf16.mxu0 %vm289_vm0, %v4636_v44 }
 0x12d   : > { %3856 = vmatmul.mubr.msk.bf16.gmra.mrb[28].mxu1 %vm289_vm0, %v2298_v17 }
 0x12e   : > { %4000 = vmatmul.mubr.msk.bf16.gmra.mrb[28].mxu0 %vm289_vm0, %v2605_v38 }
 0x1a8   : > { %v3793_v48 = vpop.f32.mrb[0].mxu1 }
 0x1a9   : > { %v1174_v49 = vpop.f32.mrb[1].mxu1 }
 0x1aa   : > { %v3794_v50 = vpop.f32.mrb[2].mxu1 }
 0x1ab   : > { %v1177_v51 = vpop.f32.mrb[3].mxu1 }
 0x1b0   : > { %v3797_v62 = vpop.f32.mrb[4].mxu1 }
 0x1b1   : > { %v1190_v63 = vpop.f32.mrb[5].mxu1 }
 0x1b2   : > { %v3798_v0 = vpop.f32.mrb[6].mxu1 }
 0x1b3   : > { %v1193_v2 = vpop.f32.mrb[7].mxu1 }
 0x1b8   : > { %v3801_v12 = vpop.f32.mrb[8].mxu1 }
 0x1b9   : > { %v1206_v13 = vpop.f32.mrb[9].mxu1 }
 0x1ba   : > { %v3802_v15 = vpop.f32.mrb[10].mxu1 }
 0x1bb   : > { %v1209_v16 = vpop.f32.mrb[11].mxu1 }
 0x1c0   : > { %v4890_v28 = vpop.f32.mrb[12].mxu1 }
 0x1c1   : > { %v4892_v29 = vpop.f32.mrb[13].mxu1 }
 0x1c2   : > { %v4894_v34 = vpop.f32.mrb[14].mxu1 }
 0x1c3   : > { %v4896_v45 = vpop.f32.mrb[15].mxu1 }
 0x1c9   : > { %v3973_v46 = vpop.f32.mrb[0].mxu0 }
 0x1ca   : > { %v4007_v52 = vadd.f32 %v3973_v46, %v3793_v48  ;;  %v2705_v5 = vpop.f32.mrb[1].mxu0 }
 0x1cb   : > { %v4008_v6 = vadd.f32 %v2705_v5, %v1174_v49  ;;  %v3974_v7 = vpop.f32.mrb[2].mxu0 }
 0x1cc   : > { %v2873_v8 = vadd.f32 %v4007_v52, %v4901_v47  ;;  %v4009_v23 = vadd.f32 %v3974_v7, %v3794_v50  ;;  %v2708_v25 = vpop.f32.mrb[3].mxu0 }
 0x1cd   : > { %v2871_v27 = vadd.f32 %v4008_v6, %v4901_v47  ;;  %v4010_v30 = vadd.f32 %v2708_v25, %v1177_v51 }
 0x1ce   : > { %v2905_v43 = vmax.f32 %v2873_v8, 0.0  ;;  %v2874_v44 = vadd.f32 %v4009_v23, %v4901_v47 }
 0x1cf   : > { %v2903_v53 = vmax.f32 %v2871_v27, 0.0  ;;  %v2872_v58 = vadd.f32 %v4010_v30, %v4901_v47 }
 0x1d0   : > { %v2906_v59 = vmax.f32 %v2874_v44, 0.0 }
 0x1d1   : > { %v2935_v18 = vmax.f32 %v2903_v53, %v2905_v43  ;;  %v2904_v19 = vmax.f32 %v2872_v58, 0.0  ;;  %v3977_v20 = vpop.f32.mrb[4].mxu0 }
 0x1d2   : > { %v4011_v61 = vadd.f32 %v3977_v20, %v3797_v62  ;;  %v2721_v21 = vpop.f32.mrb[5].mxu0 }
 0x1d3   : > { %v3501_v22 = vpack.c.bf16 %v2935_v18, %v2935_v18  ;;  %v2936_v35 = vmax.f32 %v2904_v19, %v2906_v59  ;;  %v4012_v36 = vadd.f32 %v2721_v21, %v1190_v63  ;;  %v3978_v37 = vpop.f32.mrb[6].mxu0 }
 0x1d4   : > { %v2877_v40 = vadd.f32 %v4011_v61, %v4901_v47  ;;  %v4013_v41 = vadd.f32 %v3978_v37, %v3798_v0  ;;  %v2724_v42 = vpop.f32.mrb[7].mxu0 }
 0x1d5   : > { %3016 = vst.msk [vmem:[%s4911_s7] sm:$0xf] %vm3015_vm1, %v3501_v22  ;;  %v3502_v54 = vpack.c.bf16 %v2936_v35, %v2936_v35  ;;  %v2875_v55 = vadd.f32 %v4012_v36, %v4901_v47  ;;  %v4014_v56 = vadd.f32 %v2724_v42, %v1193_v2 }
 0x1d6   : > { %v2909_v57 = vmax.f32 %v2877_v40, 0.0  ;;  %v2878_v39 = vadd.f32 %v4013_v41, %v4901_v47 }
 0x1d7   : > { %3017 = vst.msk [vmem:[%s4911_s7 + $0x4] sm:$0xf] %vm3015_vm1, %v3502_v54  ;;  %v2907_v60 = vmax.f32 %v2875_v55, 0.0  ;;  %v2876_v33 = vadd.f32 %v4014_v56, %v4901_v47 }
 0x1d8   : > { %v2910_v4 = vmax.f32 %v2878_v39, 0.0 }
 0x1d9   : > { %v2937_v9 = vmax.f32 %v2907_v60, %v2909_v57  ;;  %v2908_v10 = vmax.f32 %v2876_v33, 0.0  ;;  %v3981_v11 = vpop.f32.mrb[8].mxu0 }
 0x1da   : > { %v4015_v1 = vadd.f32 %v3981_v11, %v3801_v12  ;;  %v2737_v14 = vpop.f32.mrb[9].mxu0 }
 0x1db   : > { %v3503_v17 = vpack.c.bf16 %v2937_v9, %v2937_v9  ;;  %v2938_v3 = vmax.f32 %v2908_v10, %v2910_v4  ;;  %v4016_v24 = vadd.f32 %v2737_v14, %v1206_v13  ;;  %v3982_v26 = vpop.f32.mrb[10].mxu0 }
 0x1dc   : > { %v2881_v31 = vadd.f32 %v4015_v1, %v4901_v47  ;;  %v4017_v32 = vadd.f32 %v3982_v26, %v3802_v15  ;;  %v2740_v38 = vpop.f32.mrb[11].mxu0 }
 0x1dd   : > { %3018 = vst.msk [vmem:[%s4911_s7 + $0x8] sm:$0xf] %vm3015_vm1, %v3503_v17  ;;  %v3504_v48 = vpack.c.bf16 %v2938_v3, %v2938_v3  ;;  %v2879_v49 = vadd.f32 %v4016_v24, %v4901_v47  ;;  %v4018_v50 = vadd.f32 %v2740_v38, %v1209_v16 }
 0x1de   : > { %v2913_v51 = vmax.f32 %v2881_v31, 0.0  ;;  %v2882_v62 = vadd.f32 %v4017_v32, %v4901_v47 }
 0x1df   : > { %3019 = vst.msk [vmem:[%s4911_s7 + $0xc] sm:$0xf] %vm3015_vm1, %v3504_v48  ;;  %v2911_v63 = vmax.f32 %v2879_v49, 0.0  ;;  %v2880_v0 = vadd.f32 %v4018_v50, %v4901_v47 }
 0x1e0   : > { %v2914_v2 = vmax.f32 %v2882_v62, 0.0 }
 0x1e1   : > { %v2939_v12 = vmax.f32 %v2911_v63, %v2913_v51  ;;  %v2912_v13 = vmax.f32 %v2880_v0, 0.0  ;;  %v3985_v15 = vpop.f32.mrb[12].mxu0 }
 0x1e2   : > { %v4019_v46 = vadd.f32 %v3985_v15, %v4890_v28  ;;  %v2753_v52 = vpop.f32.mrb[13].mxu0 }
 0x1e3   : > { %v3505_v5 = vpack.c.bf16 %v2939_v12, %v2939_v12  ;;  %v2940_v6 = vmax.f32 %v2912_v13, %v2914_v2  ;;  %v4020_v16 = vadd.f32 %v2753_v52, %v4892_v29  ;;  %v3986_v7 = vpop.f32.mrb[14].mxu0 }
 0x1e4   : > { %v2885_v8 = vadd.f32 %v4019_v46, %v4901_v47  ;;  %v4021_v23 = vadd.f32 %v3986_v7, %v4894_v34  ;;  %v2756_v25 = vpop.f32.mrb[15].mxu0 }
 0x1e5   : > { %3020 = vst.msk [vmem:[%s4911_s7 + $0x10] sm:$0xf] %vm3015_vm1, %v3505_v5  ;;  %v3506_v27 = vpack.c.bf16 %v2940_v6, %v2940_v6  ;;  %v2883_v30 = vadd.f32 %v4020_v16, %v4901_v47  ;;  %v4022_v43 = vadd.f32 %v2756_v25, %v4896_v45 }
 0x1e6   : > { %v2917_v44 = vmax.f32 %v2885_v8, 0.0  ;;  %v2886_v28 = vadd.f32 %v4021_v23, %v4901_v47 }
 0x1e7   : > { %3021 = vst.msk [vmem:[%s4911_s7 + $0x14] sm:$0xf] %vm3015_vm1, %v3506_v27  ;;  %v2915_v53 = vmax.f32 %v2883_v30, 0.0  ;;  %v2884_v29 = vadd.f32 %v4022_v43, %v4901_v47 }
 0x1e8   : > { %v2918_v58 = vmax.f32 %v2886_v28, 0.0  ;;  %v3845_v59 = vpop.f32.mrb[16].mxu1 }
 0x1e9   : > { %v2941_v34 = vmax.f32 %v2915_v53, %v2917_v44  ;;  %v2916_v18 = vmax.f32 %v2884_v29, 0.0  ;;  %v3989_v19 = vpop.f32.mrb[16].mxu0  ;;  %v1544_v20 = vpop.f32.mrb[17].mxu1 }
 0x1ea   : > { %v4023_v61 = vadd.f32 %v3989_v19, %v3845_v59  ;;  %v2769_v21 = vpop.f32.mrb[17].mxu0  ;;  %v3846_v22 = vpop.f32.mrb[18].mxu1 }
 0x1eb   : > { %v3507_v45 = vpack.c.bf16 %v2941_v34, %v2941_v34  ;;  %v2942_v35 = vmax.f32 %v2916_v18, %v2918_v58  ;;  %v4024_v36 = vadd.f32 %v2769_v21, %v1544_v20  ;;  %v3990_v37 = vpop.f32.mrb[18].mxu0  ;;  %v1547_v40 = vpop.f32.mrb[19].mxu1 }
 0x1ec   : > { %v2889_v41 = vadd.f32 %v4023_v61, %v4901_v47  ;;  %v4025_v42 = vadd.f32 %v3990_v37, %v3846_v22  ;;  %v2772_v54 = vpop.f32.mrb[19].mxu0 }
 0x1ed   : > { %3022 = vst.msk [vmem:[%s4911_s7 + $0x18] sm:$0xf] %vm3015_vm1, %v3507_v45  ;;  %v3508_v55 = vpack.c.bf16 %v2942_v35, %v2942_v35  ;;  %v2887_v56 = vadd.f32 %v4024_v36, %v4901_v47  ;;  %v4026_v57 = vadd.f32 %v2772_v54, %v1547_v40 }
 0x1ee   : > { %v2921_v39 = vmax.f32 %v2889_v41, 0.0  ;;  %v2890_v60 = vadd.f32 %v4025_v42, %v4901_v47 }
 0x1ef   : > { %3023 = vst.msk [vmem:[%s4911_s7 + $0x1c] sm:$0xf] %vm3015_vm1, %v3508_v55  ;;  %v2919_v33 = vmax.f32 %v2887_v56, 0.0  ;;  %v2888_v4 = vadd.f32 %v4026_v57, %v4901_v47 }
 0x1f0   : > { %v2922_v9 = vmax.f32 %v2890_v60, 0.0  ;;  %v3849_v10 = vpop.f32.mrb[20].mxu1 }
 0x1f1   : > { %v2943_v11 = vmax.f32 %v2919_v33, %v2921_v39  ;;  %v2920_v1 = vmax.f32 %v2888_v4, 0.0  ;;  %v3993_v14 = vpop.f32.mrb[20].mxu0  ;;  %v1560_v17 = vpop.f32.mrb[21].mxu1 }
 0x1f2   : > { %v4027_v3 = vadd.f32 %v3993_v14, %v3849_v10  ;;  %v2785_v24 = vpop.f32.mrb[21].mxu0  ;;  %v3850_v26 = vpop.f32.mrb[22].mxu1 }
 0x1f3   : > { %v3509_v31 = vpack.c.bf16 %v2943_v11, %v2943_v11  ;;  %v2944_v32 = vmax.f32 %v2920_v1, %v2922_v9  ;;  %v4028_v38 = vadd.f32 %v2785_v24, %v1560_v17  ;;  %v3994_v48 = vpop.f32.mrb[22].mxu0  ;;  %v1563_v49 = vpop.f32.mrb[23].mxu1 }
 0x1f4   : > { %v2893_v50 = vadd.f32 %v4027_v3, %v4901_v47  ;;  %v4029_v51 = vadd.f32 %v3994_v48, %v3850_v26  ;;  %v2788_v62 = vpop.f32.mrb[23].mxu0 }
 0x1f5   : > { %3024 = vst.msk [vmem:[%s4911_s7 + $0x20] sm:$0xf] %vm3015_vm1, %v3509_v31  ;;  %v3510_v63 = vpack.c.bf16 %v2944_v32, %v2944_v32  ;;  %v2891_v0 = vadd.f32 %v4028_v38, %v4901_v47  ;;  %v4030_v2 = vadd.f32 %v2788_v62, %v1563_v49 }
 0x1f6   : > { %v2925_v12 = vmax.f32 %v2893_v50, 0.0  ;;  %v2894_v13 = vadd.f32 %v4029_v51, %v4901_v47 }
 0x1f7   : > { %3025 = vst.msk [vmem:[%s4911_s7 + $0x24] sm:$0xf] %vm3015_vm1, %v3510_v63  ;;  %v2923_v15 = vmax.f32 %v2891_v0, 0.0  ;;  %v2892_v46 = vadd.f32 %v4030_v2, %v4901_v47 }
 0x1f8   : > { %v2926_v52 = vmax.f32 %v2894_v13, 0.0  ;;  %v3853_v5 = vpop.f32.mrb[24].mxu1 }
 0x1f9   : > { %v2945_v6 = vmax.f32 %v2923_v15, %v2925_v12  ;;  %v2924_v16 = vmax.f32 %v2892_v46, 0.0  ;;  %v3997_v7 = vpop.f32.mrb[24].mxu0  ;;  %v1576_v8 = vpop.f32.mrb[25].mxu1 }
 0x1fa   : > { %v4031_v23 = vadd.f32 %v3997_v7, %v3853_v5  ;;  %v2801_v25 = vpop.f32.mrb[25].mxu0  ;;  %v3854_v27 = vpop.f32.mrb[26].mxu1 }
 0x1fb   : > { %v3511_v30 = vpack.c.bf16 %v2945_v6, %v2945_v6  ;;  %v2946_v43 = vmax.f32 %v2924_v16, %v2926_v52  ;;  %v4032_v44 = vadd.f32 %v2801_v25, %v1576_v8  ;;  %v3998_v28 = vpop.f32.mrb[26].mxu0  ;;  %v1579_v53 = vpop.f32.mrb[27].mxu1 }
 0x1fc   : > { %v2897_v29 = vadd.f32 %v4031_v23, %v4901_v47  ;;  %v4033_v58 = vadd.f32 %v3998_v28, %v3854_v27  ;;  %v2804_v59 = vpop.f32.mrb[27].mxu0 }
 0x1fd   : > { %3026 = vst.msk [vmem:[%s4911_s7 + $0x28] sm:$0xf] %vm3015_vm1, %v3511_v30  ;;  %v3512_v34 = vpack.c.bf16 %v2946_v43, %v2946_v43  ;;  %v2895_v18 = vadd.f32 %v4032_v44, %v4901_v47  ;;  %v4034_v19 = vadd.f32 %v2804_v59, %v1579_v53 }
 0x1fe   : > { %v2929_v20 = vmax.f32 %v2897_v29, 0.0  ;;  %v2898_v61 = vadd.f32 %v4033_v58, %v4901_v47 }
 0x1ff   : > { %3027 = vst.msk [vmem:[%s4911_s7 + $0x2c] sm:$0xf] %vm3015_vm1, %v3512_v34  ;;  %v2927_v21 = vmax.f32 %v2895_v18, 0.0  ;;  %v2896_v22 = vadd.f32 %v4034_v19, %v4901_v47 }
 0x200   : > { %v2930_v45 = vmax.f32 %v2898_v61, 0.0  ;;  %v3857_v35 = vpop.f32.mrb[28].mxu1 }
 0x201   : > { %v2947_v36 = vmax.f32 %v2927_v21, %v2929_v20  ;;  %v2928_v37 = vmax.f32 %v2896_v22, 0.0  ;;  %v4001_v40 = vpop.f32.mrb[28].mxu0  ;;  %v1592_v41 = vpop.f32.mrb[29].mxu1 }
 0x202   : > { %v4035_v42 = vadd.f32 %v4001_v40, %v3857_v35  ;;  %v2817_v54 = vpop.f32.mrb[29].mxu0  ;;  %v3858_v55 = vpop.f32.mrb[30].mxu1 }
 0x203   : > { %v3513_v56 = vpack.c.bf16 %v2947_v36, %v2947_v36  ;;  %v2948_v57 = vmax.f32 %v2928_v37, %v2930_v45  ;;  %v4036_v39 = vadd.f32 %v2817_v54, %v1592_v41  ;;  %v4002_v60 = vpop.f32.mrb[30].mxu0  ;;  %v1595_v33 = vpop.f32.mrb[31].mxu1 }
 0x204   : > { %v2901_v4 = vadd.f32 %v4035_v42, %v4901_v47  ;;  %v4037_v9 = vadd.f32 %v4002_v60, %v3858_v55  ;;  %v2820_v10 = vpop.f32.mrb[31].mxu0 }
 0x205   : > { %3028 = vst.msk [vmem:[%s4911_s7 + $0x30] sm:$0xf] %vm3015_vm1, %v3513_v56  ;;  %v3514_v11 = vpack.c.bf16 %v2948_v57, %v2948_v57  ;;  %v2899_v1 = vadd.f32 %v4036_v39, %v4901_v47  ;;  %v4038_v14 = vadd.f32 %v2820_v10, %v1595_v33 }
 0x206   : > { %v2933_v17 = vmax.f32 %v2901_v4, 0.0  ;;  %v2902_v3 = vadd.f32 %v4037_v9, %v4901_v47 }
 0x207   : > { %3029 = vst.msk [vmem:[%s4911_s7 + $0x34] sm:$0xf] %vm3015_vm1, %v3514_v11  ;;  %v2931_v24 = vmax.f32 %v2899_v1, 0.0  ;;  %v2900_v26 = vadd.f32 %v4038_v14, %v4901_v47 }
 0x208   : > { %v2934_v31 = vmax.f32 %v2902_v3, 0.0 }
 0x209   : > { %v2949_v32 = vmax.f32 %v2931_v24, %v2933_v17  ;;  %v2932_v38 = vmax.f32 %v2900_v26, 0.0 }
 0x20b   : > { %v3515_v48 = vpack.c.bf16 %v2949_v32, %v2949_v32  ;;  %v2950_v49 = vmax.f32 %v2932_v38, %v2934_v31 }
 0x20d   : > { %3030 = vst.msk [vmem:[%s4911_s7 + $0x38] sm:$0xf] %vm3015_vm1, %v3515_v48  ;;  %v3516_v50 = vpack.c.bf16 %v2950_v49, %v2950_v49 }
 0x20f   : > { %3031 = vst.msk [vmem:[%s4911_s7 + $0x3c] sm:$0xf] %vm3015_vm1, %v3516_v50 }
 0x210 PF: > { %s13_s12 = sadd.s32 1, %s4296_s12  }
 0x211   : > { %p10_p4 = scmp.ge.s32.totalorder %s13_s12, 4  }
 0x213   :  { %12 = sbr.rel (!%p10_p4) target bundleno = 1 (0x1), region = 72 }

// kernel: simple_cnn_forward.7
= control target key start
LH: loop header
LB: loop body
LE: loop exit
PB: predicated region body
PF: predicated region fallthrough
CT: control target
= control target key end

     0   :  { %v282_v36 = vlaneseq  ;;  %v2961_v37 = vmov 1966171168   ;;  %s3887_s0 = inlined_call_operand.vmem [shape: bf16[2,2048], index: 0, kind: input, shape index: {}]   ;;  %s3888_s1 = inlined_call_operand.vmem [shape: bf16[2048,256], index: 1, kind: input, shape index: {}]   ;;  %s3889_s2 = inlined_call_operand.vmem [shape: f32[1,256], index: 2, kind: input, shape index: {}]   ;;  %s3890_s3 = inlined_call_operand.vmem [shape: bf16[256,128], index: 3, kind: input, shape index: {}]   ;;  %s3891_s4 = inlined_call_operand.vmem [shape: f32[1,128], index: 4, kind: input, shape index: {}]   ;;  %s3892_s5 = inlined_call_operand.hbm [shape: f32[2,128], index: 5, kind: output, shape index: {}]  }
   0x1   :  { %v2535_v0 = vld [vmem:[%s3888_s1 + $0x4] ss:$8 sps:$4 sm:$0xff]   ;;  %v2539_v2 = vld [vmem:[%s3888_s1] ss:$8 sps:$4 sm:$0xff]   ;;  %v2541_v4 = vld [vmem:[%s3888_s1 + $0x14] ss:$8 sps:$4 sm:$0xff]   ;;  %v296_v38 = vunpack.c.l.s4 %v2961_v37 }
   0x2   :  { %v2537_v1 = vld [vmem:[%s3888_s1 + $0x404] ss:$8 sps:$4 sm:$0xff]   ;;  %1688 = vmatprep.subr.bf16.mxu1 %v2535_v0  ;;  %v2540_v3 = vld [vmem:[%s3888_s1 + $0x400] ss:$8 sps:$4 sm:$0xff]   ;;  %v2543_v5 = vld [vmem:[%s3888_s1 + $0x414] ss:$8 sps:$4 sm:$0xff]  }
   0x3   :  { %1852 = vmatprep.subr.bf16.mxu0 %v2537_v1  ;;  %1689 = vmatpush1.bf16.msra.mxu1 %v2539_v2  ;;  %v2545_v6 = vld [vmem:[%s3888_s1 + $0x10] ss:$8 sps:$4 sm:$0xff]   ;;  %v2547_v8 = vld [vmem:[%s3888_s1 + $0x24] ss:$8 sps:$4 sm:$0xff]   ;;  %v2551_v10 = vld [vmem:[%s3888_s1 + $0x20] ss:$8 sps:$4 sm:$0xff]   ;;  %v297_v43 = vunpack.c.0.s8 %v296_v38 }
   0x4   :  { %1853 = vmatpush1.bf16.msra.mxu0 %v2540_v3  ;;  %1690 = vmatprep.subr.bf16.mxu1 %v2541_v4  ;;  %v2546_v7 = vld [vmem:[%s3888_s1 + $0x410] ss:$8 sps:$4 sm:$0xff]   ;;  %v2549_v9 = vld [vmem:[%s3888_s1 + $0x424] ss:$8 sps:$4 sm:$0xff]   ;;  %v2552_v11 = vld [vmem:[%s3888_s1 + $0x420] ss:$8 sps:$4 sm:$0xff]  }
   0x5   :  { %1854 = vmatprep.subr.bf16.mxu0 %v2543_v5  ;;  %v2553_v12 = vld [vmem:[%s3888_s1 + $0x34] ss:$8 sps:$4 sm:$0xff]   ;;  %v2557_v14 = vld [vmem:[%s3888_s1 + $0x30] ss:$8 sps:$4 sm:$0xff]   ;;  %v2559_v16 = vld [vmem:[%s3888_s1 + $0x44] ss:$8 sps:$4 sm:$0xff]  }
   0x6   :  { %v2555_v13 = vld [vmem:[%s3888_s1 + $0x434] ss:$8 sps:$4 sm:$0xff]   ;;  %v2558_v15 = vld [vmem:[%s3888_s1 + $0x430] ss:$8 sps:$4 sm:$0xff]   ;;  %v2561_v17 = vld [vmem:[%s3888_s1 + $0x444] ss:$8 sps:$4 sm:$0xff]  }
   0x7   :  { %1691 = vmatpush1.bf16.msra.mxu1 %v2545_v6  ;;  %v2563_v18 = vld [vmem:[%s3888_s1 + $0x40] ss:$8 sps:$4 sm:$0xff]   ;;  %v2565_v20 = vld [vmem:[%s3888_s1 + $0x54] ss:$8 sps:$4 sm:$0xff]   ;;  %v2569_v22 = vld [vmem:[%s3888_s1 + $0x50] ss:$8 sps:$4 sm:$0xff]  }
   0x8   :  { %1855 = vmatpush1.bf16.msra.mxu0 %v2546_v7  ;;  %1692 = vmatprep.subr.bf16.mxu1 %v2547_v8  ;;  %v2564_v19 = vld [vmem:[%s3888_s1 + $0x440] ss:$8 sps:$4 sm:$0xff]   ;;  %v2567_v21 = vld [vmem:[%s3888_s1 + $0x454] ss:$8 sps:$4 sm:$0xff]   ;;  %v2570_v23 = vld [vmem:[%s3888_s1 + $0x450] ss:$8 sps:$4 sm:$0xff]  }
   0x9   :  { %1856 = vmatprep.subr.bf16.mxu0 %v2549_v9  ;;  %v2571_v24 = vld [vmem:[%s3888_s1 + $0x64] ss:$8 sps:$4 sm:$0xff]   ;;  %v2575_v26 = vld [vmem:[%s3888_s1 + $0x60] ss:$8 sps:$4 sm:$0xff]   ;;  %v2577_v28 = vld [vmem:[%s3888_s1 + $0x74] ss:$8 sps:$4 sm:$0xff]  }
   0xa   :  { %v2573_v25 = vld [vmem:[%s3888_s1 + $0x464] ss:$8 sps:$4 sm:$0xff]   ;;  %v2576_v27 = vld [vmem:[%s3888_s1 + $0x460] ss:$8 sps:$4 sm:$0xff]   ;;  %v2579_v29 = vld [vmem:[%s3888_s1 + $0x474] ss:$8 sps:$4 sm:$0xff]  }
   0xb   :  { %1693 = vmatpush1.bf16.msra.mxu1 %v2551_v10  ;;  %v2581_v30 = vld [vmem:[%s3888_s1 + $0x70] ss:$8 sps:$4 sm:$0xff]   ;;  %v2583_v32 = vld [vmem:[%s3888_s1 + $0x84] ss:$8 sps:$4 sm:$0xff]   ;;  %v2587_v34 = vld [vmem:[%s3888_s1 + $0x80] ss:$8 sps:$4 sm:$0xff]  }
   0xc   :  { %1857 = vmatpush1.bf16.msra.mxu0 %v2552_v11  ;;  %1694 = vmatprep.subr.bf16.mxu1 %v2553_v12  ;;  %v2582_v31 = vld [vmem:[%s3888_s1 + $0x470] ss:$8 sps:$4 sm:$0xff]   ;;  %v2585_v33 = vld [vmem:[%s3888_s1 + $0x484] ss:$8 sps:$4 sm:$0xff]   ;;  %v2588_v35 = vld [vmem:[%s3888_s1 + $0x480] ss:$8 sps:$4 sm:$0xff]  }
   0xd   :  { %1858 = vmatprep.subr.bf16.mxu0 %v2555_v13  ;;  %v2589_v39 = vld [vmem:[%s3888_s1 + $0x94] ss:$8 sps:$4 sm:$0xff]   ;;  %v2593_v41 = vld [vmem:[%s3888_s1 + $0x90] ss:$8 sps:$4 sm:$0xff]   ;;  %v3110_v42 = vshrl.u32 %v282_v36, 7  ;;  %v22_v52 = vld [vmem:[%s3887_s0] sm:$0xff] }
   0xe   :  { %v2591_v40 = vld [vmem:[%s3888_s1 + $0x494] ss:$8 sps:$4 sm:$0xff]   ;;  %v2594_v44 = vld [vmem:[%s3888_s1 + $0x490] ss:$8 sps:$4 sm:$0xff]   ;;  %v2595_v45 = vld [vmem:[%s3888_s1 + $0xa4] ss:$8 sps:$4 sm:$0xff]   ;;  %v294_v12 = vcombine.high %v22_v52, %v22_v52 }
   0xf   :  { %1695 = vmatpush1.bf16.msra.mxu1 %v2557_v14  ;;  %v2597_v46 = vld [vmem:[%s3888_s1 + $0x4a4] ss:$8 sps:$4 sm:$0xff]   ;;  %v2599_v47 = vld [vmem:[%s3888_s1 + $0xa0] ss:$8 sps:$4 sm:$0xff]   ;;  %v3128_v49 = vsub.s32 %v297_v43, %v3110_v42  ;;  %v2601_v50 = vld [vmem:[%s3888_s1 + $0xb4] ss:$8 sps:$4 sm:$0xff]  }
  0x10   :  { %1859 = vmatpush1.bf16.msra.mxu0 %v2558_v15  ;;  %1696 = vmatprep.subr.bf16.mxu1 %v2559_v16  ;;  %v2600_v48 = vld [vmem:[%s3888_s1 + $0x4a0] ss:$8 sps:$4 sm:$0xff]   ;;  %v2603_v51 = vld [vmem:[%s3888_s1 + $0x4b4] ss:$8 sps:$4 sm:$0xff]   ;;  %v2605_v53 = vld [vmem:[%s3888_s1 + $0xb0] ss:$8 sps:$4 sm:$0xff]  }
  0x11   :  { %1860 = vmatprep.subr.bf16.mxu0 %v2561_v17  ;;  %v301_v54 = vrot.slane %v22_v52, %v3128_v49  ;;  %v2606_v55 = vld [vmem:[%s3888_s1 + $0x4b0] ss:$8 sps:$4 sm:$0xff]   ;;  %v23_v56 = vld [vmem:[%s3887_s0 + $0x8] sm:$0xff]  ;;  %v2613_v1 = vld [vmem:[%s3888_s1 + $0xd4] ss:$8 sps:$4 sm:$0xff]  }
  0x12   :  { %v2607_v57 = vld [vmem:[%s3888_s1 + $0xc4] ss:$8 sps:$4 sm:$0xff]   ;;  %v350_v60 = vrot.slane %v23_v56, %v3128_v49  ;;  %v2611_v63 = vld [vmem:[%s3888_s1 + $0xc0] ss:$8 sps:$4 sm:$0xff]   ;;  %v2615_v2 = vld [vmem:[%s3888_s1 + $0x4d4] ss:$8 sps:$4 sm:$0xff]   ;;  %v343_v13 = vcombine.high %v23_v56, %v23_v56 }
  0x13   :  { %1697 = vmatpush1.bf16.msra.mxu1 %v2563_v18  ;;  %v2609_v58 = vld [vmem:[%s3888_s1 + $0x4c4] ss:$8 sps:$4 sm:$0xff]   ;;  %v309_v59 = vcombine.high %v301_v54, %v301_v54  ;;  %v2612_v0 = vld [vmem:[%s3888_s1 + $0x4c0] ss:$8 sps:$4 sm:$0xff]   ;;  %v2617_v4 = vld [vmem:[%s3888_s1 + $0xd0] ss:$8 sps:$4 sm:$0xff]   ;;  %v308_v18 = vrot.slane %v294_v12, %v3128_v49 }
  0x14   :  { %1861 = vmatpush1.bf16.msra.mxu0 %v2564_v19  ;;  %1698 = vmatprep.subr.bf16.mxu1 %v2565_v20  ;;  %v358_v62 = vcombine.high %v350_v60, %v350_v60  ;;  %v2618_v5 = vld [vmem:[%s3888_s1 + $0x4d0] ss:$8 sps:$4 sm:$0xff]   ;;  %v2619_v6 = vld [vmem:[%s3888_s1 + $0xe4] ss:$8 sps:$4 sm:$0xff]   ;;  %v2623_v8 = vld [vmem:[%s3888_s1 + $0xe0] ss:$8 sps:$4 sm:$0xff]   ;;  %v357_v19 = vrot.slane %v343_v13, %v3128_v49  ;;  %v3212_v20 = vrot.slane %v301_v54, %v3128_v49 }
  0x15   :  { %1862 = vmatprep.subr.bf16.mxu0 %v2567_v21  ;;  %v3157_v61 = vrot.slane %v309_v59, %v3128_v49  ;;  %v2621_v7 = vld [vmem:[%s3888_s1 + $0x4e4] ss:$8 sps:$4 sm:$0xff]   ;;  %v2624_v9 = vld [vmem:[%s3888_s1 + $0x4e0] ss:$8 sps:$4 sm:$0xff]   ;;  %v2625_v10 = vld [vmem:[%s3888_s1 + $0xf4] ss:$8 sps:$4 sm:$0xff]   ;;  %v3215_v21 = vrot.slane %v350_v60, %v3128_v49 }
  0x16   :  { %v380_v3 = vrot.slane %v358_v62, %v3128_v49  ;;  %v2627_v11 = vld [vmem:[%s3888_s1 + $0x4f4] ss:$8 sps:$4 sm:$0xff]   ;;  %v2629_v14 = vld [vmem:[%s3888_s1 + $0xf0] ss:$8 sps:$4 sm:$0xff]   ;;  %v2634_v16 = vld [vmem:[%s3888_s1 + $0x104] ss:$8 sps:$4 sm:$0xff]  }
  0x17   :  { %1699 = vmatpush1.bf16.msra.mxu1 %v2569_v22  ;;  %1720 = vmatprep.mubr.bf16.mxu1 %v3157_v61  ;;  %v2630_v15 = vld [vmem:[%s3888_s1 + $0x4f0] ss:$8 sps:$4 sm:$0xff]   ;;  %v2638_v17 = vld [vmem:[%s3888_s1 + $0x504] ss:$8 sps:$4 sm:$0xff]   ;;  %v310_v22 = vcombine.high %v308_v18, %v308_v18  ;;  %v2645_v38 = vld [vmem:[%s3888_s1 + $0x120] ss:$8 sps:$4 sm:$0xff]  }
  0x18   :  { %1863 = vmatpush1.bf16.msra.mxu0 %v2570_v23  ;;  %1700 = vmatprep.subr.bf16.mxu1 %v2571_v24  ;;  %v359_v23 = vcombine.high %v357_v19, %v357_v19  ;;  %v2632_v24 = vld [vmem:[%s3888_s1 + $0x100] ss:$8 sps:$4 sm:$0xff]   ;;  %v2647_v36 = vld [vmem:[%s3888_s1 + $0x124] ss:$8 sps:$4 sm:$0xff]   ;;  %v2651_v43 = vld [vmem:[%s3888_s1 + $0x130] ss:$8 sps:$4 sm:$0xff]  }
  0x19   :  { %1864 = vmatprep.subr.bf16.mxu0 %v2573_v25  ;;  %1884 = vmatprep.mubr.bf16.mxu0 %v380_v3  ;;  %v2636_v25 = vld [vmem:[%s3888_s1 + $0x500] ss:$8 sps:$4 sm:$0xff]   ;;  %v2650_v37 = vld [vmem:[%s3888_s1 + $0x524] ss:$8 sps:$4 sm:$0xff]   ;;  %v2666_v52 = vld [vmem:[%s3888_s1 + $0x550] ss:$8 sps:$4 sm:$0xff]  }
  0x1a   :  { %v2674_v54 = vld [vmem:[%s3888_s1 + $0x564] ss:$8 sps:$4 sm:$0xff]   ;;  %v2672_v56 = vld [vmem:[%s3888_s1 + $0x560] ss:$8 sps:$4 sm:$0xff]   ;;  %v2675_v59 = vld [vmem:[%s3888_s1 + $0x170] ss:$8 sps:$4 sm:$0xff]  }
  0x1b   :  { %1701 = vmatpush1.bf16.msra.mxu1 %v2575_v26  ;;  %v2641_v26 = vld [vmem:[%s3888_s1 + $0x114] ss:$8 sps:$4 sm:$0xff]   ;;  %v2678_v60 = vld [vmem:[%s3888_s1 + $0x570] ss:$8 sps:$4 sm:$0xff]   ;;  %v2686_v62 = vld [vmem:[%s3888_s1 + $0x584] ss:$8 sps:$4 sm:$0xff]  }
  0x1c   :  { %1865 = vmatpush1.bf16.msra.mxu0 %v2576_v27  ;;  %1702 = vmatprep.subr.bf16.mxu1 %v2577_v28  ;;  %v2644_v27 = vld [vmem:[%s3888_s1 + $0x514] ss:$8 sps:$4 sm:$0xff]   ;;  %v3230_v28 = vrot.slane %v310_v22, %v3128_v49  ;;  %v2702_v12 = vld [vmem:[%s3888_s1 + $0x5b0] ss:$8 sps:$4 sm:$0xff]   ;;  %v2707_v13 = vld [vmem:[%s3888_s1 + $0x1c4] ss:$8 sps:$4 sm:$0xff]  }
  0x1d   :  { %1866 = vmatprep.subr.bf16.mxu0 %v2579_v29  ;;  %v3233_v29 = vrot.slane %v359_v23, %v3128_v49  ;;  %v2714_v22 = vld [vmem:[%s3888_s1 + $0x5d0] ss:$8 sps:$4 sm:$0xff]   ;;  %v2719_v23 = vld [vmem:[%s3888_s1 + $0x1e4] ss:$8 sps:$4 sm:$0xff]  }
  0x1f   :  { %1703 = vmatpush1.bf16.msra.mxu1 %v2581_v30  ;;  %v3236_v30 = vrot.slane %v308_v18, %v3128_v49  ;;  %v2716_v18 = vld [vmem:[%s3888_s1 + $0x5d4] ss:$8 sps:$4 sm:$0xff]  }
  0x20   :  { %1867 = vmatpush1.bf16.msra.mxu0 %v2582_v31  ;;  %1704 = vmatprep.subr.bf16.mxu1 %v2583_v32  ;;  %v341_v31 = vcombine.high %v3157_v61, %v3157_v61  ;;  %v390_v32 = vcombine.high %v380_v3, %v380_v3  ;;  %v2683_v61 = vld [vmem:[%s3888_s1 + $0x184] ss:$8 sps:$4 sm:$0xff]   ;;  %v2687_v3 = vld [vmem:[%s3888_s1 + $0x190] ss:$8 sps:$4 sm:$0xff]  }
  0x21   :  { %1868 = vmatprep.subr.bf16.mxu0 %v2585_v33  ;;  %v3241_v33 = vrot.slane %v357_v19, %v3128_v49  ;;  %v2665_v49 = vld [vmem:[%s3888_s1 + $0x154] ss:$8 sps:$4 sm:$0xff]   ;;  %v2711_v19 = vld [vmem:[%s3888_s1 + $0x1d0] ss:$8 sps:$4 sm:$0xff]  }
  0x23   :  { %1705 = vmatpush1.bf16.msra.mxu1 %v2587_v34  ;;  %v2639_v34 = vld [vmem:[%s3888_s1 + $0x110] ss:$8 sps:$4 sm:$0xff]  }
  0x24   :  { %1869 = vmatpush1.bf16.msra.mxu0 %v2588_v35  ;;  %1706 = vmatprep.subr.bf16.mxu1 %v2589_v39  ;;  %v2642_v35 = vld [vmem:[%s3888_s1 + $0x510] ss:$8 sps:$4 sm:$0xff]   ;;  %v2648_v39 = vld [vmem:[%s3888_s1 + $0x520] ss:$8 sps:$4 sm:$0xff]  }
  0x25   :  { %1870 = vmatprep.subr.bf16.mxu0 %v2591_v40  ;;  %v2653_v40 = vld [vmem:[%s3888_s1 + $0x134] ss:$8 sps:$4 sm:$0xff]  }
  0x27   :  { %1707 = vmatpush1.bf16.msra.mxu1 %v2593_v41  ;;  %v2656_v41 = vld [vmem:[%s3888_s1 + $0x534] ss:$8 sps:$4 sm:$0xff]  }
  0x28   :  { %1871 = vmatpush1.bf16.msra.mxu0 %v2594_v44  ;;  %1708 = vmatprep.subr.bf16.mxu1 %v2595_v45  ;;  %v2654_v44 = vld [vmem:[%s3888_s1 + $0x530] ss:$8 sps:$4 sm:$0xff]   ;;  %v2659_v45 = vld [vmem:[%s3888_s1 + $0x144] ss:$8 sps:$4 sm:$0xff]  }
  0x29   :  { %1872 = vmatprep.subr.bf16.mxu0 %v2597_v46  ;;  %v2662_v46 = vld [vmem:[%s3888_s1 + $0x544] ss:$8 sps:$4 sm:$0xff]  }
  0x2b   :  { %1709 = vmatpush1.bf16.msra.mxu1 %v2599_v47  ;;  %v2657_v47 = vld [vmem:[%s3888_s1 + $0x140] ss:$8 sps:$4 sm:$0xff]  }
  0x2c   :  { %1873 = vmatpush1.bf16.msra.mxu0 %v2600_v48  ;;  %1710 = vmatprep.subr.bf16.mxu1 %v2601_v50  ;;  %v2660_v48 = vld [vmem:[%s3888_s1 + $0x540] ss:$8 sps:$4 sm:$0xff]   ;;  %v2668_v50 = vld [vmem:[%s3888_s1 + $0x554] ss:$8 sps:$4 sm:$0xff]  }
  0x2d   :  { %1874 = vmatprep.subr.bf16.mxu0 %v2603_v51  ;;  %v2663_v51 = vld [vmem:[%s3888_s1 + $0x150] ss:$8 sps:$4 sm:$0xff]  }
  0x2f   :  { %1711 = vmatpush1.bf16.msra.mxu1 %v2605_v53  ;;  %v2671_v53 = vld [vmem:[%s3888_s1 + $0x164] ss:$8 sps:$4 sm:$0xff]  }
  0x30   :  { %1875 = vmatpush1.bf16.msra.mxu0 %v2606_v55  ;;  %1712 = vmatprep.subr.bf16.mxu1 %v2607_v57  ;;  %v2669_v55 = vld [vmem:[%s3888_s1 + $0x160] ss:$8 sps:$4 sm:$0xff]   ;;  %v2677_v57 = vld [vmem:[%s3888_s1 + $0x174] ss:$8 sps:$4 sm:$0xff]  }
  0x31   :  { %1876 = vmatprep.subr.bf16.mxu0 %v2609_v58  ;;  %v2680_v58 = vld [vmem:[%s3888_s1 + $0x574] ss:$8 sps:$4 sm:$0xff]  }
  0x33   :  { %1713 = vmatpush1.bf16.msra.mxu1 %v2611_v63  ;;  %v2681_v63 = vld [vmem:[%s3888_s1 + $0x180] ss:$8 sps:$4 sm:$0xff]  }
  0x34   :  { %1877 = vmatpush1.bf16.msra.mxu0 %v2612_v0  ;;  %1714 = vmatprep.subr.bf16.mxu1 %v2613_v1  ;;  %v2684_v0 = vld [vmem:[%s3888_s1 + $0x580] ss:$8 sps:$4 sm:$0xff]   ;;  %v2689_v1 = vld [vmem:[%s3888_s1 + $0x194] ss:$8 sps:$4 sm:$0xff]  }
  0x35   :  { %1878 = vmatprep.subr.bf16.mxu0 %v2615_v2  ;;  %v2692_v2 = vld [vmem:[%s3888_s1 + $0x594] ss:$8 sps:$4 sm:$0xff]  }
  0x37   :  { %1715 = vmatpush1.bf16.msra.mxu1 %v2617_v4  ;;  %v2690_v4 = vld [vmem:[%s3888_s1 + $0x590] ss:$8 sps:$4 sm:$0xff]  }
  0x38   :  { %1879 = vmatpush1.bf16.msra.mxu0 %v2618_v5  ;;  %1716 = vmatprep.subr.bf16.mxu1 %v2619_v6  ;;  %v2695_v5 = vld [vmem:[%s3888_s1 + $0x1a4] ss:$8 sps:$4 sm:$0xff]  }
  0x39   :  { %1880 = vmatprep.subr.bf16.mxu0 %v2621_v7  ;;  %v2698_v6 = vld [vmem:[%s3888_s1 + $0x5a4] ss:$8 sps:$4 sm:$0xff]   ;;  %v2693_v7 = vld [vmem:[%s3888_s1 + $0x1a0] ss:$8 sps:$4 sm:$0xff]  }
  0x3b   :  { %1717 = vmatpush1.bf16.msra.mxu1 %v2623_v8  ;;  %v2696_v8 = vld [vmem:[%s3888_s1 + $0x5a0] ss:$8 sps:$4 sm:$0xff]  }
  0x3c   :  { %1881 = vmatpush1.bf16.msra.mxu0 %v2624_v9  ;;  %1718 = vmatprep.subr.bf16.mxu1 %v2625_v10  ;;  %v2701_v9 = vld [vmem:[%s3888_s1 + $0x1b4] ss:$8 sps:$4 sm:$0xff]  }
  0x3d   :  { %1882 = vmatprep.subr.bf16.mxu0 %v2627_v11  ;;  %v2704_v10 = vld [vmem:[%s3888_s1 + $0x5b4] ss:$8 sps:$4 sm:$0xff]   ;;  %v2699_v11 = vld [vmem:[%s3888_s1 + $0x1b0] ss:$8 sps:$4 sm:$0xff]  }
  0x3f   :  { %1719 = vmatpush1.bf16.msra.mxu1 %v2629_v14  ;;  %v2710_v14 = vld [vmem:[%s3888_s1 + $0x5c4] ss:$8 sps:$4 sm:$0xff]  }
  0x40   :  { %1883 = vmatpush1.bf16.msra.mxu0 %v2630_v15  ;;  %1729 = vmatprep.subr.bf16.mxu1 %v2634_v16  ;;  %v2705_v15 = vld [vmem:[%s3888_s1 + $0x1c0] ss:$8 sps:$4 sm:$0xff]  }
  0x41   :  { %1893 = vmatprep.subr.bf16.mxu0 %v2638_v17  ;;  %v2708_v16 = vld [vmem:[%s3888_s1 + $0x5c0] ss:$8 sps:$4 sm:$0xff]   ;;  %v2713_v17 = vld [vmem:[%s3888_s1 + $0x1d4] ss:$8 sps:$4 sm:$0xff]  }
  0x42   :  { %1721 = vmatmul.mubr.bf16.vlgmr.msra.gmra.mrb[0].mxu1 %v3212_v20 }
  0x43   :  { %1885 = vmatmul.mubr.bf16.vlgmr.msra.gmra.mrb[0].mxu0 %v3215_v21  ;;  %1730 = vmatpush1.bf16.msra.mxu1 %v2632_v24  ;;  %v2722_v24 = vld [vmem:[%s3888_s1 + $0x5e4] ss:$8 sps:$4 sm:$0xff]  }
  0x44   :  { %1894 = vmatpush1.bf16.msra.mxu0 %v2636_v25  ;;  %1731 = vmatprep.subr.bf16.mxu1 %v2641_v26  ;;  %v2717_v25 = vld [vmem:[%s3888_s1 + $0x1e0] ss:$8 sps:$4 sm:$0xff]  }
  0x45   :  { %1895 = vmatprep.subr.bf16.mxu0 %v2644_v27  ;;  %1761 = vmatprep.mubr.bf16.mxu1 %v341_v31  ;;  %v2720_v26 = vld [vmem:[%s3888_s1 + $0x5e0] ss:$8 sps:$4 sm:$0xff]   ;;  %v2725_v27 = vld [vmem:[%s3888_s1 + $0x1f4] ss:$8 sps:$4 sm:$0xff]  }
  0x46   :  { %1925 = vmatprep.mubr.bf16.mxu0 %v390_v32  ;;  %v2728_v31 = vld [vmem:[%s3888_s1 + $0x5f4] ss:$8 sps:$4 sm:$0xff]   ;;  %v2723_v32 = vld [vmem:[%s3888_s1 + $0x1f0] ss:$8 sps:$4 sm:$0xff]  }
  0x47   :  { %1732 = vmatpush1.bf16.msra.mxu1 %v2639_v34  ;;  %v2726_v34 = vld [vmem:[%s3888_s1 + $0x5f0] ss:$8 sps:$4 sm:$0xff]  }
  0x48   :  { %1896 = vmatpush1.bf16.msra.mxu0 %v2642_v35  ;;  %1733 = vmatprep.subr.bf16.mxu1 %v2647_v36  ;;  %v2731_v35 = vld [vmem:[%s3888_s1 + $0x204] ss:$8 sps:$4 sm:$0xff]  }
  0x49   :  { %1897 = vmatprep.subr.bf16.mxu0 %v2650_v37  ;;  %v2734_v36 = vld [vmem:[%s3888_s1 + $0x604] ss:$8 sps:$4 sm:$0xff]   ;;  %v339_v37 = vcombine.high %v3212_v20, %v3212_v20  ;;  %v2740_v20 = vld [vmem:[%s3888_s1 + $0x614] ss:$8 sps:$4 sm:$0xff]  }
  0x4b   :  { %1734 = vmatpush1.bf16.msra.mxu1 %v2645_v38  ;;  %v388_v38 = vcombine.high %v3215_v21, %v3215_v21  ;;  %v2735_v21 = vld [vmem:[%s3888_s1 + $0x210] ss:$8 sps:$4 sm:$0xff]  }
  0x4c   :  { %1898 = vmatpush1.bf16.msra.mxu0 %v2648_v39  ;;  %1735 = vmatprep.subr.bf16.mxu1 %v2653_v40  ;;  %v2729_v39 = vld [vmem:[%s3888_s1 + $0x200] ss:$8 sps:$4 sm:$0xff]  }
  0x4d   :  { %1899 = vmatprep.subr.bf16.mxu0 %v2656_v41  ;;  %v2732_v40 = vld [vmem:[%s3888_s1 + $0x600] ss:$8 sps:$4 sm:$0xff]   ;;  %v2737_v41 = vld [vmem:[%s3888_s1 + $0x214] ss:$8 sps:$4 sm:$0xff]  }
  0x4f   :  { %1736 = vmatpush1.bf16.msra.mxu1 %v2651_v43  ;;  %v2738_v43 = vld [vmem:[%s3888_s1 + $0x610] ss:$8 sps:$4 sm:$0xff]  }
  0x50   :  { %1900 = vmatpush1.bf16.msra.mxu0 %v2654_v44  ;;  %1737 = vmatprep.subr.bf16.mxu1 %v2659_v45  ;;  %v2743_v44 = vld [vmem:[%s3888_s1 + $0x224] ss:$8 sps:$4 sm:$0xff]  }
  0x51   :  { %1901 = vmatprep.subr.bf16.mxu0 %v2662_v46  ;;  %v2746_v45 = vld [vmem:[%s3888_s1 + $0x624] ss:$8 sps:$4 sm:$0xff]   ;;  %v2741_v46 = vld [vmem:[%s3888_s1 + $0x220] ss:$8 sps:$4 sm:$0xff]  }
  0x53   :  { %1738 = vmatpush1.bf16.msra.mxu1 %v2657_v47  ;;  %v2744_v47 = vld [vmem:[%s3888_s1 + $0x620] ss:$8 sps:$4 sm:$0xff]  }
  0x54   :  { %1902 = vmatpush1.bf16.msra.mxu0 %v2660_v48  ;;  %1739 = vmatprep.subr.bf16.mxu1 %v2665_v49  ;;  %v2749_v48 = vld [vmem:[%s3888_s1 + $0x234] ss:$8 sps:$4 sm:$0xff]  }
  0x55   :  { %1903 = vmatprep.subr.bf16.mxu0 %v2668_v50  ;;  %v2752_v49 = vld [vmem:[%s3888_s1 + $0x634] ss:$8 sps:$4 sm:$0xff]   ;;  %v2747_v50 = vld [vmem:[%s3888_s1 + $0x230] ss:$8 sps:$4 sm:$0xff]  }
  0x57   :  { %1740 = vmatpush1.bf16.msra.mxu1 %v2663_v51  ;;  %v2750_v51 = vld [vmem:[%s3888_s1 + $0x630] ss:$8 sps:$4 sm:$0xff]  }
  0x58   :  { %1904 = vmatpush1.bf16.msra.mxu0 %v2666_v52  ;;  %1741 = vmatprep.subr.bf16.mxu1 %v2671_v53  ;;  %v2755_v52 = vld [vmem:[%s3888_s1 + $0x244] ss:$8 sps:$4 sm:$0xff]  }
  0x59   :  { %1905 = vmatprep.subr.bf16.mxu0 %v2674_v54  ;;  %v2758_v53 = vld [vmem:[%s3888_s1 + $0x644] ss:$8 sps:$4 sm:$0xff]   ;;  %v2753_v54 = vld [vmem:[%s3888_s1 + $0x240] ss:$8 sps:$4 sm:$0xff]  }
  0x5b   :  { %1742 = vmatpush1.bf16.msra.mxu1 %v2669_v55  ;;  %v2756_v55 = vld [vmem:[%s3888_s1 + $0x640] ss:$8 sps:$4 sm:$0xff]  }
  0x5c   :  { %1906 = vmatpush1.bf16.msra.mxu0 %v2672_v56  ;;  %1743 = vmatprep.subr.bf16.mxu1 %v2677_v57  ;;  %v2761_v56 = vld [vmem:[%s3888_s1 + $0x254] ss:$8 sps:$4 sm:$0xff]  }
  0x5d   :  { %1907 = vmatprep.subr.bf16.mxu0 %v2680_v58  ;;  %v2764_v57 = vld [vmem:[%s3888_s1 + $0x654] ss:$8 sps:$4 sm:$0xff]   ;;  %v2759_v58 = vld [vmem:[%s3888_s1 + $0x250] ss:$8 sps:$4 sm:$0xff]  }
  0x5f   :  { %1744 = vmatpush1.bf16.msra.mxu1 %v2675_v59  ;;  %v2762_v59 = vld [vmem:[%s3888_s1 + $0x650] ss:$8 sps:$4 sm:$0xff]  }
  0x60   :  { %1908 = vmatpush1.bf16.msra.mxu0 %v2678_v60  ;;  %1745 = vmatprep.subr.bf16.mxu1 %v2683_v61  ;;  %v2767_v60 = vld [vmem:[%s3888_s1 + $0x264] ss:$8 sps:$4 sm:$0xff]  }
  0x61   :  { %1909 = vmatprep.subr.bf16.mxu0 %v2686_v62  ;;  %v2770_v61 = vld [vmem:[%s3888_s1 + $0x664] ss:$8 sps:$4 sm:$0xff]   ;;  %v2765_v62 = vld [vmem:[%s3888_s1 + $0x260] ss:$8 sps:$4 sm:$0xff]  }
  0x63   :  { %1746 = vmatpush1.bf16.msra.mxu1 %v2681_v63  ;;  %v2768_v63 = vld [vmem:[%s3888_s1 + $0x660] ss:$8 sps:$4 sm:$0xff]  }
  0x64   :  { %1910 = vmatpush1.bf16.msra.mxu0 %v2684_v0  ;;  %1747 = vmatprep.subr.bf16.mxu1 %v2689_v1  ;;  %v2773_v0 = vld [vmem:[%s3888_s1 + $0x274] ss:$8 sps:$4 sm:$0xff]  }
  0x65   :  { %1911 = vmatprep.subr.bf16.mxu0 %v2692_v2  ;;  %v2776_v1 = vld [vmem:[%s3888_s1 + $0x674] ss:$8 sps:$4 sm:$0xff]   ;;  %v2771_v2 = vld [vmem:[%s3888_s1 + $0x270] ss:$8 sps:$4 sm:$0xff]  }
  0x67   :  { %1748 = vmatpush1.bf16.msra.mxu1 %v2687_v3  ;;  %v2774_v3 = vld [vmem:[%s3888_s1 + $0x670] ss:$8 sps:$4 sm:$0xff]  }
  0x68   :  { %1912 = vmatpush1.bf16.msra.mxu0 %v2690_v4  ;;  %1749 = vmatprep.subr.bf16.mxu1 %v2695_v5  ;;  %v2779_v4 = vld [vmem:[%s3888_s1 + $0x284] ss:$8 sps:$4 sm:$0xff]  }
  0x69   :  { %1913 = vmatprep.subr.bf16.mxu0 %v2698_v6  ;;  %v2782_v5 = vld [vmem:[%s3888_s1 + $0x684] ss:$8 sps:$4 sm:$0xff]   ;;  %v2777_v6 = vld [vmem:[%s3888_s1 + $0x280] ss:$8 sps:$4 sm:$0xff]  }
  0x6b   :  { %1750 = vmatpush1.bf16.msra.mxu1 %v2693_v7  ;;  %v2780_v7 = vld [vmem:[%s3888_s1 + $0x680] ss:$8 sps:$4 sm:$0xff]  }
  0x6c   :  { %1914 = vmatpush1.bf16.msra.mxu0 %v2696_v8  ;;  %1751 = vmatprep.subr.bf16.mxu1 %v2701_v9  ;;  %v2785_v8 = vld [vmem:[%s3888_s1 + $0x294] ss:$8 sps:$4 sm:$0xff]  }
  0x6d   :  { %1915 = vmatprep.subr.bf16.mxu0 %v2704_v10  ;;  %v2788_v9 = vld [vmem:[%s3888_s1 + $0x694] ss:$8 sps:$4 sm:$0xff]   ;;  %v2783_v10 = vld [vmem:[%s3888_s1 + $0x290] ss:$8 sps:$4 sm:$0xff]  }
  0x6f   :  { %1752 = vmatpush1.bf16.msra.mxu1 %v2699_v11  ;;  %v2786_v11 = vld [vmem:[%s3888_s1 + $0x690] ss:$8 sps:$4 sm:$0xff]  }
  0x70   :  { %1916 = vmatpush1.bf16.msra.mxu0 %v2702_v12  ;;  %1753 = vmatprep.subr.bf16.mxu1 %v2707_v13  ;;  %v2791_v12 = vld [vmem:[%s3888_s1 + $0x2a4] ss:$8 sps:$4 sm:$0xff]  }
  0x71   :  { %1917 = vmatprep.subr.bf16.mxu0 %v2710_v14  ;;  %v2794_v13 = vld [vmem:[%s3888_s1 + $0x6a4] ss:$8 sps:$4 sm:$0xff]   ;;  %v2789_v14 = vld [vmem:[%s3888_s1 + $0x2a0] ss:$8 sps:$4 sm:$0xff]  }
  0x73   :  { %1754 = vmatpush1.bf16.msra.mxu1 %v2705_v15  ;;  %v2792_v15 = vld [vmem:[%s3888_s1 + $0x6a0] ss:$8 sps:$4 sm:$0xff]  }
  0x74   :  { %1918 = vmatpush1.bf16.msra.mxu0 %v2708_v16  ;;  %1755 = vmatprep.subr.bf16.mxu1 %v2713_v17  ;;  %v2797_v16 = vld [vmem:[%s3888_s1 + $0x2b4] ss:$8 sps:$4 sm:$0xff]  }
  0x75   :  { %1919 = vmatprep.subr.bf16.mxu0 %v2716_v18  ;;  %v2800_v17 = vld [vmem:[%s3888_s1 + $0x6b4] ss:$8 sps:$4 sm:$0xff]   ;;  %v2795_v18 = vld [vmem:[%s3888_s1 + $0x2b0] ss:$8 sps:$4 sm:$0xff]  }
  0x77   :  { %1756 = vmatpush1.bf16.msra.mxu1 %v2711_v19  ;;  %v2798_v19 = vld [vmem:[%s3888_s1 + $0x6b0] ss:$8 sps:$4 sm:$0xff]  }
  0x78   :  { %1920 = vmatpush1.bf16.msra.mxu0 %v2714_v22  ;;  %1757 = vmatprep.subr.bf16.mxu1 %v2719_v23  ;;  %v2803_v22 = vld [vmem:[%s3888_s1 + $0x2c4] ss:$8 sps:$4 sm:$0xff]  }
  0x79   :  { %1921 = vmatprep.subr.bf16.mxu0 %v2722_v24  ;;  %v2806_v23 = vld [vmem:[%s3888_s1 + $0x6c4] ss:$8 sps:$4 sm:$0xff]   ;;  %v2801_v24 = vld [vmem:[%s3888_s1 + $0x2c0] ss:$8 sps:$4 sm:$0xff]  }
  0x7b   :  { %1758 = vmatpush1.bf16.msra.mxu1 %v2717_v25  ;;  %v2804_v25 = vld [vmem:[%s3888_s1 + $0x6c0] ss:$8 sps:$4 sm:$0xff]  }
  0x7c   :  { %1922 = vmatpush1.bf16.msra.mxu0 %v2720_v26  ;;  %1759 = vmatprep.subr.bf16.mxu1 %v2725_v27  ;;  %v2809_v26 = vld [vmem:[%s3888_s1 + $0x2d4] ss:$8 sps:$4 sm:$0xff]  }
  0x7d   :  { %1923 = vmatprep.subr.bf16.mxu0 %v2728_v31  ;;  %v2812_v27 = vld [vmem:[%s3888_s1 + $0x6d4] ss:$8 sps:$4 sm:$0xff]   ;;  %v2807_v31 = vld [vmem:[%s3888_s1 + $0x2d0] ss:$8 sps:$4 sm:$0xff]  }
  0x7f   :  { %1760 = vmatpush1.bf16.msra.mxu1 %v2723_v32  ;;  %v2810_v32 = vld [vmem:[%s3888_s1 + $0x6d0] ss:$8 sps:$4 sm:$0xff]  }
  0x80   :  { %1924 = vmatpush1.bf16.msra.mxu0 %v2726_v34  ;;  %1770 = vmatprep.subr.bf16.mxu1 %v2731_v35  ;;  %v2815_v34 = vld [vmem:[%s3888_s1 + $0x2e4] ss:$8 sps:$4 sm:$0xff]  }
  0x81   :  { %1934 = vmatprep.subr.bf16.mxu0 %v2734_v36  ;;  %v2818_v35 = vld [vmem:[%s3888_s1 + $0x6e4] ss:$8 sps:$4 sm:$0xff]   ;;  %v2813_v36 = vld [vmem:[%s3888_s1 + $0x2e0] ss:$8 sps:$4 sm:$0xff]  }
  0x82   :  { %1762 = vmatmul.mubr.bf16.vlgmr.msra.gmra.mrb[0].mxu1 %v339_v37  ;;  %v2816_v37 = vld [vmem:[%s3888_s1 + $0x6e0] ss:$8 sps:$4 sm:$0xff]  }
  0x83   :  { %1926 = vmatmul.mubr.bf16.vlgmr.msra.gmra.mrb[0].mxu0 %v388_v38  ;;  %1771 = vmatpush1.bf16.msra.mxu1 %v2729_v39  ;;  %v2821_v38 = vld [vmem:[%s3888_s1 + $0x2f4] ss:$8 sps:$4 sm:$0xff]  }
  0x84   :  { %1935 = vmatpush1.bf16.msra.mxu0 %v2732_v40  ;;  %1772 = vmatprep.subr.bf16.mxu1 %v2737_v41  ;;  %v2824_v39 = vld [vmem:[%s3888_s1 + $0x6f4] ss:$8 sps:$4 sm:$0xff]  }
  0x85   :  { %1936 = vmatprep.subr.bf16.mxu0 %v2740_v20  ;;  %1802 = vmatprep.mubr.bf16.mxu1 %v3230_v28 }
  0x86   :  { %1966 = vmatprep.mubr.bf16.mxu0 %v3233_v29 }
  0x87   :  { %1773 = vmatpush1.bf16.msra.mxu1 %v2735_v21 }
  0x88   :  { %1937 = vmatpush1.bf16.msra.mxu0 %v2738_v43  ;;  %1774 = vmatprep.subr.bf16.mxu1 %v2743_v44 }
  0x89   :  { %1938 = vmatprep.subr.bf16.mxu0 %v2746_v45 }
  0x8b   :  { %1775 = vmatpush1.bf16.msra.mxu1 %v2741_v46 }
  0x8c   :  { %1939 = vmatpush1.bf16.msra.mxu0 %v2744_v47  ;;  %1776 = vmatprep.subr.bf16.mxu1 %v2749_v48 }
  0x8d   :  { %1940 = vmatprep.subr.bf16.mxu0 %v2752_v49 }
  0x8f   :  { %1777 = vmatpush1.bf16.msra.mxu1 %v2747_v50 }
  0x90   :  { %1941 = vmatpush1.bf16.msra.mxu0 %v2750_v51  ;;  %1778 = vmatprep.subr.bf16.mxu1 %v2755_v52 }
  0x91   :  { %1942 = vmatprep.subr.bf16.mxu0 %v2758_v53 }
  0x93   :  { %1779 = vmatpush1.bf16.msra.mxu1 %v2753_v54 }
  0x94   :  { %1943 = vmatpush1.bf16.msra.mxu0 %v2756_v55  ;;  %1780 = vmatprep.subr.bf16.mxu1 %v2761_v56 }
  0x95   :  { %1944 = vmatprep.subr.bf16.mxu0 %v2764_v57 }
  0x97   :  { %1781 = vmatpush1.bf16.msra.mxu1 %v2759_v58 }
  0x98   :  { %1945 = vmatpush1.bf16.msra.mxu0 %v2762_v59  ;;  %1782 = vmatprep.subr.bf16.mxu1 %v2767_v60 }
  0x99   :  { %1946 = vmatprep.subr.bf16.mxu0 %v2770_v61 }
  0x9b   :  { %1783 = vmatpush1.bf16.msra.mxu1 %v2765_v62 }
  0x9c   :  { %1947 = vmatpush1.bf16.msra.mxu0 %v2768_v63  ;;  %1784 = vmatprep.subr.bf16.mxu1 %v2773_v0 }
  0x9d   :  { %1948 = vmatprep.subr.bf16.mxu0 %v2776_v1 }
  0x9f   :  { %1785 = vmatpush1.bf16.msra.mxu1 %v2771_v2 }
  0xa0   :  { %1949 = vmatpush1.bf16.msra.mxu0 %v2774_v3  ;;  %1786 = vmatprep.subr.bf16.mxu1 %v2779_v4 }
  0xa1   :  { %1950 = vmatprep.subr.bf16.mxu0 %v2782_v5 }
  0xa3   :  { %1787 = vmatpush1.bf16.msra.mxu1 %v2777_v6 }
  0xa4   :  { %1951 = vmatpush1.bf16.msra.mxu0 %v2780_v7  ;;  %1788 = vmatprep.subr.bf16.mxu1 %v2785_v8 }
  0xa5   :  { %1952 = vmatprep.subr.bf16.mxu0 %v2788_v9 }
  0xa7   :  { %1789 = vmatpush1.bf16.msra.mxu1 %v2783_v10 }
  0xa8   :  { %1953 = vmatpush1.bf16.msra.mxu0 %v2786_v11  ;;  %1790 = vmatprep.subr.bf16.mxu1 %v2791_v12 }
  0xa9   :  { %1954 = vmatprep.subr.bf16.mxu0 %v2794_v13 }
  0xab   :  { %1791 = vmatpush1.bf16.msra.mxu1 %v2789_v14 }
  0xac   :  { %1955 = vmatpush1.bf16.msra.mxu0 %v2792_v15  ;;  %1792 = vmatprep.subr.bf16.mxu1 %v2797_v16 }
  0xad   :  { %1956 = vmatprep.subr.bf16.mxu0 %v2800_v17 }
  0xaf   :  { %1793 = vmatpush1.bf16.msra.mxu1 %v2795_v18 }
  0xb0   :  { %1957 = vmatpush1.bf16.msra.mxu0 %v2798_v19  ;;  %1794 = vmatprep.subr.bf16.mxu1 %v2803_v22 }
  0xb1   :  { %1958 = vmatprep.subr.bf16.mxu0 %v2806_v23 }
  0xb3   :  { %1795 = vmatpush1.bf16.msra.mxu1 %v2801_v24 }
  0xb4   :  { %1959 = vmatpush1.bf16.msra.mxu0 %v2804_v25  ;;  %1796 = vmatprep.subr.bf16.mxu1 %v2809_v26 }
  0xb5   :  { %1960 = vmatprep.subr.bf16.mxu0 %v2812_v27 }
  0xb7   :  { %1797 = vmatpush1.bf16.msra.mxu1 %v2807_v31 }
  0xb8   :  { %1961 = vmatpush1.bf16.msra.mxu0 %v2810_v32  ;;  %1798 = vmatprep.subr.bf16.mxu1 %v2815_v34 }
  0xb9   :  { %1962 = vmatprep.subr.bf16.mxu0 %v2818_v35 }
  0xba   :  { %10 = vsyncpa [#allocation3], 0  ;;  %v2819_v40 = vld [vmem:[%s3888_s1 + $0x2f0] ss:$8 sps:$4 sm:$0xff]   ;;  %v2827_v20 = vld [vmem:[%s3888_s1 + $0x304] ss:$8 sps:$4 sm:$0xff]   ;;  %v342_v47 = vcombine.high %v3230_v28, %v3230_v28  ;;  %v391_v48 = vcombine.high %v3233_v29, %v3233_v29 }
  0xbb   :  { %1799 = vmatpush1.bf16.msra.mxu1 %v2813_v36  ;;  %v2822_v41 = vld [vmem:[%s3888_s1 + $0x6f0] ss:$8 sps:$4 sm:$0xff]   ;;  %v2830_v21 = vld [vmem:[%s3888_s1 + $0x704] ss:$8 sps:$4 sm:$0xff]   ;;  %v2825_v43 = vld [vmem:[%s3888_s1 + $0x300] ss:$8 sps:$4 sm:$0xff]  }
  0xbc   :  { %1963 = vmatpush1.bf16.msra.mxu0 %v2816_v37  ;;  %1800 = vmatprep.subr.bf16.mxu1 %v2821_v38  ;;  %v2828_v44 = vld [vmem:[%s3888_s1 + $0x700] ss:$8 sps:$4 sm:$0xff]   ;;  %v2833_v45 = vld [vmem:[%s3888_s1 + $0x314] ss:$8 sps:$4 sm:$0xff]   ;;  %v2831_v49 = vld [vmem:[%s3888_s1 + $0x310] ss:$8 sps:$4 sm:$0xff]  }
  0xbd   :  { %1964 = vmatprep.subr.bf16.mxu0 %v2824_v39  ;;  %v2836_v46 = vld [vmem:[%s3888_s1 + $0x714] ss:$8 sps:$4 sm:$0xff]   ;;  %v2834_v50 = vld [vmem:[%s3888_s1 + $0x710] ss:$8 sps:$4 sm:$0xff]   ;;  %v2839_v28 = vld [vmem:[%s3888_s1 + $0x324] ss:$8 sps:$4 sm:$0xff]  }
  0xbe   :  { %v2842_v29 = vld [vmem:[%s3888_s1 + $0x724] ss:$8 sps:$4 sm:$0xff]   ;;  %v2837_v51 = vld [vmem:[%s3888_s1 + $0x320] ss:$8 sps:$4 sm:$0xff]   ;;  %v2845_v53 = vld [vmem:[%s3888_s1 + $0x334] ss:$8 sps:$4 sm:$0xff]  }
  0xbf   :  { %1801 = vmatpush1.bf16.msra.mxu1 %v2819_v40  ;;  %v2840_v52 = vld [vmem:[%s3888_s1 + $0x720] ss:$8 sps:$4 sm:$0xff]   ;;  %v2848_v54 = vld [vmem:[%s3888_s1 + $0x734] ss:$8 sps:$4 sm:$0xff]   ;;  %v2843_v55 = vld [vmem:[%s3888_s1 + $0x330] ss:$8 sps:$4 sm:$0xff]  }
  0xc0   :  { %1965 = vmatpush1.bf16.msra.mxu0 %v2822_v41  ;;  %1811 = vmatprep.subr.bf16.mxu1 %v2827_v20  ;;  %v2846_v56 = vld [vmem:[%s3888_s1 + $0x730] ss:$8 sps:$4 sm:$0xff]   ;;  %v2851_v57 = vld [vmem:[%s3888_s1 + $0x344] ss:$8 sps:$4 sm:$0xff]   ;;  %v2849_v59 = vld [vmem:[%s3888_s1 + $0x340] ss:$8 sps:$4 sm:$0xff]  }
  0xc1   :  { %1975 = vmatprep.subr.bf16.mxu0 %v2830_v21  ;;  %v2854_v58 = vld [vmem:[%s3888_s1 + $0x744] ss:$8 sps:$4 sm:$0xff]   ;;  %v2852_v60 = vld [vmem:[%s3888_s1 + $0x740] ss:$8 sps:$4 sm:$0xff]   ;;  %v2857_v61 = vld [vmem:[%s3888_s1 + $0x354] ss:$8 sps:$4 sm:$0xff]  }
  0xc2   :  { %1803 = vmatmul.mubr.bf16.vlgmr.msra.gmra.mrb[0].mxu1 %v3236_v30  ;;  %v2860_v62 = vld [vmem:[%s3888_s1 + $0x754] ss:$8 sps:$4 sm:$0xff]   ;;  %v2855_v63 = vld [vmem:[%s3888_s1 + $0x350] ss:$8 sps:$4 sm:$0xff]   ;;  %v2863_v1 = vld [vmem:[%s3888_s1 + $0x364] ss:$8 sps:$4 sm:$0xff]  }
  0xc3   :  { %1967 = vmatmul.mubr.bf16.vlgmr.msra.gmra.mrb[0].mxu0 %v3241_v33  ;;  %1812 = vmatpush1.bf16.msra.mxu1 %v2825_v43  ;;  %v2858_v0 = vld [vmem:[%s3888_s1 + $0x750] ss:$8 sps:$4 sm:$0xff]   ;;  %v2866_v2 = vld [vmem:[%s3888_s1 + $0x764] ss:$8 sps:$4 sm:$0xff]   ;;  %v2861_v3 = vld [vmem:[%s3888_s1 + $0x360] ss:$8 sps:$4 sm:$0xff]  }
  0xc4   :  { %1976 = vmatpush1.bf16.msra.mxu0 %v2828_v44  ;;  %1813 = vmatprep.subr.bf16.mxu1 %v2833_v45  ;;  %v2864_v4 = vld [vmem:[%s3888_s1 + $0x760] ss:$8 sps:$4 sm:$0xff]   ;;  %v2869_v5 = vld [vmem:[%s3888_s1 + $0x374] ss:$8 sps:$4 sm:$0xff]   ;;  %v2867_v7 = vld [vmem:[%s3888_s1 + $0x370] ss:$8 sps:$4 sm:$0xff]  }
  0xc5   :  { %1977 = vmatprep.subr.bf16.mxu0 %v2836_v46  ;;  %1843 = vmatprep.mubr.bf16.mxu1 %v342_v47  ;;  %v2872_v6 = vld [vmem:[%s3888_s1 + $0x774] ss:$8 sps:$4 sm:$0xff]   ;;  %v2870_v8 = vld [vmem:[%s3888_s1 + $0x770] ss:$8 sps:$4 sm:$0xff]   ;;  %v2875_v9 = vld [vmem:[%s3888_s1 + $0x384] ss:$8 sps:$4 sm:$0xff]   ;;  %v340_v47 = vcombine.high %v3236_v30, %v3236_v30 }
  0xc6   :  { %2007 = vmatprep.mubr.bf16.mxu0 %v391_v48  ;;  %v2878_v10 = vld [vmem:[%s3888_s1 + $0x784] ss:$8 sps:$4 sm:$0xff]   ;;  %v2873_v11 = vld [vmem:[%s3888_s1 + $0x380] ss:$8 sps:$4 sm:$0xff]   ;;  %v2881_v13 = vld [vmem:[%s3888_s1 + $0x394] ss:$8 sps:$4 sm:$0xff]   ;;  %v389_v48 = vcombine.high %v3241_v33, %v3241_v33 }
  0xc7   :  { %1814 = vmatpush1.bf16.msra.mxu1 %v2831_v49  ;;  %v2876_v12 = vld [vmem:[%s3888_s1 + $0x780] ss:$8 sps:$4 sm:$0xff]   ;;  %v2884_v14 = vld [vmem:[%s3888_s1 + $0x794] ss:$8 sps:$4 sm:$0xff]   ;;  %v2879_v15 = vld [vmem:[%s3888_s1 + $0x390] ss:$8 sps:$4 sm:$0xff]  }
  0xc8   :  { %1978 = vmatpush1.bf16.msra.mxu0 %v2834_v50  ;;  %1815 = vmatprep.subr.bf16.mxu1 %v2839_v28  ;;  %v2882_v16 = vld [vmem:[%s3888_s1 + $0x790] ss:$8 sps:$4 sm:$0xff]   ;;  %v2887_v17 = vld [vmem:[%s3888_s1 + $0x3a4] ss:$8 sps:$4 sm:$0xff]   ;;  %v2885_v19 = vld [vmem:[%s3888_s1 + $0x3a0] ss:$8 sps:$4 sm:$0xff]  }
  0xc9   :  { %1979 = vmatprep.subr.bf16.mxu0 %v2842_v29  ;;  %v2890_v18 = vld [vmem:[%s3888_s1 + $0x7a4] ss:$8 sps:$4 sm:$0xff]   ;;  %v2888_v22 = vld [vmem:[%s3888_s1 + $0x7a0] ss:$8 sps:$4 sm:$0xff]   ;;  %v2893_v23 = vld [vmem:[%s3888_s1 + $0x3b4] ss:$8 sps:$4 sm:$0xff]  }
  0xca   :  { %v2896_v24 = vld [vmem:[%s3888_s1 + $0x7b4] ss:$8 sps:$4 sm:$0xff]   ;;  %v2891_v25 = vld [vmem:[%s3888_s1 + $0x3b0] ss:$8 sps:$4 sm:$0xff]   ;;  %v2899_v27 = vld [vmem:[%s3888_s1 + $0x3c4] ss:$8 sps:$4 sm:$0xff]  }
  0xcb   :  { %1816 = vmatpush1.bf16.msra.mxu1 %v2837_v51  ;;  %v2894_v26 = vld [vmem:[%s3888_s1 + $0x7b0] ss:$8 sps:$4 sm:$0xff]   ;;  %v2902_v31 = vld [vmem:[%s3888_s1 + $0x7c4] ss:$8 sps:$4 sm:$0xff]   ;;  %v2897_v32 = vld [vmem:[%s3888_s1 + $0x3c0] ss:$8 sps:$4 sm:$0xff]  }
  0xcc   :  { %1980 = vmatpush1.bf16.msra.mxu0 %v2840_v52  ;;  %1817 = vmatprep.subr.bf16.mxu1 %v2845_v53  ;;  %v2900_v34 = vld [vmem:[%s3888_s1 + $0x7c0] ss:$8 sps:$4 sm:$0xff]   ;;  %v2905_v35 = vld [vmem:[%s3888_s1 + $0x3d4] ss:$8 sps:$4 sm:$0xff]   ;;  %v2903_v37 = vld [vmem:[%s3888_s1 + $0x3d0] ss:$8 sps:$4 sm:$0xff]  }
  0xcd   :  { %1981 = vmatprep.subr.bf16.mxu0 %v2848_v54  ;;  %v2908_v36 = vld [vmem:[%s3888_s1 + $0x7d4] ss:$8 sps:$4 sm:$0xff]   ;;  %v2906_v38 = vld [vmem:[%s3888_s1 + $0x7d0] ss:$8 sps:$4 sm:$0xff]   ;;  %v2911_v39 = vld [vmem:[%s3888_s1 + $0x3e4] ss:$8 sps:$4 sm:$0xff]  }
  0xce   :  { %v2914_v40 = vld [vmem:[%s3888_s1 + $0x7e4] ss:$8 sps:$4 sm:$0xff]   ;;  %v2909_v41 = vld [vmem:[%s3888_s1 + $0x3e0] ss:$8 sps:$4 sm:$0xff]   ;;  %v2917_v21 = vld [vmem:[%s3888_s1 + $0x3f4] ss:$8 sps:$4 sm:$0xff]  }
  0xcf   :  { %1818 = vmatpush1.bf16.msra.mxu1 %v2843_v55  ;;  %v2912_v20 = vld [vmem:[%s3888_s1 + $0x7e0] ss:$8 sps:$4 sm:$0xff]   ;;  %v2920_v43 = vld [vmem:[%s3888_s1 + $0x7f4] ss:$8 sps:$4 sm:$0xff]   ;;  %v2915_v44 = vld [vmem:[%s3888_s1 + $0x3f0] ss:$8 sps:$4 sm:$0xff]  }
  0xd0   :  { %1982 = vmatpush1.bf16.msra.mxu0 %v2846_v56  ;;  %1819 = vmatprep.subr.bf16.mxu1 %v2851_v57  ;;  %v2918_v45 = vld [vmem:[%s3888_s1 + $0x7f0] ss:$8 sps:$4 sm:$0xff]   ;;  %v2921_v46 = vld [vmem:[%s3890_s3 + $0x40] sm:$0xff]   ;;  %v2923_v50 = vld [vmem:[%s3890_s3 + $0x48] sm:$0xff]   ;;  %s2962_s23 = smov [#allocation2]  }
  0xd1   :  { %1983 = vmatprep.subr.bf16.mxu0 %v2854_v58  ;;  %v2922_v49 = vld [vmem:[%s3890_s3] sm:$0xff]   ;;  %v2924_v30 = vld [vmem:[%s3890_s3 + $0x8] sm:$0xff]   ;;  %v2925_v33 = vld [vmem:[%s3890_s3 + $0x50] sm:$0xff]   ;;  %s2202_s24 = sshll.u32 %s2962_s23, 4  ;;  %s2203_s24 = int_to_ptr.vmem [resolvable:$true] %s2202_s24 }
  0xd2   :  { %v2926_v28 = vld [vmem:[%s3890_s3 + $0x10] sm:$0xff]   ;;  %v2927_v29 = vld [vmem:[%s3890_s3 + $0x58] sm:$0xff]   ;;  %v2929_v52 = vld [vmem:[%s3890_s3 + $0x60] sm:$0xff]   ;;  %s2937_s25 = scalar_lea.vmem %s2203_s24, 32  ;;  %p2942_p1 = scmp.lt.s32.totalorder %s2203_s24, %s2203_s24 }
  0xd3   :  { %1820 = vmatpush1.bf16.msra.mxu1 %v2849_v59  ;;  %v2928_v51 = vld [vmem:[%s3890_s3 + $0x18] sm:$0xff]   ;;  %v2930_v53 = vld [vmem:[%s3890_s3 + $0x20] sm:$0xff]   ;;  %v2931_v54 = vld [vmem:[%s3890_s3 + $0x68] sm:$0xff]   ;;  %p2938_p0 = scmp.ne.s32.totalorder %s2203_s24, %s2937_s25  ;;  %p2943_p2 = scmp.lt.s32.totalorder %s2937_s25, %s2937_s25 }
  0xd4   :  { %1984 = vmatpush1.bf16.msra.mxu0 %v2852_v60  ;;  %1821 = vmatprep.subr.bf16.mxu1 %v2857_v61  ;;  %v2932_v55 = vld [vmem:[%s3890_s3 + $0x28] sm:$0xff]   ;;  %v2933_v56 = vld [vmem:[%s3890_s3 + $0x70] sm:$0xff]   ;;  %v2935_v58 = vld [vmem:[%s3890_s3 + $0x78] sm:$0xff]   ;;  %v284_v60 = vsub.s32 0, %v3110_v42 }
  0xd5   :  { %1985 = vmatprep.subr.bf16.mxu0 %v2860_v62  ;;  %v2934_v57 = vld [vmem:[%s3890_s3 + $0x30] sm:$0xff]   ;;  %v2936_v59 = vld [vmem:[%s3890_s3 + $0x38] sm:$0xff]   ;;  %v280_v61 = vld [vmem:[%s3889_s2] sm:$0x3]  ;;  %v288_v62 = vsub.s32 1, %v3110_v42  ;;  %p2944_p3 = por %p2943_p2, %p2942_p1 }
  0xd7   :  { %1822 = vmatpush1.bf16.msra.mxu1 %v2855_v63  ;;  %v285_v63 = vrot.slane %v280_v61, %v284_v60  ;;  %p2945_p4 = pnand %p2944_p3, %p2938_p0 }
  0xd8   :  { %1986 = vmatpush1.bf16.msra.mxu0 %v2858_v0  ;;  %1823 = vmatprep.subr.bf16.mxu1 %v2863_v1  ;;  %v289_v0 = vrot.slane %v280_v61, %v288_v62 }
  0xd9   :  { %1987 = vmatprep.subr.bf16.mxu0 %v2866_v2 }
  0xdb   :  { %1824 = vmatpush1.bf16.msra.mxu1 %v2861_v3 }
  0xdc   :  { %1988 = vmatpush1.bf16.msra.mxu0 %v2864_v4  ;;  %1825 = vmatprep.subr.bf16.mxu1 %v2869_v5 }
  0xdd   :  { %1989 = vmatprep.subr.bf16.mxu0 %v2872_v6 }
  0xdf   :  { %1826 = vmatpush1.bf16.msra.mxu1 %v2867_v7 }
  0xe0   :  { %1990 = vmatpush1.bf16.msra.mxu0 %v2870_v8  ;;  %1827 = vmatprep.subr.bf16.mxu1 %v2875_v9 }
  0xe1   :  { %1991 = vmatprep.subr.bf16.mxu0 %v2878_v10 }
  0xe3   :  { %1828 = vmatpush1.bf16.msra.mxu1 %v2873_v11 }
  0xe4   :  { %1992 = vmatpush1.bf16.msra.mxu0 %v2876_v12  ;;  %1829 = vmatprep.subr.bf16.mxu1 %v2881_v13 }
  0xe5   :  { %1993 = vmatprep.subr.bf16.mxu0 %v2884_v14 }
  0xe7   :  { %1830 = vmatpush1.bf16.msra.mxu1 %v2879_v15 }
  0xe8   :  { %1994 = vmatpush1.bf16.msra.mxu0 %v2882_v16  ;;  %1831 = vmatprep.subr.bf16.mxu1 %v2887_v17 }
  0xe9   :  { %1995 = vmatprep.subr.bf16.mxu0 %v2890_v18  ;;  %v2466_v18 = vld [vmem:[%s3891_s4] ss:$0 sm:$0xff] }
  0xeb   :  { %1832 = vmatpush1.bf16.msra.mxu1 %v2885_v19 }
  0xec   :  { %1996 = vmatpush1.bf16.msra.mxu0 %v2888_v22  ;;  %1833 = vmatprep.subr.bf16.mxu1 %v2893_v23 }
  0xed   :  { %1997 = vmatprep.subr.bf16.mxu0 %v2896_v24 }
  0xef   :  { %1834 = vmatpush1.bf16.msra.mxu1 %v2891_v25 }
  0xf0   :  { %1998 = vmatpush1.bf16.msra.mxu0 %v2894_v26  ;;  %1835 = vmatprep.subr.bf16.mxu1 %v2899_v27 }
  0xf1   :  { %1999 = vmatprep.subr.bf16.mxu0 %v2902_v31 }
  0xf3   :  { %1836 = vmatpush1.bf16.msra.mxu1 %v2897_v32 }
  0xf4   :  { %2000 = vmatpush1.bf16.msra.mxu0 %v2900_v34  ;;  %1837 = vmatprep.subr.bf16.mxu1 %v2905_v35 }
  0xf5   :  { %2001 = vmatprep.subr.bf16.mxu0 %v2908_v36 }
  0xf7   :  { %1838 = vmatpush1.bf16.msra.mxu1 %v2903_v37 }
  0xf8   :  { %2002 = vmatpush1.bf16.msra.mxu0 %v2906_v38  ;;  %1839 = vmatprep.subr.bf16.mxu1 %v2911_v39 }
  0xf9   :  { %2003 = vmatprep.subr.bf16.mxu0 %v2914_v40 }
  0xfb   :  { %1840 = vmatpush1.bf16.msra.mxu1 %v2909_v41 }
  0xfc   :  { %2004 = vmatpush1.bf16.msra.mxu0 %v2912_v20  ;;  %1841 = vmatprep.subr.bf16.mxu1 %v2917_v21 }
  0xfd   :  { %2005 = vmatprep.subr.bf16.mxu0 %v2920_v43 }
  0xff   :  { %1842 = vmatpush1.bf16.msra.mxu1 %v2915_v44 }
 0x100   :  { %2006 = vmatpush1.bf16.msra.mxu0 %v2918_v45  ;;  %2483 = vmatprep.subr.bf16.mxu1 %v2921_v46 }
 0x102   :  { %1844 = vmatmul.mubr.bf16.vlgmr.msra.gmra.mrb[0].mxu1 %v340_v47 }
 0x103   :  { %2008 = vmatmul.mubr.bf16.vlgmr.msra.gmra.mrb[0].mxu0 %v389_v48  ;;  %2484 = vmatpush3.bf16.msra.mxu1 %v2922_v49 }
 0x104   :  { %2485 = vmatprep.subr.bf16.mxu1 %v2923_v50 }
 0x107   :  { %2486 = vmatpush3.bf16.msra.mxu1 %v2924_v30 }
 0x108   :  { %2487 = vmatprep.subr.bf16.mxu1 %v2925_v33 }
 0x10b   :  { %2488 = vmatpush3.bf16.msra.mxu1 %v2926_v28 }
 0x10c   :  { %2489 = vmatprep.subr.bf16.mxu1 %v2927_v29 }
 0x10f   :  { %2490 = vmatpush3.bf16.msra.mxu1 %v2928_v51 }
 0x110   :  { %2491 = vmatprep.subr.bf16.mxu1 %v2929_v52 }
 0x113   :  { %2492 = vmatpush3.bf16.msra.mxu1 %v2930_v53 }
 0x114   :  { %2493 = vmatprep.subr.bf16.mxu1 %v2931_v54 }
 0x117   :  { %2494 = vmatpush3.bf16.msra.mxu1 %v2932_v55 }
 0x118   :  { %2495 = vmatprep.subr.bf16.mxu1 %v2933_v56 }
 0x11b   :  { %2496 = vmatpush3.bf16.msra.mxu1 %v2934_v57 }
 0x11c   :  { %2497 = vmatprep.subr.bf16.mxu1 %v2935_v58 }
 0x11f   :  { %2498 = vmatpush3.bf16.msra.mxu1 %v2936_v59 }
 0x1d5   :  { %v1845_v1 = vpop.f32.mrb[0].mxu1 }
 0x1d6   :  { %v2009_v2 = vpop.f32.mrb[0].mxu0  ;;  %v2505_v3 = vadd.f32 %v1845_v1, %v285_v63  ;;  %v1847_v4 = vpop.f32.mrb[1].mxu1 }
 0x1d7   :  { %v2011_v5 = vpop.f32.mrb[1].mxu0  ;;  %v2507_v6 = vadd.f32 %v1847_v4, %v289_v0  ;;  %v1849_v7 = vpop.f32.mrb[2].mxu1 }
 0x1d8   :  { %v2013_v8 = vpop.f32.mrb[2].mxu0  ;;  %v2506_v9 = vadd.f32 %v2505_v3, %v2009_v2  ;;  %v1850_v10 = vpop.f32.mrb[3].mxu1 }
 0x1d9   :  { %v2014_v11 = vpop.f32.mrb[3].mxu0  ;;  %v2508_v12 = vadd.f32 %v2507_v6, %v2011_v5 }
 0x1da   :  { %v2016_v13 = vmax.f32 %v2506_v9, 0.0 }
 0x1db   :  { %v2017_v14 = vmax.f32 %v2508_v12, 0.0 }
 0x1dc   :  { %v2018_v16 = vpack.c.bf16 %v2016_v13, %v2016_v13 }
 0x1dd   :  { %v2019_v15 = vpack.c.bf16 %v2017_v14, %v2017_v14 }
 0x1df   :  { %2187 = vmatprep.mubr.bf16.mxu1 %v2019_v15 }
 0x1e0   :  { %2188 = vmatmul.mubr.bf16.vlgmr.msra.gmra.mrb[4].mxu1 %v2018_v16 }
 0x2b3   :  { %v2499_v42 = vpop.f32.mrb[4].mxu1 }
 0x2b4   :  { %v2500_v17 = vpop.f32.mrb[5].mxu1 }
 0x2b5   :  { %v2501_v19 = vadd.f32 %v2500_v17, %v2499_v42  ;;  %v2502_v22 = vpop.f32.mrb[6].mxu1 }
 0x2b6   :  { %v2503_v23 = vpop.f32.mrb[7].mxu1 }
 0x2b7   :  { %v2190_v24 = vadd.f32 %v2501_v19, %v2466_v18 }
 0x2b9   :  { %2195 = vst [vmem:[#allocation2] sm:$0x3] %v2190_v24 }
 0x2ba   :  { %2948 = shalt.err (!%p2945_p4)
}
 0x2bb   :  { %s2949_s28 = scalar_lea.hbm %s3892_s5, 32 }
 0x2bc   :  { %p2950_p5 = scmp.ne.s32.totalorder %s3892_s5, %s2949_s28  ;;  %p2953_p6 = scmp.lt.u32.totalorder %s2949_s28, %s3892_s5 }
 0x2be   :  { %p2955_p7 = pnand %p2953_p6, %p2950_p5 }
 0x2c0   :  { %2958 = shalt.err (!%p2955_p7)
}
 0x2c1   :  { %2205 = dma.vmem_to_hbm [thread:$0]  %s2203_s24, 32, %s3892_s5, [#allocation3]  }
 0x2c2   :  { %2959 = dma.done.wait [#allocation3], 32  }
 0x2c3   :  { %2960 = vsyncadd [#allocation3], 4294967264 }
 0x2c4   :  { %2209 = vsyncpa [#allocation3], 1 }

// kernel: simple_cnn_forward.4
= control target key start
LH: loop header
LB: loop body
LE: loop exit
PB: predicated region body
PF: predicated region fallthrough
CT: control target
= control target key end

     0   :  { %s14502_s12 = smov 0   ;;  %s16842_s0 = inlined_call_operand.vmem [shape: f32[2,34,34,8], index: 0, kind: input, shape index: {}]   ;;  %s16843_s1 = inlined_call_operand.vmem [shape: bf16[9,8,32], index: 1, kind: input, shape index: {}]   ;;  %s16844_s2 = inlined_call_operand.vmem [shape: f32[1,32], index: 2, kind: input, shape index: {}]   ;;  %s16845_s3 = inlined_call_operand.vmem [shape: bf16[2,16,32,32], index: 3, kind: output, shape index: {}]  }
   0x1 LB: > { %s10180_s13 = sadd.s32 4294967295, %s14480_s12   ;;  %p10184_p0 = scmp.ge.s32.totalorder %s14480_s12, 1  ;;  %s14480_s12 = sphi %s14502_s12, %s13_s12  }
   0x2   : > { %p137_p1 = scmp.lt.s32.totalorder %s14480_s12, 3 }
   0x4   : > { %p138_p2 = pnand %p10184_p0, %p137_p1 }
   0x6   : > { %141 = sbr.rel (%p138_p2) target bundleno = 1394 (0x572), region = 32 }
   0xd   : > { %v10188_v0 = vld [vmem:[%s16843_s1 + $0x4] sm:$0xf]  ;;  %vm752_vm0 = vcmask 1043456   ;;  %v10703_v1 = vld [vmem:[%s16843_s1 + $0x10] sm:$0xf]  ;;  %p161_p3 = scmp.lt.s32.totalorder %s10180_s13, 1 }
   0xe   : > { %14453 = vmatprep.subr.msk.bf16.mxu1 %vm752_vm0, %v10188_v0  ;;  %14457 = vmatprep.subr.msk.bf16.mxu0 %vm752_vm0, %v10703_v1  ;;  %v754_v2 = vsel %vm752_vm0, %v10188_v0, 0  ;;  %v14520_v3 = vsel %vm752_vm0, %v10703_v1, 0  ;;  %v364_v4 = vld [vmem:[%s16843_s1] sm:$0xf]  ;;  %v10896_v5 = vld [vmem:[%s16843_s1 + $0x14] sm:$0xf] }
   0xf   : > { %12258 = vmatpush3.bf16.msra.mxu1 %v754_v2  ;;  %12778 = vmatpush3.bf16.msra.mxu0 %v14520_v3  ;;  %s16889_s13 = smov (!%p161_p3, %s10180_s13), 1  ;;  %vm559_vm1 = vcmask 64512   ;;  %v1494_v15 = vsel %vm752_vm0, %v364_v4, 0  ;;  %v5615_v20 = vsel %vm752_vm0, %v10896_v5, 0  ;;  %v14557_v23 = vld [vmem:[%s16843_s1 + $0x18] sm:$0xf] }
  0x10   : > { %14454 = vmatprep.subr.msk.bf16.mxu1 %vm752_vm0, %v364_v4  ;;  %14459 = vmatprep.subr.msk.bf16.mxu0 %vm752_vm0, %v10896_v5  ;;  %s14463_s22 = smul.u32 1360, %s16889_s13  ;;  %s11607_s15 = sshll.u32 %s16889_s13, 8  ;;  %vm10060_vm2 = vcmask 257024  }
  0x11   : > { %s16506_s17 = scalar_lea.vmem %s16845_s3, %s11607_s15 }
  0x12   : > { %s14537_s25 = scalar_lea.vmem %s16842_s0, %s14463_s22 }
  0x13   : > { %v365_v6 = vld [vmem:[%s14537_s25 + $0x1] sm:$0xff]  ;;  %v366_v7 = vld [vmem:[%s14537_s25 + $0x9] sm:$0xff]  ;;  %v10576_v10 = vld [vmem:[%s14537_s25 + $0x31] sm:$0xff] }
  0x14   : > { %v10575_v8 = vld [vmem:[%s14537_s25 + $0x29] sm:$0xff]  ;;  %v493_v9 = vpack.c.bf16 %v366_v7, %v365_v6  ;;  %v367_v11 = vld [vmem:[%s14537_s25 + $0x11] sm:$0xff]  ;;  %v368_v12 = vld [vmem:[%s14537_s25 + $0x19] sm:$0xff] }
  0x15   : > { %v4294_v13 = vpack.c.bf16 %v10576_v10, %v10575_v8  ;;  %v494_v14 = vpack.c.bf16 %v368_v12, %v367_v11  ;;  %v10577_v16 = vld [vmem:[%s14537_s25 + $0x39] sm:$0xff]  ;;  %v10578_v17 = vld [vmem:[%s14537_s25 + $0x41] sm:$0xff]  ;;  %v10579_v18 = vld [vmem:[%s14537_s25 + $0x51] sm:$0xff] }
  0x16   : > { %12259 = vmatprep.mubr.msk.bf16.mxu1 %vm559_vm1, %v493_v9  ;;  %v4295_v19 = vpack.c.bf16 %v10578_v17, %v10577_v16  ;;  %v10580_v21 = vld [vmem:[%s14537_s25 + $0x59] sm:$0xff]  ;;  %v10581_v24 = vld [vmem:[%s14537_s25 + $0x61] sm:$0xff]  ;;  %v10582_v25 = vld [vmem:[%s14537_s25 + $0x69] sm:$0xff] }
  0x17   : > { %12779 = vmatprep.mubr.msk.bf16.mxu0 %vm559_vm1, %v4294_v13  ;;  %12260 = vmatmul.mubr.msk.bf16.vlgmr.msra.gmra.mrb[0].mxu1 %vm559_vm1, %v494_v14  ;;  %v4296_v22 = vpack.c.bf16 %v10580_v21, %v10579_v18  ;;  %v10583_v26 = vld [vmem:[%s14537_s25 + $0x79] sm:$0xff]  ;;  %v10584_v27 = vld [vmem:[%s14537_s25 + $0x81] sm:$0xff]  ;;  %v4297_v28 = vpack.c.bf16 %v10582_v25, %v10581_v24  ;;  %v10585_v30 = vld [vmem:[%s14537_s25 + $0x89] sm:$0xff] }
  0x18   : > { %12388 = vmatpush3.bf16.msra.mxu1 %v1494_v15  ;;  %12780 = vmatmul.mubr.msk.bf16.vlgmr.msra.gmra.mrb[0].mxu0 %vm559_vm1, %v4295_v19  ;;  %v4298_v29 = vpack.c.bf16 %v10584_v27, %v10583_v26  ;;  %v10586_v31 = vld [vmem:[%s14537_s25 + $0x91] sm:$0xff]  ;;  %v10587_v32 = vld [vmem:[%s14537_s25 + $0xa1] sm:$0xff]  ;;  %v10588_v33 = vld [vmem:[%s14537_s25 + $0xa9] sm:$0xff] }
  0x19   : > { %12908 = vmatpush3.bf16.msra.mxu0 %v5615_v20  ;;  %12263 = vmatprep.mubr.msk.bf16.mxu1 %vm559_vm1, %v4294_v13  ;;  %v4299_v34 = vpack.c.bf16 %v10586_v31, %v10585_v30  ;;  %v4300_v35 = vpack.c.bf16 %v10588_v33, %v10587_v32  ;;  %v10589_v36 = vld [vmem:[%s14537_s25 + $0xb1] sm:$0xff]  ;;  %v10590_v37 = vld [vmem:[%s14537_s25 + $0xb9] sm:$0xff]  ;;  %v10591_v38 = vld [vmem:[%s14537_s25 + $0xc9] sm:$0xff] }
  0x1a   : > { %12783 = vmatprep.mubr.msk.bf16.mxu0 %vm559_vm1, %v4296_v22  ;;  %14460 = vmatprep.subr.msk.bf16.mxu0 %vm752_vm0, %v14557_v23  ;;  %v10592_v39 = vld [vmem:[%s14537_s25 + $0xd1] sm:$0xff]  ;;  %v4301_v40 = vpack.c.bf16 %v10590_v37, %v10589_v36  ;;  %v10593_v42 = vld [vmem:[%s14537_s25 + $0xd9] sm:$0xff]  ;;  %v10594_v43 = vld [vmem:[%s14537_s25 + $0xe1] sm:$0xff] }
  0x1b   : > { %v4302_v41 = vpack.c.bf16 %v10592_v39, %v10591_v38  ;;  %v10595_v44 = vld [vmem:[%s14537_s25 + $0xf1] sm:$0xff]  ;;  %v10596_v45 = vld [vmem:[%s14537_s25 + $0xf9] sm:$0xff]  ;;  %v4303_v46 = vpack.c.bf16 %v10594_v43, %v10593_v42  ;;  %v10597_v48 = vld [vmem:[%s14537_s25 + $0x101] sm:$0xff] }
  0x1c   : > { %v4304_v47 = vpack.c.bf16 %v10596_v45, %v10595_v44  ;;  %v10598_v49 = vld [vmem:[%s14537_s25 + $0x109] sm:$0xff]  ;;  %v10599_v50 = vld [vmem:[%s14537_s25 + $0x119] sm:$0xff]  ;;  %v10600_v51 = vld [vmem:[%s14537_s25 + $0x121] sm:$0xff] }
  0x1d   : > { %v4305_v52 = vpack.c.bf16 %v10598_v49, %v10597_v48  ;;  %v4306_v53 = vpack.c.bf16 %v10600_v51, %v10599_v50  ;;  %v10601_v54 = vld [vmem:[%s14537_s25 + $0x129] sm:$0xff]  ;;  %v10602_v55 = vld [vmem:[%s14537_s25 + $0x131] sm:$0xff]  ;;  %v10603_v56 = vld [vmem:[%s14537_s25 + $0x141] sm:$0xff] }
  0x1e   : > { %v10604_v57 = vld [vmem:[%s14537_s25 + $0x149] sm:$0xff]  ;;  %v4307_v58 = vpack.c.bf16 %v10602_v55, %v10601_v54  ;;  %v10605_v60 = vld [vmem:[%s14537_s25 + $0x151] sm:$0xff]  ;;  %v10606_v61 = vld [vmem:[%s14537_s25 + $0x159] sm:$0xff] }
  0x1f   : > { %12264 = vmatmul.mubr.msk.bf16.gmra.mrb[4].mxu1 %vm559_vm1, %v4295_v19  ;;  %v4308_v59 = vpack.c.bf16 %v10604_v57, %v10603_v56  ;;  %v10607_v62 = vld [vmem:[%s14537_s25 + $0x169] sm:$0xff]  ;;  %v10608_v63 = vld [vmem:[%s14537_s25 + $0x171] sm:$0xff]  ;;  %v4309_v0 = vpack.c.bf16 %v10606_v61, %v10605_v60  ;;  %v10609_v2 = vld [vmem:[%s14537_s25 + $0x179] sm:$0xff] }
  0x20   : > { %12784 = vmatmul.mubr.msk.bf16.gmra.mrb[4].mxu0 %vm559_vm1, %v4297_v28  ;;  %12267 = vmatprep.mubr.msk.bf16.mxu1 %vm559_vm1, %v4296_v22  ;;  %v4310_v1 = vpack.c.bf16 %v10608_v63, %v10607_v62  ;;  %v10610_v4 = vld [vmem:[%s14537_s25 + $0x181] sm:$0xff]  ;;  %v10611_v5 = vld [vmem:[%s14537_s25 + $0x191] sm:$0xff]  ;;  %v10612_v6 = vld [vmem:[%s14537_s25 + $0x199] sm:$0xff]  ;;  %v6678_v62 = vsel %vm752_vm0, %v14557_v23, 0 }
  0x21   : > { %12787 = vmatprep.mubr.msk.bf16.mxu0 %vm559_vm1, %v4298_v29  ;;  %v4311_v7 = vpack.c.bf16 %v10610_v4, %v10609_v2  ;;  %v4312_v8 = vpack.c.bf16 %v10612_v6, %v10611_v5  ;;  %v10613_v9 = vld [vmem:[%s14537_s25 + $0x1a1] sm:$0xff]  ;;  %v10614_v10 = vld [vmem:[%s14537_s25 + $0x1a9] sm:$0xff]  ;;  %v10615_v11 = vld [vmem:[%s14537_s25 + $0x1b9] sm:$0xff] }
  0x22   : > { %v10616_v12 = vld [vmem:[%s14537_s25 + $0x1c1] sm:$0xff]  ;;  %v4313_v13 = vpack.c.bf16 %v10614_v10, %v10613_v9  ;;  %v10617_v15 = vld [vmem:[%s14537_s25 + $0x1c9] sm:$0xff]  ;;  %v10618_v16 = vld [vmem:[%s14537_s25 + $0x1d1] sm:$0xff] }
  0x23   : > { %v4314_v14 = vpack.c.bf16 %v10616_v12, %v10615_v11  ;;  %v10619_v17 = vld [vmem:[%s14537_s25 + $0x1e1] sm:$0xff]  ;;  %v10620_v18 = vld [vmem:[%s14537_s25 + $0x1e9] sm:$0xff]  ;;  %v4315_v19 = vpack.c.bf16 %v10618_v16, %v10617_v15  ;;  %v10621_v21 = vld [vmem:[%s14537_s25 + $0x1f1] sm:$0xff] }
  0x24   : > { %v4316_v20 = vpack.c.bf16 %v10620_v18, %v10619_v17  ;;  %v10622_v22 = vld [vmem:[%s14537_s25 + $0x1f9] sm:$0xff]  ;;  %v10623_v24 = vld [vmem:[%s14537_s25 + $0x209] sm:$0xff]  ;;  %v10624_v25 = vld [vmem:[%s14537_s25 + $0x211] sm:$0xff] }
  0x25   : > { %v4317_v26 = vpack.c.bf16 %v10622_v22, %v10621_v21  ;;  %v4318_v27 = vpack.c.bf16 %v10624_v25, %v10623_v24  ;;  %v10627_v30 = vld [vmem:[%s14537_s25 + $0x231] sm:$0xff]  ;;  %v10628_v31 = vld [vmem:[%s14537_s25 + $0x239] sm:$0xff]  ;;  %v10632_v37 = vld [vmem:[%s14537_s25 + $0x261] sm:$0xff] }
  0x26   : > { %v4320_v33 = vpack.c.bf16 %v10628_v31, %v10627_v30  ;;  %v10631_v36 = vld [vmem:[%s14537_s25 + $0x259] sm:$0xff]  ;;  %v10635_v42 = vld [vmem:[%s14537_s25 + $0x281] sm:$0xff]  ;;  %v10636_v43 = vld [vmem:[%s14537_s25 + $0x289] sm:$0xff] }
  0x27   : > { %12268 = vmatmul.mubr.msk.bf16.gmra.mrb[8].mxu1 %vm559_vm1, %v4297_v28  ;;  %v10625_v28 = vld [vmem:[%s14537_s25 + $0x219] sm:$0xff]  ;;  %v4322_v39 = vpack.c.bf16 %v10632_v37, %v10631_v36  ;;  %v4324_v45 = vpack.c.bf16 %v10636_v43, %v10635_v42  ;;  %v10768_v48 = vld [vmem:[%s14537_s25 + $0x2a] sm:$0xff]  ;;  %v10771_v54 = vld [vmem:[%s14537_s25 + $0x42] sm:$0xff] }
  0x28   : > { %12788 = vmatmul.mubr.msk.bf16.gmra.mrb[8].mxu0 %vm559_vm1, %v4299_v34  ;;  %12271 = vmatprep.mubr.msk.bf16.mxu1 %vm559_vm1, %v4298_v29  ;;  %v10626_v29 = vld [vmem:[%s14537_s25 + $0x221] sm:$0xff]  ;;  %v10769_v49 = vld [vmem:[%s14537_s25 + $0x32] sm:$0xff]  ;;  %v433_v55 = vld [vmem:[%s14537_s25 + $0x2a9] sm:$0xff] }
  0x29   : > { %12791 = vmatprep.mubr.msk.bf16.mxu0 %vm559_vm1, %v4300_v35  ;;  %v4319_v32 = vpack.c.bf16 %v10626_v29, %v10625_v28  ;;  %v5356_v51 = vpack.c.bf16 %v10769_v49, %v10768_v48  ;;  %v434_v56 = vld [vmem:[%s14537_s25 + $0x2b1] sm:$0xff]  ;;  %v435_v63 = vld [vmem:[%s14537_s25 + $0x2b9] sm:$0xff]  ;;  %v10777_v6 = vld [vmem:[%s14537_s25 + $0x82] sm:$0xff] }
  0x2a   : > { %v10772_v57 = vld [vmem:[%s14537_s25 + $0x52] sm:$0xff]  ;;  %v527_v60 = vpack.c.bf16 %v434_v56, %v433_v55  ;;  %v10775_v2 = vld [vmem:[%s14537_s25 + $0x6a] sm:$0xff]  ;;  %v10776_v5 = vld [vmem:[%s14537_s25 + $0x7a] sm:$0xff] }
  0x2b   : > { %v437_v4 = vld [vmem:[%s14537_s25 + $0x2d1] sm:$0xff]  ;;  %v438_v23 = vld [vmem:[%s14537_s25 + $0x2d9] sm:$0xff]  ;;  %v5360_v10 = vpack.c.bf16 %v10777_v6, %v10776_v5  ;;  %v439_v11 = vld [vmem:[%s14537_s25 + $0x2e1] sm:$0xff] }
  0x2c   : > { %v529_v9 = vpack.c.bf16 %v438_v23, %v437_v4  ;;  %v440_v12 = vld [vmem:[%s14537_s25 + $0x2e9] sm:$0xff]  ;;  %v441_v15 = vld [vmem:[%s14537_s25 + $0x2f9] sm:$0xff]  ;;  %v442_v16 = vld [vmem:[%s14537_s25 + $0x301] sm:$0xff] }
  0x2d   : > { %v10780_v17 = vld [vmem:[%s14537_s25 + $0xa2] sm:$0xff]  ;;  %v10781_v18 = vld [vmem:[%s14537_s25 + $0xaa] sm:$0xff]  ;;  %v531_v21 = vpack.c.bf16 %v442_v16, %v441_v15  ;;  %v10785_v31 = vld [vmem:[%s14537_s25 + $0xd2] sm:$0xff] }
  0x2e   : > { %v5362_v22 = vpack.c.bf16 %v10781_v18, %v10780_v17  ;;  %v443_v24 = vld [vmem:[%s14537_s25 + $0x309] sm:$0xff]  ;;  %v444_v25 = vld [vmem:[%s14537_s25 + $0x311] sm:$0xff]  ;;  %v445_v28 = vld [vmem:[%s14537_s25 + $0x321] sm:$0xff] }
  0x2f   : > { %12272 = vmatmul.mubr.msk.bf16.gmra.mrb[12].mxu1 %vm559_vm1, %v4299_v34  ;;  %v10629_v34 = vld [vmem:[%s14537_s25 + $0x241] sm:$0xff]  ;;  %v446_v29 = vld [vmem:[%s14537_s25 + $0x329] sm:$0xff]  ;;  %v447_v36 = vld [vmem:[%s14537_s25 + $0x331] sm:$0xff] }
  0x30   : > { %12792 = vmatmul.mubr.msk.bf16.gmra.mrb[12].mxu0 %vm559_vm1, %v4301_v40  ;;  %12275 = vmatprep.mubr.msk.bf16.mxu1 %vm559_vm1, %v4300_v35  ;;  %v10630_v35 = vld [vmem:[%s14537_s25 + $0x249] sm:$0xff]  ;;  %v448_v37 = vld [vmem:[%s14537_s25 + $0x339] sm:$0xff]  ;;  %v452_v49 = vld [vmem:[%s14537_s25 + $0x361] sm:$0xff] }
  0x31   : > { %12795 = vmatprep.mubr.msk.bf16.mxu0 %vm559_vm1, %v4302_v41  ;;  %v4321_v38 = vpack.c.bf16 %v10630_v35, %v10629_v34  ;;  %v10784_v30 = vld [vmem:[%s14537_s25 + $0xca] sm:$0xff]  ;;  %v533_v34 = vpack.c.bf16 %v446_v29, %v445_v28  ;;  %v10788_v42 = vld [vmem:[%s14537_s25 + $0xf2] sm:$0xff]  ;;  %v10789_v43 = vld [vmem:[%s14537_s25 + $0xfa] sm:$0xff] }
  0x32   : > { %v5364_v35 = vpack.c.bf16 %v10785_v31, %v10784_v30  ;;  %v451_v48 = vld [vmem:[%s14537_s25 + $0x359] sm:$0xff]  ;;  %v10793_v56 = vld [vmem:[%s14537_s25 + $0x122] sm:$0xff]  ;;  %v10797_v23 = vld [vmem:[%s14537_s25 + $0x14a] sm:$0xff] }
  0x33   : > { %v10792_v55 = vld [vmem:[%s14537_s25 + $0x11a] sm:$0xff]  ;;  %v10796_v4 = vld [vmem:[%s14537_s25 + $0x142] sm:$0xff]  ;;  %v10800_v15 = vld [vmem:[%s14537_s25 + $0x16a] sm:$0xff] }
  0x34   : > { %v10801_v16 = vld [vmem:[%s14537_s25 + $0x172] sm:$0xff]  ;;  %v10805_v29 = vld [vmem:[%s14537_s25 + $0x19a] sm:$0xff] }
  0x35   : > { %v10804_v28 = vld [vmem:[%s14537_s25 + $0x192] sm:$0xff] }
  0x37   : > { %12276 = vmatmul.mubr.msk.bf16.gmra.mrb[16].mxu1 %vm559_vm1, %v4301_v40  ;;  %v10633_v40 = vld [vmem:[%s14537_s25 + $0x269] sm:$0xff] }
  0x38   : > { %12796 = vmatmul.mubr.msk.bf16.gmra.mrb[16].mxu0 %vm559_vm1, %v4303_v46  ;;  %12279 = vmatprep.mubr.msk.bf16.mxu1 %vm559_vm1, %v4302_v41  ;;  %v10634_v41 = vld [vmem:[%s14537_s25 + $0x271] sm:$0xff] }
  0x39   : > { %12799 = vmatprep.mubr.msk.bf16.mxu0 %vm559_vm1, %v4304_v47  ;;  %v4323_v44 = vpack.c.bf16 %v10634_v41, %v10633_v40  ;;  %v449_v40 = vld [vmem:[%s14537_s25 + $0x349] sm:$0xff]  ;;  %v450_v41 = vld [vmem:[%s14537_s25 + $0x351] sm:$0xff] }
  0x3f   : > { %12280 = vmatmul.mubr.msk.bf16.gmra.mrb[20].mxu1 %vm559_vm1, %v4303_v46  ;;  %v10637_v46 = vld [vmem:[%s14537_s25 + $0x291] sm:$0xff] }
  0x40   : > { %12800 = vmatmul.mubr.msk.bf16.gmra.mrb[20].mxu0 %vm559_vm1, %v4305_v52  ;;  %12283 = vmatprep.mubr.msk.bf16.mxu1 %vm559_vm1, %v4304_v47  ;;  %v10638_v47 = vld [vmem:[%s14537_s25 + $0x299] sm:$0xff] }
  0x41   : > { %12803 = vmatprep.mubr.msk.bf16.mxu0 %vm559_vm1, %v4306_v53  ;;  %v4325_v50 = vpack.c.bf16 %v10638_v47, %v10637_v46  ;;  %v535_v46 = vpack.c.bf16 %v450_v41, %v449_v40  ;;  %v5366_v47 = vpack.c.bf16 %v10789_v43, %v10788_v42  ;;  %v10808_v40 = vld [vmem:[%s14537_s25 + $0x1ba] sm:$0xff]  ;;  %v10809_v41 = vld [vmem:[%s14537_s25 + $0x1c2] sm:$0xff] }
  0x47   : > { %12284 = vmatmul.mubr.msk.bf16.gmra.mrb[24].mxu1 %vm559_vm1, %v4305_v52  ;;  %v10770_v52 = vld [vmem:[%s14537_s25 + $0x3a] sm:$0xff] }
  0x48   : > { %12804 = vmatmul.mubr.msk.bf16.gmra.mrb[24].mxu0 %vm559_vm1, %v4307_v58  ;;  %12287 = vmatprep.mubr.msk.bf16.mxu1 %vm559_vm1, %v4306_v53  ;;  %v14687_v53 = vld [vmem:[%s16843_s1 + $0x8] sm:$0xf] }
  0x49   : > { %12807 = vmatprep.mubr.msk.bf16.mxu0 %vm559_vm1, %v4308_v59  ;;  %14455 = vmatprep.subr.msk.bf16.mxu1 %vm752_vm0, %v14687_v53 }
  0x4f   : > { %12288 = vmatmul.mubr.msk.bf16.gmra.mrb[28].mxu1 %vm559_vm1, %v4307_v58  ;;  %v10773_v58 = vld [vmem:[%s14537_s25 + $0x5a] sm:$0xff] }
  0x50   : > { %12808 = vmatmul.mubr.msk.bf16.gmra.mrb[28].mxu0 %vm559_vm1, %v4309_v0  ;;  %12291 = vmatprep.mubr.msk.bf16.mxu1 %vm559_vm1, %v4308_v59  ;;  %v5357_v59 = vpack.c.bf16 %v10771_v54, %v10770_v52  ;;  %v5358_v61 = vpack.c.bf16 %v10773_v58, %v10772_v57  ;;  %v453_v52 = vld [vmem:[%s14537_s25 + $0x371] sm:$0xff]  ;;  %v454_v54 = vld [vmem:[%s14537_s25 + $0x379] sm:$0xff]  ;;  %v536_v57 = vpack.c.bf16 %v452_v49, %v451_v48 }
  0x51   : > { %12811 = vmatprep.mubr.msk.bf16.mxu0 %vm559_vm1, %v4310_v1  ;;  %v10810_v48 = vld [vmem:[%s14537_s25 + $0x1ca] sm:$0xff]  ;;  %v10811_v49 = vld [vmem:[%s14537_s25 + $0x1d2] sm:$0xff] }
  0x57   : > { %12292 = vmatmul.mubr.msk.bf16.gmra.mrb[32].mxu1 %vm559_vm1, %v4309_v0  ;;  %v436_v0 = vld [vmem:[%s14537_s25 + $0x2c1] sm:$0xff] }
  0x58   : > { %12812 = vmatmul.mubr.msk.bf16.gmra.mrb[32].mxu0 %vm559_vm1, %v4311_v7  ;;  %12295 = vmatprep.mubr.msk.bf16.mxu1 %vm559_vm1, %v4310_v1  ;;  %v10774_v1 = vld [vmem:[%s14537_s25 + $0x62] sm:$0xff] }
  0x59   : > { %12815 = vmatprep.mubr.msk.bf16.mxu0 %vm559_vm1, %v4312_v8 }
  0x5f   : > { %12296 = vmatmul.mubr.msk.bf16.gmra.mrb[36].mxu1 %vm559_vm1, %v4311_v7  ;;  %v528_v7 = vpack.c.bf16 %v436_v0, %v435_v63  ;;  %v10794_v63 = vld [vmem:[%s14537_s25 + $0x12a] sm:$0xff]  ;;  %v10795_v0 = vld [vmem:[%s14537_s25 + $0x132] sm:$0xff] }
  0x60   : > { %12816 = vmatmul.mubr.msk.bf16.gmra.mrb[36].mxu0 %vm559_vm1, %v4313_v13  ;;  %12299 = vmatprep.mubr.msk.bf16.mxu1 %vm559_vm1, %v4312_v8  ;;  %v5359_v8 = vpack.c.bf16 %v10775_v2, %v10774_v1  ;;  %v457_v1 = vld [vmem:[%s14537_s25 + $0x399] sm:$0xff]  ;;  %v458_v2 = vld [vmem:[%s14537_s25 + $0x3a1] sm:$0xff]  ;;  %v5369_v6 = vpack.c.bf16 %v10795_v0, %v10794_v63  ;;  %v478_v0 = vld [vmem:[%s14537_s25 + $0x469] sm:$0xff] }
  0x61   : > { %12819 = vmatprep.mubr.msk.bf16.mxu0 %vm559_vm1, %v4314_v14  ;;  %v477_v63 = vld [vmem:[%s14537_s25 + $0x461] sm:$0xff] }
  0x67   : > { %12300 = vmatmul.mubr.msk.bf16.gmra.mrb[40].mxu1 %vm559_vm1, %v4313_v13  ;;  %v10778_v13 = vld [vmem:[%s14537_s25 + $0x8a] sm:$0xff] }
  0x68   : > { %12820 = vmatmul.mubr.msk.bf16.gmra.mrb[40].mxu0 %vm559_vm1, %v4315_v19  ;;  %12303 = vmatprep.mubr.msk.bf16.mxu1 %vm559_vm1, %v4314_v14  ;;  %v10779_v14 = vld [vmem:[%s14537_s25 + $0x92] sm:$0xff] }
  0x69   : > { %12823 = vmatprep.mubr.msk.bf16.mxu0 %vm559_vm1, %v4316_v20 }
  0x6f   : > { %12304 = vmatmul.mubr.msk.bf16.gmra.mrb[44].mxu1 %vm559_vm1, %v4315_v19  ;;  %v530_v19 = vpack.c.bf16 %v440_v12, %v439_v11  ;;  %v10798_v11 = vld [vmem:[%s14537_s25 + $0x152] sm:$0xff]  ;;  %v10799_v12 = vld [vmem:[%s14537_s25 + $0x15a] sm:$0xff] }
  0x70   : > { %12824 = vmatmul.mubr.msk.bf16.gmra.mrb[44].mxu0 %vm559_vm1, %v4317_v26  ;;  %12307 = vmatprep.mubr.msk.bf16.mxu1 %vm559_vm1, %v4316_v20  ;;  %v5361_v20 = vpack.c.bf16 %v10779_v14, %v10778_v13  ;;  %v461_v13 = vld [vmem:[%s14537_s25 + $0x3c1] sm:$0xff]  ;;  %v462_v14 = vld [vmem:[%s14537_s25 + $0x3c9] sm:$0xff]  ;;  %v5371_v18 = vpack.c.bf16 %v10799_v12, %v10798_v11  ;;  %v482_v12 = vld [vmem:[%s14537_s25 + $0x491] sm:$0xff] }
  0x71   : > { %12827 = vmatprep.mubr.msk.bf16.mxu0 %vm559_vm1, %v4318_v27  ;;  %v481_v11 = vld [vmem:[%s14537_s25 + $0x489] sm:$0xff] }
  0x77   : > { %12308 = vmatmul.mubr.msk.bf16.gmra.mrb[48].mxu1 %vm559_vm1, %v4317_v26  ;;  %v10782_v26 = vld [vmem:[%s14537_s25 + $0xb2] sm:$0xff] }
  0x78   : > { %12828 = vmatmul.mubr.msk.bf16.gmra.mrb[48].mxu0 %vm559_vm1, %v4319_v32  ;;  %12311 = vmatprep.mubr.msk.bf16.mxu1 %vm559_vm1, %v4318_v27  ;;  %v10783_v27 = vld [vmem:[%s14537_s25 + $0xba] sm:$0xff] }
  0x79   : > { %12831 = vmatprep.mubr.msk.bf16.mxu0 %vm559_vm1, %v4320_v33 }
  0x7f   : > { %12312 = vmatmul.mubr.msk.bf16.gmra.mrb[52].mxu1 %vm559_vm1, %v4319_v32  ;;  %v532_v32 = vpack.c.bf16 %v444_v25, %v443_v24  ;;  %v10802_v24 = vld [vmem:[%s14537_s25 + $0x17a] sm:$0xff]  ;;  %v10803_v25 = vld [vmem:[%s14537_s25 + $0x182] sm:$0xff] }
  0x80   : > { %12832 = vmatmul.mubr.msk.bf16.gmra.mrb[52].mxu0 %vm559_vm1, %v4321_v38  ;;  %12315 = vmatprep.mubr.msk.bf16.mxu1 %vm559_vm1, %v4320_v33  ;;  %v5363_v33 = vpack.c.bf16 %v10783_v27, %v10782_v26  ;;  %v465_v26 = vld [vmem:[%s14537_s25 + $0x3e9] sm:$0xff]  ;;  %v466_v27 = vld [vmem:[%s14537_s25 + $0x3f1] sm:$0xff]  ;;  %v5373_v31 = vpack.c.bf16 %v10803_v25, %v10802_v24  ;;  %v486_v25 = vld [vmem:[%s14537_s25 + $0x4b9] sm:$0xff] }
  0x81   : > { %12835 = vmatprep.mubr.msk.bf16.mxu0 %vm559_vm1, %v4322_v39  ;;  %v485_v24 = vld [vmem:[%s14537_s25 + $0x4b1] sm:$0xff] }
  0x87   : > { %12316 = vmatmul.mubr.msk.bf16.gmra.mrb[56].mxu1 %vm559_vm1, %v4321_v38  ;;  %v10786_v38 = vld [vmem:[%s14537_s25 + $0xda] sm:$0xff] }
  0x88   : > { %12836 = vmatmul.mubr.msk.bf16.gmra.mrb[56].mxu0 %vm559_vm1, %v4323_v44  ;;  %12319 = vmatprep.mubr.msk.bf16.mxu1 %vm559_vm1, %v4322_v39  ;;  %v10787_v39 = vld [vmem:[%s14537_s25 + $0xe2] sm:$0xff] }
  0x89   : > { %12839 = vmatprep.mubr.msk.bf16.mxu0 %vm559_vm1, %v4324_v45 }
  0x8f   : > { %12320 = vmatmul.mubr.msk.bf16.gmra.mrb[60].mxu1 %vm559_vm1, %v4323_v44  ;;  %v534_v44 = vpack.c.bf16 %v448_v37, %v447_v36  ;;  %v10806_v36 = vld [vmem:[%s14537_s25 + $0x1a2] sm:$0xff]  ;;  %v10807_v37 = vld [vmem:[%s14537_s25 + $0x1aa] sm:$0xff] }
  0x90   : > { %12840 = vmatmul.mubr.msk.bf16.gmra.mrb[60].mxu0 %vm559_vm1, %v4325_v50  ;;  %12323 = vmatprep.mubr.msk.bf16.mxu1 %vm559_vm1, %v4324_v45  ;;  %v5365_v45 = vpack.c.bf16 %v10787_v39, %v10786_v38  ;;  %v469_v38 = vld [vmem:[%s14537_s25 + $0x411] sm:$0xff]  ;;  %v470_v39 = vld [vmem:[%s14537_s25 + $0x419] sm:$0xff]  ;;  %v5375_v43 = vpack.c.bf16 %v10807_v37, %v10806_v36  ;;  %v490_v37 = vld [vmem:[%s14537_s25 + $0x4e1] sm:$0xff] }
  0x91   : > { %12909 = vmatprep.mubr.msk.bf16.mxu0 %vm559_vm1, %v5356_v51  ;;  %v10791_v51 = vld [vmem:[%s14537_s25 + $0x10a] sm:$0xff]  ;;  %v489_v36 = vld [vmem:[%s14537_s25 + $0x4d9] sm:$0xff] }
  0x97   : > { %12324 = vmatmul.mubr.msk.bf16.gmra.mrb[64].mxu1 %vm559_vm1, %v4325_v50  ;;  %v10790_v50 = vld [vmem:[%s14537_s25 + $0x102] sm:$0xff] }
  0x98   : > { %12910 = vmatmul.mubr.msk.bf16.vlgmr.msra.gmra.mrb[0].mxu0 %vm559_vm1, %v5357_v59  ;;  %12327 = vmatprep.mubr.msk.bf16.mxu1 %vm559_vm1, %v527_v60  ;;  %v5367_v58 = vpack.c.bf16 %v10791_v51, %v10790_v50  ;;  %v537_v59 = vpack.c.bf16 %v454_v54, %v453_v52  ;;  %v5368_v60 = vpack.c.bf16 %v10793_v56, %v10792_v55  ;;  %v473_v50 = vld [vmem:[%s14537_s25 + $0x439] sm:$0xff]  ;;  %v474_v51 = vld [vmem:[%s14537_s25 + $0x441] sm:$0xff]  ;;  %v10813_v54 = vld [vmem:[%s14537_s25 + $0x1ea] sm:$0xff] }
  0x99   : > { %13038 = vmatpush3.bf16.msra.mxu0 %v6678_v62  ;;  %12913 = vmatprep.mubr.msk.bf16.mxu0 %vm559_vm1, %v5358_v61  ;;  %v455_v61 = vld [vmem:[%s14537_s25 + $0x381] sm:$0xff]  ;;  %v456_v62 = vld [vmem:[%s14537_s25 + $0x389] sm:$0xff]  ;;  %v5377_v56 = vpack.c.bf16 %v10811_v49, %v10810_v48 }
  0x9a   : > { %v538_v5 = vpack.c.bf16 %v456_v62, %v455_v61  ;;  %v10812_v52 = vld [vmem:[%s14537_s25 + $0x1e2] sm:$0xff]  ;;  %v10814_v61 = vld [vmem:[%s14537_s25 + $0x1f2] sm:$0xff]  ;;  %v10815_v62 = vld [vmem:[%s14537_s25 + $0x1fa] sm:$0xff] }
  0x9b   : > { %v172_v48 = vld [vmem:[%s14537_s25] sm:$0xff]  ;;  %v173_v49 = vld [vmem:[%s14537_s25 + $0x8] sm:$0xff] }
  0x9f   : > { %12328 = vmatmul.mubr.msk.bf16.gmra.mrb[68].mxu1 %vm559_vm1, %v528_v7  ;;  %v539_v7 = vpack.c.bf16 %v458_v2, %v457_v1  ;;  %v10816_v1 = vld [vmem:[%s14537_s25 + $0x20a] sm:$0xff]  ;;  %v10817_v2 = vld [vmem:[%s14537_s25 + $0x212] sm:$0xff] }
  0xa0   : > { %12914 = vmatmul.mubr.msk.bf16.gmra.mrb[4].mxu0 %vm559_vm1, %v5359_v8  ;;  %12331 = vmatprep.mubr.msk.bf16.mxu1 %vm559_vm1, %v529_v9  ;;  %v5370_v8 = vpack.c.bf16 %v10797_v23, %v10796_v4  ;;  %v459_v9 = vld [vmem:[%s14537_s25 + $0x3a9] sm:$0xff]  ;;  %v5379_v23 = vpack.c.bf16 %v10815_v62, %v10814_v61  ;;  %v14891_v62 = vld [vmem:[%s16843_s1 + $0x1c] sm:$0xf] }
  0xa1   : > { %12917 = vmatprep.mubr.msk.bf16.mxu0 %vm559_vm1, %v5360_v10  ;;  %v460_v10 = vld [vmem:[%s14537_s25 + $0x3b1] sm:$0xff]  ;;  %v176_v61 = vld [vmem:[%s14537_s25 + $0x28] sm:$0xff]  ;;  %14461 = vmatprep.subr.msk.bf16.mxu0 %vm752_vm0, %v14891_v62 }
  0xa2   : > { %v540_v17 = vpack.c.bf16 %v460_v10, %v459_v9  ;;  %v10818_v9 = vld [vmem:[%s14537_s25 + $0x21a] sm:$0xff]  ;;  %v10819_v10 = vld [vmem:[%s14537_s25 + $0x222] sm:$0xff] }
  0xa7   : > { %12332 = vmatmul.mubr.msk.bf16.gmra.mrb[72].mxu1 %vm559_vm1, %v530_v19  ;;  %v541_v19 = vpack.c.bf16 %v462_v14, %v461_v13  ;;  %v10820_v13 = vld [vmem:[%s14537_s25 + $0x232] sm:$0xff]  ;;  %v10821_v14 = vld [vmem:[%s14537_s25 + $0x23a] sm:$0xff] }
  0xa8   : > { %12918 = vmatmul.mubr.msk.bf16.gmra.mrb[8].mxu0 %vm559_vm1, %v5361_v20  ;;  %12335 = vmatprep.mubr.msk.bf16.mxu1 %vm559_vm1, %v531_v21  ;;  %v5372_v20 = vpack.c.bf16 %v10801_v16, %v10800_v15  ;;  %v463_v21 = vld [vmem:[%s14537_s25 + $0x3d1] sm:$0xff]  ;;  %v5381_v16 = vpack.c.bf16 %v10819_v10, %v10818_v9  ;;  %v10838_v9 = vld [vmem:[%s14537_s25 + $0x2e2] sm:$0xff] }
  0xa9   : > { %12921 = vmatprep.mubr.msk.bf16.mxu0 %vm559_vm1, %v5362_v22  ;;  %v464_v22 = vld [vmem:[%s14537_s25 + $0x3d9] sm:$0xff]  ;;  %v10839_v10 = vld [vmem:[%s14537_s25 + $0x2ea] sm:$0xff] }
  0xaa   : > { %v542_v30 = vpack.c.bf16 %v464_v22, %v463_v21  ;;  %v10822_v21 = vld [vmem:[%s14537_s25 + $0x242] sm:$0xff]  ;;  %v10823_v22 = vld [vmem:[%s14537_s25 + $0x24a] sm:$0xff] }
  0xaf   : > { %12336 = vmatmul.mubr.msk.bf16.gmra.mrb[76].mxu1 %vm559_vm1, %v532_v32  ;;  %v543_v32 = vpack.c.bf16 %v466_v27, %v465_v26  ;;  %v10824_v26 = vld [vmem:[%s14537_s25 + $0x25a] sm:$0xff]  ;;  %v10825_v27 = vld [vmem:[%s14537_s25 + $0x262] sm:$0xff] }
  0xb0   : > { %12922 = vmatmul.mubr.msk.bf16.gmra.mrb[12].mxu0 %vm559_vm1, %v5363_v33  ;;  %12339 = vmatprep.mubr.msk.bf16.mxu1 %vm559_vm1, %v533_v34  ;;  %v5374_v33 = vpack.c.bf16 %v10805_v29, %v10804_v28  ;;  %v467_v34 = vld [vmem:[%s14537_s25 + $0x3f9] sm:$0xff]  ;;  %v5383_v29 = vpack.c.bf16 %v10823_v22, %v10822_v21 }
  0xb1   : > { %12925 = vmatprep.mubr.msk.bf16.mxu0 %vm559_vm1, %v5364_v35  ;;  %v468_v35 = vld [vmem:[%s14537_s25 + $0x401] sm:$0xff]  ;;  %v10843_v21 = vld [vmem:[%s14537_s25 + $0x312] sm:$0xff] }
  0xb2   : > { %v544_v42 = vpack.c.bf16 %v468_v35, %v467_v34  ;;  %v10826_v34 = vld [vmem:[%s14537_s25 + $0x26a] sm:$0xff]  ;;  %v10827_v35 = vld [vmem:[%s14537_s25 + $0x272] sm:$0xff] }
  0xb3   : > { %v184_v22 = vld [vmem:[%s14537_s25 + $0x78] sm:$0xff] }
  0xb7   : > { %12340 = vmatmul.mubr.msk.bf16.gmra.mrb[80].mxu1 %vm559_vm1, %v534_v44  ;;  %v545_v44 = vpack.c.bf16 %v470_v39, %v469_v38  ;;  %v10828_v38 = vld [vmem:[%s14537_s25 + $0x282] sm:$0xff]  ;;  %v10829_v39 = vld [vmem:[%s14537_s25 + $0x28a] sm:$0xff] }
  0xb8   : > { %12926 = vmatmul.mubr.msk.bf16.gmra.mrb[16].mxu0 %vm559_vm1, %v5365_v45  ;;  %12343 = vmatprep.mubr.msk.bf16.mxu1 %vm559_vm1, %v535_v46  ;;  %v5376_v45 = vpack.c.bf16 %v10809_v41, %v10808_v40  ;;  %v471_v46 = vld [vmem:[%s14537_s25 + $0x421] sm:$0xff]  ;;  %v5385_v41 = vpack.c.bf16 %v10827_v35, %v10826_v34 }
  0xb9   : > { %12929 = vmatprep.mubr.msk.bf16.mxu0 %vm559_vm1, %v5366_v47  ;;  %v472_v47 = vld [vmem:[%s14537_s25 + $0x429] sm:$0xff]  ;;  %v10847_v34 = vld [vmem:[%s14537_s25 + $0x33a] sm:$0xff] }
  0xba   : > { %v546_v55 = vpack.c.bf16 %v472_v47, %v471_v46  ;;  %v10830_v46 = vld [vmem:[%s14537_s25 + $0x292] sm:$0xff]  ;;  %v10831_v47 = vld [vmem:[%s14537_s25 + $0x29a] sm:$0xff] }
  0xbb   : > { %v188_v35 = vld [vmem:[%s14537_s25 + $0xa0] sm:$0xff] }
  0xbf   : > { %12344 = vmatmul.mubr.msk.bf16.gmra.mrb[84].mxu1 %vm559_vm1, %v536_v57  ;;  %v547_v57 = vpack.c.bf16 %v474_v51, %v473_v50  ;;  %v10832_v50 = vld [vmem:[%s14537_s25 + $0x2aa] sm:$0xff]  ;;  %v10833_v51 = vld [vmem:[%s14537_s25 + $0x2b2] sm:$0xff] }
  0xc0   : > { %12930 = vmatmul.mubr.msk.bf16.gmra.mrb[20].mxu0 %vm559_vm1, %v5367_v58  ;;  %12347 = vmatprep.mubr.msk.bf16.mxu1 %vm559_vm1, %v537_v59  ;;  %v5378_v58 = vpack.c.bf16 %v10813_v54, %v10812_v52  ;;  %v475_v59 = vld [vmem:[%s14537_s25 + $0x449] sm:$0xff]  ;;  %v5387_v54 = vpack.c.bf16 %v10831_v47, %v10830_v46 }
  0xc1   : > { %12933 = vmatprep.mubr.msk.bf16.mxu0 %vm559_vm1, %v5368_v60  ;;  %v476_v60 = vld [vmem:[%s14537_s25 + $0x451] sm:$0xff]  ;;  %v10851_v46 = vld [vmem:[%s14537_s25 + $0x362] sm:$0xff] }
  0xc2   : > { %v548_v4 = vpack.c.bf16 %v476_v60, %v475_v59  ;;  %v10834_v59 = vld [vmem:[%s14537_s25 + $0x2ba] sm:$0xff]  ;;  %v10835_v60 = vld [vmem:[%s14537_s25 + $0x2c2] sm:$0xff] }
  0xc3   : > { %v192_v47 = vld [vmem:[%s14537_s25 + $0xc8] sm:$0xff] }
  0xc7   : > { %12348 = vmatmul.mubr.msk.bf16.gmra.mrb[88].mxu1 %vm559_vm1, %v538_v5  ;;  %v549_v5 = vpack.c.bf16 %v478_v0, %v477_v63  ;;  %v177_v63 = vld [vmem:[%s14537_s25 + $0x30] sm:$0xff] }
  0xc8   : > { %12934 = vmatmul.mubr.msk.bf16.gmra.mrb[24].mxu0 %vm559_vm1, %v5369_v6  ;;  %12351 = vmatprep.mubr.msk.bf16.mxu1 %vm559_vm1, %v539_v7  ;;  %v5380_v6 = vpack.c.bf16 %v10817_v2, %v10816_v1  ;;  %v479_v7 = vld [vmem:[%s14537_s25 + $0x471] sm:$0xff]  ;;  %v10837_v1 = vld [vmem:[%s14537_s25 + $0x2da] sm:$0xff] }
  0xc9   : > { %12937 = vmatprep.mubr.msk.bf16.mxu0 %vm559_vm1, %v5370_v8  ;;  %v480_v8 = vld [vmem:[%s14537_s25 + $0x479] sm:$0xff] }
  0xca   : > { %v550_v15 = vpack.c.bf16 %v480_v8, %v479_v7  ;;  %v10836_v0 = vld [vmem:[%s14537_s25 + $0x2d2] sm:$0xff]  ;;  %v179_v8 = vld [vmem:[%s14537_s25 + $0x40] sm:$0xff] }
  0xcb   : > { %v178_v7 = vld [vmem:[%s14537_s25 + $0x38] sm:$0xff] }
  0xcf   : > { %12352 = vmatmul.mubr.msk.bf16.gmra.mrb[92].mxu1 %vm559_vm1, %v540_v17  ;;  %v551_v17 = vpack.c.bf16 %v482_v12, %v481_v11  ;;  %v181_v11 = vld [vmem:[%s14537_s25 + $0x58] sm:$0xff] }
  0xd0   : > { %12938 = vmatmul.mubr.msk.bf16.gmra.mrb[28].mxu0 %vm559_vm1, %v5371_v18  ;;  %12355 = vmatprep.mubr.msk.bf16.mxu1 %vm559_vm1, %v541_v19  ;;  %v5382_v18 = vpack.c.bf16 %v10821_v14, %v10820_v13  ;;  %v483_v19 = vld [vmem:[%s14537_s25 + $0x499] sm:$0xff]  ;;  %v10841_v13 = vld [vmem:[%s14537_s25 + $0x302] sm:$0xff]  ;;  %v303_v14 = vpack.c.bf16 %v179_v8, %v178_v7  ;;  %v10858_v7 = vld [vmem:[%s14537_s25 + $0x3aa] sm:$0xff] }
  0xd1   : > { %12941 = vmatprep.mubr.msk.bf16.mxu0 %vm559_vm1, %v5372_v20  ;;  %v484_v20 = vld [vmem:[%s14537_s25 + $0x4a1] sm:$0xff]  ;;  %v10859_v8 = vld [vmem:[%s14537_s25 + $0x3b2] sm:$0xff] }
  0xd2   : > { %v552_v28 = vpack.c.bf16 %v484_v20, %v483_v19  ;;  %v10840_v12 = vld [vmem:[%s14537_s25 + $0x2fa] sm:$0xff]  ;;  %v183_v19 = vld [vmem:[%s14537_s25 + $0x68] sm:$0xff] }
  0xd3   : > { %v10842_v20 = vld [vmem:[%s14537_s25 + $0x30a] sm:$0xff] }
  0xd7   : > { %12356 = vmatmul.mubr.msk.bf16.gmra.mrb[96].mxu1 %vm559_vm1, %v542_v30  ;;  %v553_v30 = vpack.c.bf16 %v486_v25, %v485_v24  ;;  %v185_v24 = vld [vmem:[%s14537_s25 + $0x80] sm:$0xff] }
  0xd8   : > { %12942 = vmatmul.mubr.msk.bf16.gmra.mrb[32].mxu0 %vm559_vm1, %v5373_v31  ;;  %12359 = vmatprep.mubr.msk.bf16.mxu1 %vm559_vm1, %v543_v32  ;;  %v5384_v31 = vpack.c.bf16 %v10825_v27, %v10824_v26  ;;  %v487_v32 = vld [vmem:[%s14537_s25 + $0x4c1] sm:$0xff]  ;;  %v10845_v26 = vld [vmem:[%s14537_s25 + $0x32a] sm:$0xff] }
  0xd9   : > { %12945 = vmatprep.mubr.msk.bf16.mxu0 %vm559_vm1, %v5374_v33  ;;  %v488_v33 = vld [vmem:[%s14537_s25 + $0x4c9] sm:$0xff] }
  0xda   : > { %v554_v40 = vpack.c.bf16 %v488_v33, %v487_v32  ;;  %v10844_v25 = vld [vmem:[%s14537_s25 + $0x322] sm:$0xff]  ;;  %v187_v32 = vld [vmem:[%s14537_s25 + $0x90] sm:$0xff] }
  0xdb   : > { %v10846_v33 = vld [vmem:[%s14537_s25 + $0x332] sm:$0xff] }
  0xdf   : > { %12360 = vmatmul.mubr.msk.bf16.gmra.mrb[100].mxu1 %vm559_vm1, %v544_v42  ;;  %v555_v42 = vpack.c.bf16 %v490_v37, %v489_v36  ;;  %v189_v36 = vld [vmem:[%s14537_s25 + $0xa8] sm:$0xff] }
  0xe0   : > { %12946 = vmatmul.mubr.msk.bf16.gmra.mrb[36].mxu0 %vm559_vm1, %v5375_v43  ;;  %12363 = vmatprep.mubr.msk.bf16.mxu1 %vm559_vm1, %v545_v44  ;;  %v5386_v43 = vpack.c.bf16 %v10829_v39, %v10828_v38  ;;  %v491_v44 = vld [vmem:[%s14537_s25 + $0x4e9] sm:$0xff]  ;;  %v10849_v38 = vld [vmem:[%s14537_s25 + $0x352] sm:$0xff] }
  0xe1   : > { %12949 = vmatprep.mubr.msk.bf16.mxu0 %vm559_vm1, %v5376_v45  ;;  %v492_v45 = vld [vmem:[%s14537_s25 + $0x4f1] sm:$0xff] }
  0xe2   : > { %v556_v52 = vpack.c.bf16 %v492_v45, %v491_v44  ;;  %v10848_v37 = vld [vmem:[%s14537_s25 + $0x34a] sm:$0xff]  ;;  %v191_v44 = vld [vmem:[%s14537_s25 + $0xb8] sm:$0xff] }
  0xe3   : > { %v10850_v45 = vld [vmem:[%s14537_s25 + $0x35a] sm:$0xff] }
  0xe7   : > { %12364 = vmatmul.mubr.msk.bf16.gmra.mrb[104].mxu1 %vm559_vm1, %v546_v55  ;;  %v300_v55 = vpack.c.bf16 %v173_v49, %v172_v48  ;;  %v193_v48 = vld [vmem:[%s14537_s25 + $0xd0] sm:$0xff] }
  0xe8   : > { %12950 = vmatmul.mubr.msk.bf16.gmra.mrb[40].mxu0 %vm559_vm1, %v5377_v56  ;;  %12367 = vmatprep.mubr.msk.bf16.mxu1 %vm559_vm1, %v547_v57  ;;  %v5388_v56 = vpack.c.bf16 %v10833_v51, %v10832_v50  ;;  %v174_v57 = vld [vmem:[%s14537_s25 + $0x10] sm:$0xff]  ;;  %v10853_v50 = vld [vmem:[%s14537_s25 + $0x37a] sm:$0xff] }
  0xe9   : > { %12953 = vmatprep.mubr.msk.bf16.mxu0 %vm559_vm1, %v5378_v58  ;;  %v175_v58 = vld [vmem:[%s14537_s25 + $0x18] sm:$0xff] }
  0xea   : > { %v301_v2 = vpack.c.bf16 %v175_v58, %v174_v57  ;;  %v10852_v49 = vld [vmem:[%s14537_s25 + $0x372] sm:$0xff]  ;;  %v195_v57 = vld [vmem:[%s14537_s25 + $0xe0] sm:$0xff] }
  0xeb   : > { %v10854_v58 = vld [vmem:[%s14537_s25 + $0x382] sm:$0xff] }
  0xef   : > { %12368 = vmatmul.mubr.msk.bf16.gmra.mrb[108].mxu1 %vm559_vm1, %v548_v4  ;;  %v5389_v4 = vpack.c.bf16 %v10835_v60, %v10834_v59  ;;  %v10855_v59 = vld [vmem:[%s14537_s25 + $0x38a] sm:$0xff] }
  0xf0   : > { %12954 = vmatmul.mubr.msk.bf16.gmra.mrb[44].mxu0 %vm559_vm1, %v5379_v23  ;;  %12371 = vmatprep.mubr.msk.bf16.mxu1 %vm559_vm1, %v549_v5  ;;  %v2428_v23 = vsel %vm752_vm0, %v14687_v53, 0  ;;  %v302_v5 = vpack.c.bf16 %v177_v63, %v176_v61  ;;  %v180_v53 = vld [vmem:[%s14537_s25 + $0x50] sm:$0xff]  ;;  %v197_v61 = vld [vmem:[%s14537_s25 + $0xf8] sm:$0xff] }
  0xf1   : > { %12957 = vmatprep.mubr.msk.bf16.mxu0 %vm559_vm1, %v5380_v6  ;;  %v5390_v6 = vpack.c.bf16 %v10837_v1, %v10836_v0  ;;  %v196_v60 = vld [vmem:[%s14537_s25 + $0xf0] sm:$0xff]  ;;  %v10856_v63 = vld [vmem:[%s14537_s25 + $0x39a] sm:$0xff]  ;;  %v10857_v0 = vld [vmem:[%s14537_s25 + $0x3a2] sm:$0xff] }
  0xf7   : > { %12372 = vmatmul.mubr.msk.bf16.gmra.mrb[112].mxu1 %vm559_vm1, %v550_v15  ;;  %v5391_v15 = vpack.c.bf16 %v10839_v10, %v10838_v9  ;;  %v200_v9 = vld [vmem:[%s14537_s25 + $0x118] sm:$0xff]  ;;  %v201_v10 = vld [vmem:[%s14537_s25 + $0x120] sm:$0xff] }
  0xf8   : > { %12958 = vmatmul.mubr.msk.bf16.gmra.mrb[48].mxu0 %vm559_vm1, %v5381_v16  ;;  %12375 = vmatprep.mubr.msk.bf16.mxu1 %vm559_vm1, %v551_v17  ;;  %v14912_v16 = vpack.c.bf16 %v181_v11, %v180_v53  ;;  %v5392_v17 = vpack.c.bf16 %v10841_v13, %v10840_v12  ;;  %v10860_v53 = vld [vmem:[%s14537_s25 + $0x3c2] sm:$0xff]  ;;  %v10861_v11 = vld [vmem:[%s14537_s25 + $0x3ca] sm:$0xff]  ;;  %v5401_v13 = vpack.c.bf16 %v10859_v8, %v10858_v7 }
  0xf9   : > { %12961 = vmatprep.mubr.msk.bf16.mxu0 %vm559_vm1, %v5382_v18  ;;  %v182_v18 = vld [vmem:[%s14537_s25 + $0x60] sm:$0xff]  ;;  %v10877_v7 = vld [vmem:[%s14537_s25 + $0x46a] sm:$0xff] }
  0xfa   : > { %v14927_v27 = vpack.c.bf16 %v183_v19, %v182_v18  ;;  %v203_v18 = vld [vmem:[%s14537_s25 + $0x130] sm:$0xff] }
  0xfb   : > { %v10862_v19 = vld [vmem:[%s14537_s25 + $0x3d2] sm:$0xff] }
  0xff   : > { %12376 = vmatmul.mubr.msk.bf16.gmra.mrb[116].mxu1 %vm559_vm1, %v552_v28  ;;  %v5393_v28 = vpack.c.bf16 %v10843_v21, %v10842_v20  ;;  %v10863_v20 = vld [vmem:[%s14537_s25 + $0x3da] sm:$0xff] }
 0x100   : > { %12962 = vmatmul.mubr.msk.bf16.gmra.mrb[52].mxu0 %vm559_vm1, %v5383_v29  ;;  %12379 = vmatprep.mubr.msk.bf16.mxu1 %vm559_vm1, %v553_v30  ;;  %v14929_v29 = vpack.c.bf16 %v185_v24, %v184_v22  ;;  %v5394_v30 = vpack.c.bf16 %v10845_v26, %v10844_v25  ;;  %v204_v21 = vld [vmem:[%s14537_s25 + $0x140] sm:$0xff]  ;;  %v205_v22 = vld [vmem:[%s14537_s25 + $0x148] sm:$0xff]  ;;  %v10865_v25 = vld [vmem:[%s14537_s25 + $0x3f2] sm:$0xff] }
 0x101   : > { %12965 = vmatprep.mubr.msk.bf16.mxu0 %vm559_vm1, %v5384_v31  ;;  %v186_v31 = vld [vmem:[%s14537_s25 + $0x88] sm:$0xff] }
 0x102   : > { %v14945_v39 = vpack.c.bf16 %v187_v32, %v186_v31  ;;  %v10864_v24 = vld [vmem:[%s14537_s25 + $0x3ea] sm:$0xff] }
 0x103   : > { %v5404_v31 = vpack.c.bf16 %v10865_v25, %v10864_v24  ;;  %v206_v32 = vld [vmem:[%s14537_s25 + $0x150] sm:$0xff] }
 0x107   : > { %12380 = vmatmul.mubr.msk.bf16.gmra.mrb[120].mxu1 %vm559_vm1, %v554_v40  ;;  %v5395_v40 = vpack.c.bf16 %v10847_v34, %v10846_v33  ;;  %v207_v33 = vld [vmem:[%s14537_s25 + $0x158] sm:$0xff] }
 0x108   : > { %12966 = vmatmul.mubr.msk.bf16.gmra.mrb[56].mxu0 %vm559_vm1, %v5385_v41  ;;  %12383 = vmatprep.mubr.msk.bf16.mxu1 %vm559_vm1, %v555_v42  ;;  %v14947_v41 = vpack.c.bf16 %v189_v36, %v188_v35  ;;  %v5396_v42 = vpack.c.bf16 %v10849_v38, %v10848_v37  ;;  %v10866_v34 = vld [vmem:[%s14537_s25 + $0x3fa] sm:$0xff]  ;;  %v10867_v35 = vld [vmem:[%s14537_s25 + $0x402] sm:$0xff]  ;;  %v209_v37 = vld [vmem:[%s14537_s25 + $0x170] sm:$0xff] }
 0x109   : > { %12969 = vmatprep.mubr.msk.bf16.mxu0 %vm559_vm1, %v5386_v43  ;;  %v190_v43 = vld [vmem:[%s14537_s25 + $0xb0] sm:$0xff]  ;;  %v208_v36 = vld [vmem:[%s14537_s25 + $0x168] sm:$0xff] }
 0x10a   : > { %v14963_v51 = vpack.c.bf16 %v191_v44, %v190_v43  ;;  %v10868_v38 = vld [vmem:[%s14537_s25 + $0x412] sm:$0xff]  ;;  %v5405_v43 = vpack.c.bf16 %v10867_v35, %v10866_v34  ;;  %v15037_v44 = vpack.c.bf16 %v209_v37, %v208_v36  ;;  %v10883_v34 = vld [vmem:[%s14537_s25 + $0x4a2] sm:$0xff] }
 0x10b   : > { %v224_v35 = vld [vmem:[%s14537_s25 + $0x208] sm:$0xff]  ;;  %v225_v36 = vld [vmem:[%s14537_s25 + $0x210] sm:$0xff] }
 0x10c   : > { %v10884_v37 = vld [vmem:[%s14537_s25 + $0x4b2] sm:$0xff] }
 0x10f   : > { %12384 = vmatmul.mubr.msk.bf16.gmra.mrb[124].mxu1 %vm559_vm1, %v556_v52  ;;  %v5397_v52 = vpack.c.bf16 %v10851_v46, %v10850_v45  ;;  %v210_v46 = vld [vmem:[%s14537_s25 + $0x178] sm:$0xff] }
 0x110   : > { %12970 = vmatmul.mubr.msk.bf16.gmra.mrb[60].mxu0 %vm559_vm1, %v5387_v54  ;;  %12389 = vmatprep.mubr.msk.bf16.mxu1 %vm559_vm1, %v300_v55  ;;  %v14965_v54 = vpack.c.bf16 %v193_v48, %v192_v47  ;;  %v5398_v55 = vpack.c.bf16 %v10853_v50, %v10852_v49  ;;  %v211_v47 = vld [vmem:[%s14537_s25 + $0x180] sm:$0xff]  ;;  %v10871_v49 = vld [vmem:[%s14537_s25 + $0x42a] sm:$0xff] }
 0x111   : > { %12973 = vmatprep.mubr.msk.bf16.mxu0 %vm559_vm1, %v5388_v56  ;;  %v194_v56 = vld [vmem:[%s14537_s25 + $0xd8] sm:$0xff]  ;;  %v10870_v48 = vld [vmem:[%s14537_s25 + $0x422] sm:$0xff]  ;;  %v212_v50 = vld [vmem:[%s14537_s25 + $0x190] sm:$0xff] }
 0x112   : > { %v14981_v1 = vpack.c.bf16 %v195_v57, %v194_v56  ;;  %v10873_v56 = vld [vmem:[%s14537_s25 + $0x442] sm:$0xff]  ;;  %v15053_v57 = vpack.c.bf16 %v211_v47, %v210_v46  ;;  %v226_v47 = vld [vmem:[%s14537_s25 + $0x218] sm:$0xff] }
 0x117   : > { %12390 = vmatmul.mubr.msk.bf16.vlgmr.msra.gmra.mrb[0].mxu1 %vm559_vm1, %v301_v2  ;;  %v5399_v2 = vpack.c.bf16 %v10855_v59, %v10854_v58  ;;  %v5407_v58 = vpack.c.bf16 %v10871_v49, %v10870_v48  ;;  %v227_v48 = vld [vmem:[%s14537_s25 + $0x220] sm:$0xff] }
 0x118   : > { %12518 = vmatpush3.bf16.msra.mxu1 %v2428_v23  ;;  %12974 = vmatmul.mubr.msk.bf16.gmra.mrb[64].mxu0 %vm559_vm1, %v5389_v4  ;;  %v14983_v4 = vpack.c.bf16 %v197_v61, %v196_v60  ;;  %v5400_v23 = vpack.c.bf16 %v10857_v0, %v10856_v63  ;;  %v214_v61 = vld [vmem:[%s14537_s25 + $0x1a0] sm:$0xff]  ;;  %v215_v63 = vld [vmem:[%s14537_s25 + $0x1a8] sm:$0xff] }
 0x119   : > { %12393 = vmatprep.mubr.msk.bf16.mxu1 %vm559_vm1, %v302_v5  ;;  %12977 = vmatprep.mubr.msk.bf16.mxu0 %vm559_vm1, %v5390_v6  ;;  %v198_v5 = vld [vmem:[%s14537_s25 + $0x100] sm:$0xff]  ;;  %v199_v6 = vld [vmem:[%s14537_s25 + $0x108] sm:$0xff]  ;;  %v15071_v8 = vpack.c.bf16 %v215_v63, %v214_v61 }
 0x11a   : > { %v14999_v12 = vpack.c.bf16 %v199_v6, %v198_v5  ;;  %v10874_v0 = vld [vmem:[%s14537_s25 + $0x44a] sm:$0xff]  ;;  %v217_v5 = vld [vmem:[%s14537_s25 + $0x1c0] sm:$0xff] }
 0x11b   : > { %v10876_v6 = vld [vmem:[%s14537_s25 + $0x462] sm:$0xff] }
 0x11c   : > { %v10886_v49 = vld [vmem:[%s14537_s25 + $0x4c2] sm:$0xff] }
 0x11f   : > { %12394 = vmatmul.mubr.msk.bf16.gmra.mrb[4].mxu1 %vm559_vm1, %v303_v14  ;;  %v15001_v14 = vpack.c.bf16 %v201_v10, %v200_v9 }
 0x120   : > { %12978 = vmatmul.mubr.msk.bf16.gmra.mrb[68].mxu0 %vm559_vm1, %v5391_v15  ;;  %12397 = vmatprep.mubr.msk.bf16.mxu1 %vm559_vm1, %v14912_v16  ;;  %v5402_v15 = vpack.c.bf16 %v10861_v11, %v10860_v53  ;;  %v5410_v53 = vpack.c.bf16 %v10877_v7, %v10876_v6  ;;  %v218_v11 = vld [vmem:[%s14537_s25 + $0x1c8] sm:$0xff]  ;;  %v10891_v6 = vld [vmem:[%s14537_s25 + $0x4f2] sm:$0xff] }
 0x121   : > { %12981 = vmatprep.mubr.msk.bf16.mxu0 %vm559_vm1, %v5392_v17  ;;  %v202_v17 = vld [vmem:[%s14537_s25 + $0x128] sm:$0xff]  ;;  %v232_v7 = vld [vmem:[%s14537_s25 + $0x258] sm:$0xff] }
 0x122   : > { %v15017_v26 = vpack.c.bf16 %v203_v18, %v202_v17  ;;  %v10879_v17 = vld [vmem:[%s14537_s25 + $0x47a] sm:$0xff] }
 0x123   : > { %v220_v18 = vld [vmem:[%s14537_s25 + $0x1e0] sm:$0xff] }
 0x127   : > { %12398 = vmatmul.mubr.msk.bf16.gmra.mrb[8].mxu1 %vm559_vm1, %v14927_v27 }
 0x128   : > { %12982 = vmatmul.mubr.msk.bf16.gmra.mrb[72].mxu0 %vm559_vm1, %v5393_v28  ;;  %12401 = vmatprep.mubr.msk.bf16.mxu1 %vm559_vm1, %v14929_v29  ;;  %v5403_v28 = vpack.c.bf16 %v10863_v20, %v10862_v19  ;;  %v221_v19 = vld [vmem:[%s14537_s25 + $0x1e8] sm:$0xff] }
 0x129   : > { %12985 = vmatprep.mubr.msk.bf16.mxu0 %vm559_vm1, %v5394_v30  ;;  %v15019_v30 = vpack.c.bf16 %v205_v22, %v204_v21  ;;  %v10880_v20 = vld [vmem:[%s14537_s25 + $0x48a] sm:$0xff]  ;;  %v10881_v21 = vld [vmem:[%s14537_s25 + $0x492] sm:$0xff]  ;;  %v15091_v25 = vpack.c.bf16 %v221_v19, %v220_v18 }
 0x12a   : > { %v234_v19 = vld [vmem:[%s14537_s25 + $0x268] sm:$0xff] }
 0x12f   : > { %12402 = vmatmul.mubr.msk.bf16.gmra.mrb[12].mxu1 %vm559_vm1, %v14945_v39 }
 0x130   : > { %12986 = vmatmul.mubr.msk.bf16.gmra.mrb[76].mxu0 %vm559_vm1, %v5395_v40  ;;  %12405 = vmatprep.mubr.msk.bf16.mxu1 %vm559_vm1, %v14947_v41  ;;  %v10869_v40 = vld [vmem:[%s14537_s25 + $0x41a] sm:$0xff] }
 0x131   : > { %12989 = vmatprep.mubr.msk.bf16.mxu0 %vm559_vm1, %v5396_v42  ;;  %v15035_v42 = vpack.c.bf16 %v207_v33, %v206_v32  ;;  %v5406_v45 = vpack.c.bf16 %v10869_v40, %v10868_v38  ;;  %v223_v32 = vld [vmem:[%s14537_s25 + $0x1f8] sm:$0xff] }
 0x132   : > { %v10882_v33 = vld [vmem:[%s14537_s25 + $0x49a] sm:$0xff] }
 0x133   : > { %v10885_v38 = vld [vmem:[%s14537_s25 + $0x4ba] sm:$0xff] }
 0x134   : > { %v5414_v46 = vpack.c.bf16 %v10885_v38, %v10884_v37  ;;  %v15173_v37 = vld [vmem:[%s16843_s1 + $0xc] sm:$0xf] }
 0x135   : > { %v240_v38 = vld [vmem:[%s14537_s25 + $0x2a8] sm:$0xff]  ;;  %14456 = vmatprep.subr.msk.bf16.mxu1 %vm752_vm0, %v15173_v37 }
 0x137   : > { %12406 = vmatmul.mubr.msk.bf16.gmra.mrb[16].mxu1 %vm559_vm1, %v14963_v51 }
 0x138   : > { %12990 = vmatmul.mubr.msk.bf16.gmra.mrb[80].mxu0 %vm559_vm1, %v5397_v52  ;;  %12409 = vmatprep.mubr.msk.bf16.mxu1 %vm559_vm1, %v14965_v54  ;;  %v213_v52 = vld [vmem:[%s14537_s25 + $0x198] sm:$0xff] }
 0x139   : > { %12993 = vmatprep.mubr.msk.bf16.mxu0 %vm559_vm1, %v5398_v55  ;;  %v10872_v55 = vld [vmem:[%s14537_s25 + $0x43a] sm:$0xff]  ;;  %v15055_v59 = vpack.c.bf16 %v213_v52, %v212_v50  ;;  %v10887_v50 = vld [vmem:[%s14537_s25 + $0x4ca] sm:$0xff] }
 0x13a   : > { %v5408_v60 = vpack.c.bf16 %v10873_v56, %v10872_v55  ;;  %v228_v52 = vld [vmem:[%s14537_s25 + $0x230] sm:$0xff]  ;;  %v229_v55 = vld [vmem:[%s14537_s25 + $0x238] sm:$0xff]  ;;  %v5415_v61 = vpack.c.bf16 %v10887_v50, %v10886_v49  ;;  %v243_v49 = vld [vmem:[%s14537_s25 + $0x2c0] sm:$0xff] }
 0x13b   : > { %v10888_v56 = vld [vmem:[%s14537_s25 + $0x4da] sm:$0xff]  ;;  %v15127_v63 = vpack.c.bf16 %v229_v55, %v228_v52  ;;  %v244_v50 = vld [vmem:[%s14537_s25 + $0x2d0] sm:$0xff] }
 0x13f   : > { %12410 = vmatmul.mubr.msk.bf16.gmra.mrb[20].mxu1 %vm559_vm1, %v14981_v1 }
 0x140   : > { %12994 = vmatmul.mubr.msk.bf16.gmra.mrb[84].mxu0 %vm559_vm1, %v5399_v2  ;;  %12413 = vmatprep.mubr.msk.bf16.mxu1 %vm559_vm1, %v14983_v4  ;;  %v10875_v2 = vld [vmem:[%s14537_s25 + $0x452] sm:$0xff] }
 0x141   : > { %12997 = vmatprep.mubr.msk.bf16.mxu0 %vm559_vm1, %v5400_v23  ;;  %v216_v23 = vld [vmem:[%s14537_s25 + $0x1b8] sm:$0xff]  ;;  %v5409_v9 = vpack.c.bf16 %v10875_v2, %v10874_v0  ;;  %v230_v2 = vld [vmem:[%s14537_s25 + $0x240] sm:$0xff] }
 0x142   : > { %v15073_v10 = vpack.c.bf16 %v217_v5, %v216_v23  ;;  %v231_v23 = vld [vmem:[%s14537_s25 + $0x248] sm:$0xff] }
 0x143   : > { %v10890_v5 = vld [vmem:[%s14537_s25 + $0x4ea] sm:$0xff] }
 0x147   : > { %12414 = vmatmul.mubr.msk.bf16.gmra.mrb[24].mxu1 %vm559_vm1, %v14999_v12 }
 0x148   : > { %12998 = vmatmul.mubr.msk.bf16.gmra.mrb[88].mxu0 %vm559_vm1, %v5401_v13  ;;  %12417 = vmatprep.mubr.msk.bf16.mxu1 %vm559_vm1, %v15001_v14  ;;  %v219_v13 = vld [vmem:[%s14537_s25 + $0x1d0] sm:$0xff] }
 0x149   : > { %13001 = vmatprep.mubr.msk.bf16.mxu0 %vm559_vm1, %v5402_v15  ;;  %v10878_v15 = vld [vmem:[%s14537_s25 + $0x472] sm:$0xff]  ;;  %v15089_v22 = vpack.c.bf16 %v219_v13, %v218_v11  ;;  %v10893_v11 = vld [vmem:[%s14537_s25 + $0x50a] sm:$0xff]  ;;  %v15143_v13 = vpack.c.bf16 %v231_v23, %v230_v2  ;;  %v252_v2 = vld [vmem:[%s14537_s25 + $0x320] sm:$0xff] }
 0x14a   : > { %v5411_v24 = vpack.c.bf16 %v10879_v17, %v10878_v15  ;;  %v5417_v15 = vpack.c.bf16 %v10891_v6, %v10890_v5  ;;  %v253_v23 = vld [vmem:[%s14537_s25 + $0x328] sm:$0xff] }
 0x14b   : > { %v15233_v6 = vpack.c.bf16 %v253_v23, %v252_v2  ;;  %v284_v2 = vld [vmem:[%s14537_s25 + $0x460] sm:$0xff]  ;;  %v285_v23 = vld [vmem:[%s14537_s25 + $0x468] sm:$0xff] }
 0x14f   : > { %12418 = vmatmul.mubr.msk.bf16.gmra.mrb[28].mxu1 %vm559_vm1, %v15017_v26 }
 0x150   : > { %13002 = vmatmul.mubr.msk.bf16.gmra.mrb[92].mxu0 %vm559_vm1, %v5403_v28  ;;  %12421 = vmatprep.mubr.msk.bf16.mxu1 %vm559_vm1, %v15019_v30  ;;  %v5412_v28 = vpack.c.bf16 %v10881_v21, %v10880_v20  ;;  %v235_v20 = vld [vmem:[%s14537_s25 + $0x270] sm:$0xff] }
 0x151   : > { %13005 = vmatprep.mubr.msk.bf16.mxu0 %vm559_vm1, %v5404_v31  ;;  %v222_v31 = vld [vmem:[%s14537_s25 + $0x1f0] sm:$0xff] }
 0x152   : > { %v15107_v40 = vpack.c.bf16 %v223_v32, %v222_v31  ;;  %v10894_v21 = vld [vmem:[%s14537_s25 + $0x512] sm:$0xff]  ;;  %v237_v31 = vld [vmem:[%s14537_s25 + $0x288] sm:$0xff]  ;;  %v15159_v32 = vpack.c.bf16 %v235_v20, %v234_v19 }
 0x157   : > { %12422 = vmatmul.mubr.msk.bf16.gmra.mrb[32].mxu1 %vm559_vm1, %v15035_v42 }
 0x158   : > { %13006 = vmatmul.mubr.msk.bf16.gmra.mrb[96].mxu0 %vm559_vm1, %v5405_v43  ;;  %12425 = vmatprep.mubr.msk.bf16.mxu1 %vm559_vm1, %v15037_v44  ;;  %v5413_v43 = vpack.c.bf16 %v10883_v34, %v10882_v33 }
 0x159   : > { %13009 = vmatprep.mubr.msk.bf16.mxu0 %vm559_vm1, %v5406_v45  ;;  %v15109_v45 = vpack.c.bf16 %v225_v36, %v224_v35  ;;  %v238_v35 = vld [vmem:[%s14537_s25 + $0x290] sm:$0xff]  ;;  %v239_v36 = vld [vmem:[%s14537_s25 + $0x298] sm:$0xff] }
 0x15f   : > { %12426 = vmatmul.mubr.msk.bf16.gmra.mrb[36].mxu1 %vm559_vm1, %v15053_v57 }
 0x160   : > { %13010 = vmatmul.mubr.msk.bf16.gmra.mrb[100].mxu0 %vm559_vm1, %v5407_v58  ;;  %12429 = vmatprep.mubr.msk.bf16.mxu1 %vm559_vm1, %v15055_v59  ;;  %v10889_v58 = vld [vmem:[%s14537_s25 + $0x4e2] sm:$0xff] }
 0x161   : > { %13013 = vmatprep.mubr.msk.bf16.mxu0 %vm559_vm1, %v5408_v60  ;;  %v15125_v60 = vpack.c.bf16 %v227_v48, %v226_v47  ;;  %v5416_v0 = vpack.c.bf16 %v10889_v58, %v10888_v56  ;;  %v7740_v48 = vsel %vm752_vm0, %v14891_v62, 0  ;;  %v245_v62 = vld [vmem:[%s14537_s25 + $0x2d8] sm:$0xff]  ;;  %v249_v58 = vld [vmem:[%s14537_s25 + $0x300] sm:$0xff] }
 0x162   : > { %v15201_v55 = vpack.c.bf16 %v245_v62, %v244_v50  ;;  %v248_v56 = vld [vmem:[%s14537_s25 + $0x2f8] sm:$0xff]  ;;  %v276_v50 = vld [vmem:[%s14537_s25 + $0x410] sm:$0xff] }
 0x163   : > { %v277_v62 = vld [vmem:[%s14537_s25 + $0x418] sm:$0xff] }
 0x167   : > { %12430 = vmatmul.mubr.msk.bf16.gmra.mrb[40].mxu1 %vm559_vm1, %v15071_v8 }
 0x168   : > { %13014 = vmatmul.mubr.msk.bf16.gmra.mrb[104].mxu0 %vm559_vm1, %v5409_v9  ;;  %12433 = vmatprep.mubr.msk.bf16.mxu1 %vm559_vm1, %v15073_v10  ;;  %v233_v9 = vld [vmem:[%s14537_s25 + $0x260] sm:$0xff] }
 0x169   : > { %13017 = vmatprep.mubr.msk.bf16.mxu0 %vm559_vm1, %v5410_v53  ;;  %v10892_v53 = vld [vmem:[%s14537_s25 + $0x502] sm:$0xff]  ;;  %v15145_v17 = vpack.c.bf16 %v233_v9, %v232_v7  ;;  %v257_v9 = vld [vmem:[%s14537_s25 + $0x350] sm:$0xff] }
 0x16a   : > { %v5418_v18 = vpack.c.bf16 %v10893_v11, %v10892_v53  ;;  %v256_v7 = vld [vmem:[%s14537_s25 + $0x348] sm:$0xff] }
 0x16b   : > { %v15249_v11 = vpack.c.bf16 %v257_v9, %v256_v7  ;;  %v288_v7 = vld [vmem:[%s14537_s25 + $0x488] sm:$0xff]  ;;  %v289_v9 = vld [vmem:[%s14537_s25 + $0x490] sm:$0xff] }
 0x16f   : > { %12434 = vmatmul.mubr.msk.bf16.gmra.mrb[44].mxu1 %vm559_vm1, %v15089_v22 }
 0x170   : > { %13018 = vmatmul.mubr.msk.bf16.gmra.mrb[108].mxu0 %vm559_vm1, %v5411_v24  ;;  %12437 = vmatprep.mubr.msk.bf16.mxu1 %vm559_vm1, %v15091_v25  ;;  %v10895_v24 = vld [vmem:[%s14537_s25 + $0x51a] sm:$0xff] }
 0x171   : > { %13021 = vmatprep.mubr.msk.bf16.mxu0 %vm559_vm1, %v5412_v28  ;;  %v236_v28 = vld [vmem:[%s14537_s25 + $0x280] sm:$0xff]  ;;  %v5419_v33 = vpack.c.bf16 %v10895_v24, %v10894_v21  ;;  %v264_v21 = vld [vmem:[%s14537_s25 + $0x398] sm:$0xff] }
 0x172   : > { %v15161_v34 = vpack.c.bf16 %v237_v31, %v236_v28  ;;  %v265_v24 = vld [vmem:[%s14537_s25 + $0x3a0] sm:$0xff] }
 0x173   : > { %v15281_v31 = vpack.c.bf16 %v265_v24, %v264_v21  ;;  %v296_v21 = vld [vmem:[%s14537_s25 + $0x4d8] sm:$0xff]  ;;  %v297_v24 = vld [vmem:[%s14537_s25 + $0x4e0] sm:$0xff] }
 0x177   : > { %12438 = vmatmul.mubr.msk.bf16.gmra.mrb[48].mxu1 %vm559_vm1, %v15107_v40 }
 0x178   : > { %13022 = vmatmul.mubr.msk.bf16.gmra.mrb[112].mxu0 %vm559_vm1, %v5413_v43  ;;  %12441 = vmatprep.mubr.msk.bf16.mxu1 %vm559_vm1, %v15109_v45  ;;  %v241_v43 = vld [vmem:[%s14537_s25 + $0x2b0] sm:$0xff] }
 0x179   : > { %13025 = vmatprep.mubr.msk.bf16.mxu0 %vm559_vm1, %v5414_v46  ;;  %v15181_v46 = vpack.c.bf16 %v239_v36, %v238_v35  ;;  %v15183_v47 = vpack.c.bf16 %v241_v43, %v240_v38  ;;  %v269_v35 = vld [vmem:[%s14537_s25 + $0x3c8] sm:$0xff] }
 0x17a   : > { %v272_v43 = vld [vmem:[%s14537_s25 + $0x3e8] sm:$0xff] }
 0x17f   : > { %12442 = vmatmul.mubr.msk.bf16.gmra.mrb[52].mxu1 %vm559_vm1, %v15125_v60 }
 0x180   : > { %13026 = vmatmul.mubr.msk.bf16.gmra.mrb[116].mxu0 %vm559_vm1, %v5415_v61  ;;  %12445 = vmatprep.mubr.msk.bf16.mxu1 %vm559_vm1, %v15127_v63 }
 0x181   : > { %13029 = vmatprep.mubr.msk.bf16.mxu0 %vm559_vm1, %v5416_v0  ;;  %v15217_v0 = vpack.c.bf16 %v249_v58, %v248_v56  ;;  %v280_v56 = vld [vmem:[%s14537_s25 + $0x438] sm:$0xff]  ;;  %v281_v58 = vld [vmem:[%s14537_s25 + $0x440] sm:$0xff] }
 0x187   : > { %12446 = vmatmul.mubr.msk.bf16.gmra.mrb[56].mxu1 %vm559_vm1, %v15143_v13 }
 0x188   : > { %13030 = vmatmul.mubr.msk.bf16.gmra.mrb[120].mxu0 %vm559_vm1, %v5417_v15  ;;  %12449 = vmatprep.mubr.msk.bf16.mxu1 %vm559_vm1, %v15145_v17  ;;  %v260_v15 = vld [vmem:[%s14537_s25 + $0x370] sm:$0xff] }
 0x189   : > { %13033 = vmatprep.mubr.msk.bf16.mxu0 %vm559_vm1, %v5418_v18  ;;  %v261_v18 = vld [vmem:[%s14537_s25 + $0x378] sm:$0xff] }
 0x18a   : > { %v15265_v20 = vpack.c.bf16 %v261_v18, %v260_v15  ;;  %v292_v15 = vld [vmem:[%s14537_s25 + $0x4b0] sm:$0xff]  ;;  %v293_v18 = vld [vmem:[%s14537_s25 + $0x4b8] sm:$0xff] }
 0x18f   : > { %12450 = vmatmul.mubr.msk.bf16.gmra.mrb[60].mxu1 %vm559_vm1, %v15159_v32 }
 0x190   : > { %13034 = vmatmul.mubr.msk.bf16.gmra.mrb[124].mxu0 %vm559_vm1, %v5419_v33  ;;  %12453 = vmatprep.mubr.msk.bf16.mxu1 %vm559_vm1, %v15161_v34  ;;  %v268_v33 = vld [vmem:[%s14537_s25 + $0x3c0] sm:$0xff] }
 0x191   : > { %13039 = vmatprep.mubr.msk.bf16.mxu0 %vm559_vm1, %v14912_v16  ;;  %v242_v16 = vld [vmem:[%s14537_s25 + $0x2b8] sm:$0xff]  ;;  %v15297_v38 = vpack.c.bf16 %v269_v35, %v268_v33  ;;  %v2041_v33 = vld [vmem:[%s14537_s25 + $0x2] sm:$0xff]  ;;  %v2042_v35 = vld [vmem:[%s14537_s25 + $0xa] sm:$0xff] }
 0x192   : > { %v15199_v52 = vpack.c.bf16 %v243_v49, %v242_v16 }
 0x197   : > { %12454 = vmatmul.mubr.msk.bf16.gmra.mrb[64].mxu1 %vm559_vm1, %v15181_v46 }
 0x198   : > { %13040 = vmatmul.mubr.msk.bf16.vlgmr.msra.gmra.mrb[0].mxu0 %vm559_vm1, %v14927_v27  ;;  %12457 = vmatprep.mubr.msk.bf16.mxu1 %vm559_vm1, %v15183_v47  ;;  %v246_v27 = vld [vmem:[%s14537_s25 + $0x2e0] sm:$0xff] }
 0x199   : > { %13168 = vmatpush3.bf16.msra.mxu0 %v7740_v48  ;;  %13043 = vmatprep.mubr.msk.bf16.mxu0 %vm559_vm1, %v14929_v29  ;;  %v247_v29 = vld [vmem:[%s14537_s25 + $0x2e8] sm:$0xff]  ;;  %v273_v48 = vld [vmem:[%s14537_s25 + $0x3f0] sm:$0xff] }
 0x19a   : > { %v15215_v61 = vpack.c.bf16 %v247_v29, %v246_v27  ;;  %v15313_v49 = vpack.c.bf16 %v273_v48, %v272_v43  ;;  %v15329_v29 = vpack.c.bf16 %v277_v62, %v276_v50  ;;  %v2044_v43 = vld [vmem:[%s14537_s25 + $0x1a] sm:$0xff]  ;;  %v2045_v48 = vld [vmem:[%s14537_s25 + $0x2a] sm:$0xff]  ;;  %v2048_v62 = vld [vmem:[%s14537_s25 + $0x42] sm:$0xff] }
 0x19f   : > { %12458 = vmatmul.mubr.msk.bf16.gmra.mrb[68].mxu1 %vm559_vm1, %v15199_v52 }
 0x1a0   : > { %13044 = vmatmul.mubr.msk.bf16.gmra.mrb[4].mxu0 %vm559_vm1, %v14945_v39  ;;  %12461 = vmatprep.mubr.msk.bf16.mxu1 %vm559_vm1, %v15201_v55  ;;  %v250_v39 = vld [vmem:[%s14537_s25 + $0x308] sm:$0xff] }
 0x1a1   : > { %13047 = vmatprep.mubr.msk.bf16.mxu0 %vm559_vm1, %v14947_v41  ;;  %v251_v41 = vld [vmem:[%s14537_s25 + $0x310] sm:$0xff] }
 0x1a2   : > { %v15231_v5 = vpack.c.bf16 %v251_v41, %v250_v39  ;;  %v15345_v41 = vpack.c.bf16 %v281_v58, %v280_v56  ;;  %v2052_v58 = vld [vmem:[%s14537_s25 + $0x6a] sm:$0xff] }
 0x1a7   : > { %12462 = vmatmul.mubr.msk.bf16.gmra.mrb[72].mxu1 %vm559_vm1, %v15215_v61 }
 0x1a8   : > { %13048 = vmatmul.mubr.msk.bf16.gmra.mrb[8].mxu0 %vm559_vm1, %v14963_v51  ;;  %12465 = vmatprep.mubr.msk.bf16.mxu1 %vm559_vm1, %v15217_v0  ;;  %v254_v51 = vld [vmem:[%s14537_s25 + $0x330] sm:$0xff] }
 0x1a9   : > { %13051 = vmatprep.mubr.msk.bf16.mxu0 %vm559_vm1, %v14965_v54  ;;  %v255_v54 = vld [vmem:[%s14537_s25 + $0x338] sm:$0xff] }
 0x1aa   : > { %v15247_v53 = vpack.c.bf16 %v255_v54, %v254_v51  ;;  %v15361_v54 = vpack.c.bf16 %v285_v23, %v284_v2 }
 0x1af   : > { %12466 = vmatmul.mubr.msk.bf16.gmra.mrb[76].mxu1 %vm559_vm1, %v15231_v5 }
 0x1b0   : > { %13052 = vmatmul.mubr.msk.bf16.gmra.mrb[12].mxu0 %vm559_vm1, %v14981_v1  ;;  %12469 = vmatprep.mubr.msk.bf16.mxu1 %vm559_vm1, %v15233_v6  ;;  %v258_v1 = vld [vmem:[%s14537_s25 + $0x358] sm:$0xff] }
 0x1b1   : > { %13055 = vmatprep.mubr.msk.bf16.mxu0 %vm559_vm1, %v14983_v4  ;;  %v259_v4 = vld [vmem:[%s14537_s25 + $0x360] sm:$0xff] }
 0x1b2   : > { %v15263_v19 = vpack.c.bf16 %v259_v4, %v258_v1  ;;  %v15377_v4 = vpack.c.bf16 %v289_v9, %v288_v7 }
 0x1b7   : > { %12470 = vmatmul.mubr.msk.bf16.gmra.mrb[80].mxu1 %vm559_vm1, %v15247_v53 }
 0x1b8   : > { %13056 = vmatmul.mubr.msk.bf16.gmra.mrb[16].mxu0 %vm559_vm1, %v14999_v12  ;;  %12473 = vmatprep.mubr.msk.bf16.mxu1 %vm559_vm1, %v15249_v11  ;;  %v262_v12 = vld [vmem:[%s14537_s25 + $0x380] sm:$0xff] }
 0x1b9   : > { %13059 = vmatprep.mubr.msk.bf16.mxu0 %vm559_vm1, %v15001_v14  ;;  %v263_v14 = vld [vmem:[%s14537_s25 + $0x388] sm:$0xff] }
 0x1ba   : > { %v15279_v28 = vpack.c.bf16 %v263_v14, %v262_v12  ;;  %v15393_v14 = vpack.c.bf16 %v293_v18, %v292_v15 }
 0x1bf   : > { %12474 = vmatmul.mubr.msk.bf16.gmra.mrb[84].mxu1 %vm559_vm1, %v15263_v19 }
 0x1c0   : > { %13060 = vmatmul.mubr.msk.bf16.gmra.mrb[20].mxu0 %vm559_vm1, %v15017_v26  ;;  %12477 = vmatprep.mubr.msk.bf16.mxu1 %vm559_vm1, %v15265_v20  ;;  %v266_v26 = vld [vmem:[%s14537_s25 + $0x3a8] sm:$0xff] }
 0x1c1   : > { %13063 = vmatprep.mubr.msk.bf16.mxu0 %vm559_vm1, %v15019_v30  ;;  %v267_v30 = vld [vmem:[%s14537_s25 + $0x3b0] sm:$0xff] }
 0x1c2   : > { %v15295_v36 = vpack.c.bf16 %v267_v30, %v266_v26  ;;  %v15409_v30 = vpack.c.bf16 %v297_v24, %v296_v21 }
 0x1c7   : > { %12478 = vmatmul.mubr.msk.bf16.gmra.mrb[88].mxu1 %vm559_vm1, %v15279_v28 }
 0x1c8   : > { %13064 = vmatmul.mubr.msk.bf16.gmra.mrb[24].mxu0 %vm559_vm1, %v15035_v42  ;;  %12481 = vmatprep.mubr.msk.bf16.mxu1 %vm559_vm1, %v15281_v31  ;;  %v270_v42 = vld [vmem:[%s14537_s25 + $0x3d0] sm:$0xff] }
 0x1c9   : > { %13067 = vmatprep.mubr.msk.bf16.mxu0 %vm559_vm1, %v15037_v44  ;;  %v271_v44 = vld [vmem:[%s14537_s25 + $0x3d8] sm:$0xff] }
 0x1ca   : > { %v15311_v16 = vpack.c.bf16 %v271_v44, %v270_v42  ;;  %v2169_v44 = vpack.c.bf16 %v2042_v35, %v2041_v33 }
 0x1cf   : > { %12482 = vmatmul.mubr.msk.bf16.gmra.mrb[92].mxu1 %vm559_vm1, %v15295_v36 }
 0x1d0   : > { %13068 = vmatmul.mubr.msk.bf16.gmra.mrb[28].mxu0 %vm559_vm1, %v15053_v57  ;;  %12485 = vmatprep.mubr.msk.bf16.mxu1 %vm559_vm1, %v15297_v38  ;;  %v274_v57 = vld [vmem:[%s14537_s25 + $0x3f8] sm:$0xff] }
 0x1d1   : > { %13071 = vmatprep.mubr.msk.bf16.mxu0 %vm559_vm1, %v15055_v59  ;;  %v275_v59 = vld [vmem:[%s14537_s25 + $0x400] sm:$0xff] }
 0x1d2   : > { %v15327_v27 = vpack.c.bf16 %v275_v59, %v274_v57  ;;  %v2046_v57 = vld [vmem:[%s14537_s25 + $0x32] sm:$0xff]  ;;  %v3491_v59 = vsel %vm752_vm0, %v15173_v37, 0  ;;  %v2050_v37 = vld [vmem:[%s14537_s25 + $0x5a] sm:$0xff] }
 0x1d3   : > { %v2171_v50 = vpack.c.bf16 %v2046_v57, %v2045_v48  ;;  %v2076_v57 = vld [vmem:[%s14537_s25 + $0x15a] sm:$0xff] }
 0x1d7   : > { %12486 = vmatmul.mubr.msk.bf16.gmra.mrb[96].mxu1 %vm559_vm1, %v15311_v16 }
 0x1d8   : > { %13072 = vmatmul.mubr.msk.bf16.gmra.mrb[32].mxu0 %vm559_vm1, %v15071_v8  ;;  %12489 = vmatprep.mubr.msk.bf16.mxu1 %vm559_vm1, %v15313_v49  ;;  %v278_v8 = vld [vmem:[%s14537_s25 + $0x420] sm:$0xff] }
 0x1d9   : > { %13075 = vmatprep.mubr.msk.bf16.mxu0 %vm559_vm1, %v15073_v10  ;;  %v279_v10 = vld [vmem:[%s14537_s25 + $0x428] sm:$0xff] }
 0x1da   : > { %v15343_v39 = vpack.c.bf16 %v279_v10, %v278_v8  ;;  %v2049_v8 = vld [vmem:[%s14537_s25 + $0x52] sm:$0xff] }
 0x1db   : > { %v14472_v10 = vld [vmem:[%s16843_s1 + $0x10] sm:$0xf] }
 0x1df   : > { %12490 = vmatmul.mubr.msk.bf16.gmra.mrb[100].mxu1 %vm559_vm1, %v15327_v27 }
 0x1e0   : > { %13076 = vmatmul.mubr.msk.bf16.gmra.mrb[36].mxu0 %vm559_vm1, %v15089_v22  ;;  %12493 = vmatprep.mubr.msk.bf16.mxu1 %vm559_vm1, %v15329_v29  ;;  %v282_v22 = vld [vmem:[%s14537_s25 + $0x448] sm:$0xff] }
 0x1e1   : > { %13079 = vmatprep.mubr.msk.bf16.mxu0 %vm559_vm1, %v15091_v25  ;;  %v283_v25 = vld [vmem:[%s14537_s25 + $0x450] sm:$0xff] }
 0x1e2   : > { %v15359_v51 = vpack.c.bf16 %v283_v25, %v282_v22  ;;  %v2053_v22 = vld [vmem:[%s14537_s25 + $0x7a] sm:$0xff]  ;;  %v2054_v25 = vld [vmem:[%s14537_s25 + $0x82] sm:$0xff] }
 0x1e3   : > { %v2175_v23 = vpack.c.bf16 %v2054_v25, %v2053_v22  ;;  %v2090_v22 = vld [vmem:[%s14537_s25 + $0x1ea] sm:$0xff] }
 0x1e7   : > { %12494 = vmatmul.mubr.msk.bf16.gmra.mrb[104].mxu1 %vm559_vm1, %v15343_v39 }
 0x1e8   : > { %13080 = vmatmul.mubr.msk.bf16.gmra.mrb[40].mxu0 %vm559_vm1, %v15107_v40  ;;  %12497 = vmatprep.mubr.msk.bf16.mxu1 %vm559_vm1, %v15345_v41  ;;  %v286_v40 = vld [vmem:[%s14537_s25 + $0x470] sm:$0xff] }
 0x1e9   : > { %13083 = vmatprep.mubr.msk.bf16.mxu0 %vm559_vm1, %v15109_v45  ;;  %v287_v45 = vld [vmem:[%s14537_s25 + $0x478] sm:$0xff] }
 0x1ea   : > { %v15375_v1 = vpack.c.bf16 %v287_v45, %v286_v40  ;;  %v2056_v40 = vld [vmem:[%s14537_s25 + $0x92] sm:$0xff]  ;;  %v2058_v45 = vld [vmem:[%s14537_s25 + $0xaa] sm:$0xff] }
 0x1ef   : > { %12498 = vmatmul.mubr.msk.bf16.gmra.mrb[108].mxu1 %vm559_vm1, %v15359_v51 }
 0x1f0   : > { %13084 = vmatmul.mubr.msk.bf16.gmra.mrb[44].mxu0 %vm559_vm1, %v15125_v60  ;;  %12501 = vmatprep.mubr.msk.bf16.mxu1 %vm559_vm1, %v15361_v54  ;;  %v290_v60 = vld [vmem:[%s14537_s25 + $0x498] sm:$0xff] }
 0x1f1   : > { %13087 = vmatprep.mubr.msk.bf16.mxu0 %vm559_vm1, %v15127_v63  ;;  %v291_v63 = vld [vmem:[%s14537_s25 + $0x4a0] sm:$0xff] }
 0x1f2   : > { %v15391_v12 = vpack.c.bf16 %v291_v63, %v290_v60  ;;  %v2060_v60 = vld [vmem:[%s14537_s25 + $0xba] sm:$0xff]  ;;  %v2062_v63 = vld [vmem:[%s14537_s25 + $0xd2] sm:$0xff] }
 0x1f7   : > { %12502 = vmatmul.mubr.msk.bf16.gmra.mrb[112].mxu1 %vm559_vm1, %v15375_v1 }
 0x1f8   : > { %13088 = vmatmul.mubr.msk.bf16.gmra.mrb[48].mxu0 %vm559_vm1, %v15143_v13  ;;  %12505 = vmatprep.mubr.msk.bf16.mxu1 %vm559_vm1, %v15377_v4  ;;  %v294_v13 = vld [vmem:[%s14537_s25 + $0x4c0] sm:$0xff] }
 0x1f9   : > { %13091 = vmatprep.mubr.msk.bf16.mxu0 %vm559_vm1, %v15145_v17  ;;  %v295_v17 = vld [vmem:[%s14537_s25 + $0x4c8] sm:$0xff] }
 0x1fa   : > { %v15407_v26 = vpack.c.bf16 %v295_v17, %v294_v13  ;;  %v2064_v13 = vld [vmem:[%s14537_s25 + $0xe2] sm:$0xff]  ;;  %v2066_v17 = vld [vmem:[%s14537_s25 + $0xfa] sm:$0xff] }
 0x1ff   : > { %12506 = vmatmul.mubr.msk.bf16.gmra.mrb[116].mxu1 %vm559_vm1, %v15391_v12 }
 0x200   : > { %13092 = vmatmul.mubr.msk.bf16.gmra.mrb[52].mxu0 %vm559_vm1, %v15159_v32  ;;  %12509 = vmatprep.mubr.msk.bf16.mxu1 %vm559_vm1, %v15393_v14  ;;  %v298_v32 = vld [vmem:[%s14537_s25 + $0x4e8] sm:$0xff] }
 0x201   : > { %13095 = vmatprep.mubr.msk.bf16.mxu0 %vm559_vm1, %v15161_v34  ;;  %v299_v34 = vld [vmem:[%s14537_s25 + $0x4f0] sm:$0xff] }
 0x202   : > { %v15423_v42 = vpack.c.bf16 %v299_v34, %v298_v32  ;;  %v2068_v32 = vld [vmem:[%s14537_s25 + $0x10a] sm:$0xff]  ;;  %v2070_v34 = vld [vmem:[%s14537_s25 + $0x122] sm:$0xff] }
 0x207   : > { %12510 = vmatmul.mubr.msk.bf16.gmra.mrb[120].mxu1 %vm559_vm1, %v15407_v26 }
 0x208   : > { %13096 = vmatmul.mubr.msk.bf16.gmra.mrb[56].mxu0 %vm559_vm1, %v15181_v46  ;;  %12513 = vmatprep.mubr.msk.bf16.mxu1 %vm559_vm1, %v15409_v30  ;;  %v2043_v46 = vld [vmem:[%s14537_s25 + $0x12] sm:$0xff] }
 0x209   : > { %13099 = vmatprep.mubr.msk.bf16.mxu0 %vm559_vm1, %v15183_v47  ;;  %v15437_v47 = vld [vmem:[%s16843_s1 + $0x20] sm:$0xf] }
 0x20a   : > { %14462 = vmatprep.subr.msk.bf16.mxu0 %vm752_vm0, %v15437_v47 }
 0x20f   : > { %12514 = vmatmul.mubr.msk.bf16.gmra.mrb[124].mxu1 %vm559_vm1, %v15423_v42 }
 0x210   : > { %13100 = vmatmul.mubr.msk.bf16.gmra.mrb[60].mxu0 %vm559_vm1, %v15199_v52  ;;  %12519 = vmatprep.mubr.msk.bf16.mxu1 %vm559_vm1, %v2169_v44  ;;  %v2170_v52 = vpack.c.bf16 %v2044_v43, %v2043_v46  ;;  %v2072_v44 = vld [vmem:[%s14537_s25 + $0x132] sm:$0xff]  ;;  %v2074_v46 = vld [vmem:[%s14537_s25 + $0x14a] sm:$0xff] }
 0x211   : > { %13103 = vmatprep.mubr.msk.bf16.mxu0 %vm559_vm1, %v15201_v55  ;;  %v2047_v55 = vld [vmem:[%s14537_s25 + $0x3a] sm:$0xff] }
 0x212   : > { %v2172_v56 = vpack.c.bf16 %v2048_v62, %v2047_v55  ;;  %v2080_v55 = vld [vmem:[%s14537_s25 + $0x182] sm:$0xff]  ;;  %v2082_v62 = vld [vmem:[%s14537_s25 + $0x19a] sm:$0xff] }
 0x217   : > { %12520 = vmatmul.mubr.msk.bf16.vlgmr.msra.gmra.mrb[0].mxu1 %vm559_vm1, %v2170_v52  ;;  %v2078_v52 = vld [vmem:[%s14537_s25 + $0x172] sm:$0xff] }
 0x218   : > { %12648 = vmatpush3.bf16.msra.mxu1 %v3491_v59  ;;  %13104 = vmatmul.mubr.msk.bf16.gmra.mrb[64].mxu0 %vm559_vm1, %v15215_v61  ;;  %v2173_v61 = vpack.c.bf16 %v2050_v37, %v2049_v8 }
 0x219   : > { %12523 = vmatprep.mubr.msk.bf16.mxu1 %vm559_vm1, %v2171_v50  ;;  %13107 = vmatprep.mubr.msk.bf16.mxu0 %vm559_vm1, %v15217_v0  ;;  %v2051_v0 = vld [vmem:[%s14537_s25 + $0x62] sm:$0xff] }
 0x21a   : > { %14458 = vmatprep.subr.msk.bf16.mxu1 %vm752_vm0, %v14472_v10  ;;  %v2174_v2 = vpack.c.bf16 %v2052_v58, %v2051_v0  ;;  %v2084_v10 = vld [vmem:[%s14537_s25 + $0x1aa] sm:$0xff]  ;;  %v2088_v58 = vld [vmem:[%s14537_s25 + $0x1d2] sm:$0xff] }
 0x21f   : > { %12524 = vmatmul.mubr.msk.bf16.gmra.mrb[4].mxu1 %vm559_vm1, %v2172_v56  ;;  %v2086_v56 = vld [vmem:[%s14537_s25 + $0x1c2] sm:$0xff] }
 0x220   : > { %13108 = vmatmul.mubr.msk.bf16.gmra.mrb[68].mxu0 %vm559_vm1, %v15231_v5  ;;  %12527 = vmatprep.mubr.msk.bf16.mxu1 %vm559_vm1, %v2173_v61  ;;  %v2055_v5 = vld [vmem:[%s14537_s25 + $0x8a] sm:$0xff] }
 0x221   : > { %13111 = vmatprep.mubr.msk.bf16.mxu0 %vm559_vm1, %v15233_v6  ;;  %v2057_v6 = vld [vmem:[%s14537_s25 + $0xa2] sm:$0xff]  ;;  %v2176_v7 = vpack.c.bf16 %v2056_v40, %v2055_v5  ;;  %v2094_v5 = vld [vmem:[%s14537_s25 + $0x212] sm:$0xff] }
 0x222   : > { %v2177_v9 = vpack.c.bf16 %v2058_v45, %v2057_v6  ;;  %v2096_v45 = vld [vmem:[%s14537_s25 + $0x222] sm:$0xff] }
 0x227   : > { %12528 = vmatmul.mubr.msk.bf16.gmra.mrb[8].mxu1 %vm559_vm1, %v2174_v2 }
 0x228   : > { %13112 = vmatmul.mubr.msk.bf16.gmra.mrb[72].mxu0 %vm559_vm1, %v15247_v53  ;;  %12531 = vmatprep.mubr.msk.bf16.mxu1 %vm559_vm1, %v2175_v23  ;;  %v2059_v53 = vld [vmem:[%s14537_s25 + $0xb2] sm:$0xff]  ;;  %v2092_v23 = vld [vmem:[%s14537_s25 + $0x1fa] sm:$0xff] }
 0x229   : > { %13115 = vmatprep.mubr.msk.bf16.mxu0 %vm559_vm1, %v15249_v11  ;;  %v2061_v11 = vld [vmem:[%s14537_s25 + $0xca] sm:$0xff]  ;;  %v2178_v15 = vpack.c.bf16 %v2060_v60, %v2059_v53 }
 0x22a   : > { %v2179_v18 = vpack.c.bf16 %v2062_v63, %v2061_v11  ;;  %v11082_v53 = vld [vmem:[%s14537_s25 + $0x508] sm:$0xff] }
 0x22b   : > { %v2099_v63 = vld [vmem:[%s14537_s25 + $0x242] sm:$0xff] }
 0x22f   : > { %12532 = vmatmul.mubr.msk.bf16.gmra.mrb[12].mxu1 %vm559_vm1, %v2176_v7  ;;  %v2098_v7 = vld [vmem:[%s14537_s25 + $0x23a] sm:$0xff] }
 0x230   : > { %13116 = vmatmul.mubr.msk.bf16.gmra.mrb[76].mxu0 %vm559_vm1, %v15263_v19  ;;  %12535 = vmatprep.mubr.msk.bf16.mxu1 %vm559_vm1, %v2177_v9  ;;  %v2063_v19 = vld [vmem:[%s14537_s25 + $0xda] sm:$0xff] }
 0x231   : > { %13119 = vmatprep.mubr.msk.bf16.mxu0 %vm559_vm1, %v15265_v20  ;;  %v2065_v20 = vld [vmem:[%s14537_s25 + $0xf2] sm:$0xff]  ;;  %v2180_v21 = vpack.c.bf16 %v2064_v13, %v2063_v19  ;;  %v11081_v9 = vld [vmem:[%s14537_s25 + $0x500] sm:$0xff] }
 0x232   : > { %v2181_v24 = vpack.c.bf16 %v2066_v17, %v2065_v20  ;;  %v6479_v11 = vpack.c.bf16 %v11082_v53, %v11081_v9  ;;  %v2101_v19 = vld [vmem:[%s14537_s25 + $0x25a] sm:$0xff]  ;;  %v2102_v13 = vld [vmem:[%s14537_s25 + $0x262] sm:$0xff]  ;;  %v11086_v17 = vld [vmem:[%s14537_s25 + $0x530] sm:$0xff] }
 0x233   : > { %v11085_v20 = vld [vmem:[%s14537_s25 + $0x528] sm:$0xff] }
 0x237   : > { %12536 = vmatmul.mubr.msk.bf16.gmra.mrb[16].mxu1 %vm559_vm1, %v2178_v15  ;;  %v11083_v15 = vld [vmem:[%s14537_s25 + $0x510] sm:$0xff] }
 0x238   : > { %13120 = vmatmul.mubr.msk.bf16.gmra.mrb[80].mxu0 %vm559_vm1, %v15279_v28  ;;  %12539 = vmatprep.mubr.msk.bf16.mxu1 %vm559_vm1, %v2179_v18  ;;  %v2067_v28 = vld [vmem:[%s14537_s25 + $0x102] sm:$0xff]  ;;  %v11084_v18 = vld [vmem:[%s14537_s25 + $0x518] sm:$0xff] }
 0x239   : > { %13123 = vmatprep.mubr.msk.bf16.mxu0 %vm559_vm1, %v15281_v31  ;;  %v2069_v31 = vld [vmem:[%s14537_s25 + $0x11a] sm:$0xff]  ;;  %v2182_v33 = vpack.c.bf16 %v2068_v32, %v2067_v28  ;;  %v6481_v28 = vpack.c.bf16 %v11086_v17, %v11085_v20  ;;  %v2103_v32 = vld [vmem:[%s14537_s25 + $0x26a] sm:$0xff] }
 0x23a   : > { %v2183_v35 = vpack.c.bf16 %v2070_v34, %v2069_v31  ;;  %v2104_v31 = vld [vmem:[%s14537_s25 + $0x272] sm:$0xff] }
 0x23b   : > { %v11087_v34 = vld [vmem:[%s14537_s25 + $0x538] sm:$0xff] }
 0x23f   : > { %12540 = vmatmul.mubr.msk.bf16.gmra.mrb[20].mxu1 %vm559_vm1, %v2180_v21  ;;  %v6480_v21 = vpack.c.bf16 %v11084_v18, %v11083_v15  ;;  %v2121_v15 = vld [vmem:[%s14537_s25 + $0x322] sm:$0xff]  ;;  %v2122_v18 = vld [vmem:[%s14537_s25 + $0x32a] sm:$0xff] }
 0x240   : > { %13124 = vmatmul.mubr.msk.bf16.gmra.mrb[84].mxu0 %vm559_vm1, %v15295_v36  ;;  %12543 = vmatprep.mubr.msk.bf16.mxu1 %vm559_vm1, %v2181_v24  ;;  %v2071_v36 = vld [vmem:[%s14537_s25 + $0x12a] sm:$0xff]  ;;  %v2199_v24 = vpack.c.bf16 %v2102_v13, %v2101_v19  ;;  %v11171_v13 = vld [vmem:[%s14537_s25 + $0xf9] sm:$0xff] }
 0x241   : > { %13127 = vmatprep.mubr.msk.bf16.mxu0 %vm559_vm1, %v15297_v38  ;;  %v2073_v38 = vld [vmem:[%s14537_s25 + $0x142] sm:$0xff]  ;;  %v2184_v43 = vpack.c.bf16 %v2072_v44, %v2071_v36  ;;  %v2106_v36 = vld [vmem:[%s14537_s25 + $0x28a] sm:$0xff] }
 0x242   : > { %v2185_v48 = vpack.c.bf16 %v2074_v46, %v2073_v38  ;;  %v11154_v44 = vld [vmem:[%s14537_s25 + $0x51] sm:$0xff]  ;;  %v11155_v38 = vld [vmem:[%s14537_s25 + $0x59] sm:$0xff]  ;;  %v2200_v46 = vpack.c.bf16 %v2104_v31, %v2103_v32  ;;  %v11172_v32 = vld [vmem:[%s14537_s25 + $0x101] sm:$0xff] }
 0x243   : > { %v11170_v19 = vld [vmem:[%s14537_s25 + $0xf1] sm:$0xff]  ;;  %v11173_v31 = vld [vmem:[%s14537_s25 + $0x109] sm:$0xff] }
 0x247   : > { %12544 = vmatmul.mubr.msk.bf16.gmra.mrb[24].mxu1 %vm559_vm1, %v2182_v33  ;;  %v11088_v33 = vld [vmem:[%s14537_s25 + $0x540] sm:$0xff] }
 0x248   : > { %13128 = vmatmul.mubr.msk.bf16.gmra.mrb[88].mxu0 %vm559_vm1, %v15311_v16  ;;  %12547 = vmatprep.mubr.msk.bf16.mxu1 %vm559_vm1, %v2183_v35  ;;  %v2075_v16 = vld [vmem:[%s14537_s25 + $0x152] sm:$0xff]  ;;  %v2105_v35 = vld [vmem:[%s14537_s25 + $0x282] sm:$0xff] }
 0x249   : > { %13131 = vmatprep.mubr.msk.bf16.mxu0 %vm559_vm1, %v15313_v49  ;;  %v2077_v49 = vld [vmem:[%s14537_s25 + $0x16a] sm:$0xff]  ;;  %v2186_v59 = vpack.c.bf16 %v2076_v57, %v2075_v16  ;;  %v7481_v16 = vpack.c.bf16 %v11155_v38, %v11154_v44  ;;  %v2107_v57 = vld [vmem:[%s14537_s25 + $0x292] sm:$0xff]  ;;  %v7490_v38 = vpack.c.bf16 %v11173_v31, %v11172_v32  ;;  %v2146_v32 = vld [vmem:[%s14537_s25 + $0x41a] sm:$0xff] }
 0x24a   : > { %v2187_v50 = vpack.c.bf16 %v2078_v52, %v2077_v49  ;;  %v2108_v49 = vld [vmem:[%s14537_s25 + $0x29a] sm:$0xff] }
 0x24b   : > { %v11156_v52 = vld [vmem:[%s14537_s25 + $0x61] sm:$0xff] }
 0x24c   : > { %v11194_v31 = vld [vmem:[%s14537_s25 + $0x1e1] sm:$0xff] }
 0x24f   : > { %12548 = vmatmul.mubr.msk.bf16.gmra.mrb[28].mxu1 %vm559_vm1, %v2184_v43  ;;  %v6482_v43 = vpack.c.bf16 %v11088_v33, %v11087_v34  ;;  %v2125_v34 = vld [vmem:[%s14537_s25 + $0x34a] sm:$0xff]  ;;  %v2126_v33 = vld [vmem:[%s14537_s25 + $0x352] sm:$0xff] }
 0x250   : > { %13132 = vmatmul.mubr.msk.bf16.gmra.mrb[92].mxu0 %vm559_vm1, %v15327_v27  ;;  %12551 = vmatprep.mubr.msk.bf16.mxu1 %vm559_vm1, %v2185_v48  ;;  %v2079_v27 = vld [vmem:[%s14537_s25 + $0x17a] sm:$0xff]  ;;  %v2201_v48 = vpack.c.bf16 %v2106_v36, %v2105_v35 }
 0x251   : > { %13135 = vmatprep.mubr.msk.bf16.mxu0 %vm559_vm1, %v15329_v29  ;;  %v2081_v29 = vld [vmem:[%s14537_s25 + $0x192] sm:$0xff]  ;;  %v2188_v8 = vpack.c.bf16 %v2080_v55, %v2079_v27  ;;  %v11175_v36 = vld [vmem:[%s14537_s25 + $0x121] sm:$0xff] }
 0x252   : > { %v2189_v37 = vpack.c.bf16 %v2082_v62, %v2081_v29  ;;  %v2110_v27 = vld [vmem:[%s14537_s25 + $0x2b2] sm:$0xff]  ;;  %v11159_v29 = vld [vmem:[%s14537_s25 + $0x81] sm:$0xff]  ;;  %v2202_v62 = vpack.c.bf16 %v2108_v49, %v2107_v57  ;;  %v11176_v57 = vld [vmem:[%s14537_s25 + $0x129] sm:$0xff] }
 0x253   : > { %v11158_v55 = vld [vmem:[%s14537_s25 + $0x79] sm:$0xff]  ;;  %v11177_v49 = vld [vmem:[%s14537_s25 + $0x131] sm:$0xff] }
 0x254   : > { %v11174_v35 = vld [vmem:[%s14537_s25 + $0x119] sm:$0xff] }
 0x257   : > { %12552 = vmatmul.mubr.msk.bf16.gmra.mrb[32].mxu1 %vm559_vm1, %v2186_v59  ;;  %v11157_v59 = vld [vmem:[%s14537_s25 + $0x69] sm:$0xff] }
 0x258   : > { %13136 = vmatmul.mubr.msk.bf16.gmra.mrb[96].mxu0 %vm559_vm1, %v15343_v39  ;;  %12555 = vmatprep.mubr.msk.bf16.mxu1 %vm559_vm1, %v2187_v50  ;;  %v2083_v39 = vld [vmem:[%s14537_s25 + $0x1a2] sm:$0xff]  ;;  %v2109_v50 = vld [vmem:[%s14537_s25 + $0x2aa] sm:$0xff] }
 0x259   : > { %13139 = vmatprep.mubr.msk.bf16.mxu0 %vm559_vm1, %v15345_v41  ;;  %v2085_v41 = vld [vmem:[%s14537_s25 + $0x1ba] sm:$0xff]  ;;  %v2190_v61 = vpack.c.bf16 %v2084_v10, %v2083_v39  ;;  %v7483_v39 = vpack.c.bf16 %v11159_v29, %v11158_v55  ;;  %v8802_v10 = vsel %vm752_vm0, %v15437_v47, 0  ;;  %v7492_v29 = vpack.c.bf16 %v11177_v49, %v11176_v57  ;;  %v2150_v57 = vld [vmem:[%s14537_s25 + $0x442] sm:$0xff] }
 0x25a   : > { %v2191_v0 = vpack.c.bf16 %v2086_v56, %v2085_v41  ;;  %v2111_v41 = vld [vmem:[%s14537_s25 + $0x2ba] sm:$0xff]  ;;  %v2112_v56 = vld [vmem:[%s14537_s25 + $0x2c2] sm:$0xff] }
 0x25b   : > { %v2114_v47 = vld [vmem:[%s14537_s25 + $0x2da] sm:$0xff]  ;;  %v11198_v49 = vld [vmem:[%s14537_s25 + $0x209] sm:$0xff] }
 0x25f   : > { %12556 = vmatmul.mubr.msk.bf16.gmra.mrb[36].mxu1 %vm559_vm1, %v2188_v8  ;;  %v7482_v8 = vpack.c.bf16 %v11157_v59, %v11156_v52  ;;  %v2129_v52 = vld [vmem:[%s14537_s25 + $0x372] sm:$0xff]  ;;  %v2130_v59 = vld [vmem:[%s14537_s25 + $0x37a] sm:$0xff] }
 0x260   : > { %13140 = vmatmul.mubr.msk.bf16.gmra.mrb[100].mxu0 %vm559_vm1, %v15359_v51  ;;  %12559 = vmatprep.mubr.msk.bf16.mxu1 %vm559_vm1, %v2189_v37  ;;  %v2087_v51 = vld [vmem:[%s14537_s25 + $0x1ca] sm:$0xff]  ;;  %v2203_v37 = vpack.c.bf16 %v2110_v27, %v2109_v50  ;;  %v11178_v50 = vld [vmem:[%s14537_s25 + $0x141] sm:$0xff] }
 0x261   : > { %13143 = vmatprep.mubr.msk.bf16.mxu0 %vm559_vm1, %v15361_v54  ;;  %v2089_v54 = vld [vmem:[%s14537_s25 + $0x1e2] sm:$0xff]  ;;  %v2192_v25 = vpack.c.bf16 %v2088_v58, %v2087_v51  ;;  %v2113_v51 = vld [vmem:[%s14537_s25 + $0x2d2] sm:$0xff] }
 0x262   : > { %v2193_v2 = vpack.c.bf16 %v2090_v22, %v2089_v54  ;;  %v11162_v58 = vld [vmem:[%s14537_s25 + $0xa1] sm:$0xff]  ;;  %v11163_v54 = vld [vmem:[%s14537_s25 + $0xa9] sm:$0xff]  ;;  %v2204_v22 = vpack.c.bf16 %v2112_v56, %v2111_v41  ;;  %v11181_v41 = vld [vmem:[%s14537_s25 + $0x159] sm:$0xff] }
 0x263   : > { %v11179_v27 = vld [vmem:[%s14537_s25 + $0x149] sm:$0xff]  ;;  %v2133_v56 = vld [vmem:[%s14537_s25 + $0x39a] sm:$0xff] }
 0x267   : > { %12560 = vmatmul.mubr.msk.bf16.gmra.mrb[40].mxu1 %vm559_vm1, %v2190_v61  ;;  %v11160_v61 = vld [vmem:[%s14537_s25 + $0x89] sm:$0xff] }
 0x268   : > { %13144 = vmatmul.mubr.msk.bf16.gmra.mrb[104].mxu0 %vm559_vm1, %v15375_v1  ;;  %12563 = vmatprep.mubr.msk.bf16.mxu1 %vm559_vm1, %v2191_v0  ;;  %v2091_v1 = vld [vmem:[%s14537_s25 + $0x1f2] sm:$0xff] }
 0x269   : > { %13147 = vmatprep.mubr.msk.bf16.mxu0 %vm559_vm1, %v15377_v4  ;;  %v2093_v4 = vld [vmem:[%s14537_s25 + $0x20a] sm:$0xff]  ;;  %v2194_v40 = vpack.c.bf16 %v2092_v23, %v2091_v1  ;;  %v7485_v1 = vpack.c.bf16 %v11163_v54, %v11162_v58  ;;  %v2115_v23 = vld [vmem:[%s14537_s25 + $0x2e2] sm:$0xff] }
 0x26a   : > { %v2195_v6 = vpack.c.bf16 %v2094_v5, %v2093_v4  ;;  %v11161_v0 = vld [vmem:[%s14537_s25 + $0x91] sm:$0xff] }
 0x26b   : > { %v2116_v4 = vld [vmem:[%s14537_s25 + $0x2ea] sm:$0xff] }
 0x26c   : > { %v11164_v5 = vld [vmem:[%s14537_s25 + $0xb1] sm:$0xff] }
 0x26f   : > { %12564 = vmatmul.mubr.msk.bf16.gmra.mrb[44].mxu1 %vm559_vm1, %v2192_v25  ;;  %v7484_v25 = vpack.c.bf16 %v11161_v0, %v11160_v61  ;;  %v2134_v61 = vld [vmem:[%s14537_s25 + $0x3a2] sm:$0xff] }
 0x270   : > { %13148 = vmatmul.mubr.msk.bf16.gmra.mrb[108].mxu0 %vm559_vm1, %v15391_v12  ;;  %12567 = vmatprep.mubr.msk.bf16.mxu1 %vm559_vm1, %v2193_v2  ;;  %v2095_v12 = vld [vmem:[%s14537_s25 + $0x21a] sm:$0xff]  ;;  %v2205_v2 = vpack.c.bf16 %v2114_v47, %v2113_v51  ;;  %v11182_v0 = vld [vmem:[%s14537_s25 + $0x169] sm:$0xff]  ;;  %v11183_v51 = vld [vmem:[%s14537_s25 + $0x171] sm:$0xff]  ;;  %v2215_v54 = vpack.c.bf16 %v2134_v61, %v2133_v56 }
 0x271   : > { %13151 = vmatprep.mubr.msk.bf16.mxu0 %vm559_vm1, %v15393_v14  ;;  %v2097_v14 = vld [vmem:[%s14537_s25 + $0x232] sm:$0xff]  ;;  %v2196_v60 = vpack.c.bf16 %v2096_v45, %v2095_v12  ;;  %v2118_v12 = vld [vmem:[%s14537_s25 + $0x302] sm:$0xff] }
 0x272   : > { %v11166_v45 = vld [vmem:[%s14537_s25 + $0xc9] sm:$0xff]  ;;  %v11203_v56 = vld [vmem:[%s14537_s25 + $0x239] sm:$0xff] }
 0x277   : > { %12568 = vmatmul.mubr.msk.bf16.gmra.mrb[48].mxu1 %vm559_vm1, %v2194_v40  ;;  %v11165_v40 = vld [vmem:[%s14537_s25 + $0xb9] sm:$0xff] }
 0x278   : > { %13152 = vmatmul.mubr.msk.bf16.gmra.mrb[112].mxu0 %vm559_vm1, %v15407_v26  ;;  %12571 = vmatprep.mubr.msk.bf16.mxu1 %vm559_vm1, %v2195_v6  ;;  %v2197_v26 = vpack.c.bf16 %v2098_v7, %v2097_v14  ;;  %v2117_v6 = vld [vmem:[%s14537_s25 + $0x2fa] sm:$0xff]  ;;  %v11167_v14 = vld [vmem:[%s14537_s25 + $0xd1] sm:$0xff]  ;;  %v2206_v7 = vpack.c.bf16 %v2116_v4, %v2115_v23  ;;  %v7486_v9 = vpack.c.bf16 %v11165_v40, %v11164_v5  ;;  %v2137_v4 = vld [vmem:[%s14537_s25 + $0x3c2] sm:$0xff] }
 0x279   : > { %13155 = vmatprep.mubr.msk.bf16.mxu0 %vm559_vm1, %v15409_v30  ;;  %v2100_v30 = vld [vmem:[%s14537_s25 + $0x24a] sm:$0xff]  ;;  %v2207_v53 = vpack.c.bf16 %v2118_v12, %v2117_v6  ;;  %v11185_v23 = vld [vmem:[%s14537_s25 + $0x181] sm:$0xff]  ;;  %v11187_v6 = vld [vmem:[%s14537_s25 + $0x199] sm:$0xff] }
 0x27a   : > { %v2138_v5 = vld [vmem:[%s14537_s25 + $0x3ca] sm:$0xff] }
 0x27b   : > { %v11186_v40 = vld [vmem:[%s14537_s25 + $0x191] sm:$0xff] }
 0x27f   : > { %12572 = vmatmul.mubr.msk.bf16.gmra.mrb[52].mxu1 %vm559_vm1, %v2196_v60  ;;  %v7487_v60 = vpack.c.bf16 %v11167_v14, %v11166_v45  ;;  %v2217_v14 = vpack.c.bf16 %v2138_v5, %v2137_v4  ;;  %v11207_v4 = vld [vmem:[%s14537_s25 + $0x261] sm:$0xff] }
 0x280   : > { %13156 = vmatmul.mubr.msk.bf16.gmra.mrb[116].mxu0 %vm559_vm1, %v15423_v42  ;;  %12575 = vmatprep.mubr.msk.bf16.mxu1 %vm559_vm1, %v2197_v26  ;;  %v2198_v42 = vpack.c.bf16 %v2100_v30, %v2099_v63  ;;  %v2119_v26 = vld [vmem:[%s14537_s25 + $0x30a] sm:$0xff]  ;;  %v11168_v63 = vld [vmem:[%s14537_s25 + $0xd9] sm:$0xff]  ;;  %v11169_v30 = vld [vmem:[%s14537_s25 + $0xe1] sm:$0xff] }
 0x281   : > { %13159 = vmatprep.mubr.msk.bf16.mxu0 %vm559_vm1, %v6479_v11  ;;  %v2120_v11 = vld [vmem:[%s14537_s25 + $0x312] sm:$0xff]  ;;  %v7488_v17 = vpack.c.bf16 %v11169_v30, %v11168_v63 }
 0x282   : > { %v2208_v20 = vpack.c.bf16 %v2120_v11, %v2119_v26  ;;  %v11189_v26 = vld [vmem:[%s14537_s25 + $0x1a9] sm:$0xff]  ;;  %v2142_v63 = vld [vmem:[%s14537_s25 + $0x3f2] sm:$0xff] }
 0x283   : > { %v2141_v11 = vld [vmem:[%s14537_s25 + $0x3ea] sm:$0xff]  ;;  %v11190_v30 = vld [vmem:[%s14537_s25 + $0x1b9] sm:$0xff] }
 0x287   : > { %12576 = vmatmul.mubr.msk.bf16.gmra.mrb[56].mxu1 %vm559_vm1, %v2198_v42  ;;  %v2209_v42 = vpack.c.bf16 %v2122_v18, %v2121_v15  ;;  %v11191_v15 = vld [vmem:[%s14537_s25 + $0x1c1] sm:$0xff] }
 0x288   : > { %13160 = vmatmul.mubr.msk.bf16.gmra.mrb[120].mxu0 %vm559_vm1, %v6480_v21  ;;  %12579 = vmatprep.mubr.msk.bf16.mxu1 %vm559_vm1, %v2199_v24  ;;  %v7489_v21 = vpack.c.bf16 %v11171_v13, %v11170_v19  ;;  %v2123_v24 = vld [vmem:[%s14537_s25 + $0x332] sm:$0xff]  ;;  %v2219_v13 = vpack.c.bf16 %v2142_v63, %v2141_v11  ;;  %v11211_v11 = vld [vmem:[%s14537_s25 + $0x289] sm:$0xff] }
 0x289   : > { %13163 = vmatprep.mubr.msk.bf16.mxu0 %vm559_vm1, %v6481_v28  ;;  %v2124_v28 = vld [vmem:[%s14537_s25 + $0x33a] sm:$0xff] }
 0x28a   : > { %v2210_v44 = vpack.c.bf16 %v2124_v28, %v2123_v24  ;;  %v11193_v24 = vld [vmem:[%s14537_s25 + $0x1d1] sm:$0xff] }
 0x28b   : > { %v2145_v28 = vld [vmem:[%s14537_s25 + $0x412] sm:$0xff] }
 0x28f   : > { %12580 = vmatmul.mubr.msk.bf16.gmra.mrb[60].mxu1 %vm559_vm1, %v2200_v46  ;;  %v2211_v46 = vpack.c.bf16 %v2126_v33, %v2125_v34  ;;  %v11195_v34 = vld [vmem:[%s14537_s25 + $0x1e9] sm:$0xff] }
 0x290   : > { %13164 = vmatmul.mubr.msk.bf16.gmra.mrb[124].mxu0 %vm559_vm1, %v6482_v43  ;;  %12583 = vmatprep.mubr.msk.bf16.mxu1 %vm559_vm1, %v2201_v48  ;;  %v7491_v43 = vpack.c.bf16 %v11175_v36, %v11174_v35  ;;  %v2127_v48 = vld [vmem:[%s14537_s25 + $0x35a] sm:$0xff]  ;;  %v2221_v36 = vpack.c.bf16 %v2146_v32, %v2145_v28  ;;  %v11215_v28 = vld [vmem:[%s14537_s25 + $0x2b1] sm:$0xff] }
 0x291   : > { %13169 = vmatprep.mubr.msk.bf16.mxu0 %vm559_vm1, %v7481_v16  ;;  %v2128_v16 = vld [vmem:[%s14537_s25 + $0x362] sm:$0xff] }
 0x292   : > { %v2212_v55 = vpack.c.bf16 %v2128_v16, %v2127_v48  ;;  %v11197_v48 = vld [vmem:[%s14537_s25 + $0x1f9] sm:$0xff] }
 0x293   : > { %v2149_v16 = vld [vmem:[%s14537_s25 + $0x43a] sm:$0xff] }
 0x297   : > { %12584 = vmatmul.mubr.msk.bf16.gmra.mrb[64].mxu1 %vm559_vm1, %v2202_v62  ;;  %v2213_v62 = vpack.c.bf16 %v2130_v59, %v2129_v52  ;;  %v11199_v52 = vld [vmem:[%s14537_s25 + $0x211] sm:$0xff] }
 0x298   : > { %13170 = vmatmul.mubr.msk.bf16.vlgmr.msra.gmra.mrb[0].mxu0 %vm559_vm1, %v7482_v8  ;;  %12587 = vmatprep.mubr.msk.bf16.mxu1 %vm559_vm1, %v2203_v37  ;;  %v7493_v8 = vpack.c.bf16 %v11179_v27, %v11178_v50  ;;  %v2131_v37 = vld [vmem:[%s14537_s25 + $0x382] sm:$0xff]  ;;  %v2223_v27 = vpack.c.bf16 %v2150_v57, %v2149_v16  ;;  %v11219_v16 = vld [vmem:[%s14537_s25 + $0x2d9] sm:$0xff] }
 0x299   : > { %13298 = vmatpush3.bf16.msra.mxu0 %v8802_v10  ;;  %13173 = vmatprep.mubr.msk.bf16.mxu0 %vm559_vm1, %v7483_v39  ;;  %v2132_v39 = vld [vmem:[%s14537_s25 + $0x38a] sm:$0xff] }
 0x29a   : > { %v11180_v10 = vld [vmem:[%s14537_s25 + $0x151] sm:$0xff]  ;;  %v2214_v47 = vpack.c.bf16 %v2132_v39, %v2131_v37  ;;  %v11201_v37 = vld [vmem:[%s14537_s25 + $0x221] sm:$0xff] }
 0x29b   : > { %v7494_v58 = vpack.c.bf16 %v11181_v41, %v11180_v10  ;;  %v2153_v39 = vld [vmem:[%s14537_s25 + $0x462] sm:$0xff]  ;;  %v2154_v10 = vld [vmem:[%s14537_s25 + $0x46a] sm:$0xff] }
 0x29c   : > { %v11202_v41 = vld [vmem:[%s14537_s25 + $0x231] sm:$0xff] }
 0x29f   : > { %12588 = vmatmul.mubr.msk.bf16.gmra.mrb[68].mxu1 %vm559_vm1, %v2204_v22  ;;  %v7495_v22 = vpack.c.bf16 %v11183_v51, %v11182_v0  ;;  %v2225_v51 = vpack.c.bf16 %v2154_v10, %v2153_v39  ;;  %v11223_v39 = vld [vmem:[%s14537_s25 + $0x301] sm:$0xff] }
 0x2a0   : > { %13174 = vmatmul.mubr.msk.bf16.gmra.mrb[4].mxu0 %vm559_vm1, %v7484_v25  ;;  %12591 = vmatprep.mubr.msk.bf16.mxu1 %vm559_vm1, %v2205_v2  ;;  %v2135_v25 = vld [vmem:[%s14537_s25 + $0x3aa] sm:$0xff]  ;;  %v2136_v2 = vld [vmem:[%s14537_s25 + $0x3b2] sm:$0xff] }
 0x2a1   : > { %13177 = vmatprep.mubr.msk.bf16.mxu0 %vm559_vm1, %v7485_v1  ;;  %v11184_v1 = vld [vmem:[%s14537_s25 + $0x179] sm:$0xff]  ;;  %v2216_v12 = vpack.c.bf16 %v2136_v2, %v2135_v25  ;;  %v11205_v25 = vld [vmem:[%s14537_s25 + $0x249] sm:$0xff] }
 0x2a2   : > { %v7496_v45 = vpack.c.bf16 %v11185_v23, %v11184_v1  ;;  %v2157_v2 = vld [vmem:[%s14537_s25 + $0x48a] sm:$0xff]  ;;  %v2158_v1 = vld [vmem:[%s14537_s25 + $0x492] sm:$0xff] }
 0x2a3   : > { %v11206_v23 = vld [vmem:[%s14537_s25 + $0x259] sm:$0xff] }
 0x2a7   : > { %12592 = vmatmul.mubr.msk.bf16.gmra.mrb[72].mxu1 %vm559_vm1, %v2206_v7  ;;  %v7497_v7 = vpack.c.bf16 %v11187_v6, %v11186_v40  ;;  %v2227_v6 = vpack.c.bf16 %v2158_v1, %v2157_v2 }
 0x2a8   : > { %13178 = vmatmul.mubr.msk.bf16.gmra.mrb[8].mxu0 %vm559_vm1, %v7486_v9  ;;  %12595 = vmatprep.mubr.msk.bf16.mxu1 %vm559_vm1, %v2207_v53  ;;  %v2139_v9 = vld [vmem:[%s14537_s25 + $0x3d2] sm:$0xff]  ;;  %v2140_v53 = vld [vmem:[%s14537_s25 + $0x3da] sm:$0xff] }
 0x2a9   : > { %13181 = vmatprep.mubr.msk.bf16.mxu0 %vm559_vm1, %v7487_v60  ;;  %v11188_v60 = vld [vmem:[%s14537_s25 + $0x1a1] sm:$0xff]  ;;  %v2218_v18 = vpack.c.bf16 %v2140_v53, %v2139_v9  ;;  %v11209_v9 = vld [vmem:[%s14537_s25 + $0x271] sm:$0xff] }
 0x2aa   : > { %v7498_v19 = vpack.c.bf16 %v11189_v26, %v11188_v60  ;;  %v2161_v53 = vld [vmem:[%s14537_s25 + $0x4b2] sm:$0xff]  ;;  %v2162_v60 = vld [vmem:[%s14537_s25 + $0x4ba] sm:$0xff] }
 0x2ab   : > { %v11210_v26 = vld [vmem:[%s14537_s25 + $0x281] sm:$0xff] }
 0x2af   : > { %12596 = vmatmul.mubr.msk.bf16.gmra.mrb[76].mxu1 %vm559_vm1, %v2208_v20  ;;  %v7499_v20 = vpack.c.bf16 %v11191_v15, %v11190_v30  ;;  %v2229_v15 = vpack.c.bf16 %v2162_v60, %v2161_v53 }
 0x2b0   : > { %13182 = vmatmul.mubr.msk.bf16.gmra.mrb[12].mxu0 %vm559_vm1, %v7488_v17  ;;  %12599 = vmatprep.mubr.msk.bf16.mxu1 %vm559_vm1, %v2209_v42  ;;  %v2143_v17 = vld [vmem:[%s14537_s25 + $0x3fa] sm:$0xff]  ;;  %v2144_v42 = vld [vmem:[%s14537_s25 + $0x402] sm:$0xff] }
 0x2b1   : > { %13185 = vmatprep.mubr.msk.bf16.mxu0 %vm559_vm1, %v7489_v21  ;;  %v11192_v21 = vld [vmem:[%s14537_s25 + $0x1c9] sm:$0xff]  ;;  %v2220_v33 = vpack.c.bf16 %v2144_v42, %v2143_v17  ;;  %v11213_v17 = vld [vmem:[%s14537_s25 + $0x299] sm:$0xff] }
 0x2b2   : > { %v7500_v35 = vpack.c.bf16 %v11193_v24, %v11192_v21  ;;  %v2165_v42 = vld [vmem:[%s14537_s25 + $0x4da] sm:$0xff]  ;;  %v2166_v21 = vld [vmem:[%s14537_s25 + $0x4e2] sm:$0xff] }
 0x2b3   : > { %v11214_v24 = vld [vmem:[%s14537_s25 + $0x2a9] sm:$0xff] }
 0x2b7   : > { %12600 = vmatmul.mubr.msk.bf16.gmra.mrb[80].mxu1 %vm559_vm1, %v2210_v44  ;;  %v7501_v44 = vpack.c.bf16 %v11195_v34, %v11194_v31  ;;  %v2231_v34 = vpack.c.bf16 %v2166_v21, %v2165_v42 }
 0x2b8   : > { %13186 = vmatmul.mubr.msk.bf16.gmra.mrb[16].mxu0 %vm559_vm1, %v7490_v38  ;;  %12603 = vmatprep.mubr.msk.bf16.mxu1 %vm559_vm1, %v2211_v46  ;;  %v2147_v38 = vld [vmem:[%s14537_s25 + $0x422] sm:$0xff]  ;;  %v2148_v46 = vld [vmem:[%s14537_s25 + $0x42a] sm:$0xff] }
 0x2b9   : > { %13189 = vmatprep.mubr.msk.bf16.mxu0 %vm559_vm1, %v7491_v43  ;;  %v11196_v43 = vld [vmem:[%s14537_s25 + $0x1f1] sm:$0xff]  ;;  %v2222_v59 = vpack.c.bf16 %v2148_v46, %v2147_v38  ;;  %v11217_v38 = vld [vmem:[%s14537_s25 + $0x2c1] sm:$0xff] }
 0x2ba   : > { %v7502_v50 = vpack.c.bf16 %v11197_v48, %v11196_v43  ;;  %v10382_v46 = vld [vmem:[%s14537_s25 + $0x28] sm:$0xff]  ;;  %v10383_v43 = vld [vmem:[%s14537_s25 + $0x30] sm:$0xff] }
 0x2bb   : > { %v11218_v48 = vld [vmem:[%s14537_s25 + $0x2d1] sm:$0xff] }
 0x2bf   : > { %12604 = vmatmul.mubr.msk.bf16.gmra.mrb[84].mxu1 %vm559_vm1, %v2212_v55  ;;  %v7503_v55 = vpack.c.bf16 %v11199_v52, %v11198_v49  ;;  %v3232_v52 = vpack.c.bf16 %v10383_v43, %v10382_v46 }
 0x2c0   : > { %13190 = vmatmul.mubr.msk.bf16.gmra.mrb[20].mxu0 %vm559_vm1, %v7492_v29  ;;  %12607 = vmatprep.mubr.msk.bf16.mxu1 %vm559_vm1, %v2213_v62  ;;  %v2151_v29 = vld [vmem:[%s14537_s25 + $0x44a] sm:$0xff]  ;;  %v2152_v62 = vld [vmem:[%s14537_s25 + $0x452] sm:$0xff] }
 0x2c1   : > { %13193 = vmatprep.mubr.msk.bf16.mxu0 %vm559_vm1, %v7493_v8  ;;  %v11200_v8 = vld [vmem:[%s14537_s25 + $0x219] sm:$0xff]  ;;  %v2224_v61 = vpack.c.bf16 %v2152_v62, %v2151_v29  ;;  %v11221_v29 = vld [vmem:[%s14537_s25 + $0x2e9] sm:$0xff] }
 0x2c2   : > { %v7504_v0 = vpack.c.bf16 %v11201_v37, %v11200_v8  ;;  %v10386_v62 = vld [vmem:[%s14537_s25 + $0x50] sm:$0xff]  ;;  %v10387_v8 = vld [vmem:[%s14537_s25 + $0x58] sm:$0xff] }
 0x2c3   : > { %v11222_v37 = vld [vmem:[%s14537_s25 + $0x2f9] sm:$0xff] }
 0x2c7   : > { %12608 = vmatmul.mubr.msk.bf16.gmra.mrb[88].mxu1 %vm559_vm1, %v2214_v47  ;;  %v7505_v47 = vpack.c.bf16 %v11203_v56, %v11202_v41  ;;  %v3234_v56 = vpack.c.bf16 %v10387_v8, %v10386_v62 }
 0x2c8   : > { %13194 = vmatmul.mubr.msk.bf16.gmra.mrb[24].mxu0 %vm559_vm1, %v7494_v58  ;;  %12611 = vmatprep.mubr.msk.bf16.mxu1 %vm559_vm1, %v2215_v54  ;;  %v2155_v58 = vld [vmem:[%s14537_s25 + $0x472] sm:$0xff]  ;;  %v2156_v54 = vld [vmem:[%s14537_s25 + $0x47a] sm:$0xff] }
 0x2c9   : > { %13197 = vmatprep.mubr.msk.bf16.mxu0 %vm559_vm1, %v7495_v22  ;;  %v11204_v22 = vld [vmem:[%s14537_s25 + $0x241] sm:$0xff]  ;;  %v2226_v5 = vpack.c.bf16 %v2156_v54, %v2155_v58  ;;  %v11225_v58 = vld [vmem:[%s14537_s25 + $0x311] sm:$0xff] }
 0x2ca   : > { %v7506_v40 = vpack.c.bf16 %v11205_v25, %v11204_v22  ;;  %v10390_v54 = vld [vmem:[%s14537_s25 + $0x78] sm:$0xff]  ;;  %v10391_v22 = vld [vmem:[%s14537_s25 + $0x80] sm:$0xff] }
 0x2cb   : > { %v11226_v25 = vld [vmem:[%s14537_s25 + $0x321] sm:$0xff] }
 0x2cf   : > { %12612 = vmatmul.mubr.msk.bf16.gmra.mrb[92].mxu1 %vm559_vm1, %v2216_v12  ;;  %v7507_v12 = vpack.c.bf16 %v11207_v4, %v11206_v23  ;;  %v3236_v23 = vpack.c.bf16 %v10391_v22, %v10390_v54 }
 0x2d0   : > { %13198 = vmatmul.mubr.msk.bf16.gmra.mrb[28].mxu0 %vm559_vm1, %v7496_v45  ;;  %12615 = vmatprep.mubr.msk.bf16.mxu1 %vm559_vm1, %v2217_v14  ;;  %v2159_v45 = vld [vmem:[%s14537_s25 + $0x49a] sm:$0xff]  ;;  %v2160_v14 = vld [vmem:[%s14537_s25 + $0x4a2] sm:$0xff] }
 0x2d1   : > { %13201 = vmatprep.mubr.msk.bf16.mxu0 %vm559_vm1, %v7497_v7  ;;  %v11208_v7 = vld [vmem:[%s14537_s25 + $0x269] sm:$0xff]  ;;  %v2228_v63 = vpack.c.bf16 %v2160_v14, %v2159_v45  ;;  %v10394_v45 = vld [vmem:[%s14537_s25 + $0xa0] sm:$0xff] }
 0x2d2   : > { %v7508_v30 = vpack.c.bf16 %v11209_v9, %v11208_v7  ;;  %v10395_v14 = vld [vmem:[%s14537_s25 + $0xa8] sm:$0xff]  ;;  %v11231_v9 = vld [vmem:[%s14537_s25 + $0x351] sm:$0xff] }
 0x2d3   : > { %v11230_v7 = vld [vmem:[%s14537_s25 + $0x349] sm:$0xff] }
 0x2d7   : > { %12616 = vmatmul.mubr.msk.bf16.gmra.mrb[96].mxu1 %vm559_vm1, %v2218_v18  ;;  %v7509_v18 = vpack.c.bf16 %v11211_v11, %v11210_v26  ;;  %v3238_v26 = vpack.c.bf16 %v10395_v14, %v10394_v45  ;;  %v7519_v11 = vpack.c.bf16 %v11231_v9, %v11230_v7 }
 0x2d8   : > { %13202 = vmatmul.mubr.msk.bf16.gmra.mrb[32].mxu0 %vm559_vm1, %v7498_v19  ;;  %12619 = vmatprep.mubr.msk.bf16.mxu1 %vm559_vm1, %v2219_v13  ;;  %v2163_v19 = vld [vmem:[%s14537_s25 + $0x4c2] sm:$0xff]  ;;  %v2164_v13 = vld [vmem:[%s14537_s25 + $0x4ca] sm:$0xff] }
 0x2d9   : > { %13205 = vmatprep.mubr.msk.bf16.mxu0 %vm559_vm1, %v7499_v20  ;;  %v11212_v20 = vld [vmem:[%s14537_s25 + $0x291] sm:$0xff]  ;;  %v2230_v32 = vpack.c.bf16 %v2164_v13, %v2163_v19  ;;  %v10398_v19 = vld [vmem:[%s14537_s25 + $0xc8] sm:$0xff] }
 0x2da   : > { %v7510_v31 = vpack.c.bf16 %v11213_v17, %v11212_v20  ;;  %v10399_v13 = vld [vmem:[%s14537_s25 + $0xd0] sm:$0xff]  ;;  %v11235_v17 = vld [vmem:[%s14537_s25 + $0x379] sm:$0xff] }
 0x2db   : > { %v11234_v20 = vld [vmem:[%s14537_s25 + $0x371] sm:$0xff] }
 0x2df   : > { %12620 = vmatmul.mubr.msk.bf16.gmra.mrb[100].mxu1 %vm559_vm1, %v2220_v33  ;;  %v7511_v33 = vpack.c.bf16 %v11215_v28, %v11214_v24  ;;  %v3240_v24 = vpack.c.bf16 %v10399_v13, %v10398_v19  ;;  %v7521_v28 = vpack.c.bf16 %v11235_v17, %v11234_v20 }
 0x2e0   : > { %13206 = vmatmul.mubr.msk.bf16.gmra.mrb[36].mxu0 %vm559_vm1, %v7500_v35  ;;  %12623 = vmatprep.mubr.msk.bf16.mxu1 %vm559_vm1, %v2221_v36  ;;  %v2167_v35 = vld [vmem:[%s14537_s25 + $0x4ea] sm:$0xff]  ;;  %v2168_v36 = vld [vmem:[%s14537_s25 + $0x4f2] sm:$0xff] }
 0x2e1   : > { %13209 = vmatprep.mubr.msk.bf16.mxu0 %vm559_vm1, %v7501_v44  ;;  %v11216_v44 = vld [vmem:[%s14537_s25 + $0x2b9] sm:$0xff]  ;;  %v2232_v57 = vpack.c.bf16 %v2168_v36, %v2167_v35  ;;  %v10402_v35 = vld [vmem:[%s14537_s25 + $0xf0] sm:$0xff] }
 0x2e2   : > { %v7512_v49 = vpack.c.bf16 %v11217_v38, %v11216_v44  ;;  %v10403_v36 = vld [vmem:[%s14537_s25 + $0xf8] sm:$0xff]  ;;  %v11239_v38 = vld [vmem:[%s14537_s25 + $0x3a1] sm:$0xff] }
 0x2e3   : > { %v11238_v44 = vld [vmem:[%s14537_s25 + $0x399] sm:$0xff] }
 0x2e7   : > { %12624 = vmatmul.mubr.msk.bf16.gmra.mrb[104].mxu1 %vm559_vm1, %v2222_v59  ;;  %v7513_v59 = vpack.c.bf16 %v11219_v16, %v11218_v48  ;;  %v3242_v48 = vpack.c.bf16 %v10403_v36, %v10402_v35  ;;  %v7523_v16 = vpack.c.bf16 %v11239_v38, %v11238_v44 }
 0x2e8   : > { %13210 = vmatmul.mubr.msk.bf16.gmra.mrb[40].mxu0 %vm559_vm1, %v7502_v50  ;;  %12627 = vmatprep.mubr.msk.bf16.mxu1 %vm559_vm1, %v2223_v27  ;;  %v10384_v50 = vld [vmem:[%s14537_s25 + $0x38] sm:$0xff]  ;;  %v10385_v27 = vld [vmem:[%s14537_s25 + $0x40] sm:$0xff] }
 0x2e9   : > { %13213 = vmatprep.mubr.msk.bf16.mxu0 %vm559_vm1, %v7503_v55  ;;  %v11220_v55 = vld [vmem:[%s14537_s25 + $0x2e1] sm:$0xff]  ;;  %v3233_v10 = vpack.c.bf16 %v10385_v27, %v10384_v50  ;;  %v10406_v50 = vld [vmem:[%s14537_s25 + $0x118] sm:$0xff] }
 0x2ea   : > { %v7514_v41 = vpack.c.bf16 %v11221_v29, %v11220_v55  ;;  %v10407_v27 = vld [vmem:[%s14537_s25 + $0x120] sm:$0xff]  ;;  %v11243_v29 = vld [vmem:[%s14537_s25 + $0x3c9] sm:$0xff] }
 0x2eb   : > { %v11242_v55 = vld [vmem:[%s14537_s25 + $0x3c1] sm:$0xff] }
 0x2ef   : > { %12628 = vmatmul.mubr.msk.bf16.gmra.mrb[108].mxu1 %vm559_vm1, %v2224_v61  ;;  %v7515_v61 = vpack.c.bf16 %v11223_v39, %v11222_v37  ;;  %v3244_v37 = vpack.c.bf16 %v10407_v27, %v10406_v50  ;;  %v7525_v39 = vpack.c.bf16 %v11243_v29, %v11242_v55 }
 0x2f0   : > { %13214 = vmatmul.mubr.msk.bf16.gmra.mrb[44].mxu0 %vm559_vm1, %v7504_v0  ;;  %12631 = vmatprep.mubr.msk.bf16.mxu1 %vm559_vm1, %v2225_v51  ;;  %v10388_v0 = vld [vmem:[%s14537_s25 + $0x60] sm:$0xff]  ;;  %v10389_v51 = vld [vmem:[%s14537_s25 + $0x68] sm:$0xff] }
 0x2f1   : > { %13217 = vmatprep.mubr.msk.bf16.mxu0 %vm559_vm1, %v7505_v47  ;;  %v11224_v47 = vld [vmem:[%s14537_s25 + $0x309] sm:$0xff]  ;;  %v3235_v2 = vpack.c.bf16 %v10389_v51, %v10388_v0  ;;  %v10410_v0 = vld [vmem:[%s14537_s25 + $0x140] sm:$0xff] }
 0x2f2   : > { %v7516_v1 = vpack.c.bf16 %v11225_v58, %v11224_v47  ;;  %v10411_v51 = vld [vmem:[%s14537_s25 + $0x148] sm:$0xff]  ;;  %v11247_v58 = vld [vmem:[%s14537_s25 + $0x3f1] sm:$0xff] }
 0x2f3   : > { %v11246_v47 = vld [vmem:[%s14537_s25 + $0x3e9] sm:$0xff] }
 0x2f7   : > { %12632 = vmatmul.mubr.msk.bf16.gmra.mrb[112].mxu1 %vm559_vm1, %v2226_v5  ;;  %v10392_v5 = vld [vmem:[%s14537_s25 + $0x88] sm:$0xff] }
 0x2f8   : > { %13218 = vmatmul.mubr.msk.bf16.gmra.mrb[48].mxu0 %vm559_vm1, %v7506_v40  ;;  %12635 = vmatprep.mubr.msk.bf16.mxu1 %vm559_vm1, %v2227_v6  ;;  %v10393_v40 = vld [vmem:[%s14537_s25 + $0x90] sm:$0xff] }
 0x2f9   : > { %13221 = vmatprep.mubr.msk.bf16.mxu0 %vm559_vm1, %v7507_v12  ;;  %v11228_v6 = vld [vmem:[%s14537_s25 + $0x331] sm:$0xff]  ;;  %v11229_v12 = vld [vmem:[%s14537_s25 + $0x339] sm:$0xff]  ;;  %v3237_v53 = vpack.c.bf16 %v10393_v40, %v10392_v5  ;;  %v10414_v5 = vld [vmem:[%s14537_s25 + $0x168] sm:$0xff] }
 0x2fa   : > { %v7518_v60 = vpack.c.bf16 %v11229_v12, %v11228_v6  ;;  %v10415_v40 = vld [vmem:[%s14537_s25 + $0x170] sm:$0xff]  ;;  %v11251_v12 = vld [vmem:[%s14537_s25 + $0x419] sm:$0xff] }
 0x2fb   : > { %v11250_v6 = vld [vmem:[%s14537_s25 + $0x411] sm:$0xff]  ;;  %v3248_v7 = vpack.c.bf16 %v10415_v40, %v10414_v5 }
 0x2fc   : > { %v7529_v9 = vpack.c.bf16 %v11251_v12, %v11250_v6 }
 0x2ff   : > { %12636 = vmatmul.mubr.msk.bf16.gmra.mrb[116].mxu1 %vm559_vm1, %v2228_v63  ;;  %v10396_v63 = vld [vmem:[%s14537_s25 + $0xb0] sm:$0xff] }
 0x300   : > { %13222 = vmatmul.mubr.msk.bf16.gmra.mrb[52].mxu0 %vm559_vm1, %v7508_v30  ;;  %12639 = vmatprep.mubr.msk.bf16.mxu1 %vm559_vm1, %v2229_v15  ;;  %v10397_v30 = vld [vmem:[%s14537_s25 + $0xb8] sm:$0xff] }
 0x301   : > { %13225 = vmatprep.mubr.msk.bf16.mxu0 %vm559_vm1, %v7509_v18  ;;  %v11232_v15 = vld [vmem:[%s14537_s25 + $0x359] sm:$0xff]  ;;  %v11233_v18 = vld [vmem:[%s14537_s25 + $0x361] sm:$0xff]  ;;  %v3239_v42 = vpack.c.bf16 %v10397_v30, %v10396_v63  ;;  %v10418_v63 = vld [vmem:[%s14537_s25 + $0x190] sm:$0xff] }
 0x302   : > { %v7520_v21 = vpack.c.bf16 %v11233_v18, %v11232_v15  ;;  %v10419_v30 = vld [vmem:[%s14537_s25 + $0x198] sm:$0xff]  ;;  %v11255_v18 = vld [vmem:[%s14537_s25 + $0x441] sm:$0xff] }
 0x303   : > { %v11254_v15 = vld [vmem:[%s14537_s25 + $0x439] sm:$0xff]  ;;  %v3250_v20 = vpack.c.bf16 %v10419_v30, %v10418_v63 }
 0x304   : > { %v7531_v17 = vpack.c.bf16 %v11255_v18, %v11254_v15 }
 0x307   : > { %12640 = vmatmul.mubr.msk.bf16.gmra.mrb[120].mxu1 %vm559_vm1, %v2230_v32  ;;  %v10400_v32 = vld [vmem:[%s14537_s25 + $0xd8] sm:$0xff] }
 0x308   : > { %13226 = vmatmul.mubr.msk.bf16.gmra.mrb[56].mxu0 %vm559_vm1, %v7510_v31  ;;  %12643 = vmatprep.mubr.msk.bf16.mxu1 %vm559_vm1, %v2231_v34  ;;  %v10401_v31 = vld [vmem:[%s14537_s25 + $0xe0] sm:$0xff] }
 0x309   : > { %13229 = vmatprep.mubr.msk.bf16.mxu0 %vm559_vm1, %v7511_v33  ;;  %v11236_v34 = vld [vmem:[%s14537_s25 + $0x381] sm:$0xff]  ;;  %v11237_v33 = vld [vmem:[%s14537_s25 + $0x389] sm:$0xff]  ;;  %v3241_v46 = vpack.c.bf16 %v10401_v31, %v10400_v32  ;;  %v10422_v32 = vld [vmem:[%s14537_s25 + $0x1b8] sm:$0xff] }
 0x30a   : > { %v7522_v43 = vpack.c.bf16 %v11237_v33, %v11236_v34  ;;  %v10423_v31 = vld [vmem:[%s14537_s25 + $0x1c0] sm:$0xff]  ;;  %v11259_v33 = vld [vmem:[%s14537_s25 + $0x469] sm:$0xff] }
 0x30b   : > { %v11258_v34 = vld [vmem:[%s14537_s25 + $0x461] sm:$0xff]  ;;  %v3252_v44 = vpack.c.bf16 %v10423_v31, %v10422_v32 }
 0x30c   : > { %v7533_v38 = vpack.c.bf16 %v11259_v33, %v11258_v34 }
 0x30f   : > { %12644 = vmatmul.mubr.msk.bf16.gmra.mrb[124].mxu1 %vm559_vm1, %v2232_v57  ;;  %v10404_v57 = vld [vmem:[%s14537_s25 + $0x100] sm:$0xff] }
 0x310   : > { %13230 = vmatmul.mubr.msk.bf16.gmra.mrb[60].mxu0 %vm559_vm1, %v7512_v49  ;;  %12649 = vmatprep.mubr.msk.bf16.mxu1 %vm559_vm1, %v3232_v52  ;;  %v10405_v49 = vld [vmem:[%s14537_s25 + $0x108] sm:$0xff] }
 0x311   : > { %13233 = vmatprep.mubr.msk.bf16.mxu0 %vm559_vm1, %v7513_v59  ;;  %v11240_v52 = vld [vmem:[%s14537_s25 + $0x3a9] sm:$0xff]  ;;  %v11241_v59 = vld [vmem:[%s14537_s25 + $0x3b1] sm:$0xff]  ;;  %v3243_v62 = vpack.c.bf16 %v10405_v49, %v10404_v57  ;;  %v10426_v57 = vld [vmem:[%s14537_s25 + $0x1e0] sm:$0xff] }
 0x312   : > { %v7524_v8 = vpack.c.bf16 %v11241_v59, %v11240_v52  ;;  %v10427_v49 = vld [vmem:[%s14537_s25 + $0x1e8] sm:$0xff]  ;;  %v11263_v59 = vld [vmem:[%s14537_s25 + $0x491] sm:$0xff] }
 0x313   : > { %v11262_v52 = vld [vmem:[%s14537_s25 + $0x489] sm:$0xff]  ;;  %v3254_v55 = vpack.c.bf16 %v10427_v49, %v10426_v57 }
 0x314   : > { %v7535_v29 = vpack.c.bf16 %v11263_v59, %v11262_v52 }
 0x317   : > { %12650 = vmatmul.mubr.msk.bf16.vlgmr.msra.gmra.mrb[0].mxu1 %vm559_vm1, %v3233_v10  ;;  %v10408_v10 = vld [vmem:[%s14537_s25 + $0x128] sm:$0xff] }
 0x318   : > { %13428 = vmatpush3.bf16.msra.mxu1 %v14520_v3  ;;  %13234 = vmatmul.mubr.msk.bf16.gmra.mrb[64].mxu0 %vm559_vm1, %v7514_v41  ;;  %v11227_v3 = vld [vmem:[%s14537_s25 + $0x329] sm:$0xff] }
 0x319   : > { %12653 = vmatprep.mubr.msk.bf16.mxu1 %vm559_vm1, %v3234_v56  ;;  %13237 = vmatprep.mubr.msk.bf16.mxu0 %vm559_vm1, %v7515_v61  ;;  %v7517_v4 = vpack.c.bf16 %v11227_v3, %v11226_v25  ;;  %v10409_v41 = vld [vmem:[%s14537_s25 + $0x130] sm:$0xff]  ;;  %v11245_v61 = vld [vmem:[%s14537_s25 + $0x3d9] sm:$0xff]  ;;  %v3246_v25 = vpack.c.bf16 %v10411_v51, %v10410_v0  ;;  %v7527_v3 = vpack.c.bf16 %v11247_v58, %v11246_v47 }
 0x31a   : > { %v11244_v56 = vld [vmem:[%s14537_s25 + $0x3d1] sm:$0xff]  ;;  %v3245_v54 = vpack.c.bf16 %v10409_v41, %v10408_v10  ;;  %v10430_v10 = vld [vmem:[%s14537_s25 + $0x208] sm:$0xff] }
 0x31b   : > { %v7526_v22 = vpack.c.bf16 %v11245_v61, %v11244_v56  ;;  %v10431_v41 = vld [vmem:[%s14537_s25 + $0x210] sm:$0xff]  ;;  %v11267_v61 = vld [vmem:[%s14537_s25 + $0x4b9] sm:$0xff] }
 0x31c   : > { %v11266_v56 = vld [vmem:[%s14537_s25 + $0x4b1] sm:$0xff]  ;;  %v3256_v47 = vpack.c.bf16 %v10431_v41, %v10430_v10 }
 0x31d   : > { %v7537_v58 = vpack.c.bf16 %v11267_v61, %v11266_v56 }
 0x31f   : > { %12654 = vmatmul.mubr.msk.bf16.gmra.mrb[4].mxu1 %vm559_vm1, %v3235_v2  ;;  %v10412_v2 = vld [vmem:[%s14537_s25 + $0x150] sm:$0xff] }
 0x320   : > { %13238 = vmatmul.mubr.msk.bf16.gmra.mrb[68].mxu0 %vm559_vm1, %v7516_v1  ;;  %12657 = vmatprep.mubr.msk.bf16.mxu1 %vm559_vm1, %v3236_v23  ;;  %v10413_v1 = vld [vmem:[%s14537_s25 + $0x158] sm:$0xff] }
 0x321   : > { %13241 = vmatprep.mubr.msk.bf16.mxu0 %vm559_vm1, %v7517_v4  ;;  %v11248_v23 = vld [vmem:[%s14537_s25 + $0x3f9] sm:$0xff]  ;;  %v11249_v4 = vld [vmem:[%s14537_s25 + $0x401] sm:$0xff]  ;;  %v3247_v45 = vpack.c.bf16 %v10413_v1, %v10412_v2  ;;  %v10434_v2 = vld [vmem:[%s14537_s25 + $0x230] sm:$0xff] }
 0x322   : > { %v7528_v14 = vpack.c.bf16 %v11249_v4, %v11248_v23  ;;  %v10435_v1 = vld [vmem:[%s14537_s25 + $0x238] sm:$0xff]  ;;  %v11271_v4 = vld [vmem:[%s14537_s25 + $0x4e1] sm:$0xff] }
 0x323   : > { %v11270_v23 = vld [vmem:[%s14537_s25 + $0x4d9] sm:$0xff]  ;;  %v3258_v6 = vpack.c.bf16 %v10435_v1, %v10434_v2 }
 0x324   : > { %v7539_v12 = vpack.c.bf16 %v11271_v4, %v11270_v23 }
 0x327   : > { %12658 = vmatmul.mubr.msk.bf16.gmra.mrb[8].mxu1 %vm559_vm1, %v3237_v53  ;;  %v10416_v53 = vld [vmem:[%s14537_s25 + $0x178] sm:$0xff] }
 0x328   : > { %13242 = vmatmul.mubr.msk.bf16.gmra.mrb[72].mxu0 %vm559_vm1, %v7518_v60  ;;  %12661 = vmatprep.mubr.msk.bf16.mxu1 %vm559_vm1, %v3238_v26  ;;  %v10417_v60 = vld [vmem:[%s14537_s25 + $0x180] sm:$0xff] }
 0x329   : > { %13245 = vmatprep.mubr.msk.bf16.mxu0 %vm559_vm1, %v7519_v11  ;;  %v11252_v26 = vld [vmem:[%s14537_s25 + $0x421] sm:$0xff]  ;;  %v11253_v11 = vld [vmem:[%s14537_s25 + $0x429] sm:$0xff]  ;;  %v3249_v19 = vpack.c.bf16 %v10417_v60, %v10416_v53  ;;  %v10438_v53 = vld [vmem:[%s14537_s25 + $0x258] sm:$0xff] }
 0x32a   : > { %v7530_v13 = vpack.c.bf16 %v11253_v11, %v11252_v26  ;;  %v10439_v60 = vld [vmem:[%s14537_s25 + $0x260] sm:$0xff]  ;;  %v11275_v11 = vld [vmem:[%s14537_s25 + $0x509] sm:$0xff] }
 0x32b   : > { %v11274_v26 = vld [vmem:[%s14537_s25 + $0x501] sm:$0xff]  ;;  %v3260_v15 = vpack.c.bf16 %v10439_v60, %v10438_v53 }
 0x32c   : > { %v7541_v18 = vpack.c.bf16 %v11275_v11, %v11274_v26 }
 0x32f   : > { %12662 = vmatmul.mubr.msk.bf16.gmra.mrb[12].mxu1 %vm559_vm1, %v3239_v42  ;;  %v10420_v42 = vld [vmem:[%s14537_s25 + $0x1a0] sm:$0xff] }
 0x330   : > { %13246 = vmatmul.mubr.msk.bf16.gmra.mrb[76].mxu0 %vm559_vm1, %v7520_v21  ;;  %12665 = vmatprep.mubr.msk.bf16.mxu1 %vm559_vm1, %v3240_v24  ;;  %v10421_v21 = vld [vmem:[%s14537_s25 + $0x1a8] sm:$0xff] }
 0x331   : > { %13249 = vmatprep.mubr.msk.bf16.mxu0 %vm559_vm1, %v7521_v28  ;;  %v11256_v24 = vld [vmem:[%s14537_s25 + $0x449] sm:$0xff]  ;;  %v11257_v28 = vld [vmem:[%s14537_s25 + $0x451] sm:$0xff]  ;;  %v3251_v35 = vpack.c.bf16 %v10421_v21, %v10420_v42  ;;  %v10442_v42 = vld [vmem:[%s14537_s25 + $0x280] sm:$0xff] }
 0x332   : > { %v7532_v36 = vpack.c.bf16 %v11257_v28, %v11256_v24  ;;  %v10443_v21 = vld [vmem:[%s14537_s25 + $0x288] sm:$0xff]  ;;  %v11279_v28 = vld [vmem:[%s14537_s25 + $0x531] sm:$0xff] }
 0x333   : > { %v11278_v24 = vld [vmem:[%s14537_s25 + $0x529] sm:$0xff]  ;;  %v3262_v34 = vpack.c.bf16 %v10443_v21, %v10442_v42 }
 0x334   : > { %v7543_v33 = vpack.c.bf16 %v11279_v28, %v11278_v24 }
 0x337   : > { %12666 = vmatmul.mubr.msk.bf16.gmra.mrb[16].mxu1 %vm559_vm1, %v3241_v46  ;;  %v10424_v46 = vld [vmem:[%s14537_s25 + $0x1c8] sm:$0xff] }
 0x338   : > { %13250 = vmatmul.mubr.msk.bf16.gmra.mrb[80].mxu0 %vm559_vm1, %v7522_v43  ;;  %12669 = vmatprep.mubr.msk.bf16.mxu1 %vm559_vm1, %v3242_v48  ;;  %v10425_v43 = vld [vmem:[%s14537_s25 + $0x1d0] sm:$0xff] }
 0x339   : > { %13253 = vmatprep.mubr.msk.bf16.mxu0 %vm559_vm1, %v7523_v16  ;;  %v11260_v48 = vld [vmem:[%s14537_s25 + $0x471] sm:$0xff]  ;;  %v11261_v16 = vld [vmem:[%s14537_s25 + $0x479] sm:$0xff]  ;;  %v3253_v50 = vpack.c.bf16 %v10425_v43, %v10424_v46  ;;  %v10446_v46 = vld [vmem:[%s14537_s25 + $0x2a8] sm:$0xff] }
 0x33a   : > { %v7534_v27 = vpack.c.bf16 %v11261_v16, %v11260_v48  ;;  %v10447_v43 = vld [vmem:[%s14537_s25 + $0x2b0] sm:$0xff]  ;;  %v11348_v16 = vld [vmem:[%s14537_s25 + $0x5a] sm:$0xff] }
 0x33b   : > { %v11347_v48 = vld [vmem:[%s14537_s25 + $0x52] sm:$0xff]  ;;  %v3264_v52 = vpack.c.bf16 %v10447_v43, %v10446_v46 }
 0x33c   : > { %v8543_v59 = vpack.c.bf16 %v11348_v16, %v11347_v48 }
 0x33f   : > { %12670 = vmatmul.mubr.msk.bf16.gmra.mrb[20].mxu1 %vm559_vm1, %v3243_v62  ;;  %v10428_v62 = vld [vmem:[%s14537_s25 + $0x1f0] sm:$0xff] }
 0x340   : > { %13254 = vmatmul.mubr.msk.bf16.gmra.mrb[84].mxu0 %vm559_vm1, %v7524_v8  ;;  %12673 = vmatprep.mubr.msk.bf16.mxu1 %vm559_vm1, %v3244_v37  ;;  %v10429_v8 = vld [vmem:[%s14537_s25 + $0x1f8] sm:$0xff] }
 0x341   : > { %13257 = vmatprep.mubr.msk.bf16.mxu0 %vm559_vm1, %v7525_v39  ;;  %v11264_v37 = vld [vmem:[%s14537_s25 + $0x499] sm:$0xff]  ;;  %v11265_v39 = vld [vmem:[%s14537_s25 + $0x4a1] sm:$0xff]  ;;  %v3255_v0 = vpack.c.bf16 %v10429_v8, %v10428_v62  ;;  %v10450_v62 = vld [vmem:[%s14537_s25 + $0x2d0] sm:$0xff] }
 0x342   : > { %v7536_v51 = vpack.c.bf16 %v11265_v39, %v11264_v37  ;;  %v10451_v8 = vld [vmem:[%s14537_s25 + $0x2d8] sm:$0xff]  ;;  %v11352_v39 = vld [vmem:[%s14537_s25 + $0x82] sm:$0xff] }
 0x343   : > { %v11351_v37 = vld [vmem:[%s14537_s25 + $0x7a] sm:$0xff]  ;;  %v3266_v56 = vpack.c.bf16 %v10451_v8, %v10450_v62 }
 0x344   : > { %v8545_v61 = vpack.c.bf16 %v11352_v39, %v11351_v37 }
 0x347   : > { %12674 = vmatmul.mubr.msk.bf16.gmra.mrb[24].mxu1 %vm559_vm1, %v3245_v54  ;;  %v10432_v54 = vld [vmem:[%s14537_s25 + $0x218] sm:$0xff] }
 0x348   : > { %13258 = vmatmul.mubr.msk.bf16.gmra.mrb[88].mxu0 %vm559_vm1, %v7526_v22  ;;  %12677 = vmatprep.mubr.msk.bf16.mxu1 %vm559_vm1, %v3246_v25  ;;  %v10433_v22 = vld [vmem:[%s14537_s25 + $0x220] sm:$0xff] }
 0x349   : > { %13261 = vmatprep.mubr.msk.bf16.mxu0 %vm559_vm1, %v7527_v3  ;;  %v11268_v25 = vld [vmem:[%s14537_s25 + $0x4c1] sm:$0xff]  ;;  %v11269_v3 = vld [vmem:[%s14537_s25 + $0x4c9] sm:$0xff]  ;;  %v3257_v5 = vpack.c.bf16 %v10433_v22, %v10432_v54  ;;  %v10454_v54 = vld [vmem:[%s14537_s25 + $0x2f8] sm:$0xff] }
 0x34a   : > { %v7538_v40 = vpack.c.bf16 %v11269_v3, %v11268_v25  ;;  %v10455_v22 = vld [vmem:[%s14537_s25 + $0x300] sm:$0xff]  ;;  %v11356_v3 = vld [vmem:[%s14537_s25 + $0xaa] sm:$0xff] }
 0x34b   : > { %v11355_v25 = vld [vmem:[%s14537_s25 + $0xa2] sm:$0xff]  ;;  %v3268_v23 = vpack.c.bf16 %v10455_v22, %v10454_v54 }
 0x34c   : > { %v8547_v4 = vpack.c.bf16 %v11356_v3, %v11355_v25 }
 0x34f   : > { %12678 = vmatmul.mubr.msk.bf16.gmra.mrb[28].mxu1 %vm559_vm1, %v3247_v45  ;;  %v10436_v45 = vld [vmem:[%s14537_s25 + $0x240] sm:$0xff] }
 0x350   : > { %13262 = vmatmul.mubr.msk.bf16.gmra.mrb[92].mxu0 %vm559_vm1, %v7528_v14  ;;  %12681 = vmatprep.mubr.msk.bf16.mxu1 %vm559_vm1, %v3248_v7  ;;  %v10437_v14 = vld [vmem:[%s14537_s25 + $0x248] sm:$0xff] }
 0x351   : > { %13265 = vmatprep.mubr.msk.bf16.mxu0 %vm559_vm1, %v7529_v9  ;;  %v11272_v7 = vld [vmem:[%s14537_s25 + $0x4e9] sm:$0xff]  ;;  %v11273_v9 = vld [vmem:[%s14537_s25 + $0x4f1] sm:$0xff]  ;;  %v3259_v63 = vpack.c.bf16 %v10437_v14, %v10436_v45  ;;  %v10458_v45 = vld [vmem:[%s14537_s25 + $0x320] sm:$0xff] }
 0x352   : > { %v7540_v30 = vpack.c.bf16 %v11273_v9, %v11272_v7  ;;  %v10459_v14 = vld [vmem:[%s14537_s25 + $0x328] sm:$0xff]  ;;  %v11360_v9 = vld [vmem:[%s14537_s25 + $0xd2] sm:$0xff] }
 0x353   : > { %v11359_v7 = vld [vmem:[%s14537_s25 + $0xca] sm:$0xff]  ;;  %v3270_v26 = vpack.c.bf16 %v10459_v14, %v10458_v45 }
 0x354   : > { %v8549_v11 = vpack.c.bf16 %v11360_v9, %v11359_v7 }
 0x357   : > { %12682 = vmatmul.mubr.msk.bf16.gmra.mrb[32].mxu1 %vm559_vm1, %v3249_v19  ;;  %v10440_v19 = vld [vmem:[%s14537_s25 + $0x268] sm:$0xff] }
 0x358   : > { %13266 = vmatmul.mubr.msk.bf16.gmra.mrb[96].mxu0 %vm559_vm1, %v7530_v13  ;;  %12685 = vmatprep.mubr.msk.bf16.mxu1 %vm559_vm1, %v3250_v20  ;;  %v10441_v13 = vld [vmem:[%s14537_s25 + $0x270] sm:$0xff] }
 0x359   : > { %13269 = vmatprep.mubr.msk.bf16.mxu0 %vm559_vm1, %v7531_v17  ;;  %v11276_v20 = vld [vmem:[%s14537_s25 + $0x511] sm:$0xff]  ;;  %v11277_v17 = vld [vmem:[%s14537_s25 + $0x519] sm:$0xff]  ;;  %v3261_v32 = vpack.c.bf16 %v10441_v13, %v10440_v19  ;;  %v10462_v19 = vld [vmem:[%s14537_s25 + $0x348] sm:$0xff] }
 0x35a   : > { %v7542_v31 = vpack.c.bf16 %v11277_v17, %v11276_v20  ;;  %v10463_v13 = vld [vmem:[%s14537_s25 + $0x350] sm:$0xff]  ;;  %v11364_v17 = vld [vmem:[%s14537_s25 + $0xfa] sm:$0xff] }
 0x35b   : > { %v11363_v20 = vld [vmem:[%s14537_s25 + $0xf2] sm:$0xff]  ;;  %v3272_v24 = vpack.c.bf16 %v10463_v13, %v10462_v19 }
 0x35c   : > { %v8551_v28 = vpack.c.bf16 %v11364_v17, %v11363_v20 }
 0x35f   : > { %12686 = vmatmul.mubr.msk.bf16.gmra.mrb[36].mxu1 %vm559_vm1, %v3251_v35  ;;  %v10444_v35 = vld [vmem:[%s14537_s25 + $0x290] sm:$0xff] }
 0x360   : > { %13270 = vmatmul.mubr.msk.bf16.gmra.mrb[100].mxu0 %vm559_vm1, %v7532_v36  ;;  %12689 = vmatprep.mubr.msk.bf16.mxu1 %vm559_vm1, %v3252_v44  ;;  %v10445_v36 = vld [vmem:[%s14537_s25 + $0x298] sm:$0xff] }
 0x361   : > { %13273 = vmatprep.mubr.msk.bf16.mxu0 %vm559_vm1, %v7533_v38  ;;  %v11280_v44 = vld [vmem:[%s14537_s25 + $0x539] sm:$0xff]  ;;  %v11281_v38 = vld [vmem:[%s14537_s25 + $0x541] sm:$0xff]  ;;  %v3263_v57 = vpack.c.bf16 %v10445_v36, %v10444_v35  ;;  %v10466_v35 = vld [vmem:[%s14537_s25 + $0x370] sm:$0xff] }
 0x362   : > { %v7544_v49 = vpack.c.bf16 %v11281_v38, %v11280_v44  ;;  %v10467_v36 = vld [vmem:[%s14537_s25 + $0x378] sm:$0xff]  ;;  %v11368_v38 = vld [vmem:[%s14537_s25 + $0x122] sm:$0xff] }
 0x363   : > { %v11367_v44 = vld [vmem:[%s14537_s25 + $0x11a] sm:$0xff]  ;;  %v3274_v48 = vpack.c.bf16 %v10467_v36, %v10466_v35 }
 0x364   : > { %v8553_v16 = vpack.c.bf16 %v11368_v38, %v11367_v44 }
 0x367   : > { %12690 = vmatmul.mubr.msk.bf16.gmra.mrb[40].mxu1 %vm559_vm1, %v3253_v50  ;;  %v10448_v50 = vld [vmem:[%s14537_s25 + $0x2b8] sm:$0xff] }
 0x368   : > { %13274 = vmatmul.mubr.msk.bf16.gmra.mrb[104].mxu0 %vm559_vm1, %v7534_v27  ;;  %12693 = vmatprep.mubr.msk.bf16.mxu1 %vm559_vm1, %v3254_v55  ;;  %v10449_v27 = vld [vmem:[%s14537_s25 + $0x2c0] sm:$0xff] }
 0x369   : > { %13277 = vmatprep.mubr.msk.bf16.mxu0 %vm559_vm1, %v7535_v29  ;;  %v11349_v55 = vld [vmem:[%s14537_s25 + $0x62] sm:$0xff]  ;;  %v11350_v29 = vld [vmem:[%s14537_s25 + $0x6a] sm:$0xff]  ;;  %v3265_v10 = vpack.c.bf16 %v10449_v27, %v10448_v50  ;;  %v10470_v50 = vld [vmem:[%s14537_s25 + $0x398] sm:$0xff] }
 0x36a   : > { %v8544_v41 = vpack.c.bf16 %v11350_v29, %v11349_v55  ;;  %v10471_v27 = vld [vmem:[%s14537_s25 + $0x3a0] sm:$0xff]  ;;  %v11372_v29 = vld [vmem:[%s14537_s25 + $0x14a] sm:$0xff] }
 0x36b   : > { %v11371_v55 = vld [vmem:[%s14537_s25 + $0x142] sm:$0xff]  ;;  %v3276_v37 = vpack.c.bf16 %v10471_v27, %v10470_v50 }
 0x36c   : > { %v8555_v39 = vpack.c.bf16 %v11372_v29, %v11371_v55 }
 0x36f   : > { %12694 = vmatmul.mubr.msk.bf16.gmra.mrb[44].mxu1 %vm559_vm1, %v3255_v0  ;;  %v10452_v0 = vld [vmem:[%s14537_s25 + $0x2e0] sm:$0xff] }
 0x370   : > { %13278 = vmatmul.mubr.msk.bf16.gmra.mrb[108].mxu0 %vm559_vm1, %v7536_v51  ;;  %12697 = vmatprep.mubr.msk.bf16.mxu1 %vm559_vm1, %v3256_v47  ;;  %v10453_v51 = vld [vmem:[%s14537_s25 + $0x2e8] sm:$0xff] }
 0x371   : > { %13281 = vmatprep.mubr.msk.bf16.mxu0 %vm559_vm1, %v7537_v58  ;;  %v11353_v47 = vld [vmem:[%s14537_s25 + $0x8a] sm:$0xff]  ;;  %v11354_v58 = vld [vmem:[%s14537_s25 + $0x92] sm:$0xff]  ;;  %v3267_v2 = vpack.c.bf16 %v10453_v51, %v10452_v0  ;;  %v10474_v0 = vld [vmem:[%s14537_s25 + $0x3c0] sm:$0xff] }
 0x372   : > { %v8546_v1 = vpack.c.bf16 %v11354_v58, %v11353_v47  ;;  %v10475_v51 = vld [vmem:[%s14537_s25 + $0x3c8] sm:$0xff]  ;;  %v11376_v58 = vld [vmem:[%s14537_s25 + $0x172] sm:$0xff] }
 0x373   : > { %v11375_v47 = vld [vmem:[%s14537_s25 + $0x16a] sm:$0xff]  ;;  %v3278_v25 = vpack.c.bf16 %v10475_v51, %v10474_v0  ;;  %v11396_v0 = vld [vmem:[%s14537_s25 + $0x23a] sm:$0xff] }
 0x374   : > { %v8557_v3 = vpack.c.bf16 %v11376_v58, %v11375_v47 }
 0x377   : > { %12698 = vmatmul.mubr.msk.bf16.gmra.mrb[48].mxu1 %vm559_vm1, %v3257_v5  ;;  %v10456_v5 = vld [vmem:[%s14537_s25 + $0x308] sm:$0xff] }
 0x378   : > { %13282 = vmatmul.mubr.msk.bf16.gmra.mrb[112].mxu0 %vm559_vm1, %v7538_v40  ;;  %12701 = vmatprep.mubr.msk.bf16.mxu1 %vm559_vm1, %v3258_v6  ;;  %v10457_v40 = vld [vmem:[%s14537_s25 + $0x310] sm:$0xff] }
 0x379   : > { %13285 = vmatprep.mubr.msk.bf16.mxu0 %vm559_vm1, %v7539_v12  ;;  %v11357_v6 = vld [vmem:[%s14537_s25 + $0xb2] sm:$0xff]  ;;  %v11358_v12 = vld [vmem:[%s14537_s25 + $0xba] sm:$0xff]  ;;  %v3269_v53 = vpack.c.bf16 %v10457_v40, %v10456_v5  ;;  %v10478_v5 = vld [vmem:[%s14537_s25 + $0x3e8] sm:$0xff] }
 0x37a   : > { %v8548_v60 = vpack.c.bf16 %v11358_v12, %v11357_v6  ;;  %v10479_v40 = vld [vmem:[%s14537_s25 + $0x3f0] sm:$0xff]  ;;  %v11380_v12 = vld [vmem:[%s14537_s25 + $0x19a] sm:$0xff] }
 0x37b   : > { %v11379_v6 = vld [vmem:[%s14537_s25 + $0x192] sm:$0xff]  ;;  %v3280_v7 = vpack.c.bf16 %v10479_v40, %v10478_v5 }
 0x37c   : > { %v8559_v9 = vpack.c.bf16 %v11380_v12, %v11379_v6  ;;  %v10498_v5 = vld [vmem:[%s14537_s25 + $0x4b0] sm:$0xff]  ;;  %v10499_v40 = vld [vmem:[%s14537_s25 + $0x4b8] sm:$0xff] }
 0x37d   : > { %v11399_v12 = vld [vmem:[%s14537_s25 + $0x25a] sm:$0xff] }
 0x37f   : > { %12702 = vmatmul.mubr.msk.bf16.gmra.mrb[52].mxu1 %vm559_vm1, %v3259_v63  ;;  %v10460_v63 = vld [vmem:[%s14537_s25 + $0x330] sm:$0xff] }
 0x380   : > { %13286 = vmatmul.mubr.msk.bf16.gmra.mrb[116].mxu0 %vm559_vm1, %v7540_v30  ;;  %12705 = vmatprep.mubr.msk.bf16.mxu1 %vm559_vm1, %v3260_v15  ;;  %v10461_v30 = vld [vmem:[%s14537_s25 + $0x338] sm:$0xff] }
 0x381   : > { %13289 = vmatprep.mubr.msk.bf16.mxu0 %vm559_vm1, %v7541_v18  ;;  %v11361_v15 = vld [vmem:[%s14537_s25 + $0xda] sm:$0xff]  ;;  %v11362_v18 = vld [vmem:[%s14537_s25 + $0xe2] sm:$0xff]  ;;  %v3271_v42 = vpack.c.bf16 %v10461_v30, %v10460_v63  ;;  %v10482_v63 = vld [vmem:[%s14537_s25 + $0x410] sm:$0xff] }
 0x382   : > { %v8550_v21 = vpack.c.bf16 %v11362_v18, %v11361_v15  ;;  %v10483_v30 = vld [vmem:[%s14537_s25 + $0x418] sm:$0xff]  ;;  %v11384_v18 = vld [vmem:[%s14537_s25 + $0x1c2] sm:$0xff] }
 0x383   : > { %v11383_v15 = vld [vmem:[%s14537_s25 + $0x1ba] sm:$0xff]  ;;  %v3282_v20 = vpack.c.bf16 %v10483_v30, %v10482_v63  ;;  %v10501_v30 = vld [vmem:[%s14537_s25 + $0x4c8] sm:$0xff] }
 0x384   : > { %v8561_v17 = vpack.c.bf16 %v11384_v18, %v11383_v15  ;;  %v10500_v63 = vld [vmem:[%s14537_s25 + $0x4c0] sm:$0xff]  ;;  %v11401_v15 = vld [vmem:[%s14537_s25 + $0x26a] sm:$0xff]  ;;  %v11402_v18 = vld [vmem:[%s14537_s25 + $0x272] sm:$0xff] }
 0x387   : > { %12706 = vmatmul.mubr.msk.bf16.gmra.mrb[56].mxu1 %vm559_vm1, %v3261_v32  ;;  %v10464_v32 = vld [vmem:[%s14537_s25 + $0x358] sm:$0xff] }
 0x388   : > { %13290 = vmatmul.mubr.msk.bf16.gmra.mrb[120].mxu0 %vm559_vm1, %v7542_v31  ;;  %12709 = vmatprep.mubr.msk.bf16.mxu1 %vm559_vm1, %v3262_v34  ;;  %v10465_v31 = vld [vmem:[%s14537_s25 + $0x360] sm:$0xff] }
 0x389   : > { %13293 = vmatprep.mubr.msk.bf16.mxu0 %vm559_vm1, %v7543_v33  ;;  %v11365_v34 = vld [vmem:[%s14537_s25 + $0x102] sm:$0xff]  ;;  %v11366_v33 = vld [vmem:[%s14537_s25 + $0x10a] sm:$0xff]  ;;  %v3273_v46 = vpack.c.bf16 %v10465_v31, %v10464_v32  ;;  %v10486_v32 = vld [vmem:[%s14537_s25 + $0x438] sm:$0xff] }
 0x38a   : > { %v8552_v43 = vpack.c.bf16 %v11366_v33, %v11365_v34  ;;  %v10487_v31 = vld [vmem:[%s14537_s25 + $0x440] sm:$0xff]  ;;  %v11388_v33 = vld [vmem:[%s14537_s25 + $0x1ea] sm:$0xff] }
 0x38b   : > { %v11387_v34 = vld [vmem:[%s14537_s25 + $0x1e2] sm:$0xff]  ;;  %v3284_v44 = vpack.c.bf16 %v10487_v31, %v10486_v32  ;;  %v8570_v32 = vpack.c.bf16 %v11402_v18, %v11401_v15 }
 0x38c   : > { %v8563_v38 = vpack.c.bf16 %v11388_v33, %v11387_v34 }
 0x38f   : > { %12710 = vmatmul.mubr.msk.bf16.gmra.mrb[60].mxu1 %vm559_vm1, %v3263_v57  ;;  %v10468_v57 = vld [vmem:[%s14537_s25 + $0x380] sm:$0xff] }
 0x390   : > { %13294 = vmatmul.mubr.msk.bf16.gmra.mrb[124].mxu0 %vm559_vm1, %v7544_v49  ;;  %12713 = vmatprep.mubr.msk.bf16.mxu1 %vm559_vm1, %v3264_v52  ;;  %v10469_v49 = vld [vmem:[%s14537_s25 + $0x388] sm:$0xff] }
 0x391   : > { %13299 = vmatprep.mubr.msk.bf16.mxu0 %vm559_vm1, %v8543_v59  ;;  %v11369_v52 = vld [vmem:[%s14537_s25 + $0x12a] sm:$0xff]  ;;  %v11370_v59 = vld [vmem:[%s14537_s25 + $0x132] sm:$0xff]  ;;  %v3275_v62 = vpack.c.bf16 %v10469_v49, %v10468_v57  ;;  %v10490_v57 = vld [vmem:[%s14537_s25 + $0x460] sm:$0xff] }
 0x392   : > { %v8554_v8 = vpack.c.bf16 %v11370_v59, %v11369_v52  ;;  %v10491_v49 = vld [vmem:[%s14537_s25 + $0x468] sm:$0xff]  ;;  %v11392_v59 = vld [vmem:[%s14537_s25 + $0x212] sm:$0xff] }
 0x393   : > { %v11391_v52 = vld [vmem:[%s14537_s25 + $0x20a] sm:$0xff]  ;;  %v3286_v55 = vpack.c.bf16 %v10491_v49, %v10490_v57  ;;  %v11408_v57 = vld [vmem:[%s14537_s25 + $0x2b2] sm:$0xff] }
 0x394   : > { %v8565_v29 = vpack.c.bf16 %v11392_v59, %v11391_v52 }
 0x397   : > { %12714 = vmatmul.mubr.msk.bf16.gmra.mrb[64].mxu1 %vm559_vm1, %v3265_v10  ;;  %v10472_v10 = vld [vmem:[%s14537_s25 + $0x3a8] sm:$0xff] }
 0x398   : > { %13300 = vmatmul.mubr.msk.bf16.vlgmr.msra.gmra.mrb[0].mxu0 %vm559_vm1, %v8544_v41  ;;  %12717 = vmatprep.mubr.msk.bf16.mxu1 %vm559_vm1, %v3266_v56  ;;  %v10473_v41 = vld [vmem:[%s14537_s25 + $0x3b0] sm:$0xff] }
 0x399   : > { %13303 = vmatprep.mubr.msk.bf16.mxu0 %vm559_vm1, %v8545_v61  ;;  %v11373_v56 = vld [vmem:[%s14537_s25 + $0x152] sm:$0xff]  ;;  %v11374_v61 = vld [vmem:[%s14537_s25 + $0x15a] sm:$0xff]  ;;  %v3277_v54 = vpack.c.bf16 %v10473_v41, %v10472_v10  ;;  %v10494_v10 = vld [vmem:[%s14537_s25 + $0x488] sm:$0xff] }
 0x39a   : > { %v8556_v22 = vpack.c.bf16 %v11374_v61, %v11373_v56  ;;  %v10495_v41 = vld [vmem:[%s14537_s25 + $0x490] sm:$0xff] }
 0x39b   : > { %v11395_v61 = vld [vmem:[%s14537_s25 + $0x232] sm:$0xff] }
 0x39f   : > { %12718 = vmatmul.mubr.msk.bf16.gmra.mrb[68].mxu1 %vm559_vm1, %v3267_v2  ;;  %v10476_v2 = vld [vmem:[%s14537_s25 + $0x3d0] sm:$0xff] }
 0x3a0   : > { %13304 = vmatmul.mubr.msk.bf16.gmra.mrb[4].mxu0 %vm559_vm1, %v8546_v1  ;;  %12721 = vmatprep.mubr.msk.bf16.mxu1 %vm559_vm1, %v3268_v23  ;;  %v10477_v1 = vld [vmem:[%s14537_s25 + $0x3d8] sm:$0xff] }
 0x3a1   : > { %13307 = vmatprep.mubr.msk.bf16.mxu0 %vm559_vm1, %v8547_v4  ;;  %v11377_v23 = vld [vmem:[%s14537_s25 + $0x17a] sm:$0xff]  ;;  %v11378_v4 = vld [vmem:[%s14537_s25 + $0x182] sm:$0xff]  ;;  %v3279_v45 = vpack.c.bf16 %v10477_v1, %v10476_v2 }
 0x3a2   : > { %v8558_v14 = vpack.c.bf16 %v11378_v4, %v11377_v23  ;;  %v10496_v2 = vld [vmem:[%s14537_s25 + $0x498] sm:$0xff]  ;;  %v10497_v1 = vld [vmem:[%s14537_s25 + $0x4a0] sm:$0xff]  ;;  %v11398_v4 = vld [vmem:[%s14537_s25 + $0x24a] sm:$0xff] }
 0x3a3   : > { %v11397_v23 = vld [vmem:[%s14537_s25 + $0x242] sm:$0xff] }
 0x3a7   : > { %12722 = vmatmul.mubr.msk.bf16.gmra.mrb[72].mxu1 %vm559_vm1, %v3269_v53  ;;  %v10480_v53 = vld [vmem:[%s14537_s25 + $0x3f8] sm:$0xff] }
 0x3a8   : > { %13308 = vmatmul.mubr.msk.bf16.gmra.mrb[8].mxu0 %vm559_vm1, %v8548_v60  ;;  %12725 = vmatprep.mubr.msk.bf16.mxu1 %vm559_vm1, %v3270_v26  ;;  %v10481_v60 = vld [vmem:[%s14537_s25 + $0x400] sm:$0xff] }
 0x3a9   : > { %13311 = vmatprep.mubr.msk.bf16.mxu0 %vm559_vm1, %v8549_v11  ;;  %v11381_v26 = vld [vmem:[%s14537_s25 + $0x1a2] sm:$0xff]  ;;  %v11382_v11 = vld [vmem:[%s14537_s25 + $0x1aa] sm:$0xff]  ;;  %v3281_v19 = vpack.c.bf16 %v10481_v60, %v10480_v53  ;;  %v8568_v53 = vpack.c.bf16 %v11398_v4, %v11397_v23  ;;  %v3290_v60 = vpack.c.bf16 %v10499_v40, %v10498_v5  ;;  %v10641_v5 = vld [vmem:[%s14537_s25 + $0x2b9] sm:$0xff] }
 0x3aa   : > { %v8560_v13 = vpack.c.bf16 %v11382_v11, %v11381_v26  ;;  %v10642_v40 = vld [vmem:[%s14537_s25 + $0x2c1] sm:$0xff] }
 0x3ab   : > { %v4327_v15 = vpack.c.bf16 %v10642_v40, %v10641_v5 }
 0x3af   : > { %12726 = vmatmul.mubr.msk.bf16.gmra.mrb[76].mxu1 %vm559_vm1, %v3271_v42  ;;  %v10484_v42 = vld [vmem:[%s14537_s25 + $0x420] sm:$0xff] }
 0x3b0   : > { %13312 = vmatmul.mubr.msk.bf16.gmra.mrb[12].mxu0 %vm559_vm1, %v8550_v21  ;;  %12729 = vmatprep.mubr.msk.bf16.mxu1 %vm559_vm1, %v3272_v24  ;;  %v10485_v21 = vld [vmem:[%s14537_s25 + $0x428] sm:$0xff] }
 0x3b1   : > { %13315 = vmatprep.mubr.msk.bf16.mxu0 %vm559_vm1, %v8551_v28  ;;  %v11385_v24 = vld [vmem:[%s14537_s25 + $0x1ca] sm:$0xff]  ;;  %v11386_v28 = vld [vmem:[%s14537_s25 + $0x1d2] sm:$0xff]  ;;  %v3283_v35 = vpack.c.bf16 %v10485_v21, %v10484_v42 }
 0x3b2   : > { %v8562_v36 = vpack.c.bf16 %v11386_v28, %v11385_v24  ;;  %v11404_v42 = vld [vmem:[%s14537_s25 + $0x28a] sm:$0xff]  ;;  %v3291_v24 = vpack.c.bf16 %v10501_v30, %v10500_v63  ;;  %v11416_v63 = vld [vmem:[%s14537_s25 + $0x302] sm:$0xff] }
 0x3b7   : > { %12730 = vmatmul.mubr.msk.bf16.gmra.mrb[80].mxu1 %vm559_vm1, %v3273_v46  ;;  %v10488_v46 = vld [vmem:[%s14537_s25 + $0x448] sm:$0xff] }
 0x3b8   : > { %13316 = vmatmul.mubr.msk.bf16.gmra.mrb[16].mxu0 %vm559_vm1, %v8552_v43  ;;  %12733 = vmatprep.mubr.msk.bf16.mxu1 %vm559_vm1, %v3274_v48  ;;  %v10489_v43 = vld [vmem:[%s14537_s25 + $0x450] sm:$0xff] }
 0x3b9   : > { %13319 = vmatprep.mubr.msk.bf16.mxu0 %vm559_vm1, %v8553_v16  ;;  %v11389_v48 = vld [vmem:[%s14537_s25 + $0x1f2] sm:$0xff]  ;;  %v11390_v16 = vld [vmem:[%s14537_s25 + $0x1fa] sm:$0xff]  ;;  %v3285_v50 = vpack.c.bf16 %v10489_v43, %v10488_v46  ;;  %v10507_v43 = vld [vmem:[%s14537_s25 + $0x508] sm:$0xff] }
 0x3ba   : > { %v8564_v27 = vpack.c.bf16 %v11390_v16, %v11389_v48  ;;  %v10506_v46 = vld [vmem:[%s14537_s25 + $0x500] sm:$0xff]  ;;  %v11407_v16 = vld [vmem:[%s14537_s25 + $0x2aa] sm:$0xff] }
 0x3bf   : > { %12734 = vmatmul.mubr.msk.bf16.gmra.mrb[84].mxu1 %vm559_vm1, %v3275_v62  ;;  %v10492_v62 = vld [vmem:[%s14537_s25 + $0x470] sm:$0xff] }
 0x3c0   : > { %13320 = vmatmul.mubr.msk.bf16.gmra.mrb[20].mxu0 %vm559_vm1, %v8554_v8  ;;  %12737 = vmatprep.mubr.msk.bf16.mxu1 %vm559_vm1, %v3276_v37  ;;  %v10493_v8 = vld [vmem:[%s14537_s25 + $0x478] sm:$0xff] }
 0x3c1   : > { %13323 = vmatprep.mubr.msk.bf16.mxu0 %vm559_vm1, %v8555_v39  ;;  %v11393_v37 = vld [vmem:[%s14537_s25 + $0x21a] sm:$0xff]  ;;  %v11394_v39 = vld [vmem:[%s14537_s25 + $0x222] sm:$0xff]  ;;  %v3287_v47 = vpack.c.bf16 %v10493_v8, %v10492_v62  ;;  %v10508_v62 = vld [vmem:[%s14537_s25 + $0x510] sm:$0xff] }
 0x3c2   : > { %v10509_v8 = vld [vmem:[%s14537_s25 + $0x518] sm:$0xff] }
 0x3c7   : > { %12738 = vmatmul.mubr.msk.bf16.gmra.mrb[88].mxu1 %vm559_vm1, %v3277_v54  ;;  %v8566_v54 = vpack.c.bf16 %v11394_v39, %v11393_v37  ;;  %v11409_v37 = vld [vmem:[%s14537_s25 + $0x2ba] sm:$0xff]  ;;  %v11410_v39 = vld [vmem:[%s14537_s25 + $0x2c2] sm:$0xff] }
 0x3c8   : > { %13324 = vmatmul.mubr.msk.bf16.gmra.mrb[24].mxu0 %vm559_vm1, %v8556_v22  ;;  %12741 = vmatprep.mubr.msk.bf16.mxu1 %vm559_vm1, %v3278_v25  ;;  %v3288_v22 = vpack.c.bf16 %v10495_v41, %v10494_v10  ;;  %v10639_v10 = vld [vmem:[%s14537_s25 + $0x2a9] sm:$0xff]  ;;  %v10640_v41 = vld [vmem:[%s14537_s25 + $0x2b1] sm:$0xff] }
 0x3c9   : > { %13327 = vmatprep.mubr.msk.bf16.mxu0 %vm559_vm1, %v8557_v3  ;;  %v8567_v3 = vpack.c.bf16 %v11396_v0, %v11395_v61  ;;  %v11411_v0 = vld [vmem:[%s14537_s25 + $0x2d2] sm:$0xff] }
 0x3cf   : > { %12742 = vmatmul.mubr.msk.bf16.gmra.mrb[92].mxu1 %vm559_vm1, %v3279_v45  ;;  %v11400_v45 = vld [vmem:[%s14537_s25 + $0x262] sm:$0xff] }
 0x3d0   : > { %13328 = vmatmul.mubr.msk.bf16.gmra.mrb[28].mxu0 %vm559_vm1, %v8558_v14  ;;  %12745 = vmatprep.mubr.msk.bf16.mxu1 %vm559_vm1, %v3280_v7  ;;  %v3289_v7 = vpack.c.bf16 %v10497_v1, %v10496_v2  ;;  %v8569_v11 = vpack.c.bf16 %v11400_v45, %v11399_v12  ;;  %v8574_v2 = vpack.c.bf16 %v11410_v39, %v11409_v37  ;;  %v11413_v12 = vld [vmem:[%s14537_s25 + $0x2e2] sm:$0xff]  ;;  %v11414_v45 = vld [vmem:[%s14537_s25 + $0x2ea] sm:$0xff]  ;;  %v11421_v37 = vld [vmem:[%s14537_s25 + $0x332] sm:$0xff] }
 0x3d1   : > { %13331 = vmatprep.mubr.msk.bf16.mxu0 %vm559_vm1, %v8559_v9  ;;  %v4326_v1 = vpack.c.bf16 %v10640_v41, %v10639_v10  ;;  %v11422_v39 = vld [vmem:[%s14537_s25 + $0x33a] sm:$0xff]  ;;  %v10652_v41 = vld [vmem:[%s14537_s25 + $0x329] sm:$0xff] }
 0x3d2   : > { %v10651_v10 = vld [vmem:[%s14537_s25 + $0x321] sm:$0xff]  ;;  %v8580_v5 = vpack.c.bf16 %v11422_v39, %v11421_v37 }
 0x3d3   : > { %v4332_v40 = vpack.c.bf16 %v10652_v41, %v10651_v10  ;;  %v11431_v39 = vld [vmem:[%s14537_s25 + $0x39a] sm:$0xff]  ;;  %v11432_v10 = vld [vmem:[%s14537_s25 + $0x3a2] sm:$0xff] }
 0x3d7   : > { %12746 = vmatmul.mubr.msk.bf16.gmra.mrb[96].mxu1 %vm559_vm1, %v3281_v19  ;;  %v10502_v19 = vld [vmem:[%s14537_s25 + $0x4d8] sm:$0xff] }
 0x3d8   : > { %13332 = vmatmul.mubr.msk.bf16.gmra.mrb[32].mxu0 %vm559_vm1, %v8560_v13  ;;  %12749 = vmatprep.mubr.msk.bf16.mxu1 %vm559_vm1, %v3282_v20  ;;  %v10503_v13 = vld [vmem:[%s14537_s25 + $0x4e0] sm:$0xff] }
 0x3d9   : > { %13335 = vmatprep.mubr.msk.bf16.mxu0 %vm559_vm1, %v8561_v17  ;;  %v11403_v17 = vld [vmem:[%s14537_s25 + $0x282] sm:$0xff]  ;;  %v3292_v31 = vpack.c.bf16 %v10503_v13, %v10502_v19  ;;  %v8576_v19 = vpack.c.bf16 %v11414_v45, %v11413_v12 }
 0x3da   : > { %v8571_v33 = vpack.c.bf16 %v11404_v42, %v11403_v17 }
 0x3df   : > { %12750 = vmatmul.mubr.msk.bf16.gmra.mrb[100].mxu1 %vm559_vm1, %v3283_v35  ;;  %v10504_v35 = vld [vmem:[%s14537_s25 + $0x4e8] sm:$0xff] }
 0x3e0   : > { %13336 = vmatmul.mubr.msk.bf16.gmra.mrb[36].mxu0 %vm559_vm1, %v8562_v36  ;;  %12753 = vmatprep.mubr.msk.bf16.mxu1 %vm559_vm1, %v3284_v44  ;;  %v10505_v36 = vld [vmem:[%s14537_s25 + $0x4f0] sm:$0xff] }
 0x3e1   : > { %13339 = vmatprep.mubr.msk.bf16.mxu0 %vm559_vm1, %v8563_v38  ;;  %v11405_v44 = vld [vmem:[%s14537_s25 + $0x292] sm:$0xff]  ;;  %v11406_v38 = vld [vmem:[%s14537_s25 + $0x29a] sm:$0xff]  ;;  %v3293_v52 = vpack.c.bf16 %v10505_v36, %v10504_v35 }
 0x3e2   : > { %v10647_v35 = vld [vmem:[%s14537_s25 + $0x2f9] sm:$0xff]  ;;  %v10648_v36 = vld [vmem:[%s14537_s25 + $0x301] sm:$0xff] }
 0x3e7   : > { %12754 = vmatmul.mubr.msk.bf16.gmra.mrb[104].mxu1 %vm559_vm1, %v3285_v50  ;;  %v8572_v50 = vpack.c.bf16 %v11406_v38, %v11405_v44  ;;  %v11419_v38 = vld [vmem:[%s14537_s25 + $0x322] sm:$0xff] }
 0x3e8   : > { %13340 = vmatmul.mubr.msk.bf16.gmra.mrb[40].mxu0 %vm559_vm1, %v8564_v27  ;;  %12757 = vmatprep.mubr.msk.bf16.mxu1 %vm559_vm1, %v3286_v55  ;;  %v3294_v27 = vpack.c.bf16 %v10507_v43, %v10506_v46  ;;  %v11420_v46 = vld [vmem:[%s14537_s25 + $0x32a] sm:$0xff] }
 0x3e9   : > { %13343 = vmatprep.mubr.msk.bf16.mxu0 %vm559_vm1, %v8565_v29  ;;  %v8573_v29 = vpack.c.bf16 %v11408_v57, %v11407_v16 }
 0x3ea   : > { %v16135_v56 = vpop.f32.mrb[0].mxu1 }
 0x3eb   : > { %v16139_v51 = vpop.f32.mrb[1].mxu1 }
 0x3ec   : > { %v16141_v58 = vpop.f32.mrb[2].mxu1 }
 0x3ed   : > { %v16143_v25 = vpop.f32.mrb[3].mxu1 }
 0x3ef   : > { %12758 = vmatmul.mubr.msk.bf16.gmra.mrb[108].mxu1 %vm559_vm1, %v3287_v47  ;;  %v11412_v47 = vld [vmem:[%s14537_s25 + $0x2da] sm:$0xff] }
 0x3f0   : > { %13344 = vmatmul.mubr.msk.bf16.gmra.mrb[44].mxu0 %vm559_vm1, %v8566_v54  ;;  %12761 = vmatprep.mubr.msk.bf16.mxu1 %vm559_vm1, %v3288_v22  ;;  %v3295_v22 = vpack.c.bf16 %v10509_v8, %v10508_v62  ;;  %v8575_v4 = vpack.c.bf16 %v11412_v47, %v11411_v0  ;;  %v10649_v62 = vld [vmem:[%s14537_s25 + $0x309] sm:$0xff]  ;;  %v10650_v8 = vld [vmem:[%s14537_s25 + $0x311] sm:$0xff] }
 0x3f1   : > { %13347 = vmatprep.mubr.msk.bf16.mxu0 %vm559_vm1, %v8567_v3  ;;  %v11423_v47 = vld [vmem:[%s14537_s25 + $0x34a] sm:$0xff] }
 0x3f2   : > { %v16155_v6 = vpop.f32.mrb[4].mxu1 }
 0x3f3   : > { %v16159_v14 = vpop.f32.mrb[5].mxu1 }
 0x3f4   : > { %v16161_v9 = vpop.f32.mrb[6].mxu1 }
 0x3f5   : > { %v16163_v26 = vpop.f32.mrb[7].mxu1 }
 0x3f7   : > { %12762 = vmatmul.mubr.msk.bf16.gmra.mrb[112].mxu1 %vm559_vm1, %v3289_v7  ;;  %v10643_v7 = vld [vmem:[%s14537_s25 + $0x2d1] sm:$0xff] }
 0x3f8   : > { %13348 = vmatmul.mubr.msk.bf16.gmra.mrb[48].mxu0 %vm559_vm1, %v8568_v53  ;;  %12765 = vmatprep.mubr.msk.bf16.mxu1 %vm559_vm1, %v3290_v60  ;;  %v10644_v53 = vld [vmem:[%s14537_s25 + $0x2d9] sm:$0xff] }
 0x3f9   : > { %13351 = vmatprep.mubr.msk.bf16.mxu0 %vm559_vm1, %v8569_v11  ;;  %v11415_v11 = vld [vmem:[%s14537_s25 + $0x2fa] sm:$0xff]  ;;  %v4328_v13 = vpack.c.bf16 %v10644_v53, %v10643_v7  ;;  %v10653_v7 = vld [vmem:[%s14537_s25 + $0x331] sm:$0xff] }
 0x3fa   : > { %v16175_v20 = vpop.f32.mrb[8].mxu1  ;;  %v8577_v42 = vpack.c.bf16 %v11416_v63, %v11415_v11  ;;  %v10654_v53 = vld [vmem:[%s14537_s25 + $0x339] sm:$0xff]  ;;  %v11426_v63 = vld [vmem:[%s14537_s25 + $0x362] sm:$0xff] }
 0x3fb   : > { %v16179_v21 = vpop.f32.mrb[9].mxu1  ;;  %v11425_v11 = vld [vmem:[%s14537_s25 + $0x35a] sm:$0xff] }
 0x3fc   : > { %v16181_v28 = vpop.f32.mrb[10].mxu1 }
 0x3fd   : > { %v16183_v34 = vpop.f32.mrb[11].mxu1 }
 0x3ff   : > { %12766 = vmatmul.mubr.msk.bf16.gmra.mrb[116].mxu1 %vm559_vm1, %v3291_v24  ;;  %v10645_v24 = vld [vmem:[%s14537_s25 + $0x2e1] sm:$0xff] }
 0x400   : > { %13352 = vmatmul.mubr.msk.bf16.gmra.mrb[52].mxu0 %vm559_vm1, %v8570_v32  ;;  %12769 = vmatprep.mubr.msk.bf16.mxu1 %vm559_vm1, %v3292_v31  ;;  %v10646_v32 = vld [vmem:[%s14537_s25 + $0x2e9] sm:$0xff] }
 0x401   : > { %13355 = vmatprep.mubr.msk.bf16.mxu0 %vm559_vm1, %v8571_v33  ;;  %v11417_v31 = vld [vmem:[%s14537_s25 + $0x30a] sm:$0xff]  ;;  %v11418_v33 = vld [vmem:[%s14537_s25 + $0x312] sm:$0xff]  ;;  %v4329_v16 = vpack.c.bf16 %v10646_v32, %v10645_v24  ;;  %v11428_v24 = vld [vmem:[%s14537_s25 + $0x37a] sm:$0xff] }
 0x402   : > { %v16195_v48 = vpop.f32.mrb[12].mxu1 }
 0x403   : > { %v16199_v49 = vpop.f32.mrb[13].mxu1 }
 0x404   : > { %v16201_v59 = vpop.f32.mrb[14].mxu1 }
 0x405   : > { %v16203_v55 = vpop.f32.mrb[15].mxu1 }
 0x407   : > { %12770 = vmatmul.mubr.msk.bf16.gmra.mrb[120].mxu1 %vm559_vm1, %v3293_v52  ;;  %v8578_v52 = vpack.c.bf16 %v11418_v33, %v11417_v31  ;;  %v4333_v31 = vpack.c.bf16 %v10654_v53, %v10653_v7  ;;  %v10661_v7 = vld [vmem:[%s14537_s25 + $0x381] sm:$0xff]  ;;  %v10662_v53 = vld [vmem:[%s14537_s25 + $0x389] sm:$0xff] }
 0x408   : > { %13356 = vmatmul.mubr.msk.bf16.gmra.mrb[56].mxu0 %vm559_vm1, %v8572_v50  ;;  %12773 = vmatprep.mubr.msk.bf16.mxu1 %vm559_vm1, %v3294_v27  ;;  %v4330_v50 = vpack.c.bf16 %v10648_v36, %v10647_v35  ;;  %v8582_v35 = vpack.c.bf16 %v11426_v63, %v11425_v11  ;;  %v11433_v11 = vld [vmem:[%s14537_s25 + $0x3aa] sm:$0xff]  ;;  %v11434_v63 = vld [vmem:[%s14537_s25 + $0x3b2] sm:$0xff] }
 0x409   : > { %13359 = vmatprep.mubr.msk.bf16.mxu0 %vm559_vm1, %v8573_v29  ;;  %v8579_v29 = vpack.c.bf16 %v11420_v46, %v11419_v38 }
 0x40a   : > { %v16215_v61 = vpop.f32.mrb[16].mxu1 }
 0x40b   : > { %v16219_v54 = vpop.f32.mrb[17].mxu1 }
 0x40c   : > { %v16221_v3 = vpop.f32.mrb[18].mxu1 }
 0x40d   : > { %v16223_v23 = vpop.f32.mrb[19].mxu1 }
 0x40f   : > { %12774 = vmatmul.mubr.msk.bf16.gmra.mrb[124].mxu1 %vm559_vm1, %v3295_v22  ;;  %v11424_v22 = vld [vmem:[%s14537_s25 + $0x352] sm:$0xff] }
 0x410   : > { %13360 = vmatmul.mubr.msk.bf16.gmra.mrb[60].mxu0 %vm559_vm1, %v8574_v2  ;;  %12843 = vmatprep.mubr.msk.bf16.mxu1 %vm559_vm1, %v4326_v1  ;;  %v4331_v1 = vpack.c.bf16 %v10650_v8, %v10649_v62  ;;  %v8581_v45 = vpack.c.bf16 %v11424_v22, %v11423_v47  ;;  %v10659_v62 = vld [vmem:[%s14537_s25 + $0x371] sm:$0xff]  ;;  %v10660_v8 = vld [vmem:[%s14537_s25 + $0x379] sm:$0xff] }
 0x411   : > { %13363 = vmatprep.mubr.msk.bf16.mxu0 %vm559_vm1, %v8575_v4 }
 0x412   : > { %v16235_v60 = vpop.f32.mrb[20].mxu1 }
 0x413   : > { %v16239_v30 = vpop.f32.mrb[21].mxu1 }
 0x414   : > { %v16241_v18 = vpop.f32.mrb[22].mxu1 }
 0x415   : > { %v16243_v17 = vpop.f32.mrb[23].mxu1 }
 0x417   : > { %12844 = vmatmul.mubr.msk.bf16.vlgmr.msra.gmra.mrb[64].mxu1 %vm559_vm1, %v4327_v15  ;;  %v10655_v15 = vld [vmem:[%s14537_s25 + $0x349] sm:$0xff] }
 0x418   : > { %13364 = vmatmul.mubr.msk.bf16.gmra.mrb[64].mxu0 %vm559_vm1, %v8576_v19  ;;  %12847 = vmatprep.mubr.msk.bf16.mxu1 %vm559_vm1, %v4328_v13  ;;  %v10656_v19 = vld [vmem:[%s14537_s25 + $0x351] sm:$0xff] }
 0x419   : > { %13367 = vmatprep.mubr.msk.bf16.mxu0 %vm559_vm1, %v8577_v42  ;;  %v11427_v42 = vld [vmem:[%s14537_s25 + $0x372] sm:$0xff]  ;;  %v4334_v36 = vpack.c.bf16 %v10656_v19, %v10655_v15  ;;  %v10664_v19 = vld [vmem:[%s14537_s25 + $0x3a1] sm:$0xff] }
 0x41a   : > { %v16255_v44 = vpop.f32.mrb[24].mxu1  ;;  %v8583_v46 = vpack.c.bf16 %v11428_v24, %v11427_v42  ;;  %v10663_v15 = vld [vmem:[%s14537_s25 + $0x399] sm:$0xff]  ;;  %v11435_v24 = vld [vmem:[%s14537_s25 + $0x3c2] sm:$0xff] }
 0x41b   : > { %v16259_v43 = vpop.f32.mrb[25].mxu1 }
 0x41c   : > { %v16261_v57 = vpop.f32.mrb[26].mxu1 }
 0x41d   : > { %v16263_v27 = vpop.f32.mrb[27].mxu1 }
 0x41f   : > { %12848 = vmatmul.mubr.msk.bf16.gmra.mrb[68].mxu1 %vm559_vm1, %v4329_v16  ;;  %v10657_v16 = vld [vmem:[%s14537_s25 + $0x359] sm:$0xff] }
 0x420   : > { %13368 = vmatmul.mubr.msk.bf16.gmra.mrb[68].mxu0 %vm559_vm1, %v8578_v52  ;;  %12851 = vmatprep.mubr.msk.bf16.mxu1 %vm559_vm1, %v4330_v50  ;;  %v10658_v52 = vld [vmem:[%s14537_s25 + $0x361] sm:$0xff] }
 0x421   : > { %13371 = vmatprep.mubr.msk.bf16.mxu0 %vm559_vm1, %v8579_v29  ;;  %v11429_v50 = vld [vmem:[%s14537_s25 + $0x382] sm:$0xff]  ;;  %v11430_v29 = vld [vmem:[%s14537_s25 + $0x38a] sm:$0xff]  ;;  %v4335_v47 = vpack.c.bf16 %v10658_v52, %v10657_v16  ;;  %v8586_v16 = vpack.c.bf16 %v11434_v63, %v11433_v11  ;;  %v4338_v52 = vpack.c.bf16 %v10664_v19, %v10663_v15 }
 0x422   : > { %v16275_v0 = vpop.f32.mrb[28].mxu1 }
 0x423   : > { %v16279_v2 = vpop.f32.mrb[29].mxu1 }
 0x424   : > { %v16281_v4 = vpop.f32.mrb[30].mxu1 }
 0x425   : > { %v16283_v12 = vpop.f32.mrb[31].mxu1 }
 0x427   : > { %12852 = vmatmul.mubr.msk.bf16.gmra.mrb[72].mxu1 %vm559_vm1, %v4331_v1  ;;  %v8584_v1 = vpack.c.bf16 %v11430_v29, %v11429_v50 }
 0x428   : > { %13372 = vmatmul.mubr.msk.bf16.gmra.mrb[72].mxu0 %vm559_vm1, %v8580_v5  ;;  %12855 = vmatprep.mubr.msk.bf16.mxu1 %vm559_vm1, %v4332_v40  ;;  %v4336_v5 = vpack.c.bf16 %v10660_v8, %v10659_v62  ;;  %v10665_v62 = vld [vmem:[%s14537_s25 + $0x3a9] sm:$0xff]  ;;  %v10666_v8 = vld [vmem:[%s14537_s25 + $0x3b1] sm:$0xff] }
 0x429   : > { %13375 = vmatprep.mubr.msk.bf16.mxu0 %vm559_vm1, %v8581_v45  ;;  %v8585_v45 = vpack.c.bf16 %v11432_v10, %v11431_v39  ;;  %v11437_v39 = vld [vmem:[%s14537_s25 + $0x3d2] sm:$0xff]  ;;  %v11438_v10 = vld [vmem:[%s14537_s25 + $0x3da] sm:$0xff]  ;;  %v4339_v11 = vpack.c.bf16 %v10666_v8, %v10665_v62  ;;  %v10671_v62 = vld [vmem:[%s14537_s25 + $0x3e9] sm:$0xff] }
 0x42a   : > { %v16295_v13 = vpop.f32.mrb[32].mxu1  ;;  %v8588_v15 = vpack.c.bf16 %v11438_v10, %v11437_v39  ;;  %v10672_v8 = vld [vmem:[%s14537_s25 + $0x3f1] sm:$0xff] }
 0x42b   : > { %v16299_v32 = vpop.f32.mrb[33].mxu1  ;;  %v11443_v10 = vld [vmem:[%s14537_s25 + $0x412] sm:$0xff] }
 0x42c   : > { %v16301_v33 = vpop.f32.mrb[34].mxu1 }
 0x42d   : > { %v16303_v38 = vpop.f32.mrb[35].mxu1 }
 0x42f   : > { %12856 = vmatmul.mubr.msk.bf16.gmra.mrb[76].mxu1 %vm559_vm1, %v4333_v31  ;;  %v11436_v31 = vld [vmem:[%s14537_s25 + $0x3ca] sm:$0xff] }
 0x430   : > { %13376 = vmatmul.mubr.msk.bf16.gmra.mrb[76].mxu0 %vm559_vm1, %v8582_v35  ;;  %12859 = vmatprep.mubr.msk.bf16.mxu1 %vm559_vm1, %v4334_v36  ;;  %v4337_v36 = vpack.c.bf16 %v10662_v53, %v10661_v7  ;;  %v8587_v29 = vpack.c.bf16 %v11436_v31, %v11435_v24  ;;  %v11440_v7 = vld [vmem:[%s14537_s25 + $0x3f2] sm:$0xff] }
 0x431   : > { %13379 = vmatprep.mubr.msk.bf16.mxu0 %vm559_vm1, %v8583_v46 }
 0x432   : > { %v16315_v37 = vpop.f32.mrb[36].mxu1 }
 0x433   : > { %v16319_v41 = vpop.f32.mrb[37].mxu1 }
 0x434   : > { %v16321_v22 = vpop.f32.mrb[38].mxu1 }
 0x435   : > { %v16323_v40 = vpop.f32.mrb[39].mxu1 }
 0x437   : > { %12860 = vmatmul.mubr.msk.bf16.gmra.mrb[80].mxu1 %vm559_vm1, %v4335_v47  ;;  %v10667_v47 = vld [vmem:[%s14537_s25 + $0x3c1] sm:$0xff] }
 0x438   : > { %13380 = vmatmul.mubr.msk.bf16.gmra.mrb[80].mxu0 %vm559_vm1, %v8584_v1  ;;  %12863 = vmatprep.mubr.msk.bf16.mxu1 %vm559_vm1, %v4336_v5  ;;  %v10668_v1 = vld [vmem:[%s14537_s25 + $0x3c9] sm:$0xff] }
 0x439   : > { %13383 = vmatprep.mubr.msk.bf16.mxu0 %vm559_vm1, %v8585_v45  ;;  %v11439_v45 = vld [vmem:[%s14537_s25 + $0x3ea] sm:$0xff]  ;;  %v4340_v19 = vpack.c.bf16 %v10668_v1, %v10667_v47  ;;  %v11444_v47 = vld [vmem:[%s14537_s25 + $0x41a] sm:$0xff] }
 0x43a   : > { %v16335_v42 = vpop.f32.mrb[40].mxu1  ;;  %v8589_v31 = vpack.c.bf16 %v11440_v7, %v11439_v45 }
 0x43b   : > { %v16339_v35 = vpop.f32.mrb[41].mxu1 }
 0x43c   : > { %v16341_v46 = vpop.f32.mrb[42].mxu1 }
 0x43d   : > { %v16343_v50 = vpop.f32.mrb[43].mxu1 }
 0x43e   : > { %16846 = vst [vmem:[#allocation2_spill] sm:$0xff] %v16343_v50 }
 0x43f   : > { %12864 = vmatmul.mubr.msk.bf16.gmra.mrb[84].mxu1 %vm559_vm1, %v4337_v36  ;;  %v10669_v36 = vld [vmem:[%s14537_s25 + $0x3d1] sm:$0xff] }
 0x440   : > { %13384 = vmatmul.mubr.msk.bf16.gmra.mrb[84].mxu0 %vm559_vm1, %v8586_v16  ;;  %12867 = vmatprep.mubr.msk.bf16.mxu1 %vm559_vm1, %v4338_v52  ;;  %v10670_v16 = vld [vmem:[%s14537_s25 + $0x3d9] sm:$0xff] }
 0x441   : > { %13387 = vmatprep.mubr.msk.bf16.mxu0 %vm559_vm1, %v8587_v29  ;;  %v11441_v52 = vld [vmem:[%s14537_s25 + $0x3fa] sm:$0xff]  ;;  %v11442_v29 = vld [vmem:[%s14537_s25 + $0x402] sm:$0xff]  ;;  %v4341_v45 = vpack.c.bf16 %v10670_v16, %v10669_v36  ;;  %v11446_v36 = vld [vmem:[%s14537_s25 + $0x42a] sm:$0xff] }
 0x442   : > { %v16355_v5 = vpop.f32.mrb[44].mxu1  ;;  %v10675_v16 = vld [vmem:[%s14537_s25 + $0x411] sm:$0xff] }
 0x443   : > { %16847 = vst [vmem:[#allocation3_spill] sm:$0xff] %v16355_v5  ;;  %v16359_v53 = vpop.f32.mrb[45].mxu1 }
 0x444   : > { %16848 = vst [vmem:[#allocation4_spill] sm:$0xff] %v16359_v53  ;;  %v16361_v63 = vpop.f32.mrb[46].mxu1 }
 0x445   : > { %16849 = vst [vmem:[#allocation5_spill] sm:$0xff] %v16361_v63  ;;  %v16363_v24 = vpop.f32.mrb[47].mxu1  ;;  %v11459_v63 = vld [vmem:[%s14537_s25 + $0x4b2] sm:$0xff] }
 0x446   : > { %16850 = vst [vmem:[#allocation6_spill] sm:$0xff] %v16363_v24  ;;  %v10674_v24 = vld [vmem:[%s14537_s25 + $0x401] sm:$0xff] }
 0x447   : > { %12868 = vmatmul.mubr.msk.bf16.gmra.mrb[88].mxu1 %vm559_vm1, %v4339_v11  ;;  %v8590_v11 = vpack.c.bf16 %v11442_v29, %v11441_v52  ;;  %v10676_v52 = vld [vmem:[%s14537_s25 + $0x419] sm:$0xff] }
 0x448   : > { %13388 = vmatmul.mubr.msk.bf16.gmra.mrb[88].mxu0 %vm559_vm1, %v8588_v15  ;;  %12871 = vmatprep.mubr.msk.bf16.mxu1 %vm559_vm1, %v4340_v19  ;;  %v4342_v15 = vpack.c.bf16 %v10672_v8, %v10671_v62  ;;  %v11447_v62 = vld [vmem:[%s14537_s25 + $0x43a] sm:$0xff]  ;;  %v11448_v8 = vld [vmem:[%s14537_s25 + $0x442] sm:$0xff] }
 0x449   : > { %13391 = vmatprep.mubr.msk.bf16.mxu0 %vm559_vm1, %v8589_v31  ;;  %v8591_v31 = vpack.c.bf16 %v11444_v47, %v11443_v10 }
 0x44a   : > { %v16375_v39 = vpop.f32.mrb[48].mxu1 }
 0x44b   : > { %16851 = vst [vmem:[#allocation7_spill] sm:$0xff] %v16375_v39  ;;  %v16379_v1 = vpop.f32.mrb[49].mxu1  ;;  %v10673_v39 = vld [vmem:[%s14537_s25 + $0x3f9] sm:$0xff] }
 0x44c   : > { %16852 = vst [vmem:[#allocation8_spill] sm:$0xff] %v16379_v1  ;;  %v16381_v7 = vpop.f32.mrb[50].mxu1  ;;  %v11445_v1 = vld [vmem:[%s14537_s25 + $0x422] sm:$0xff]  ;;  %v4343_v47 = vpack.c.bf16 %v10674_v24, %v10673_v39  ;;  %v11450_v24 = vld [vmem:[%s14537_s25 + $0x452] sm:$0xff] }
 0x44d   : > { %16853 = vst [vmem:[#allocation9_spill] sm:$0xff] %v16381_v7  ;;  %v16383_v19 = vpop.f32.mrb[51].mxu1  ;;  %v10678_v7 = vld [vmem:[%s14537_s25 + $0x429] sm:$0xff]  ;;  %v10679_v39 = vld [vmem:[%s14537_s25 + $0x439] sm:$0xff] }
 0x44e   : > { %16854 = vst [vmem:[#allocation10_spill] sm:$0xff] %v16383_v19  ;;  %v8593_v19 = vpack.c.bf16 %v11448_v8, %v11447_v62 }
 0x44f   : > { %12872 = vmatmul.mubr.msk.bf16.gmra.mrb[92].mxu1 %vm559_vm1, %v4341_v45 }
 0x450   : > { %13392 = vmatmul.mubr.msk.bf16.gmra.mrb[92].mxu0 %vm559_vm1, %v8590_v11  ;;  %12875 = vmatprep.mubr.msk.bf16.mxu1 %vm559_vm1, %v4342_v15  ;;  %v8592_v11 = vpack.c.bf16 %v11446_v36, %v11445_v1  ;;  %v4344_v15 = vpack.c.bf16 %v10676_v52, %v10675_v16  ;;  %v10680_v1 = vld [vmem:[%s14537_s25 + $0x441] sm:$0xff]  ;;  %v11452_v52 = vld [vmem:[%s14537_s25 + $0x46a] sm:$0xff] }
 0x451   : > { %13395 = vmatprep.mubr.msk.bf16.mxu0 %vm559_vm1, %v8591_v31  ;;  %v11451_v16 = vld [vmem:[%s14537_s25 + $0x462] sm:$0xff] }
 0x452   : > { %v16395_v29 = vpop.f32.mrb[52].mxu1 }
 0x453   : > { %16855 = vst [vmem:[#allocation11_spill] sm:$0xff] %v16395_v29  ;;  %v16399_v10 = vpop.f32.mrb[53].mxu1  ;;  %v10677_v29 = vld [vmem:[%s14537_s25 + $0x421] sm:$0xff] }
 0x454   : > { %16856 = vst [vmem:[#allocation12_spill] sm:$0xff] %v16399_v10  ;;  %v16401_v45 = vpop.f32.mrb[54].mxu1  ;;  %v11449_v10 = vld [vmem:[%s14537_s25 + $0x44a] sm:$0xff]  ;;  %v4345_v8 = vpack.c.bf16 %v10678_v7, %v10677_v29  ;;  %v11454_v7 = vld [vmem:[%s14537_s25 + $0x47a] sm:$0xff] }
 0x455   : > { %16857 = vst [vmem:[#allocation13_spill] sm:$0xff] %v16401_v45  ;;  %v16403_v31 = vpop.f32.mrb[55].mxu1  ;;  %v10682_v45 = vld [vmem:[%s14537_s25 + $0x451] sm:$0xff]  ;;  %v10683_v29 = vld [vmem:[%s14537_s25 + $0x461] sm:$0xff] }
 0x456   : > { %16858 = vst [vmem:[#allocation14_spill] sm:$0xff] %v16403_v31  ;;  %v8595_v31 = vpack.c.bf16 %v11452_v52, %v11451_v16 }
 0x457   : > { %12876 = vmatmul.mubr.msk.bf16.gmra.mrb[96].mxu1 %vm559_vm1, %v4343_v47 }
 0x458   : > { %13396 = vmatmul.mubr.msk.bf16.gmra.mrb[96].mxu0 %vm559_vm1, %v8592_v11  ;;  %12879 = vmatprep.mubr.msk.bf16.mxu1 %vm559_vm1, %v4344_v15  ;;  %v4346_v11 = vpack.c.bf16 %v10680_v1, %v10679_v39  ;;  %v11455_v39 = vld [vmem:[%s14537_s25 + $0x48a] sm:$0xff]  ;;  %v11456_v1 = vld [vmem:[%s14537_s25 + $0x492] sm:$0xff] }
 0x459   : > { %13399 = vmatprep.mubr.msk.bf16.mxu0 %vm559_vm1, %v8593_v19  ;;  %v8594_v19 = vpack.c.bf16 %v11450_v24, %v11449_v10  ;;  %v10684_v10 = vld [vmem:[%s14537_s25 + $0x469] sm:$0xff] }
 0x45a   : > { %v16415_v36 = vpop.f32.mrb[56].mxu1 }
 0x45b   : > { %16859 = vst [vmem:[#allocation15_spill] sm:$0xff] %v16415_v36  ;;  %v16419_v62 = vpop.f32.mrb[57].mxu1  ;;  %v10681_v36 = vld [vmem:[%s14537_s25 + $0x449] sm:$0xff] }
 0x45c   : > { %16860 = vst [vmem:[#allocation16_spill] sm:$0xff] %v16419_v62  ;;  %v16421_v47 = vpop.f32.mrb[58].mxu1  ;;  %v11453_v62 = vld [vmem:[%s14537_s25 + $0x472] sm:$0xff]  ;;  %v4347_v52 = vpack.c.bf16 %v10682_v45, %v10681_v36  ;;  %v11458_v45 = vld [vmem:[%s14537_s25 + $0x4a2] sm:$0xff] }
 0x45d   : > { %16861 = vst [vmem:[#allocation17_spill] sm:$0xff] %v16421_v47  ;;  %v16423_v15 = vpop.f32.mrb[59].mxu1  ;;  %v10686_v47 = vld [vmem:[%s14537_s25 + $0x479] sm:$0xff]  ;;  %v10687_v36 = vld [vmem:[%s14537_s25 + $0x489] sm:$0xff] }
 0x45e   : > { %16862 = vst [vmem:[#allocation18_spill] sm:$0xff] %v16423_v15  ;;  %v8597_v15 = vpack.c.bf16 %v11456_v1, %v11455_v39 }
 0x45f   : > { %12880 = vmatmul.mubr.msk.bf16.gmra.mrb[100].mxu1 %vm559_vm1, %v4345_v8 }
 0x460   : > { %13400 = vmatmul.mubr.msk.bf16.gmra.mrb[100].mxu0 %vm559_vm1, %v8594_v19  ;;  %12883 = vmatprep.mubr.msk.bf16.mxu1 %vm559_vm1, %v4346_v11  ;;  %v4348_v19 = vpack.c.bf16 %v10684_v10, %v10683_v29 }
 0x461   : > { %13403 = vmatprep.mubr.msk.bf16.mxu0 %vm559_vm1, %v8595_v31  ;;  %v8596_v31 = vpack.c.bf16 %v11454_v7, %v11453_v62  ;;  %v11460_v62 = vld [vmem:[%s14537_s25 + $0x4ba] sm:$0xff] }
 0x462   : > { %v16435_v24 = vpop.f32.mrb[60].mxu1 }
 0x463   : > { %16863 = vst [vmem:[#allocation19_spill] sm:$0xff] %v16435_v24  ;;  %v16439_v16 = vpop.f32.mrb[61].mxu1  ;;  %v10685_v24 = vld [vmem:[%s14537_s25 + $0x471] sm:$0xff] }
 0x464   : > { %16864 = vst [vmem:[#allocation20_spill] sm:$0xff] %v16439_v16  ;;  %v16441_v8 = vpop.f32.mrb[62].mxu1  ;;  %v11457_v16 = vld [vmem:[%s14537_s25 + $0x49a] sm:$0xff]  ;;  %v4349_v29 = vpack.c.bf16 %v10686_v47, %v10685_v24 }
 0x465   : > { %16865 = vst [vmem:[#allocation21_spill] sm:$0xff] %v16441_v8  ;;  %v16443_v11 = vpop.f32.mrb[63].mxu1  ;;  %v10688_v8 = vld [vmem:[%s14537_s25 + $0x491] sm:$0xff]  ;;  %v8598_v1 = vpack.c.bf16 %v11458_v45, %v11457_v16  ;;  %v10690_v24 = vld [vmem:[%s14537_s25 + $0x4a1] sm:$0xff] }
 0x466   : > { %16866 = vst [vmem:[#allocation22_spill] sm:$0xff] %v16443_v11  ;;  %v10691_v16 = vld [vmem:[%s14537_s25 + $0x4b1] sm:$0xff]  ;;  %v11463_v45 = vld [vmem:[%s14537_s25 + $0x4da] sm:$0xff] }
 0x467   : > { %12884 = vmatmul.mubr.msk.bf16.gmra.mrb[104].mxu1 %vm559_vm1, %v4347_v52  ;;  %v4350_v52 = vpack.c.bf16 %v10688_v8, %v10687_v36  ;;  %v10692_v8 = vld [vmem:[%s14537_s25 + $0x4b9] sm:$0xff]  ;;  %v11464_v36 = vld [vmem:[%s14537_s25 + $0x4e2] sm:$0xff] }
 0x468   : > { %13404 = vmatmul.mubr.msk.bf16.gmra.mrb[104].mxu0 %vm559_vm1, %v8596_v31  ;;  %12887 = vmatprep.mubr.msk.bf16.mxu1 %vm559_vm1, %v4348_v19  ;;  %v8599_v19 = vpack.c.bf16 %v11460_v62, %v11459_v63  ;;  %v11461_v63 = vld [vmem:[%s14537_s25 + $0x4c2] sm:$0xff]  ;;  %v8601_v5 = vpack.c.bf16 %v11464_v36, %v11463_v45 }
 0x469   : > { %13407 = vmatprep.mubr.msk.bf16.mxu0 %vm559_vm1, %v8597_v15 }
 0x46b   : > { %v13301_v7 = vpop.f32.mrb[0].mxu0 }
 0x46c   : > { %v13429_v10 = vadd.f32 %v13301_v7, %v16135_v56  ;;  %v8838_v39 = vpop.f32.mrb[1].mxu0  ;;  %v16463_v56 = vld [vmem:[%s16844_s2] ss:$0 sm:$0xff] }
 0x46d   : > { %v13430_v31 = vadd.f32 %v8838_v39, %v16139_v51  ;;  %v13302_v15 = vpop.f32.mrb[2].mxu0  ;;  %v10689_v51 = vld [vmem:[%s14537_s25 + $0x499] sm:$0xff] }
 0x46e   : > { %v13431_v11 = vadd.f32 %v13302_v15, %v16141_v58  ;;  %v8841_v53 = vpop.f32.mrb[3].mxu0  ;;  %v11462_v58 = vld [vmem:[%s14537_s25 + $0x4ca] sm:$0xff]  ;;  %v4351_v7 = vpack.c.bf16 %v10690_v24, %v10689_v51 }
 0x46f   : > { %v13432_v47 = vadd.f32 %v8841_v53, %v16143_v25  ;;  %12888 = vmatmul.mubr.msk.bf16.gmra.mrb[108].mxu1 %vm559_vm1, %v4349_v29  ;;  %v9486_v25 = vadd.f32 %v13429_v10, %v16463_v56  ;;  %v8600_v39 = vpack.c.bf16 %v11462_v58, %v11461_v63 }
 0x470   : > { %13408 = vmatmul.mubr.msk.bf16.gmra.mrb[108].mxu0 %vm559_vm1, %v8598_v1  ;;  %12891 = vmatprep.mubr.msk.bf16.mxu1 %vm559_vm1, %v4350_v52  ;;  %v4352_v1 = vpack.c.bf16 %v10692_v8, %v10691_v16  ;;  %v9484_v52 = vadd.f32 %v13430_v31, %v16463_v56  ;;  %v9487_v50 = vadd.f32 %v13431_v11, %v16463_v56  ;;  %v10694_v31 = vld [vmem:[%s14537_s25 + $0x4c9] sm:$0xff] }
 0x471   : > { %13411 = vmatprep.mubr.msk.bf16.mxu0 %vm559_vm1, %v8599_v19  ;;  %v9485_v24 = vadd.f32 %v13432_v47, %v16463_v56  ;;  %v9614_v11 = vmax.f32 %v9486_v25, 0.0  ;;  %v11466_v47 = vld [vmem:[%s14537_s25 + $0x4f2] sm:$0xff] }
 0x472   : > { %v9615_v25 = vmax.f32 %v9487_v50, 0.0 }
 0x473   : > { %v13305_v62 = vpop.f32.mrb[4].mxu0 }
 0x474   : > { %v13433_v53 = vadd.f32 %v13305_v62, %v16155_v6  ;;  %v8854_v29 = vpop.f32.mrb[5].mxu0  ;;  %v10695_v62 = vld [vmem:[%s14537_s25 + $0x4d9] sm:$0xff] }
 0x475   : > { %v13434_v15 = vadd.f32 %v8854_v29, %v16159_v14  ;;  %v13306_v19 = vpop.f32.mrb[6].mxu0  ;;  %v10693_v14 = vld [vmem:[%s14537_s25 + $0x4c1] sm:$0xff] }
 0x476   : > { %v9490_v51 = vadd.f32 %v13433_v53, %v16463_v56  ;;  %v13435_v6 = vadd.f32 %v13306_v19, %v16161_v9  ;;  %v8857_v10 = vpop.f32.mrb[7].mxu0  ;;  %v11465_v9 = vld [vmem:[%s14537_s25 + $0x4ea] sm:$0xff]  ;;  %v11467_v19 = vld [vmem:[%s14537_s25 + $0x502] sm:$0xff] }
 0x477   : > { %v9488_v63 = vadd.f32 %v13434_v15, %v16463_v56  ;;  %v13436_v58 = vadd.f32 %v8857_v10, %v16163_v26  ;;  %12892 = vmatmul.mubr.msk.bf16.gmra.mrb[112].mxu1 %vm559_vm1, %v4351_v7  ;;  %v9612_v26 = vmax.f32 %v9484_v52, 0.0  ;;  %v10696_v7 = vld [vmem:[%s14537_s25 + $0x4e1] sm:$0xff]  ;;  %v4353_v15 = vpack.c.bf16 %v10694_v31, %v10693_v14 }
 0x478   : > { %v9618_v16 = vmax.f32 %v9490_v51, 0.0  ;;  %v9491_v8 = vadd.f32 %v13435_v6, %v16463_v56  ;;  %13412 = vmatmul.mubr.msk.bf16.gmra.mrb[112].mxu0 %vm559_vm1, %v8600_v39  ;;  %12895 = vmatprep.mubr.msk.bf16.mxu1 %vm559_vm1, %v4352_v1  ;;  %v11468_v39 = vld [vmem:[%s14537_s25 + $0x50a] sm:$0xff]  ;;  %v9613_v51 = vmax.f32 %v9485_v24, 0.0  ;;  %v4354_v14 = vpack.c.bf16 %v10696_v7, %v10695_v62  ;;  %v11470_v62 = vld [vmem:[%s14537_s25 + $0x51a] sm:$0xff] }
 0x479   : > { %v9616_v45 = vmax.f32 %v9488_v63, 0.0  ;;  %v9489_v36 = vadd.f32 %v13436_v58, %v16463_v56  ;;  %13415 = vmatprep.mubr.msk.bf16.mxu0 %vm559_vm1, %v8601_v5  ;;  %v8602_v5 = vpack.c.bf16 %v11466_v47, %v11465_v9  ;;  %v10699_v7 = vld [vmem:[%s14537_s25 + $0x501] sm:$0xff] }
 0x47a   : > { %v9742_v53 = vmax.f32 %v9614_v11, %v9618_v16  ;;  %v9619_v29 = vmax.f32 %v9491_v8, 0.0  ;;  %v8603_v8 = vpack.c.bf16 %v11468_v39, %v11467_v19 }
 0x47b   : > { %v9740_v1 = vmax.f32 %v9612_v26, %v9616_v45  ;;  %v9617_v52 = vmax.f32 %v9489_v36, 0.0  ;;  %v13309_v6 = vpop.f32.mrb[8].mxu0  ;;  %v10697_v45 = vld [vmem:[%s14537_s25 + $0x4e9] sm:$0xff]  ;;  %v10698_v36 = vld [vmem:[%s14537_s25 + $0x4f1] sm:$0xff] }
 0x47c   : > { %v11610_v10 = vpack.c.bf16 %v9742_v53, %v9742_v53  ;;  %v9743_v63 = vmax.f32 %v9615_v25, %v9619_v29  ;;  %v13437_v50 = vadd.f32 %v13309_v6, %v16175_v20  ;;  %v8870_v58 = vpop.f32.mrb[9].mxu0  ;;  %v10700_v25 = vld [vmem:[%s14537_s25 + $0x509] sm:$0xff] }
 0x47d   : > { %v11608_v31 = vpack.c.bf16 %v9740_v1, %v9740_v1  ;;  %v9741_v24 = vmax.f32 %v9613_v51, %v9617_v52  ;;  %v13438_v11 = vadd.f32 %v8870_v58, %v16179_v21  ;;  %v13310_v16 = vpop.f32.mrb[10].mxu0  ;;  %v11471_v53 = vld [vmem:[%s14537_s25 + $0x52a] sm:$0xff]  ;;  %v4356_v52 = vpack.c.bf16 %v10700_v25, %v10699_v7 }
 0x47e   : > { %10063 = vst.msk [vmem:[%s16506_s17 + $0x8] sm:$0xf] %vm10060_vm2, %v11610_v10  ;;  %v11611_v9 = vpack.c.bf16 %v9743_v63, %v9743_v63  ;;  %v13439_v20 = vadd.f32 %v13310_v16, %v16181_v28  ;;  %v8873_v47 = vpop.f32.mrb[11].mxu0  ;;  %v11469_v28 = vld [vmem:[%s14537_s25 + $0x512] sm:$0xff]  ;;  %v9494_v19 = vadd.f32 %v13437_v50, %v16463_v56 }
 0x47f   : > { %10061 = vst.msk [vmem:[%s16506_s17] sm:$0xf] %vm10060_vm2, %v11608_v31  ;;  %v11609_v26 = vpack.c.bf16 %v9741_v24, %v9741_v24  ;;  %v13440_v21 = vadd.f32 %v8873_v47, %v16183_v34  ;;  %12896 = vmatmul.mubr.msk.bf16.gmra.mrb[116].mxu1 %vm559_vm1, %v4353_v15  ;;  %v11472_v34 = vld [vmem:[%s14537_s25 + $0x532] sm:$0xff]  ;;  %v4355_v15 = vpack.c.bf16 %v10698_v36, %v10697_v45 }
 0x480   : > { %10064 = vst.msk [vmem:[%s16506_s17 + $0xc] sm:$0xf] %vm10060_vm2, %v11611_v9  ;;  %13416 = vmatmul.mubr.msk.bf16.gmra.mrb[116].mxu0 %vm559_vm1, %v8602_v5  ;;  %12899 = vmatprep.mubr.msk.bf16.mxu1 %vm559_vm1, %v4354_v14  ;;  %v8604_v1 = vpack.c.bf16 %v11470_v62, %v11469_v28  ;;  %v9492_v6 = vadd.f32 %v13438_v11, %v16463_v56  ;;  %v10702_v9 = vld [vmem:[%s14537_s25 + $0x519] sm:$0xff] }
 0x481   : > { %10062 = vst.msk [vmem:[%s16506_s17 + $0x4] sm:$0xf] %vm10060_vm2, %v11609_v26  ;;  %13419 = vmatprep.mubr.msk.bf16.mxu0 %vm559_vm1, %v8603_v8  ;;  %v8605_v63 = vpack.c.bf16 %v11472_v34, %v11471_v53  ;;  %v9495_v58 = vadd.f32 %v13439_v20, %v16463_v56 }
 0x482   : > { %v9620_v20 = vmax.f32 %v9492_v6, 0.0 }
 0x483   : > { %v13313_v29 = vpop.f32.mrb[12].mxu0  ;;  %v9623_v45 = vmax.f32 %v9495_v58, 0.0 }
 0x484   : > { %v13441_v39 = vadd.f32 %v13313_v29, %v16195_v48  ;;  %v8886_v51 = vpop.f32.mrb[13].mxu0  ;;  %v9493_v48 = vadd.f32 %v13440_v21, %v16463_v56  ;;  %v11473_v21 = vld [vmem:[%s14537_s25 + $0x53a] sm:$0xff] }
 0x485   : > { %v13442_v5 = vadd.f32 %v8886_v51, %v16199_v49  ;;  %v13314_v10 = vpop.f32.mrb[14].mxu0  ;;  %v9622_v49 = vmax.f32 %v9494_v19, 0.0 }
 0x486   : > { %v9498_v14 = vadd.f32 %v13441_v39, %v16463_v56  ;;  %v13443_v31 = vadd.f32 %v13314_v10, %v16201_v59  ;;  %v8889_v50 = vpop.f32.mrb[15].mxu0  ;;  %v10701_v59 = vld [vmem:[%s14537_s25 + $0x511] sm:$0xff]  ;;  %v9621_v62 = vmax.f32 %v9493_v48, 0.0 }
 0x487   : > { %v9496_v24 = vadd.f32 %v13442_v5, %v16463_v56  ;;  %v13444_v11 = vadd.f32 %v8889_v50, %v16203_v55  ;;  %12900 = vmatmul.mubr.msk.bf16.gmra.mrb[120].mxu1 %vm559_vm1, %v4355_v15  ;;  %v11474_v55 = vld [vmem:[%s14537_s25 + $0x542] sm:$0xff]  ;;  %v4357_v34 = vpack.c.bf16 %v10702_v9, %v10701_v59 }
 0x488   : > { %v9626_v16 = vmax.f32 %v9498_v14, 0.0  ;;  %v9499_v8 = vadd.f32 %v13443_v31, %v16463_v56  ;;  %13420 = vmatmul.mubr.msk.bf16.gmra.mrb[120].mxu0 %vm559_vm1, %v8604_v1  ;;  %12903 = vmatprep.mubr.msk.bf16.mxu1 %vm559_vm1, %v4356_v52  ;;  %v8606_v51 = vpack.c.bf16 %v11474_v55, %v11473_v21 }
 0x489   : > { %v9624_v47 = vmax.f32 %v9496_v24, 0.0  ;;  %v9497_v26 = vadd.f32 %v13444_v11, %v16463_v56  ;;  %13423 = vmatprep.mubr.msk.bf16.mxu0 %vm559_vm1, %v8605_v63 }
 0x48a   : > { %v9746_v36 = vmax.f32 %v9622_v49, %v9626_v16  ;;  %v9627_v28 = vmax.f32 %v9499_v8, 0.0 }
 0x48b   : > { %v9744_v7 = vmax.f32 %v9620_v20, %v9624_v47  ;;  %v9625_v25 = vmax.f32 %v9497_v26, 0.0  ;;  %v13317_v53 = vpop.f32.mrb[16].mxu0 }
 0x48c   : > { %v11614_v29 = vpack.c.bf16 %v9746_v36, %v9746_v36  ;;  %v9747_v15 = vmax.f32 %v9623_v45, %v9627_v28  ;;  %v13445_v19 = vadd.f32 %v13317_v53, %v16215_v61  ;;  %v8902_v39 = vpop.f32.mrb[17].mxu0 }
 0x48d   : > { %v11612_v1 = vpack.c.bf16 %v9744_v7, %v9744_v7  ;;  %v9745_v52 = vmax.f32 %v9621_v62, %v9625_v25  ;;  %v13446_v6 = vadd.f32 %v8902_v39, %v16219_v54  ;;  %v13318_v5 = vpop.f32.mrb[18].mxu0 }
 0x48e   : > { %10067 = vst.msk [vmem:[%s16506_s17 + $0x18] sm:$0xf] %vm10060_vm2, %v11614_v29  ;;  %v11615_v10 = vpack.c.bf16 %v9747_v15, %v9747_v15  ;;  %v13447_v63 = vadd.f32 %v13318_v5, %v16221_v3  ;;  %v8905_v58 = vpop.f32.mrb[19].mxu0  ;;  %v9502_v54 = vadd.f32 %v13445_v19, %v16463_v56 }
 0x48f   : > { %10065 = vst.msk [vmem:[%s16506_s17 + $0x10] sm:$0xf] %vm10060_vm2, %v11612_v1  ;;  %v11613_v14 = vpack.c.bf16 %v9745_v52, %v9745_v52  ;;  %v13448_v31 = vadd.f32 %v8905_v58, %v16223_v23  ;;  %12904 = vmatmul.mubr.msk.bf16.gmra.mrb[124].mxu1 %vm559_vm1, %v4357_v34  ;;  %v9500_v48 = vadd.f32 %v13446_v6, %v16463_v56 }
 0x490   : > { %10068 = vst.msk [vmem:[%s16506_s17 + $0x1c] sm:$0xf] %vm10060_vm2, %v11615_v10  ;;  %13424 = vmatmul.mubr.msk.bf16.gmra.mrb[124].mxu0 %vm559_vm1, %v8606_v51  ;;  %v9503_v23 = vadd.f32 %v13447_v63, %v16463_v56 }
 0x491   : > { %10066 = vst.msk [vmem:[%s16506_s17 + $0x14] sm:$0xf] %vm10060_vm2, %v11613_v14  ;;  %v9501_v59 = vadd.f32 %v13448_v31, %v16463_v56  ;;  %v9628_v21 = vmax.f32 %v9500_v48, 0.0 }
 0x492   : > { %v9631_v45 = vmax.f32 %v9503_v23, 0.0 }
 0x493   : > { %v13321_v61 = vpop.f32.mrb[20].mxu0 }
 0x494   : > { %v13449_v50 = vadd.f32 %v13321_v61, %v16235_v60  ;;  %v8918_v3 = vpop.f32.mrb[21].mxu0  ;;  %v9630_v60 = vmax.f32 %v9502_v54, 0.0 }
 0x495   : > { %v13450_v24 = vadd.f32 %v8918_v3, %v16239_v30  ;;  %v13322_v11 = vpop.f32.mrb[22].mxu0 }
 0x496   : > { %v9506_v49 = vadd.f32 %v13449_v50, %v16463_v56  ;;  %v13451_v16 = vadd.f32 %v13322_v11, %v16241_v18  ;;  %v8921_v8 = vpop.f32.mrb[23].mxu0  ;;  %v9629_v18 = vmax.f32 %v9501_v59, 0.0 }
 0x497   : > { %v9504_v9 = vadd.f32 %v13450_v24, %v16463_v56  ;;  %v13452_v20 = vadd.f32 %v8921_v8, %v16243_v17 }
 0x498   : > { %v9634_v47 = vmax.f32 %v9506_v49, 0.0  ;;  %v9507_v26 = vadd.f32 %v13451_v16, %v16463_v56 }
 0x499   : > { %v9632_v30 = vmax.f32 %v9504_v9, 0.0  ;;  %v9505_v55 = vadd.f32 %v13452_v20, %v16463_v56 }
 0x49a   : > { %v9750_v36 = vmax.f32 %v9630_v60, %v9634_v47  ;;  %v9635_v28 = vmax.f32 %v9507_v26, 0.0 }
 0x49b   : > { %v9748_v62 = vmax.f32 %v9628_v21, %v9632_v30  ;;  %v9633_v7 = vmax.f32 %v9505_v55, 0.0  ;;  %v13325_v25 = vpop.f32.mrb[24].mxu0 }
 0x49c   : > { %v11618_v53 = vpack.c.bf16 %v9750_v36, %v9750_v36  ;;  %v9751_v17 = vmax.f32 %v9631_v45, %v9635_v28  ;;  %v13453_v34 = vadd.f32 %v13325_v25, %v16255_v44  ;;  %v8934_v29 = vpop.f32.mrb[25].mxu0 }
 0x49d   : > { %v11616_v15 = vpack.c.bf16 %v9748_v62, %v9748_v62  ;;  %v9749_v19 = vmax.f32 %v9629_v18, %v9633_v7  ;;  %v13454_v39 = vadd.f32 %v8934_v29, %v16259_v43  ;;  %v13326_v51 = vpop.f32.mrb[26].mxu0 }
 0x49e   : > { %10071 = vst.msk [vmem:[%s16506_s17 + $0x28] sm:$0xf] %vm10060_vm2, %v11618_v53  ;;  %v11619_v1 = vpack.c.bf16 %v9751_v17, %v9751_v17  ;;  %v13455_v52 = vadd.f32 %v13326_v51, %v16261_v57  ;;  %v8937_v6 = vpop.f32.mrb[27].mxu0  ;;  %v9510_v63 = vadd.f32 %v13453_v34, %v16463_v56 }
 0x49f   : > { %10069 = vst.msk [vmem:[%s16506_s17 + $0x20] sm:$0xf] %vm10060_vm2, %v11616_v15  ;;  %v11617_v5 = vpack.c.bf16 %v9749_v19, %v9749_v19  ;;  %v13456_v10 = vadd.f32 %v8937_v6, %v16263_v27  ;;  %v9508_v14 = vadd.f32 %v13454_v39, %v16463_v56 }
 0x4a0   : > { %10072 = vst.msk [vmem:[%s16506_s17 + $0x2c] sm:$0xf] %vm10060_vm2, %v11619_v1  ;;  %v9511_v61 = vadd.f32 %v13455_v52, %v16463_v56 }
 0x4a1   : > { %10070 = vst.msk [vmem:[%s16506_s17 + $0x24] sm:$0xf] %vm10060_vm2, %v11617_v5  ;;  %v9509_v3 = vadd.f32 %v13456_v10, %v16463_v56  ;;  %v9636_v49 = vmax.f32 %v9508_v14, 0.0 }
 0x4a2   : > { %v9639_v8 = vmax.f32 %v9511_v61, 0.0 }
 0x4a3   : > { %v13329_v44 = vpop.f32.mrb[28].mxu0 }
 0x4a4   : > { %v13457_v43 = vadd.f32 %v13329_v44, %v16275_v0  ;;  %v8950_v58 = vpop.f32.mrb[29].mxu0  ;;  %v9638_v0 = vmax.f32 %v9510_v63, 0.0 }
 0x4a5   : > { %v13458_v57 = vadd.f32 %v8950_v58, %v16279_v2  ;;  %v13330_v31 = vpop.f32.mrb[30].mxu0 }
 0x4a6   : > { %v9514_v54 = vadd.f32 %v13457_v43, %v16463_v56  ;;  %v13459_v27 = vadd.f32 %v13330_v31, %v16281_v4  ;;  %v8953_v50 = vpop.f32.mrb[31].mxu0  ;;  %v9637_v4 = vmax.f32 %v9509_v3, 0.0 }
 0x4a7   : > { %v9512_v48 = vadd.f32 %v13458_v57, %v16463_v56  ;;  %v13460_v24 = vadd.f32 %v8953_v50, %v16283_v12 }
 0x4a8   : > { %v9642_v11 = vmax.f32 %v9514_v54, 0.0  ;;  %v9515_v23 = vadd.f32 %v13459_v27, %v16463_v56 }
 0x4a9   : > { %v9640_v2 = vmax.f32 %v9512_v48, 0.0  ;;  %v9513_v16 = vadd.f32 %v13460_v24, %v16463_v56 }
 0x4aa   : > { %v9754_v59 = vmax.f32 %v9638_v0, %v9642_v11  ;;  %v9643_v9 = vmax.f32 %v9515_v23, 0.0 }
 0x4ab   : > { %v9752_v20 = vmax.f32 %v9636_v49, %v9640_v2  ;;  %v9641_v60 = vmax.f32 %v9513_v16, 0.0  ;;  %v13333_v47 = vpop.f32.mrb[32].mxu0  ;;  %v16867_v16 = vld [vmem:[#allocation2_spill] sm:$0xff] }
 0x4ac   : > { %v11622_v26 = vpack.c.bf16 %v9754_v59, %v9754_v59  ;;  %v9755_v12 = vmax.f32 %v9639_v8, %v9643_v9  ;;  %v13461_v21 = vadd.f32 %v13333_v47, %v16295_v13  ;;  %v8966_v30 = vpop.f32.mrb[33].mxu0 }
 0x4ad   : > { %v11620_v55 = vpack.c.bf16 %v9752_v20, %v9752_v20  ;;  %v9753_v45 = vmax.f32 %v9637_v4, %v9641_v60  ;;  %v13462_v36 = vadd.f32 %v8966_v30, %v16299_v32  ;;  %v13334_v28 = vpop.f32.mrb[34].mxu0  ;;  %v16869_v60 = vld [vmem:[#allocation4_spill] sm:$0xff] }
 0x4ae   : > { %10075 = vst.msk [vmem:[%s16506_s17 + $0x38] sm:$0xf] %vm10060_vm2, %v11622_v26  ;;  %v11623_v18 = vpack.c.bf16 %v9755_v12, %v9755_v12  ;;  %v13463_v62 = vadd.f32 %v13334_v28, %v16301_v33  ;;  %v8969_v7 = vpop.f32.mrb[35].mxu0  ;;  %v9518_v17 = vadd.f32 %v13461_v21, %v16463_v56  ;;  %v16870_v21 = vld [vmem:[#allocation5_spill] sm:$0xff]  ;;  %v16871_v28 = vld [vmem:[#allocation6_spill] sm:$0xff] }
 0x4af   : > { %10073 = vst.msk [vmem:[%s16506_s17 + $0x30] sm:$0xf] %vm10060_vm2, %v11620_v55  ;;  %v11621_v25 = vpack.c.bf16 %v9753_v45, %v9753_v45  ;;  %v13464_v53 = vadd.f32 %v8969_v7, %v16303_v38  ;;  %v9516_v29 = vadd.f32 %v13462_v36, %v16463_v56 }
 0x4b0   : > { %10076 = vst.msk [vmem:[%s16506_s17 + $0x3c] sm:$0xf] %vm10060_vm2, %v11623_v18  ;;  %v9519_v19 = vadd.f32 %v13463_v62, %v16463_v56 }
 0x4b1   : > { %10074 = vst.msk [vmem:[%s16506_s17 + $0x34] sm:$0xf] %vm10060_vm2, %v11621_v25  ;;  %v9517_v1 = vadd.f32 %v13464_v53, %v16463_v56  ;;  %v9644_v44 = vmax.f32 %v9516_v29, 0.0 }
 0x4b2   : > { %v9647_v43 = vmax.f32 %v9519_v19, 0.0 }
 0x4b3   : > { %v13337_v13 = vpop.f32.mrb[36].mxu0 }
 0x4b4   : > { %v13465_v32 = vadd.f32 %v13337_v13, %v16315_v37  ;;  %v8982_v34 = vpop.f32.mrb[37].mxu0  ;;  %v9646_v37 = vmax.f32 %v9518_v17, 0.0 }
 0x4b5   : > { %v13466_v33 = vadd.f32 %v8982_v34, %v16319_v41  ;;  %v13338_v15 = vpop.f32.mrb[38].mxu0 }
 0x4b6   : > { %v9522_v39 = vadd.f32 %v13465_v32, %v16463_v56  ;;  %v13467_v38 = vadd.f32 %v13338_v15, %v16321_v22  ;;  %v8985_v51 = vpop.f32.mrb[39].mxu0  ;;  %v9645_v22 = vmax.f32 %v9517_v1, 0.0  ;;  %v16872_v1 = vld [vmem:[#allocation7_spill] sm:$0xff] }
 0x4b7   : > { %v9520_v52 = vadd.f32 %v13466_v33, %v16463_v56  ;;  %v13468_v6 = vadd.f32 %v8985_v51, %v16323_v40 }
 0x4b8   : > { %v9650_v5 = vmax.f32 %v9522_v39, 0.0  ;;  %v9523_v10 = vadd.f32 %v13467_v38, %v16463_v56 }
 0x4b9   : > { %v9648_v41 = vmax.f32 %v9520_v52, 0.0  ;;  %v9521_v63 = vadd.f32 %v13468_v6, %v16463_v56 }
 0x4ba   : > { %v9758_v58 = vmax.f32 %v9646_v37, %v9650_v5  ;;  %v9651_v14 = vmax.f32 %v9523_v10, 0.0  ;;  %v16873_v10 = vld [vmem:[#allocation8_spill] sm:$0xff] }
 0x4bb   : > { %v9756_v57 = vmax.f32 %v9644_v44, %v9648_v41  ;;  %v9649_v31 = vmax.f32 %v9521_v63, 0.0  ;;  %v13341_v61 = vpop.f32.mrb[40].mxu0 }
 0x4bc   : > { %v11626_v54 = vpack.c.bf16 %v9758_v58, %v9758_v58  ;;  %v9759_v40 = vmax.f32 %v9647_v43, %v9651_v14  ;;  %v13469_v27 = vadd.f32 %v13341_v61, %v16335_v42  ;;  %v8998_v50 = vpop.f32.mrb[41].mxu0  ;;  %v16874_v43 = vld [vmem:[#allocation9_spill] sm:$0xff] }
 0x4bd   : > { %v11624_v3 = vpack.c.bf16 %v9756_v57, %v9756_v57  ;;  %v9757_v48 = vmax.f32 %v9645_v22, %v9649_v31  ;;  %v13470_v24 = vadd.f32 %v8998_v50, %v16339_v35  ;;  %v13342_v0 = vpop.f32.mrb[42].mxu0  ;;  %v16868_v35 = vld [vmem:[#allocation3_spill] sm:$0xff]  ;;  %v16875_v57 = vld [vmem:[#allocation10_spill] sm:$0xff] }
 0x4be   : > { %10079 = vst.msk [vmem:[%s16506_s17 + $0x48] sm:$0xf] %vm10060_vm2, %v11626_v54  ;;  %v11627_v11 = vpack.c.bf16 %v9759_v40, %v9759_v40  ;;  %v13471_v23 = vadd.f32 %v13342_v0, %v16341_v46  ;;  %v9001_v49 = vpop.f32.mrb[43].mxu0  ;;  %v9526_v59 = vadd.f32 %v13469_v27, %v16463_v56  ;;  %v16876_v40 = vld [vmem:[#allocation11_spill] sm:$0xff] }
 0x4bf   : > { %10077 = vst.msk [vmem:[%s16506_s17 + $0x40] sm:$0xf] %vm10060_vm2, %v11624_v3  ;;  %v11625_v2 = vpack.c.bf16 %v9757_v48, %v9757_v48  ;;  %v13472_v8 = vadd.f32 %v9001_v49, %v16867_v16  ;;  %v9524_v20 = vadd.f32 %v13470_v24, %v16463_v56  ;;  %v16877_v48 = vld [vmem:[#allocation12_spill] sm:$0xff]  ;;  %v16878_v49 = vld [vmem:[#allocation13_spill] sm:$0xff] }
 0x4c0   : > { %10080 = vst.msk [vmem:[%s16506_s17 + $0x4c] sm:$0xf] %vm10060_vm2, %v11627_v11  ;;  %v9527_v26 = vadd.f32 %v13471_v23, %v16463_v56  ;;  %v9654_v62 = vmax.f32 %v9526_v59, 0.0  ;;  %v16879_v59 = vld [vmem:[#allocation14_spill] sm:$0xff] }
 0x4c1   : > { %10078 = vst.msk [vmem:[%s16506_s17 + $0x44] sm:$0xf] %vm10060_vm2, %v11625_v2  ;;  %v9525_v45 = vadd.f32 %v13472_v8, %v16463_v56  ;;  %v9652_v53 = vmax.f32 %v9524_v20, 0.0 }
 0x4c2   : > { %v9655_v32 = vmax.f32 %v9527_v26, 0.0 }
 0x4c3   : > { %v13345_v42 = vpop.f32.mrb[44].mxu0  ;;  %v9653_v33 = vmax.f32 %v9525_v45, 0.0 }
 0x4c4   : > { %v13473_v9 = vadd.f32 %v13345_v42, %v16868_v35  ;;  %v9014_v4 = vpop.f32.mrb[45].mxu0 }
 0x4c5   : > { %v13474_v46 = vadd.f32 %v9014_v4, %v16869_v60  ;;  %v13346_v47 = vpop.f32.mrb[46].mxu0 }
 0x4c6   : > { %v9530_v12 = vadd.f32 %v13473_v9, %v16463_v56  ;;  %v13475_v30 = vadd.f32 %v13346_v47, %v16870_v21  ;;  %v9017_v55 = vpop.f32.mrb[47].mxu0 }
 0x4c7   : > { %v9528_v36 = vadd.f32 %v13474_v46, %v16463_v56  ;;  %v13476_v18 = vadd.f32 %v9017_v55, %v16871_v28 }
 0x4c8   : > { %v9658_v7 = vmax.f32 %v9530_v12, 0.0  ;;  %v9531_v25 = vadd.f32 %v13475_v30, %v16463_v56 }
 0x4c9   : > { %v9656_v13 = vmax.f32 %v9528_v36, 0.0  ;;  %v9529_v17 = vadd.f32 %v13476_v18, %v16463_v56 }
 0x4ca   : > { %v9762_v34 = vmax.f32 %v9654_v62, %v9658_v7  ;;  %v9659_v29 = vmax.f32 %v9531_v25, 0.0  ;;  %v16880_v62 = vld [vmem:[#allocation15_spill] sm:$0xff] }
 0x4cb   : > { %v9760_v15 = vmax.f32 %v9652_v53, %v9656_v13  ;;  %v9657_v19 = vmax.f32 %v9529_v17, 0.0  ;;  %v13349_v39 = vpop.f32.mrb[48].mxu0  ;;  %v16881_v17 = vld [vmem:[#allocation16_spill] sm:$0xff] }
 0x4cc   : > { %v11630_v38 = vpack.c.bf16 %v9762_v34, %v9762_v34  ;;  %v9763_v51 = vmax.f32 %v9655_v32, %v9659_v29  ;;  %v13477_v52 = vadd.f32 %v13349_v39, %v16872_v1  ;;  %v9030_v6 = vpop.f32.mrb[49].mxu0 }
 0x4cd   : > { %v11628_v37 = vpack.c.bf16 %v9760_v15, %v9760_v15  ;;  %v9761_v5 = vmax.f32 %v9653_v33, %v9657_v19  ;;  %v13478_v44 = vadd.f32 %v9030_v6, %v16873_v10  ;;  %v13350_v41 = vpop.f32.mrb[50].mxu0  ;;  %v16882_v33 = vld [vmem:[#allocation17_spill] sm:$0xff]  ;;  %v16884_v6 = vld [vmem:[#allocation19_spill] sm:$0xff] }
 0x4ce   : > { %10083 = vst.msk [vmem:[%s16506_s17 + $0x58] sm:$0xf] %vm10060_vm2, %v11630_v38  ;;  %v11631_v63 = vpack.c.bf16 %v9763_v51, %v9763_v51  ;;  %v13479_v58 = vadd.f32 %v13350_v41, %v16874_v43  ;;  %v9033_v14 = vpop.f32.mrb[51].mxu0  ;;  %v9534_v54 = vadd.f32 %v13477_v52, %v16463_v56  ;;  %v16883_v38 = vld [vmem:[#allocation18_spill] sm:$0xff] }
 0x4cf   : > { %10081 = vst.msk [vmem:[%s16506_s17 + $0x50] sm:$0xf] %vm10060_vm2, %v11628_v37  ;;  %v11629_v22 = vpack.c.bf16 %v9761_v5, %v9761_v5  ;;  %v13480_v31 = vadd.f32 %v9033_v14, %v16875_v57  ;;  %v9532_v3 = vadd.f32 %v13478_v44, %v16463_v56  ;;  %v16885_v44 = vld [vmem:[#allocation20_spill] sm:$0xff]  ;;  %v16886_v14 = vld [vmem:[#allocation21_spill] sm:$0xff] }
 0x4d0   : > { %10084 = vst.msk [vmem:[%s16506_s17 + $0x5c] sm:$0xf] %vm10060_vm2, %v11631_v63  ;;  %v9535_v11 = vadd.f32 %v13479_v58, %v16463_v56  ;;  %v9662_v9 = vmax.f32 %v9534_v54, 0.0  ;;  %v16887_v54 = vld [vmem:[#allocation22_spill] sm:$0xff] }
 0x4d1   : > { %10082 = vst.msk [vmem:[%s16506_s17 + $0x54] sm:$0xf] %vm10060_vm2, %v11629_v22  ;;  %v9533_v8 = vadd.f32 %v13480_v31, %v16463_v56  ;;  %v9660_v60 = vmax.f32 %v9532_v3, 0.0 }
 0x4d2   : > { %v9663_v26 = vmax.f32 %v9535_v11, 0.0 }
 0x4d3   : > { %v13353_v61 = vpop.f32.mrb[52].mxu0  ;;  %v9661_v30 = vmax.f32 %v9533_v8, 0.0 }
 0x4d4   : > { %v13481_v27 = vadd.f32 %v13353_v61, %v16876_v40  ;;  %v9046_v50 = vpop.f32.mrb[53].mxu0 }
 0x4d5   : > { %v13482_v24 = vadd.f32 %v9046_v50, %v16877_v48  ;;  %v13354_v0 = vpop.f32.mrb[54].mxu0 }
 0x4d6   : > { %v9538_v23 = vadd.f32 %v13481_v27, %v16463_v56  ;;  %v13483_v2 = vadd.f32 %v13354_v0, %v16878_v49  ;;  %v9049_v16 = vpop.f32.mrb[55].mxu0 }
 0x4d7   : > { %v9536_v42 = vadd.f32 %v13482_v24, %v16463_v56  ;;  %v13484_v35 = vadd.f32 %v9049_v16, %v16879_v59 }
 0x4d8   : > { %v9666_v4 = vmax.f32 %v9538_v23, 0.0  ;;  %v9539_v20 = vadd.f32 %v13483_v2, %v16463_v56 }
 0x4d9   : > { %v9664_v46 = vmax.f32 %v9536_v42, 0.0  ;;  %v9537_v47 = vadd.f32 %v13484_v35, %v16463_v56 }
 0x4da   : > { %v9766_v12 = vmax.f32 %v9662_v9, %v9666_v4  ;;  %v9667_v21 = vmax.f32 %v9539_v20, 0.0 }
 0x4db   : > { %v9764_v55 = vmax.f32 %v9660_v60, %v9664_v46  ;;  %v9665_v45 = vmax.f32 %v9537_v47, 0.0  ;;  %v13357_v36 = vpop.f32.mrb[56].mxu0 }
 0x4dc   : > { %v11634_v28 = vpack.c.bf16 %v9766_v12, %v9766_v12  ;;  %v9767_v18 = vmax.f32 %v9663_v26, %v9667_v21  ;;  %v13485_v7 = vadd.f32 %v13357_v36, %v16880_v62  ;;  %v9062_v25 = vpop.f32.mrb[57].mxu0 }
 0x4dd   : > { %v11632_v53 = vpack.c.bf16 %v9764_v55, %v9764_v55  ;;  %v9765_v13 = vmax.f32 %v9661_v30, %v9665_v45  ;;  %v13486_v32 = vadd.f32 %v9062_v25, %v16881_v17  ;;  %v13358_v34 = vpop.f32.mrb[58].mxu0 }
 0x4de   : > { %10087 = vst.msk [vmem:[%s16506_s17 + $0x68] sm:$0xf] %vm10060_vm2, %v11634_v28  ;;  %v11635_v29 = vpack.c.bf16 %v9767_v18, %v9767_v18  ;;  %v13487_v15 = vadd.f32 %v13358_v34, %v16882_v33  ;;  %v9065_v19 = vpop.f32.mrb[59].mxu0  ;;  %v9542_v52 = vadd.f32 %v13485_v7, %v16463_v56 }
 0x4df   : > { %10085 = vst.msk [vmem:[%s16506_s17 + $0x60] sm:$0xf] %vm10060_vm2, %v11632_v53  ;;  %v11633_v39 = vpack.c.bf16 %v9765_v13, %v9765_v13  ;;  %v13488_v51 = vadd.f32 %v9065_v19, %v16883_v38  ;;  %v9540_v10 = vadd.f32 %v13486_v32, %v16463_v56 }
 0x4e0   : > { %10088 = vst.msk [vmem:[%s16506_s17 + $0x6c] sm:$0xf] %vm10060_vm2, %v11635_v29  ;;  %v9543_v43 = vadd.f32 %v13487_v15, %v16463_v56  ;;  %v9670_v27 = vmax.f32 %v9542_v52, 0.0 }
 0x4e1   : > { %10086 = vst.msk [vmem:[%s16506_s17 + $0x64] sm:$0xf] %vm10060_vm2, %v11633_v39  ;;  %v9541_v31 = vadd.f32 %v13488_v51, %v16463_v56  ;;  %v9668_v48 = vmax.f32 %v9540_v10, 0.0 }
 0x4e2   : > { %v9671_v11 = vmax.f32 %v9543_v43, 0.0 }
 0x4e3   : > { %v13361_v1 = vpop.f32.mrb[60].mxu0  ;;  %v9669_v16 = vmax.f32 %v9541_v31, 0.0 }
 0x4e4   : > { %v13489_v37 = vadd.f32 %v13361_v1, %v16884_v6  ;;  %v9078_v5 = vpop.f32.mrb[61].mxu0 }
 0x4e5   : > { %v13490_v41 = vadd.f32 %v9078_v5, %v16885_v44  ;;  %v13362_v63 = vpop.f32.mrb[62].mxu0 }
 0x4e6   : > { %v9546_v58 = vadd.f32 %v13489_v37, %v16463_v56  ;;  %v13491_v22 = vadd.f32 %v13362_v63, %v16886_v14  ;;  %v9081_v57 = vpop.f32.mrb[63].mxu0 }
 0x4e7   : > { %v9544_v61 = vadd.f32 %v13490_v41, %v16463_v56  ;;  %v13492_v40 = vadd.f32 %v9081_v57, %v16887_v54 }
 0x4e8   : > { %v9674_v50 = vmax.f32 %v9546_v58, 0.0  ;;  %v9547_v3 = vadd.f32 %v13491_v22, %v16463_v56 }
 0x4e9   : > { %v9672_v24 = vmax.f32 %v9544_v61, 0.0  ;;  %v9545_v0 = vadd.f32 %v13492_v40, %v16463_v56 }
 0x4ea   : > { %v9770_v23 = vmax.f32 %v9670_v27, %v9674_v50  ;;  %v9675_v49 = vmax.f32 %v9547_v3, 0.0  ;;  %v12845_v2 = vpop.f32.mrb[64].mxu1 }
 0x4eb   : > { %v9768_v8 = vmax.f32 %v9668_v48, %v9672_v24  ;;  %v9673_v42 = vmax.f32 %v9545_v0, 0.0  ;;  %v13365_v59 = vpop.f32.mrb[64].mxu0  ;;  %v4845_v35 = vpop.f32.mrb[65].mxu1 }
 0x4ec   : > { %v11638_v9 = vpack.c.bf16 %v9770_v23, %v9770_v23  ;;  %v9771_v4 = vmax.f32 %v9671_v11, %v9675_v49  ;;  %v13493_v20 = vadd.f32 %v13365_v59, %v12845_v2  ;;  %v9094_v60 = vpop.f32.mrb[65].mxu0  ;;  %v12846_v46 = vpop.f32.mrb[66].mxu1 }
 0x4ed   : > { %v11636_v47 = vpack.c.bf16 %v9768_v8, %v9768_v8  ;;  %v9769_v26 = vmax.f32 %v9669_v16, %v9673_v42  ;;  %v13494_v12 = vadd.f32 %v9094_v60, %v4845_v35  ;;  %v13366_v21 = vpop.f32.mrb[66].mxu0  ;;  %v4848_v30 = vpop.f32.mrb[67].mxu1 }
 0x4ee   : > { %10091 = vst.msk [vmem:[%s16506_s17 + $0x78] sm:$0xf] %vm10060_vm2, %v11638_v9  ;;  %v11639_v55 = vpack.c.bf16 %v9771_v4, %v9771_v4  ;;  %v13495_v45 = vadd.f32 %v13366_v21, %v12846_v46  ;;  %v9097_v36 = vpop.f32.mrb[67].mxu0  ;;  %v9550_v53 = vadd.f32 %v13493_v20, %v16463_v56 }
 0x4ef   : > { %10089 = vst.msk [vmem:[%s16506_s17 + $0x70] sm:$0xf] %vm10060_vm2, %v11636_v47  ;;  %v11637_v28 = vpack.c.bf16 %v9769_v26, %v9769_v26  ;;  %v13496_v18 = vadd.f32 %v9097_v36, %v4848_v30  ;;  %v9548_v34 = vadd.f32 %v13494_v12, %v16463_v56 }
 0x4f0   : > { %10092 = vst.msk [vmem:[%s16506_s17 + $0x7c] sm:$0xf] %vm10060_vm2, %v11639_v55  ;;  %v9551_v19 = vadd.f32 %v13495_v45, %v16463_v56  ;;  %v9678_v37 = vmax.f32 %v9550_v53, 0.0 }
 0x4f1   : > { %10090 = vst.msk [vmem:[%s16506_s17 + $0x74] sm:$0xf] %vm10060_vm2, %v11637_v28  ;;  %v9549_v1 = vadd.f32 %v13496_v18, %v16463_v56  ;;  %v9676_v44 = vmax.f32 %v9548_v34, 0.0 }
 0x4f2   : > { %v12849_v62 = vpop.f32.mrb[68].mxu1  ;;  %v9679_v43 = vmax.f32 %v9551_v19, 0.0 }
 0x4f3   : > { %v13369_v7 = vpop.f32.mrb[68].mxu0  ;;  %v4861_v25 = vpop.f32.mrb[69].mxu1  ;;  %v9677_v57 = vmax.f32 %v9549_v1, 0.0 }
 0x4f4   : > { %v13497_v13 = vadd.f32 %v13369_v7, %v12849_v62  ;;  %v9110_v17 = vpop.f32.mrb[69].mxu0  ;;  %v12850_v32 = vpop.f32.mrb[70].mxu1 }
 0x4f5   : > { %v13498_v29 = vadd.f32 %v9110_v17, %v4861_v25  ;;  %v13370_v33 = vpop.f32.mrb[70].mxu0  ;;  %v4864_v15 = vpop.f32.mrb[71].mxu1 }
 0x4f6   : > { %v9554_v39 = vadd.f32 %v13497_v13, %v16463_v56  ;;  %v13499_v38 = vadd.f32 %v13370_v33, %v12850_v32  ;;  %v9113_v51 = vpop.f32.mrb[71].mxu0 }
 0x4f7   : > { %v9552_v52 = vadd.f32 %v13498_v29, %v16463_v56  ;;  %v13500_v6 = vadd.f32 %v9113_v51, %v4864_v15 }
 0x4f8   : > { %v9682_v5 = vmax.f32 %v9554_v39, 0.0  ;;  %v9555_v10 = vadd.f32 %v13499_v38, %v16463_v56 }
 0x4f9   : > { %v9680_v41 = vmax.f32 %v9552_v52, 0.0  ;;  %v9553_v63 = vadd.f32 %v13500_v6, %v16463_v56 }
 0x4fa   : > { %v9774_v58 = vmax.f32 %v9678_v37, %v9682_v5  ;;  %v9683_v14 = vmax.f32 %v9555_v10, 0.0  ;;  %v12853_v22 = vpop.f32.mrb[72].mxu1 }
 0x4fb   : > { %v9772_v31 = vmax.f32 %v9676_v44, %v9680_v41  ;;  %v9681_v61 = vmax.f32 %v9553_v63, 0.0  ;;  %v13373_v54 = vpop.f32.mrb[72].mxu0  ;;  %v4877_v40 = vpop.f32.mrb[73].mxu1 }
 0x4fc   : > { %v11642_v27 = vpack.c.bf16 %v9774_v58, %v9774_v58  ;;  %v9775_v50 = vmax.f32 %v9679_v43, %v9683_v14  ;;  %v13501_v3 = vadd.f32 %v13373_v54, %v12853_v22  ;;  %v9126_v48 = vpop.f32.mrb[73].mxu0  ;;  %v12854_v24 = vpop.f32.mrb[74].mxu1 }
 0x4fd   : > { %v11640_v0 = vpack.c.bf16 %v9772_v31, %v9772_v31  ;;  %v9773_v11 = vmax.f32 %v9677_v57, %v9681_v61  ;;  %v13502_v23 = vadd.f32 %v9126_v48, %v4877_v40  ;;  %v13374_v49 = vpop.f32.mrb[74].mxu0  ;;  %v4880_v2 = vpop.f32.mrb[75].mxu1 }
 0x4fe   : > { %10095 = vst.msk [vmem:[%s16506_s17 + $0x88] sm:$0xf] %vm10060_vm2, %v11642_v27  ;;  %v11643_v16 = vpack.c.bf16 %v9775_v50, %v9775_v50  ;;  %v13503_v8 = vadd.f32 %v13374_v49, %v12854_v24  ;;  %v9129_v42 = vpop.f32.mrb[75].mxu0  ;;  %v9558_v60 = vadd.f32 %v13501_v3, %v16463_v56  ;;  %v16741_v3 = vld [vmem:[%s16844_s2] ss:$0 sm:$0xff] }
 0x4ff   : > { %10093 = vst.msk [vmem:[%s16506_s17 + $0x80] sm:$0xf] %vm10060_vm2, %v11640_v0  ;;  %v11641_v59 = vpack.c.bf16 %v9773_v11, %v9773_v11  ;;  %v13504_v35 = vadd.f32 %v9129_v42, %v4880_v2  ;;  %v9556_v12 = vadd.f32 %v13502_v23, %v16463_v56 }
 0x500   : > { %10096 = vst.msk [vmem:[%s16506_s17 + $0x8c] sm:$0xf] %vm10060_vm2, %v11643_v16  ;;  %v9559_v45 = vadd.f32 %v13503_v8, %v16463_v56  ;;  %v9686_v53 = vmax.f32 %v9558_v60, 0.0 }
 0x501   : > { %10094 = vst.msk [vmem:[%s16506_s17 + $0x84] sm:$0xf] %vm10060_vm2, %v11641_v59  ;;  %v9557_v62 = vadd.f32 %v13504_v35, %v16463_v56  ;;  %v9684_v32 = vmax.f32 %v9556_v12, 0.0 }
 0x502   : > { %v12857_v9 = vpop.f32.mrb[76].mxu1  ;;  %v9687_v33 = vmax.f32 %v9559_v45, 0.0 }
 0x503   : > { %v13377_v4 = vpop.f32.mrb[76].mxu0  ;;  %v4893_v20 = vpop.f32.mrb[77].mxu1  ;;  %v9685_v38 = vmax.f32 %v9557_v62, 0.0 }
 0x504   : > { %v13505_v46 = vadd.f32 %v13377_v4, %v12857_v9  ;;  %v9142_v47 = vpop.f32.mrb[77].mxu0  ;;  %v12858_v26 = vpop.f32.mrb[78].mxu1 }
 0x505   : > { %v13506_v21 = vadd.f32 %v9142_v47, %v4893_v20  ;;  %v13378_v30 = vpop.f32.mrb[78].mxu0  ;;  %v4896_v55 = vpop.f32.mrb[79].mxu1 }
 0x506   : > { %v9562_v36 = vadd.f32 %v13505_v46, %v16463_v56  ;;  %v13507_v28 = vadd.f32 %v13378_v30, %v12858_v26  ;;  %v9145_v18 = vpop.f32.mrb[79].mxu0 }
 0x507   : > { %v9560_v7 = vadd.f32 %v13506_v21, %v16463_v56  ;;  %v13508_v25 = vadd.f32 %v9145_v18, %v4896_v55 }
 0x508   : > { %v9690_v13 = vmax.f32 %v9562_v36, 0.0  ;;  %v9563_v17 = vadd.f32 %v13507_v28, %v16463_v56 }
 0x509   : > { %v9688_v34 = vmax.f32 %v9560_v7, 0.0  ;;  %v9561_v29 = vadd.f32 %v13508_v25, %v16463_v56 }
 0x50a   : > { %v9778_v15 = vmax.f32 %v9686_v53, %v9690_v13  ;;  %v9691_v19 = vmax.f32 %v9563_v17, 0.0  ;;  %v12861_v39 = vpop.f32.mrb[80].mxu1 }
 0x50b   : > { %v9776_v51 = vmax.f32 %v9684_v32, %v9688_v34  ;;  %v9689_v1 = vmax.f32 %v9561_v29, 0.0  ;;  %v13381_v52 = vpop.f32.mrb[80].mxu0  ;;  %v4909_v6 = vpop.f32.mrb[81].mxu1 }
 0x50c   : > { %v11646_v37 = vpack.c.bf16 %v9778_v15, %v9778_v15  ;;  %v9779_v5 = vmax.f32 %v9687_v33, %v9691_v19  ;;  %v13509_v10 = vadd.f32 %v13381_v52, %v12861_v39  ;;  %v9158_v44 = vpop.f32.mrb[81].mxu0  ;;  %v12862_v41 = vpop.f32.mrb[82].mxu1 }
 0x50d   : > { %v11644_v63 = vpack.c.bf16 %v9776_v51, %v9776_v51  ;;  %v9777_v56 = vmax.f32 %v9685_v38, %v9689_v1  ;;  %v13510_v43 = vadd.f32 %v9158_v44, %v4909_v6  ;;  %v13382_v58 = vpop.f32.mrb[82].mxu0  ;;  %v4912_v14 = vpop.f32.mrb[83].mxu1 }
 0x50e   : > { %10099 = vst.msk [vmem:[%s16506_s17 + $0x98] sm:$0xf] %vm10060_vm2, %v11646_v37  ;;  %v11647_v22 = vpack.c.bf16 %v9779_v5, %v9779_v5  ;;  %v13511_v57 = vadd.f32 %v13382_v58, %v12862_v41  ;;  %v9161_v31 = vpop.f32.mrb[83].mxu0  ;;  %v9566_v48 = vadd.f32 %v16741_v3, %v13509_v10 }
 0x50f   : > { %10097 = vst.msk [vmem:[%s16506_s17 + $0x90] sm:$0xf] %vm10060_vm2, %v11644_v63  ;;  %v11645_v61 = vpack.c.bf16 %v9777_v56, %v9777_v56  ;;  %v13512_v54 = vadd.f32 %v9161_v31, %v4912_v14  ;;  %v9564_v23 = vadd.f32 %v16741_v3, %v13510_v43 }
 0x510   : > { %10100 = vst.msk [vmem:[%s16506_s17 + $0x9c] sm:$0xf] %vm10060_vm2, %v11647_v22  ;;  %v9567_v8 = vadd.f32 %v16741_v3, %v13511_v57  ;;  %v9694_v60 = vmax.f32 %v9566_v48, 0.0 }
 0x511   : > { %10098 = vst.msk [vmem:[%s16506_s17 + $0x94] sm:$0xf] %vm10060_vm2, %v11645_v61  ;;  %v9565_v9 = vadd.f32 %v16741_v3, %v13512_v54  ;;  %v9692_v26 = vmax.f32 %v9564_v23, 0.0 }
 0x512   : > { %v12865_v40 = vpop.f32.mrb[84].mxu1  ;;  %v9695_v30 = vmax.f32 %v9567_v8, 0.0 }
 0x513   : > { %v13385_v27 = vpop.f32.mrb[84].mxu0  ;;  %v4925_v50 = vpop.f32.mrb[85].mxu1  ;;  %v9693_v28 = vmax.f32 %v9565_v9, 0.0 }
 0x514   : > { %v13513_v24 = vadd.f32 %v13385_v27, %v12865_v40  ;;  %v9174_v0 = vpop.f32.mrb[85].mxu0  ;;  %v12866_v11 = vpop.f32.mrb[86].mxu1 }
 0x515   : > { %v13514_v49 = vadd.f32 %v9174_v0, %v4925_v50  ;;  %v13386_v2 = vpop.f32.mrb[86].mxu0  ;;  %v4928_v16 = vpop.f32.mrb[87].mxu1 }
 0x516   : > { %v9570_v42 = vadd.f32 %v16741_v3, %v13513_v24  ;;  %v13515_v59 = vadd.f32 %v13386_v2, %v12866_v11  ;;  %v9177_v35 = vpop.f32.mrb[87].mxu0 }
 0x517   : > { %v9568_v4 = vadd.f32 %v16741_v3, %v13514_v49  ;;  %v13516_v20 = vadd.f32 %v9177_v35, %v4928_v16 }
 0x518   : > { %v9698_v46 = vmax.f32 %v9570_v42, 0.0  ;;  %v9571_v47 = vadd.f32 %v16741_v3, %v13515_v59 }
 0x519   : > { %v9696_v12 = vmax.f32 %v9568_v4, 0.0  ;;  %v9569_v21 = vadd.f32 %v16741_v3, %v13516_v20 }
 0x51a   : > { %v9782_v55 = vmax.f32 %v9694_v60, %v9698_v46  ;;  %v9699_v45 = vmax.f32 %v9571_v47, 0.0  ;;  %v12869_v36 = vpop.f32.mrb[88].mxu1 }
 0x51b   : > { %v9780_v18 = vmax.f32 %v9692_v26, %v9696_v12  ;;  %v9697_v62 = vmax.f32 %v9569_v21, 0.0  ;;  %v13389_v7 = vpop.f32.mrb[88].mxu0  ;;  %v4941_v25 = vpop.f32.mrb[89].mxu1 }
 0x51c   : > { %v11650_v53 = vpack.c.bf16 %v9782_v55, %v9782_v55  ;;  %v9783_v13 = vmax.f32 %v9695_v30, %v9699_v45  ;;  %v13517_v17 = vadd.f32 %v13389_v7, %v12869_v36  ;;  %v9190_v32 = vpop.f32.mrb[89].mxu0  ;;  %v12870_v34 = vpop.f32.mrb[90].mxu1 }
 0x51d   : > { %v11648_v29 = vpack.c.bf16 %v9780_v18, %v9780_v18  ;;  %v9781_v33 = vmax.f32 %v9693_v28, %v9697_v62  ;;  %v13518_v15 = vadd.f32 %v9190_v32, %v4941_v25  ;;  %v13390_v19 = vpop.f32.mrb[90].mxu0  ;;  %v4944_v39 = vpop.f32.mrb[91].mxu1 }
 0x51e   : > { %10103 = vst.msk [vmem:[%s16506_s17 + $0xa8] sm:$0xf] %vm10060_vm2, %v11650_v53  ;;  %v11651_v38 = vpack.c.bf16 %v9783_v13, %v9783_v13  ;;  %v13519_v51 = vadd.f32 %v13390_v19, %v12870_v34  ;;  %v9193_v1 = vpop.f32.mrb[91].mxu0  ;;  %v9574_v44 = vadd.f32 %v16741_v3, %v13517_v17 }
 0x51f   : > { %10101 = vst.msk [vmem:[%s16506_s17 + $0xa0] sm:$0xf] %vm10060_vm2, %v11648_v29  ;;  %v11649_v52 = vpack.c.bf16 %v9781_v33, %v9781_v33  ;;  %v13520_v6 = vadd.f32 %v9193_v1, %v4944_v39  ;;  %v9572_v43 = vadd.f32 %v16741_v3, %v13518_v15 }
 0x520   : > { %10104 = vst.msk [vmem:[%s16506_s17 + $0xac] sm:$0xf] %vm10060_vm2, %v11651_v38  ;;  %v9575_v57 = vadd.f32 %v16741_v3, %v13519_v51  ;;  %v9702_v48 = vmax.f32 %v9574_v44, 0.0 }
 0x521   : > { %10102 = vst.msk [vmem:[%s16506_s17 + $0xa4] sm:$0xf] %vm10060_vm2, %v11649_v52  ;;  %v9573_v40 = vadd.f32 %v16741_v3, %v13520_v6  ;;  %v9700_v11 = vmax.f32 %v9572_v43, 0.0 }
 0x522   : > { %v12873_v37 = vpop.f32.mrb[92].mxu1  ;;  %v9703_v2 = vmax.f32 %v9575_v57, 0.0 }
 0x523   : > { %v13393_v5 = vpop.f32.mrb[92].mxu0  ;;  %v4957_v10 = vpop.f32.mrb[93].mxu1  ;;  %v9701_v59 = vmax.f32 %v9573_v40, 0.0 }
 0x524   : > { %v13521_v41 = vadd.f32 %v13393_v5, %v12873_v37  ;;  %v9206_v63 = vpop.f32.mrb[93].mxu0  ;;  %v12874_v56 = vpop.f32.mrb[94].mxu1 }
 0x525   : > { %v13522_v58 = vadd.f32 %v9206_v63, %v4957_v10  ;;  %v13394_v14 = vpop.f32.mrb[94].mxu0  ;;  %v4960_v22 = vpop.f32.mrb[95].mxu1 }
 0x526   : > { %v9578_v31 = vadd.f32 %v16741_v3, %v13521_v41  ;;  %v13523_v61 = vadd.f32 %v13394_v14, %v12874_v56  ;;  %v9209_v54 = vpop.f32.mrb[95].mxu0 }
 0x527   : > { %v9576_v27 = vadd.f32 %v16741_v3, %v13522_v58  ;;  %v13524_v50 = vadd.f32 %v9209_v54, %v4960_v22 }
 0x528   : > { %v9706_v24 = vmax.f32 %v9578_v31, 0.0  ;;  %v9579_v0 = vadd.f32 %v16741_v3, %v13523_v61 }
 0x529   : > { %v9704_v23 = vmax.f32 %v9576_v27, 0.0  ;;  %v9577_v49 = vadd.f32 %v16741_v3, %v13524_v50 }
 0x52a   : > { %v9786_v16 = vmax.f32 %v9702_v48, %v9706_v24  ;;  %v9707_v8 = vmax.f32 %v9579_v0, 0.0  ;;  %v12877_v42 = vpop.f32.mrb[96].mxu1 }
 0x52b   : > { %v9784_v35 = vmax.f32 %v9700_v11, %v9704_v23  ;;  %v9705_v9 = vmax.f32 %v9577_v49, 0.0  ;;  %v13397_v4 = vpop.f32.mrb[96].mxu0  ;;  %v4973_v20 = vpop.f32.mrb[97].mxu1 }
 0x52c   : > { %v11654_v60 = vpack.c.bf16 %v9786_v16, %v9786_v16  ;;  %v9787_v46 = vmax.f32 %v9703_v2, %v9707_v8  ;;  %v13525_v47 = vadd.f32 %v13397_v4, %v12877_v42  ;;  %v9222_v26 = vpop.f32.mrb[97].mxu0  ;;  %v12878_v12 = vpop.f32.mrb[98].mxu1 }
 0x52d   : > { %v11652_v21 = vpack.c.bf16 %v9784_v35, %v9784_v35  ;;  %v9785_v30 = vmax.f32 %v9701_v59, %v9705_v9  ;;  %v13526_v55 = vadd.f32 %v9222_v26, %v4973_v20  ;;  %v13398_v45 = vpop.f32.mrb[98].mxu0  ;;  %v4976_v36 = vpop.f32.mrb[99].mxu1 }
 0x52e   : > { %10107 = vst.msk [vmem:[%s16506_s17 + $0xb8] sm:$0xf] %vm10060_vm2, %v11654_v60  ;;  %v11655_v28 = vpack.c.bf16 %v9787_v46, %v9787_v46  ;;  %v13527_v18 = vadd.f32 %v13398_v45, %v12878_v12  ;;  %v9225_v62 = vpop.f32.mrb[99].mxu0  ;;  %v9582_v32 = vadd.f32 %v16741_v3, %v13525_v47 }
 0x52f   : > { %10105 = vst.msk [vmem:[%s16506_s17 + $0xb0] sm:$0xf] %vm10060_vm2, %v11652_v21  ;;  %v11653_v7 = vpack.c.bf16 %v9785_v30, %v9785_v30  ;;  %v13528_v25 = vadd.f32 %v9225_v62, %v4976_v36  ;;  %v9580_v15 = vadd.f32 %v16741_v3, %v13526_v55 }
 0x530   : > { %10108 = vst.msk [vmem:[%s16506_s17 + $0xbc] sm:$0xf] %vm10060_vm2, %v11655_v28  ;;  %v9583_v51 = vadd.f32 %v16741_v3, %v13527_v18  ;;  %v9710_v44 = vmax.f32 %v9582_v32, 0.0 }
 0x531   : > { %10106 = vst.msk [vmem:[%s16506_s17 + $0xb4] sm:$0xf] %vm10060_vm2, %v11653_v7  ;;  %v9581_v37 = vadd.f32 %v16741_v3, %v13528_v25  ;;  %v9708_v56 = vmax.f32 %v9580_v15, 0.0 }
 0x532   : > { %v12881_v53 = vpop.f32.mrb[100].mxu1  ;;  %v9711_v14 = vmax.f32 %v9583_v51, 0.0 }
 0x533   : > { %v13401_v13 = vpop.f32.mrb[100].mxu0  ;;  %v4989_v17 = vpop.f32.mrb[101].mxu1  ;;  %v9709_v61 = vmax.f32 %v9581_v37, 0.0 }
 0x534   : > { %v13529_v34 = vadd.f32 %v13401_v13, %v12881_v53  ;;  %v9238_v29 = vpop.f32.mrb[101].mxu0  ;;  %v12882_v33 = vpop.f32.mrb[102].mxu1 }
 0x535   : > { %v13530_v19 = vadd.f32 %v9238_v29, %v4989_v17  ;;  %v13402_v39 = vpop.f32.mrb[102].mxu0  ;;  %v4992_v38 = vpop.f32.mrb[103].mxu1 }
 0x536   : > { %v9586_v1 = vadd.f32 %v16741_v3, %v13529_v34  ;;  %v13531_v52 = vadd.f32 %v13402_v39, %v12882_v33  ;;  %v9241_v6 = vpop.f32.mrb[103].mxu0 }
 0x537   : > { %v9584_v5 = vadd.f32 %v16741_v3, %v13530_v19  ;;  %v13532_v10 = vadd.f32 %v9241_v6, %v4992_v38 }
 0x538   : > { %v9714_v41 = vmax.f32 %v9586_v1, 0.0  ;;  %v9587_v63 = vadd.f32 %v16741_v3, %v13531_v52 }
 0x539   : > { %v9712_v43 = vmax.f32 %v9584_v5, 0.0  ;;  %v9585_v58 = vadd.f32 %v16741_v3, %v13532_v10 }
 0x53a   : > { %v9790_v22 = vmax.f32 %v9710_v44, %v9714_v41  ;;  %v9715_v57 = vmax.f32 %v9587_v63, 0.0  ;;  %v12885_v31 = vpop.f32.mrb[104].mxu1 }
 0x53b   : > { %v9788_v54 = vmax.f32 %v9708_v56, %v9712_v43  ;;  %v9713_v40 = vmax.f32 %v9585_v58, 0.0  ;;  %v13405_v27 = vpop.f32.mrb[104].mxu0  ;;  %v5005_v50 = vpop.f32.mrb[105].mxu1 }
 0x53c   : > { %v11658_v48 = vpack.c.bf16 %v9790_v22, %v9790_v22  ;;  %v9791_v24 = vmax.f32 %v9711_v14, %v9715_v57  ;;  %v13533_v0 = vadd.f32 %v13405_v27, %v12885_v31  ;;  %v9254_v11 = vpop.f32.mrb[105].mxu0  ;;  %v12886_v23 = vpop.f32.mrb[106].mxu1 }
 0x53d   : > { %v11656_v49 = vpack.c.bf16 %v9788_v54, %v9788_v54  ;;  %v9789_v2 = vmax.f32 %v9709_v61, %v9713_v40  ;;  %v13534_v16 = vadd.f32 %v9254_v11, %v5005_v50  ;;  %v13406_v8 = vpop.f32.mrb[106].mxu0  ;;  %v5008_v42 = vpop.f32.mrb[107].mxu1 }
 0x53e   : > { %10111 = vst.msk [vmem:[%s16506_s17 + $0xc8] sm:$0xf] %vm10060_vm2, %v11658_v48  ;;  %v11659_v59 = vpack.c.bf16 %v9791_v24, %v9791_v24  ;;  %v13535_v35 = vadd.f32 %v13406_v8, %v12886_v23  ;;  %v9257_v9 = vpop.f32.mrb[107].mxu0  ;;  %v9590_v26 = vadd.f32 %v16741_v3, %v13533_v0 }
 0x53f   : > { %10109 = vst.msk [vmem:[%s16506_s17 + $0xc0] sm:$0xf] %vm10060_vm2, %v11656_v49  ;;  %v11657_v4 = vpack.c.bf16 %v9789_v2, %v9789_v2  ;;  %v13536_v20 = vadd.f32 %v9257_v9, %v5008_v42  ;;  %v9588_v55 = vadd.f32 %v16741_v3, %v13534_v16 }
 0x540   : > { %10112 = vst.msk [vmem:[%s16506_s17 + $0xcc] sm:$0xf] %vm10060_vm2, %v11659_v59  ;;  %v9591_v18 = vadd.f32 %v16741_v3, %v13535_v35  ;;  %v9718_v32 = vmax.f32 %v9590_v26, 0.0 }
 0x541   : > { %10110 = vst.msk [vmem:[%s16506_s17 + $0xc4] sm:$0xf] %vm10060_vm2, %v11657_v4  ;;  %v9589_v53 = vadd.f32 %v16741_v3, %v13536_v20  ;;  %v9716_v33 = vmax.f32 %v9588_v55, 0.0 }
 0x542   : > { %v12889_v60 = vpop.f32.mrb[108].mxu1  ;;  %v9719_v39 = vmax.f32 %v9591_v18, 0.0 }
 0x543   : > { %v13409_v46 = vpop.f32.mrb[108].mxu0  ;;  %v5021_v47 = vpop.f32.mrb[109].mxu1  ;;  %v9717_v52 = vmax.f32 %v9589_v53, 0.0 }
 0x544   : > { %v13537_v12 = vadd.f32 %v13409_v46, %v12889_v60  ;;  %v9270_v21 = vpop.f32.mrb[109].mxu0  ;;  %v12890_v30 = vpop.f32.mrb[110].mxu1 }
 0x545   : > { %v13538_v45 = vadd.f32 %v9270_v21, %v5021_v47  ;;  %v13410_v36 = vpop.f32.mrb[110].mxu0  ;;  %v5024_v28 = vpop.f32.mrb[111].mxu1 }
 0x546   : > { %v9594_v62 = vadd.f32 %v16741_v3, %v13537_v12  ;;  %v13539_v7 = vadd.f32 %v13410_v36, %v12890_v30  ;;  %v9273_v25 = vpop.f32.mrb[111].mxu0 }
 0x547   : > { %v9592_v13 = vadd.f32 %v16741_v3, %v13538_v45  ;;  %v13540_v17 = vadd.f32 %v9273_v25, %v5024_v28 }
 0x548   : > { %v9722_v34 = vmax.f32 %v9594_v62, 0.0  ;;  %v9595_v29 = vadd.f32 %v16741_v3, %v13539_v7 }
 0x549   : > { %v9720_v15 = vmax.f32 %v9592_v13, 0.0  ;;  %v9593_v19 = vadd.f32 %v16741_v3, %v13540_v17 }
 0x54a   : > { %v9794_v38 = vmax.f32 %v9718_v32, %v9722_v34  ;;  %v9723_v51 = vmax.f32 %v9595_v29, 0.0  ;;  %v12893_v1 = vpop.f32.mrb[112].mxu1 }
 0x54b   : > { %v9792_v6 = vmax.f32 %v9716_v33, %v9720_v15  ;;  %v9721_v37 = vmax.f32 %v9593_v19, 0.0  ;;  %v13413_v5 = vpop.f32.mrb[112].mxu0  ;;  %v5037_v10 = vpop.f32.mrb[113].mxu1 }
 0x54c   : > { %v11662_v44 = vpack.c.bf16 %v9794_v38, %v9794_v38  ;;  %v9795_v41 = vmax.f32 %v9719_v39, %v9723_v51  ;;  %v13541_v63 = vadd.f32 %v13413_v5, %v12893_v1  ;;  %v9286_v56 = vpop.f32.mrb[113].mxu0  ;;  %v12894_v43 = vpop.f32.mrb[114].mxu1 }
 0x54d   : > { %v11660_v58 = vpack.c.bf16 %v9792_v6, %v9792_v6  ;;  %v9793_v14 = vmax.f32 %v9717_v52, %v9721_v37  ;;  %v13542_v22 = vadd.f32 %v9286_v56, %v5037_v10  ;;  %v13414_v57 = vpop.f32.mrb[114].mxu0  ;;  %v5040_v31 = vpop.f32.mrb[115].mxu1 }
 0x54e   : > { %10115 = vst.msk [vmem:[%s16506_s17 + $0xd8] sm:$0xf] %vm10060_vm2, %v11662_v44  ;;  %v11663_v61 = vpack.c.bf16 %v9795_v41, %v9795_v41  ;;  %v13543_v54 = vadd.f32 %v13414_v57, %v12894_v43  ;;  %v9289_v40 = vpop.f32.mrb[115].mxu0  ;;  %v9598_v11 = vadd.f32 %v16741_v3, %v13541_v63 }
 0x54f   : > { %10113 = vst.msk [vmem:[%s16506_s17 + $0xd0] sm:$0xf] %vm10060_vm2, %v11660_v58  ;;  %v11661_v27 = vpack.c.bf16 %v9793_v14, %v9793_v14  ;;  %v13544_v50 = vadd.f32 %v9289_v40, %v5040_v31  ;;  %v9596_v16 = vadd.f32 %v16741_v3, %v13542_v22 }
 0x550   : > { %10116 = vst.msk [vmem:[%s16506_s17 + $0xdc] sm:$0xf] %vm10060_vm2, %v11663_v61  ;;  %v9599_v35 = vadd.f32 %v16741_v3, %v13543_v54  ;;  %v9726_v26 = vmax.f32 %v9598_v11, 0.0 }
 0x551   : > { %10114 = vst.msk [vmem:[%s16506_s17 + $0xd4] sm:$0xf] %vm10060_vm2, %v11661_v27  ;;  %v9597_v60 = vadd.f32 %v16741_v3, %v13544_v50  ;;  %v9724_v30 = vmax.f32 %v9596_v16, 0.0 }
 0x552   : > { %v12897_v48 = vpop.f32.mrb[116].mxu1  ;;  %v9727_v36 = vmax.f32 %v9599_v35, 0.0 }
 0x553   : > { %v13417_v24 = vpop.f32.mrb[116].mxu0  ;;  %v5053_v0 = vpop.f32.mrb[117].mxu1  ;;  %v9725_v7 = vmax.f32 %v9597_v60, 0.0 }
 0x554   : > { %v13545_v23 = vadd.f32 %v13417_v24, %v12897_v48  ;;  %v9302_v49 = vpop.f32.mrb[117].mxu0  ;;  %v12898_v2 = vpop.f32.mrb[118].mxu1 }
 0x555   : > { %v13546_v8 = vadd.f32 %v9302_v49, %v5053_v0  ;;  %v13418_v42 = vpop.f32.mrb[118].mxu0  ;;  %v5056_v59 = vpop.f32.mrb[119].mxu1 }
 0x556   : > { %v9602_v9 = vadd.f32 %v16741_v3, %v13545_v23  ;;  %v13547_v4 = vadd.f32 %v13418_v42, %v12898_v2  ;;  %v9305_v20 = vpop.f32.mrb[119].mxu0 }
 0x557   : > { %v9600_v46 = vadd.f32 %v16741_v3, %v13546_v8  ;;  %v13548_v47 = vadd.f32 %v9305_v20, %v5056_v59 }
 0x558   : > { %v9730_v12 = vmax.f32 %v9602_v9, 0.0  ;;  %v9603_v21 = vadd.f32 %v16741_v3, %v13547_v4 }
 0x559   : > { %v9728_v55 = vmax.f32 %v9600_v46, 0.0  ;;  %v9601_v45 = vadd.f32 %v16741_v3, %v13548_v47 }
 0x55a   : > { %v9798_v28 = vmax.f32 %v9726_v26, %v9730_v12  ;;  %v9731_v18 = vmax.f32 %v9603_v21, 0.0  ;;  %v12901_v62 = vpop.f32.mrb[120].mxu1 }
 0x55b   : > { %v9796_v25 = vmax.f32 %v9724_v30, %v9728_v55  ;;  %v9729_v53 = vmax.f32 %v9601_v45, 0.0  ;;  %v13421_v13 = vpop.f32.mrb[120].mxu0  ;;  %v5069_v17 = vpop.f32.mrb[121].mxu1 }
 0x55c   : > { %v11666_v32 = vpack.c.bf16 %v9798_v28, %v9798_v28  ;;  %v9799_v34 = vmax.f32 %v9727_v36, %v9731_v18  ;;  %v13549_v29 = vadd.f32 %v13421_v13, %v12901_v62  ;;  %v9318_v33 = vpop.f32.mrb[121].mxu0  ;;  %v12902_v15 = vpop.f32.mrb[122].mxu1 }
 0x55d   : > { %v11664_v19 = vpack.c.bf16 %v9796_v25, %v9796_v25  ;;  %v9797_v39 = vmax.f32 %v9725_v7, %v9729_v53  ;;  %v13550_v38 = vadd.f32 %v9318_v33, %v5069_v17  ;;  %v13422_v51 = vpop.f32.mrb[122].mxu0  ;;  %v5072_v1 = vpop.f32.mrb[123].mxu1 }
 0x55e   : > { %10119 = vst.msk [vmem:[%s16506_s17 + $0xe8] sm:$0xf] %vm10060_vm2, %v11666_v32  ;;  %v11667_v52 = vpack.c.bf16 %v9799_v34, %v9799_v34  ;;  %v13551_v6 = vadd.f32 %v13422_v51, %v12902_v15  ;;  %v9321_v37 = vpop.f32.mrb[123].mxu0  ;;  %v9606_v56 = vadd.f32 %v16741_v3, %v13549_v29 }
 0x55f   : > { %10117 = vst.msk [vmem:[%s16506_s17 + $0xe0] sm:$0xf] %vm10060_vm2, %v11664_v19  ;;  %v11665_v5 = vpack.c.bf16 %v9797_v39, %v9797_v39  ;;  %v13552_v10 = vadd.f32 %v9321_v37, %v5072_v1  ;;  %v9604_v22 = vadd.f32 %v16741_v3, %v13550_v38 }
 0x560   : > { %10120 = vst.msk [vmem:[%s16506_s17 + $0xec] sm:$0xf] %vm10060_vm2, %v11667_v52  ;;  %v9607_v54 = vadd.f32 %v16741_v3, %v13551_v6  ;;  %v9734_v11 = vmax.f32 %v9606_v56, 0.0 }
 0x561   : > { %10118 = vst.msk [vmem:[%s16506_s17 + $0xe4] sm:$0xf] %vm10060_vm2, %v11665_v5  ;;  %v9605_v48 = vadd.f32 %v16741_v3, %v13552_v10  ;;  %v9732_v2 = vmax.f32 %v9604_v22, 0.0 }
 0x562   : > { %v12905_v44 = vpop.f32.mrb[124].mxu1  ;;  %v9735_v42 = vmax.f32 %v9607_v54, 0.0 }
 0x563   : > { %v13425_v41 = vpop.f32.mrb[124].mxu0  ;;  %v5085_v63 = vpop.f32.mrb[125].mxu1  ;;  %v9733_v9 = vmax.f32 %v9605_v48, 0.0 }
 0x564   : > { %v13553_v43 = vadd.f32 %v13425_v41, %v12905_v44  ;;  %v9334_v58 = vpop.f32.mrb[125].mxu0  ;;  %v12906_v14 = vpop.f32.mrb[126].mxu1 }
 0x565   : > { %v13554_v57 = vadd.f32 %v9334_v58, %v5085_v63  ;;  %v13426_v31 = vpop.f32.mrb[126].mxu0  ;;  %v5088_v61 = vpop.f32.mrb[127].mxu1 }
 0x566   : > { %v9610_v40 = vadd.f32 %v16741_v3, %v13553_v43  ;;  %v13555_v27 = vadd.f32 %v13426_v31, %v12906_v14  ;;  %v9337_v50 = vpop.f32.mrb[127].mxu0 }
 0x567   : > { %v9608_v24 = vadd.f32 %v16741_v3, %v13554_v57  ;;  %v13556_v0 = vadd.f32 %v9337_v50, %v5088_v61 }
 0x568   : > { %v9738_v23 = vmax.f32 %v9610_v40, 0.0  ;;  %v9611_v49 = vadd.f32 %v16741_v3, %v13555_v27 }
 0x569   : > { %v9736_v16 = vmax.f32 %v9608_v24, 0.0  ;;  %v9609_v8 = vadd.f32 %v16741_v3, %v13556_v0 }
 0x56a   : > { %v9802_v59 = vmax.f32 %v9734_v11, %v9738_v23  ;;  %v9739_v35 = vmax.f32 %v9611_v49, 0.0 }
 0x56b   : > { %v9800_v4 = vmax.f32 %v9732_v2, %v9736_v16  ;;  %v9737_v20 = vmax.f32 %v9609_v8, 0.0 }
 0x56c   : > { %v11670_v60 = vpack.c.bf16 %v9802_v59, %v9802_v59  ;;  %v9803_v46 = vmax.f32 %v9735_v42, %v9739_v35 }
 0x56d   : > { %v11668_v47 = vpack.c.bf16 %v9800_v4, %v9800_v4  ;;  %v9801_v26 = vmax.f32 %v9733_v9, %v9737_v20 }
 0x56e   : > { %10123 = vst.msk [vmem:[%s16506_s17 + $0xf8] sm:$0xf] %vm10060_vm2, %v11670_v60  ;;  %v11671_v12 = vpack.c.bf16 %v9803_v46, %v9803_v46 }
 0x56f   : > { %10121 = vst.msk [vmem:[%s16506_s17 + $0xf0] sm:$0xf] %vm10060_vm2, %v11668_v47  ;;  %v11669_v21 = vpack.c.bf16 %v9801_v26, %v9801_v26 }
 0x570   : > { %10124 = vst.msk [vmem:[%s16506_s17 + $0xfc] sm:$0xf] %vm10060_vm2, %v11671_v12 }
 0x571   : > { %10122 = vst.msk [vmem:[%s16506_s17 + $0xf4] sm:$0xf] %vm10060_vm2, %v11669_v21 }
 0x572 PF: > { %s13_s12 = sadd.s32 1, %s14480_s12  }
 0x573   : > { %p10_p4 = scmp.ge.s32.totalorder %s13_s12, 4  }
 0x575   :  { %12 = sbr.rel (!%p10_p4) target bundleno = 1 (0x1), region = 72 }

</bundles_post_ra>
